<compile_context>
chip_gen: v5e
topology: v5e:2x2
jax: 0.10.0
libtpu: 0.0.40
codegen_flags: <defaults>
</compile_context>

<pallas_src>
import functools

import numpy as np
import jax
import jax.numpy as jnp
from jax import lax
from jax.experimental import pallas as pl
from jax.experimental.pallas import tpu as pltpu

NEG_INF = -1.0e30
VALID_MIN = -1.0e29  # anything above this is a real (unmasked) similarity


def _ap_within_pair_kernel(anc_ref, pos_ref, posT_ref, rid_ref, cid_ref,
                           qp_ref, tri_ref, ap_ref, *, knn):
    tm = anc_ref.shape[0]

    anc = anc_ref[...]                                            # (TM, D) f32
    # Similarity of this bucket's anchors vs this bucket's positives (bf16 MXU, f32 acc).
    sim = jnp.dot(anc.astype(jnp.bfloat16), posT_ref[...],
                  preferred_element_type=jnp.float32)             # (TM, TM) f32

    # Positive similarity: direct per-row dot in f32 (replaces masked diagonal reduce).
    sim_pos = jnp.sum(anc * pos_ref[...], axis=-1, keepdims=True)  # (TM, 1)

    # Negatives = same crop, excluding self.  Columns of this tile are the same packed rows,
    # so "self" is simply the local diagonal.  Padded rows (id -1) and padded columns (id -2)
    # never match anything, so they stay fully masked.
    rid = rid_ref[...]                                            # (TM, 1) int32
    cid = cid_ref[...]                                            # (1, TM) int32
    r_loc = lax.broadcasted_iota(jnp.int32, (tm, 1), 0)
    c_loc = lax.broadcasted_iota(jnp.int32, (1, tm), 1)
    keep = jnp.logical_and(rid == cid, r_loc != c_loc)
    work = jnp.where(keep, sim, NEG_INF)                          # (TM, TM)

    # r2d2 APLoss quantizer (fixed 1x1-conv weights); rows of qp are w1, b1, w2, b2.
    qp = qp_ref[...]                                              # (4, nq)
    w1, b1, w2, b2 = qp[0:1, :], qp[1:2, :], qp[2:3, :], qp[3:4, :]

    def quant(x):                                                 # (TM, 1) -> (TM, nq)
        return jnp.maximum(jnp.minimum(x * w1 + b1, x * w2 + b2), 0.0)

    rec = quant(sim_pos)       # label == 1 only at the positive sample
    nbs = rec                  # running sum of quantized samples

    # Iterative top-k fused with the quantizer accumulation.  Reference padding semantics:
    # once a row runs out of eligible negatives, repeat the last extracted value.  All
    # exact-float ties are masked in one step (differs from torch.sort only on exact ties).
    # Real rows always have >= 1 negative, so the `last` fallback at t == 0 (value 0.0) only
    # fires for padded rows, which are dropped afterwards (also keeps NEG_INF out of the
    # quantizer for those rows).
    last = jnp.zeros_like(sim_pos)
    for _ in range(knn):
        cur = jnp.max(work, axis=-1, keepdims=True)               # (TM, 1)
        val = jnp.where(cur > VALID_MIN, cur, last)
        last = val
        work = jnp.where(work == cur, NEG_INF, work)
        nbs = nbs + quant(val)

    # Cumulative sums along the quantization axis via a constant upper-triangular matmul.
    tri = tri_ref[...]                                            # (nq, nq): tri[j,k]=1 iff j<=k
    c_rec = jnp.dot(rec, tri, preferred_element_type=jnp.float32)
    c_nbs = jnp.dot(nbs, tri, preferred_element_type=jnp.float32)

    prec = c_rec / (1e-16 + c_nbs)
    rec_sum = jnp.sum(rec, axis=-1, keepdims=True)                # no eps (matches torch)
    ap_ref[...] = jnp.sum(prec * rec, axis=-1, keepdims=True) / rec_sum


def _quantizer_params(nq, min_val, max_val):
    # Deterministic, fixed Conv1d(1, 2*nq, k=1) weights exactly as r2d2 APLoss.__init__.
    a = (nq - 1) / float(max_val - min_val)
    w1 = np.full((nq,), -a, np.float32)
    b1 = (a * min_val + np.arange(nq, 0, -1)).astype(np.float32)
    w2 = np.full((nq,), a, np.float32)
    b2 = (np.arange(2 - nq, 2, 1) - a * min_val).astype(np.float32)
    w1[0] = 0.0
    b1[0] = 1.0
    w2[-1] = 0.0
    b2[-1] = 1.0
    return w1, b1, w2, b2


def ap_criterion_within_pair(anc_feat, pos_feat, kpts_crop_ids,
                             knn=20, nq=20, min_val=0.0, max_val=1.0, tm=128):
    """Returns ((1 - ap).mean(), ap.mean()) like APCriterionWithinPair.forward."""
    counts = [int(c) for c in kpts_crop_ids]
    d = anc_feat.shape[1]

    # 1) Drop crops with a single keypoint (no within-crop negatives), as the module does.
    kept, n = [], 0                      # (start row in original arrays, count)
    for c in counts:
        if c > 1:
            kept.append((n, c))
        n += c
    assert kept, "APCriterionWithinPair needs at least one crop with > 1 keypoint"
    kept_counts = [c for _, c in kept]
    b = sum(kept_counts)
    assert b > 0

    # 2) Row-tile size: multiple of 128 lanes, and every kept crop must fit inside one tile so
    #    all of a row's within-crop negatives live in the SAME tile (crop locality).
    tm = -(-max(tm, max(kept_counts)) // 128) * 128

    # 3) First-fit bin packing of kept crops into buckets of tm rows.  Per-row AP is
    #    permutation invariant, so reordering crops does not change the returned means.
    buckets, fill = [], []
    for ci, c in enumerate(kept_counts):
        for bi, f in enumerate(fill):
            if f + c <= tm:
                buckets[bi].append(ci)
                fill[bi] += c
                break
        else:
            buckets.append([ci])
            fill.append(c)
    n_tiles = len(buckets)
    b_pad = n_tiles * tm

    # 4) Packed gather indices + crop ids (pad rows -1 / pad cols -2 -> never matched).
    zero_row = anc_feat.shape[0]          # index of an appended all-zero feature row
    src_idx, rid_list, cid_list = [], [], []
    for bi in range(n_tiles):
        for ci in buckets[bi]:
            start, c = kept[ci]
            src_idx.extend(range(start, start + c))
            rid_list.extend([ci] * c)
            cid_list.extend([ci] * c)
        pad = tm - fill[bi]
        src_idx.extend([zero_row] * pad)
        rid_list.extend([-1] * pad)
        cid_list.extend([-2] * pad)
    src_idx = jnp.asarray(np.asarray(src_idx, np.int32))
    rid = jnp.asarray(np.asarray(rid_list, np.int32).reshape(b_pad, 1))
    cid = jnp.asarray(np.asarray(cid_list, np.int32).reshape(1, b_pad))
    valid_idx = jnp.asarray(np.nonzero(np.asarray(rid_list, np.int32) >= 0)[0].astype(np.int32))

    zeros = jnp.zeros((1, d), anc_feat.dtype)
    anc_p = jnp.take(jnp.concatenate([anc_feat, zeros], axis=0), src_idx, axis=0)
    pos_p = jnp.take(jnp.concatenate([pos_feat, zeros], axis=0), src_idx, axis=0)

    anc_f32 = anc_p.astype(jnp.float32)
    pos_f32 = pos_p.astype(jnp.float32)
    # RHS of the similarity matmul: bf16, pre-transposed to (D, N) so each grid step's
    # (D, TM) block feeds the MXU directly.
    posT_bf = jnp.transpose(pos_p).astype(jnp.bfloat16)

    w1, b1, w2, b2 = _quantizer_params(nq, min_val, max_val)
    qp = jnp.asarray(np.stack([w1, b1, w2, b2], axis=0))              # (4, nq)
    tri = jnp.asarray(np.triu(np.ones((nq, nq), np.float32)))         # tri[j,k]=1 iff j<=k

    ap = pl.pallas_call(
        functools.partial(_ap_within_pair_kernel, knn=knn),
        out_shape=jax.ShapeDtypeStruct((b_pad, 1), jnp.float32),
        grid=(n_tiles,),
        in_specs=[
            pl.BlockSpec((tm, d), lambda i: (i, 0)),      # anchors (f32 row tile)
            pl.BlockSpec((tm, d), lambda i: (i, 0)),      # positives (f32 row tile, for sim_pos)
            pl.BlockSpec((d, tm), lambda i: (0, i)),      # pos^T column window == this tile (bf16)
            pl.BlockSpec((tm, 1), lambda i: (i, 0)),      # row crop ids
            pl.BlockSpec((1, tm), lambda i: (0, i)),      # col crop ids
            pl.BlockSpec((4, nq), lambda i: (0, 0)),      # quantizer w1/b1/w2/b2 (one operand)
            pl.BlockSpec((nq, nq), lambda i: (0, 0)),     # upper-triangular cumsum matrix
        ],
        out_specs=pl.BlockSpec((tm, 1), lambda i: (i, 0)),
        compiler_params=pltpu.CompilerParams(dimension_semantics=("parallel",)),
    )(anc_f32, pos_f32, posT_bf, rid, cid, qp, tri)

    ap_valid = jnp.take(ap[:, 0], valid_idx)              # drop padded rows
    return (1.0 - ap_valid).mean(), ap_valid.mean()


def _reference(anc, pos, counts, knn, nq, min_val, max_val):
    # NumPy (float64) replica of the PyTorch APCriterionWithinPair forward, for verification.
    anc = np.asarray(anc, np.float64)
    pos = np.asarray(pos, np.float64)
    anc_l, pos_l, neg_counts = [], [], []
    n = 0
    for c in counts:
        if c > 1:
            anc_l.append(anc[n:n + c])
            pos_l.append(pos[n:n + c])
            neg_counts.append(c - 1)
        n += c
    anc_f = np.concatenate(anc_l)
    pos_f = np.concatenate(pos_l)
    b = anc_f.shape[0]
    sim = anc_f @ pos_f.T
    sim_pos = np.diag(sim)[:, None]
    sim_neg_all = sim[~np.eye(b, dtype=bool)].reshape(b, b - 1)
    sim_neg = []
    r = c0 = 0
    for kn in neg_counts:
        kp = kn + 1
        blk = np.sort(sim_neg_all[r:r + kp, c0:c0 + kn], axis=1)[:, ::-1]   # descending
        r += kp
        c0 += kp
        if kn < knn:
            blk = np.concatenate([blk, np.repeat(blk[:, -1:], knn - kn, axis=1)], axis=1)
        else:
            blk = blk[:, :knn]
        sim_neg.append(blk)
    x = np.concatenate([sim_pos, np.concatenate(sim_neg, axis=0)], axis=1)   # (b, knn+1)
    w1, b1, w2, b2 = _quantizer_params(nq, min_val, max_val)
    q1 = x[:, None, :] * w1[None, :, None] + b1[None, :, None]
    q2 = x[:, None, :] * w2[None, :, None] + b2[None, :, None]
    q = np.clip(np.minimum(q1, q2), 0.0, None)              # (b, nq, knn+1)
    nbs = q.sum(-1)
    rec = q[:, :, 0]                                         # label == 1 only at column 0
    prec = np.cumsum(rec, -1) / (1e-16 + np.cumsum(nbs, -1))
    rec_n = rec / rec.sum(-1, keepdims=True)
    ap = (prec * rec_n).sum(-1)
    return float((1.0 - ap).mean()), float(ap.mean())


if __name__ == "__main__":
    knn, nq = 20, 20                 # module defaults
    d = 32                           # descriptor dimension
    # The crop of 1 is dropped by the filter; the crop of 5 (4 negatives) exercises the
    # "< knn negatives -> pad with smallest" path; 165 kept rows pack into 2 buckets of 128
    # rows -> 2 grid steps (both TensorCores usable on v7x).
    counts = [40, 1, 5, 37, 50, 33]
    total = sum(counts)

    key = jax.random.PRNGKey(0)
    ka, kp = jax.random.split(key)
    anc = jax.random.normal(ka, (total, d), jnp.float32)
    pos = anc + 0.2 * jax.random.normal(kp, (total, d), jnp.float32)
    # L2-normalize so similarities behave like cosine similarities (APLoss range [0, 1]).
    anc = anc / jnp.linalg.norm(anc, axis=-1, keepdims=True)
    pos = pos / jnp.linalg.norm(pos, axis=-1, keepdims=True)

    loss, ap_mean = ap_criterion_within_pair(anc, pos, counts, knn=knn, nq=nq)
    loss, ap_mean = jax.block_until_ready((loss, ap_mean))

    ref_loss, ref_ap = _reference(np.asarray(anc), np.asarray(pos), counts, knn, nq, 0.0, 1.0)
    # bf16 MXU negatives (positives are f32) -> small (few e-4) deviation on the means;
    # 5e-3 still catches logic bugs.
    np.testing.assert_allclose(np.asarray(loss), ref_loss, rtol=0, atol=5e-3)
    np.testing.assert_allclose(np.asarray(ap_mean), ref_ap, rtol=0, atol=5e-3)
    assert np.isfinite(np.asarray(loss)) and np.isfinite(np.asarray(ap_mean))

    print("KERNEL_OK")
</pallas_src>

<mosaic_0001>
module attributes {stable_mosaic.version = 11 : i64} {
  func.func @_ap_within_pair_kernel(%arg0: i32, %arg1: memref<128x32xf32, #tpu.memory_space<vmem>>, %arg2: memref<128x32xf32, #tpu.memory_space<vmem>>, %arg3: memref<32x128xbf16, #tpu.memory_space<vmem>>, %arg4: memref<128x1xi32, #tpu.memory_space<vmem>>, %arg5: memref<1x128xi32, #tpu.memory_space<vmem>>, %arg6: memref<4x20xf32, #tpu.memory_space<vmem>>, %arg7: memref<20x20xf32, #tpu.memory_space<vmem>>, %arg8: memref<128x1xf32, #tpu.memory_space<vmem>>) attributes {dimension_semantics = [#tpu.dimension_semantics<parallel>], iteration_bounds = array<i64: 2>, scalar_prefetch = 0 : i64, scratch_operands = 0 : i64, tpu.core_type = #tpu.core_type<tc>, window_params = [{transform_indices = @transform_0, window_bounds = array<i64: 128, 32>}, {transform_indices = @transform_1, window_bounds = array<i64: 128, 32>}, {transform_indices = @transform_2, window_bounds = array<i64: 32, 128>}, {transform_indices = @transform_3, window_bounds = array<i64: 128, 1>}, {transform_indices = @transform_4, window_bounds = array<i64: 1, 128>}, {pipeline_mode = #tpu.pipeline_mode<synchronous>, transform_indices = @transform_5, window_bounds = array<i64: 4, 20>}, {pipeline_mode = #tpu.pipeline_mode<synchronous>, transform_indices = @transform_6, window_bounds = array<i64: 20, 20>}, {transform_indices = @transform_7, window_bounds = array<i64: 128, 1>}]} {
    %c0 = arith.constant 0 : index
    %c0_0 = arith.constant 0 : index
    %0 = vector.load %arg1[%c0, %c0_0] : memref<128x32xf32, #tpu.memory_space<vmem>>, vector<128x32xf32>
    %1 = arith.truncf %0 : vector<128x32xf32> to vector<128x32xbf16>
    %c0_1 = arith.constant 0 : index
    %c0_2 = arith.constant 0 : index
    %2 = vector.load %arg3[%c0_1, %c0_2] : memref<32x128xbf16, #tpu.memory_space<vmem>>, vector<32x128xbf16>
    %cst = arith.constant dense<0.000000e+00> : vector<128x128xf32>
    %3 = tpu.matmul %1, %2, %cst {dimension_numbers = #tpu.dot_dimension_numbers<[1], [0], [0], [1], [0, 0, 1, 1], [], []>} : vector<128x32xbf16>, vector<32x128xbf16>, vector<128x128xf32> -> vector<128x128xf32>
    %c0_3 = arith.constant 0 : index
    %c0_4 = arith.constant 0 : index
    %4 = vector.load %arg2[%c0_3, %c0_4] : memref<128x32xf32, #tpu.memory_space<vmem>>, vector<128x32xf32>
    %5 = arith.mulf %0, %4 : vector<128x32xf32>
    %cst_5 = arith.constant dense<0.000000e+00> : vector<128xf32>
    %6 = vector.multi_reduction <add>, %5, %cst_5 [1] : vector<128x32xf32> to vector<128xf32>
    %7 = vector.shape_cast %6 : vector<128xf32> to vector<128x1xf32>
    %c0_6 = arith.constant 0 : index
    %c0_7 = arith.constant 0 : index
    %8 = vector.load %arg4[%c0_6, %c0_7] : memref<128x1xi32, #tpu.memory_space<vmem>>, vector<128x1xi32>
    %c0_8 = arith.constant 0 : index
    %c0_9 = arith.constant 0 : index
    %9 = vector.load %arg5[%c0_8, %c0_9] : memref<1x128xi32, #tpu.memory_space<vmem>>, vector<1x128xi32>
    %10 = tpu.iota {dimensions = array<i32: 0>} : vector<128x1xi32>
    %11 = tpu.iota {dimensions = array<i32: 1>} : vector<1x128xi32>
    %12 = vector.broadcast %8 : vector<128x1xi32> to vector<128x128xi32>
    %13 = vector.broadcast %9 : vector<1x128xi32> to vector<128x128xi32>
    %14 = arith.cmpi eq, %12, %13 : vector<128x128xi32>
    %15 = vector.broadcast %10 : vector<128x1xi32> to vector<128x128xi32>
    %16 = vector.broadcast %11 : vector<1x128xi32> to vector<128x128xi32>
    %17 = arith.cmpi ne, %15, %16 : vector<128x128xi32>
    %18 = arith.andi %14, %17 : vector<128x128xi1>
    %cst_10 = arith.constant -1.000000e+30 : f32
    %19 = vector.broadcast %cst_10 : f32 to vector<128x128xf32>
    %20 = arith.select %18, %3, %19 : vector<128x128xi1>, vector<128x128xf32>
    %c0_11 = arith.constant 0 : index
    %c0_12 = arith.constant 0 : index
    %21 = vector.load %arg6[%c0_11, %c0_12] : memref<4x20xf32, #tpu.memory_space<vmem>>, vector<4x20xf32>
    %22 = vector.extract_strided_slice %21 {offsets = [0, 0], sizes = [1, 20], strides = [1, 1]} : vector<4x20xf32> to vector<1x20xf32>
    %23 = vector.extract_strided_slice %21 {offsets = [1, 0], sizes = [1, 20], strides = [1, 1]} : vector<4x20xf32> to vector<1x20xf32>
    %24 = vector.extract_strided_slice %21 {offsets = [2, 0], sizes = [1, 20], strides = [1, 1]} : vector<4x20xf32> to vector<1x20xf32>
    %25 = vector.extract_strided_slice %21 {offsets = [3, 0], sizes = [1, 20], strides = [1, 1]} : vector<4x20xf32> to vector<1x20xf32>
    %26 = vector.broadcast %7 : vector<128x1xf32> to vector<128x20xf32>
    %27 = vector.broadcast %22 : vector<1x20xf32> to vector<128x20xf32>
    %28 = arith.mulf %26, %27 : vector<128x20xf32>
    %29 = vector.broadcast %23 : vector<1x20xf32> to vector<128x20xf32>
    %30 = arith.addf %28, %29 : vector<128x20xf32>
    %31 = vector.broadcast %7 : vector<128x1xf32> to vector<128x20xf32>
    %32 = vector.broadcast %24 : vector<1x20xf32> to vector<128x20xf32>
    %33 = arith.mulf %31, %32 : vector<128x20xf32>
    %34 = vector.broadcast %25 : vector<1x20xf32> to vector<128x20xf32>
    %35 = arith.addf %33, %34 : vector<128x20xf32>
    %36 = arith.minimumf %30, %35 : vector<128x20xf32>
    %cst_13 = arith.constant 0.000000e+00 : f32
    %37 = vector.broadcast %cst_13 : f32 to vector<128x20xf32>
    %38 = arith.maximumf %36, %37 : vector<128x20xf32>
    %cst_14 = arith.constant 0.000000e+00 : f32
    %39 = vector.broadcast %cst_14 : f32 to vector<128x1xf32>
    %cst_15 = arith.constant dense<0xFF800000> : vector<128xf32>
    %40 = vector.multi_reduction <maximumf>, %20, %cst_15 [1] : vector<128x128xf32> to vector<128xf32>
    %41 = vector.shape_cast %40 : vector<128xf32> to vector<128x1xf32>
    %cst_16 = arith.constant -1.000000e+29 : f32
    %42 = vector.broadcast %cst_16 : f32 to vector<128x1xf32>
    %43 = arith.cmpf ogt, %41, %42 : vector<128x1xf32>
    %44 = arith.select %43, %41, %39 : vector<128x1xi1>, vector<128x1xf32>
    %45 = vector.broadcast %41 : vector<128x1xf32> to vector<128x128xf32>
    %46 = arith.cmpf oeq, %20, %45 : vector<128x128xf32>
    %cst_17 = arith.constant -1.000000e+30 : f32
    %47 = vector.broadcast %cst_17 : f32 to vector<128x128xf32>
    %48 = arith.select %46, %47, %20 : vector<128x128xi1>, vector<128x128xf32>
    %49 = vector.broadcast %44 : vector<128x1xf32> to vector<128x20xf32>
    %50 = vector.broadcast %22 : vector<1x20xf32> to vector<128x20xf32>
    %51 = arith.mulf %49, %50 : vector<128x20xf32>
    %52 = vector.broadcast %23 : vector<1x20xf32> to vector<128x20xf32>
    %53 = arith.addf %51, %52 : vector<128x20xf32>
    %54 = vector.broadcast %44 : vector<128x1xf32> to vector<128x20xf32>
    %55 = vector.broadcast %24 : vector<1x20xf32> to vector<128x20xf32>
    %56 = arith.mulf %54, %55 : vector<128x20xf32>
    %57 = vector.broadcast %25 : vector<1x20xf32> to vector<128x20xf32>
    %58 = arith.addf %56, %57 : vector<128x20xf32>
    %59 = arith.minimumf %53, %58 : vector<128x20xf32>
    %cst_18 = arith.constant 0.000000e+00 : f32
    %60 = vector.broadcast %cst_18 : f32 to vector<128x20xf32>
    %61 = arith.maximumf %59, %60 : vector<128x20xf32>
    %62 = arith.addf %38, %61 : vector<128x20xf32>
    %cst_19 = arith.constant dense<0xFF800000> : vector<128xf32>
    %63 = vector.multi_reduction <maximumf>, %48, %cst_19 [1] : vector<128x128xf32> to vector<128xf32>
    %64 = vector.shape_cast %63 : vector<128xf32> to vector<128x1xf32>
    %cst_20 = arith.constant -1.000000e+29 : f32
    %65 = vector.broadcast %cst_20 : f32 to vector<128x1xf32>
    %66 = arith.cmpf ogt, %64, %65 : vector<128x1xf32>
    %67 = arith.select %66, %64, %44 : vector<128x1xi1>, vector<128x1xf32>
    %68 = vector.broadcast %64 : vector<128x1xf32> to vector<128x128xf32>
    %69 = arith.cmpf oeq, %48, %68 : vector<128x128xf32>
    %cst_21 = arith.constant -1.000000e+30 : f32
    %70 = vector.broadcast %cst_21 : f32 to vector<128x128xf32>
    %71 = arith.select %69, %70, %48 : vector<128x128xi1>, vector<128x128xf32>
    %72 = vector.broadcast %67 : vector<128x1xf32> to vector<128x20xf32>
    %73 = vector.broadcast %22 : vector<1x20xf32> to vector<128x20xf32>
    %74 = arith.mulf %72, %73 : vector<128x20xf32>
    %75 = vector.broadcast %23 : vector<1x20xf32> to vector<128x20xf32>
    %76 = arith.addf %74, %75 : vector<128x20xf32>
    %77 = vector.broadcast %67 : vector<128x1xf32> to vector<128x20xf32>
    %78 = vector.broadcast %24 : vector<1x20xf32> to vector<128x20xf32>
    %79 = arith.mulf %77, %78 : vector<128x20xf32>
    %80 = vector.broadcast %25 : vector<1x20xf32> to vector<128x20xf32>
    %81 = arith.addf %79, %80 : vector<128x20xf32>
    %82 = arith.minimumf %76, %81 : vector<128x20xf32>
    %cst_22 = arith.constant 0.000000e+00 : f32
    %83 = vector.broadcast %cst_22 : f32 to vector<128x20xf32>
    %84 = arith.maximumf %82, %83 : vector<128x20xf32>
    %85 = arith.addf %62, %84 : vector<128x20xf32>
    %cst_23 = arith.constant dense<0xFF800000> : vector<128xf32>
    %86 = vector.multi_reduction <maximumf>, %71, %cst_23 [1] : vector<128x128xf32> to vector<128xf32>
    %87 = vector.shape_cast %86 : vector<128xf32> to vector<128x1xf32>
    %cst_24 = arith.constant -1.000000e+29 : f32
    %88 = vector.broadcast %cst_24 : f32 to vector<128x1xf32>
    %89 = arith.cmpf ogt, %87, %88 : vector<128x1xf32>
    %90 = arith.select %89, %87, %67 : vector<128x1xi1>, vector<128x1xf32>
    %91 = vector.broadcast %87 : vector<128x1xf32> to vector<128x128xf32>
    %92 = arith.cmpf oeq, %71, %91 : vector<128x128xf32>
    %cst_25 = arith.constant -1.000000e+30 : f32
    %93 = vector.broadcast %cst_25 : f32 to vector<128x128xf32>
    %94 = arith.select %92, %93, %71 : vector<128x128xi1>, vector<128x128xf32>
    %95 = vector.broadcast %90 : vector<128x1xf32> to vector<128x20xf32>
    %96 = vector.broadcast %22 : vector<1x20xf32> to vector<128x20xf32>
    %97 = arith.mulf %95, %96 : vector<128x20xf32>
    %98 = vector.broadcast %23 : vector<1x20xf32> to vector<128x20xf32>
    %99 = arith.addf %97, %98 : vector<128x20xf32>
    %100 = vector.broadcast %90 : vector<128x1xf32> to vector<128x20xf32>
    %101 = vector.broadcast %24 : vector<1x20xf32> to vector<128x20xf32>
    %102 = arith.mulf %100, %101 : vector<128x20xf32>
    %103 = vector.broadcast %25 : vector<1x20xf32> to vector<128x20xf32>
    %104 = arith.addf %102, %103 : vector<128x20xf32>
    %105 = arith.minimumf %99, %104 : vector<128x20xf32>
    %cst_26 = arith.constant 0.000000e+00 : f32
    %106 = vector.broadcast %cst_26 : f32 to vector<128x20xf32>
    %107 = arith.maximumf %105, %106 : vector<128x20xf32>
    %108 = arith.addf %85, %107 : vector<128x20xf32>
    %cst_27 = arith.constant dense<0xFF800000> : vector<128xf32>
    %109 = vector.multi_reduction <maximumf>, %94, %cst_27 [1] : vector<128x128xf32> to vector<128xf32>
    %110 = vector.shape_cast %109 : vector<128xf32> to vector<128x1xf32>
    %cst_28 = arith.constant -1.000000e+29 : f32
    %111 = vector.broadcast %cst_28 : f32 to vector<128x1xf32>
    %112 = arith.cmpf ogt, %110, %111 : vector<128x1xf32>
    %113 = arith.select %112, %110, %90 : vector<128x1xi1>, vector<128x1xf32>
    %114 = vector.broadcast %110 : vector<128x1xf32> to vector<128x128xf32>
    %115 = arith.cmpf oeq, %94, %114 : vector<128x128xf32>
    %cst_29 = arith.constant -1.000000e+30 : f32
    %116 = vector.broadcast %cst_29 : f32 to vector<128x128xf32>
    %117 = arith.select %115, %116, %94 : vector<128x128xi1>, vector<128x128xf32>
    %118 = vector.broadcast %113 : vector<128x1xf32> to vector<128x20xf32>
    %119 = vector.broadcast %22 : vector<1x20xf32> to vector<128x20xf32>
    %120 = arith.mulf %118, %119 : vector<128x20xf32>
    %121 = vector.broadcast %23 : vector<1x20xf32> to vector<128x20xf32>
    %122 = arith.addf %120, %121 : vector<128x20xf32>
    %123 = vector.broadcast %113 : vector<128x1xf32> to vector<128x20xf32>
    %124 = vector.broadcast %24 : vector<1x20xf32> to vector<128x20xf32>
    %125 = arith.mulf %123, %124 : vector<128x20xf32>
    %126 = vector.broadcast %25 : vector<1x20xf32> to vector<128x20xf32>
    %127 = arith.addf %125, %126 : vector<128x20xf32>
    %128 = arith.minimumf %122, %127 : vector<128x20xf32>
    %cst_30 = arith.constant 0.000000e+00 : f32
    %129 = vector.broadcast %cst_30 : f32 to vector<128x20xf32>
    %130 = arith.maximumf %128, %129 : vector<128x20xf32>
    %131 = arith.addf %108, %130 : vector<128x20xf32>
    %cst_31 = arith.constant dense<0xFF800000> : vector<128xf32>
    %132 = vector.multi_reduction <maximumf>, %117, %cst_31 [1] : vector<128x128xf32> to vector<128xf32>
    %133 = vector.shape_cast %132 : vector<128xf32> to vector<128x1xf32>
    %cst_32 = arith.constant -1.000000e+29 : f32
    %134 = vector.broadcast %cst_32 : f32 to vector<128x1xf32>
    %135 = arith.cmpf ogt, %133, %134 : vector<128x1xf32>
    %136 = arith.select %135, %133, %113 : vector<128x1xi1>, vector<128x1xf32>
    %137 = vector.broadcast %133 : vector<128x1xf32> to vector<128x128xf32>
    %138 = arith.cmpf oeq, %117, %137 : vector<128x128xf32>
    %cst_33 = arith.constant -1.000000e+30 : f32
    %139 = vector.broadcast %cst_33 : f32 to vector<128x128xf32>
    %140 = arith.select %138, %139, %117 : vector<128x128xi1>, vector<128x128xf32>
    %141 = vector.broadcast %136 : vector<128x1xf32> to vector<128x20xf32>
    %142 = vector.broadcast %22 : vector<1x20xf32> to vector<128x20xf32>
    %143 = arith.mulf %141, %142 : vector<128x20xf32>
    %144 = vector.broadcast %23 : vector<1x20xf32> to vector<128x20xf32>
    %145 = arith.addf %143, %144 : vector<128x20xf32>
    %146 = vector.broadcast %136 : vector<128x1xf32> to vector<128x20xf32>
    %147 = vector.broadcast %24 : vector<1x20xf32> to vector<128x20xf32>
    %148 = arith.mulf %146, %147 : vector<128x20xf32>
    %149 = vector.broadcast %25 : vector<1x20xf32> to vector<128x20xf32>
    %150 = arith.addf %148, %149 : vector<128x20xf32>
    %151 = arith.minimumf %145, %150 : vector<128x20xf32>
    %cst_34 = arith.constant 0.000000e+00 : f32
    %152 = vector.broadcast %cst_34 : f32 to vector<128x20xf32>
    %153 = arith.maximumf %151, %152 : vector<128x20xf32>
    %154 = arith.addf %131, %153 : vector<128x20xf32>
    %cst_35 = arith.constant dense<0xFF800000> : vector<128xf32>
    %155 = vector.multi_reduction <maximumf>, %140, %cst_35 [1] : vector<128x128xf32> to vector<128xf32>
    %156 = vector.shape_cast %155 : vector<128xf32> to vector<128x1xf32>
    %cst_36 = arith.constant -1.000000e+29 : f32
    %157 = vector.broadcast %cst_36 : f32 to vector<128x1xf32>
    %158 = arith.cmpf ogt, %156, %157 : vector<128x1xf32>
    %159 = arith.select %158, %156, %136 : vector<128x1xi1>, vector<128x1xf32>
    %160 = vector.broadcast %156 : vector<128x1xf32> to vector<128x128xf32>
    %161 = arith.cmpf oeq, %140, %160 : vector<128x128xf32>
    %cst_37 = arith.constant -1.000000e+30 : f32
    %162 = vector.broadcast %cst_37 : f32 to vector<128x128xf32>
    %163 = arith.select %161, %162, %140 : vector<128x128xi1>, vector<128x128xf32>
    %164 = vector.broadcast %159 : vector<128x1xf32> to vector<128x20xf32>
    %165 = vector.broadcast %22 : vector<1x20xf32> to vector<128x20xf32>
    %166 = arith.mulf %164, %165 : vector<128x20xf32>
    %167 = vector.broadcast %23 : vector<1x20xf32> to vector<128x20xf32>
    %168 = arith.addf %166, %167 : vector<128x20xf32>
    %169 = vector.broadcast %159 : vector<128x1xf32> to vector<128x20xf32>
    %170 = vector.broadcast %24 : vector<1x20xf32> to vector<128x20xf32>
    %171 = arith.mulf %169, %170 : vector<128x20xf32>
    %172 = vector.broadcast %25 : vector<1x20xf32> to vector<128x20xf32>
    %173 = arith.addf %171, %172 : vector<128x20xf32>
    %174 = arith.minimumf %168, %173 : vector<128x20xf32>
    %cst_38 = arith.constant 0.000000e+00 : f32
    %175 = vector.broadcast %cst_38 : f32 to vector<128x20xf32>
    %176 = arith.maximumf %174, %175 : vector<128x20xf32>
    %177 = arith.addf %154, %176 : vector<128x20xf32>
    %cst_39 = arith.constant dense<0xFF800000> : vector<128xf32>
    %178 = vector.multi_reduction <maximumf>, %163, %cst_39 [1] : vector<128x128xf32> to vector<128xf32>
    %179 = vector.shape_cast %178 : vector<128xf32> to vector<128x1xf32>
    %cst_40 = arith.constant -1.000000e+29 : f32
    %180 = vector.broadcast %cst_40 : f32 to vector<128x1xf32>
    %181 = arith.cmpf ogt, %179, %180 : vector<128x1xf32>
    %182 = arith.select %181, %179, %159 : vector<128x1xi1>, vector<128x1xf32>
    %183 = vector.broadcast %179 : vector<128x1xf32> to vector<128x128xf32>
    %184 = arith.cmpf oeq, %163, %183 : vector<128x128xf32>
    %cst_41 = arith.constant -1.000000e+30 : f32
    %185 = vector.broadcast %cst_41 : f32 to vector<128x128xf32>
    %186 = arith.select %184, %185, %163 : vector<128x128xi1>, vector<128x128xf32>
    %187 = vector.broadcast %182 : vector<128x1xf32> to vector<128x20xf32>
    %188 = vector.broadcast %22 : vector<1x20xf32> to vector<128x20xf32>
    %189 = arith.mulf %187, %188 : vector<128x20xf32>
    %190 = vector.broadcast %23 : vector<1x20xf32> to vector<128x20xf32>
    %191 = arith.addf %189, %190 : vector<128x20xf32>
    %192 = vector.broadcast %182 : vector<128x1xf32> to vector<128x20xf32>
    %193 = vector.broadcast %24 : vector<1x20xf32> to vector<128x20xf32>
    %194 = arith.mulf %192, %193 : vector<128x20xf32>
    %195 = vector.broadcast %25 : vector<1x20xf32> to vector<128x20xf32>
    %196 = arith.addf %194, %195 : vector<128x20xf32>
    %197 = arith.minimumf %191, %196 : vector<128x20xf32>
    %cst_42 = arith.constant 0.000000e+00 : f32
    %198 = vector.broadcast %cst_42 : f32 to vector<128x20xf32>
    %199 = arith.maximumf %197, %198 : vector<128x20xf32>
    %200 = arith.addf %177, %199 : vector<128x20xf32>
    %cst_43 = arith.constant dense<0xFF800000> : vector<128xf32>
    %201 = vector.multi_reduction <maximumf>, %186, %cst_43 [1] : vector<128x128xf32> to vector<128xf32>
    %202 = vector.shape_cast %201 : vector<128xf32> to vector<128x1xf32>
    %cst_44 = arith.constant -1.000000e+29 : f32
    %203 = vector.broadcast %cst_44 : f32 to vector<128x1xf32>
    %204 = arith.cmpf ogt, %202, %203 : vector<128x1xf32>
    %205 = arith.select %204, %202, %182 : vector<128x1xi1>, vector<128x1xf32>
    %206 = vector.broadcast %202 : vector<128x1xf32> to vector<128x128xf32>
    %207 = arith.cmpf oeq, %186, %206 : vector<128x128xf32>
    %cst_45 = arith.constant -1.000000e+30 : f32
    %208 = vector.broadcast %cst_45 : f32 to vector<128x128xf32>
    %209 = arith.select %207, %208, %186 : vector<128x128xi1>, vector<128x128xf32>
    %210 = vector.broadcast %205 : vector<128x1xf32> to vector<128x20xf32>
    %211 = vector.broadcast %22 : vector<1x20xf32> to vector<128x20xf32>
    %212 = arith.mulf %210, %211 : vector<128x20xf32>
    %213 = vector.broadcast %23 : vector<1x20xf32> to vector<128x20xf32>
    %214 = arith.addf %212, %213 : vector<128x20xf32>
    %215 = vector.broadcast %205 : vector<128x1xf32> to vector<128x20xf32>
    %216 = vector.broadcast %24 : vector<1x20xf32> to vector<128x20xf32>
    %217 = arith.mulf %215, %216 : vector<128x20xf32>
    %218 = vector.broadcast %25 : vector<1x20xf32> to vector<128x20xf32>
    %219 = arith.addf %217, %218 : vector<128x20xf32>
    %220 = arith.minimumf %214, %219 : vector<128x20xf32>
    %cst_46 = arith.constant 0.000000e+00 : f32
    %221 = vector.broadcast %cst_46 : f32 to vector<128x20xf32>
    %222 = arith.maximumf %220, %221 : vector<128x20xf32>
    %223 = arith.addf %200, %222 : vector<128x20xf32>
    %cst_47 = arith.constant dense<0xFF800000> : vector<128xf32>
    %224 = vector.multi_reduction <maximumf>, %209, %cst_47 [1] : vector<128x128xf32> to vector<128xf32>
    %225 = vector.shape_cast %224 : vector<128xf32> to vector<128x1xf32>
    %cst_48 = arith.constant -1.000000e+29 : f32
    %226 = vector.broadcast %cst_48 : f32 to vector<128x1xf32>
    %227 = arith.cmpf ogt, %225, %226 : vector<128x1xf32>
    %228 = arith.select %227, %225, %205 : vector<128x1xi1>, vector<128x1xf32>
    %229 = vector.broadcast %225 : vector<128x1xf32> to vector<128x128xf32>
    %230 = arith.cmpf oeq, %209, %229 : vector<128x128xf32>
    %cst_49 = arith.constant -1.000000e+30 : f32
    %231 = vector.broadcast %cst_49 : f32 to vector<128x128xf32>
    %232 = arith.select %230, %231, %209 : vector<128x128xi1>, vector<128x128xf32>
    %233 = vector.broadcast %228 : vector<128x1xf32> to vector<128x20xf32>
    %234 = vector.broadcast %22 : vector<1x20xf32> to vector<128x20xf32>
    %235 = arith.mulf %233, %234 : vector<128x20xf32>
    %236 = vector.broadcast %23 : vector<1x20xf32> to vector<128x20xf32>
    %237 = arith.addf %235, %236 : vector<128x20xf32>
    %238 = vector.broadcast %228 : vector<128x1xf32> to vector<128x20xf32>
    %239 = vector.broadcast %24 : vector<1x20xf32> to vector<128x20xf32>
    %240 = arith.mulf %238, %239 : vector<128x20xf32>
    %241 = vector.broadcast %25 : vector<1x20xf32> to vector<128x20xf32>
    %242 = arith.addf %240, %241 : vector<128x20xf32>
    %243 = arith.minimumf %237, %242 : vector<128x20xf32>
    %cst_50 = arith.constant 0.000000e+00 : f32
    %244 = vector.broadcast %cst_50 : f32 to vector<128x20xf32>
    %245 = arith.maximumf %243, %244 : vector<128x20xf32>
    %246 = arith.addf %223, %245 : vector<128x20xf32>
    %cst_51 = arith.constant dense<0xFF800000> : vector<128xf32>
    %247 = vector.multi_reduction <maximumf>, %232, %cst_51 [1] : vector<128x128xf32> to vector<128xf32>
    %248 = vector.shape_cast %247 : vector<128xf32> to vector<128x1xf32>
    %cst_52 = arith.constant -1.000000e+29 : f32
    %249 = vector.broadcast %cst_52 : f32 to vector<128x1xf32>
    %250 = arith.cmpf ogt, %248, %249 : vector<128x1xf32>
    %251 = arith.select %250, %248, %228 : vector<128x1xi1>, vector<128x1xf32>
    %252 = vector.broadcast %248 : vector<128x1xf32> to vector<128x128xf32>
    %253 = arith.cmpf oeq, %232, %252 : vector<128x128xf32>
    %cst_53 = arith.constant -1.000000e+30 : f32
    %254 = vector.broadcast %cst_53 : f32 to vector<128x128xf32>
    %255 = arith.select %253, %254, %232 : vector<128x128xi1>, vector<128x128xf32>
    %256 = vector.broadcast %251 : vector<128x1xf32> to vector<128x20xf32>
    %257 = vector.broadcast %22 : vector<1x20xf32> to vector<128x20xf32>
    %258 = arith.mulf %256, %257 : vector<128x20xf32>
    %259 = vector.broadcast %23 : vector<1x20xf32> to vector<128x20xf32>
    %260 = arith.addf %258, %259 : vector<128x20xf32>
    %261 = vector.broadcast %251 : vector<128x1xf32> to vector<128x20xf32>
    %262 = vector.broadcast %24 : vector<1x20xf32> to vector<128x20xf32>
    %263 = arith.mulf %261, %262 : vector<128x20xf32>
    %264 = vector.broadcast %25 : vector<1x20xf32> to vector<128x20xf32>
    %265 = arith.addf %263, %264 : vector<128x20xf32>
    %266 = arith.minimumf %260, %265 : vector<128x20xf32>
    %cst_54 = arith.constant 0.000000e+00 : f32
    %267 = vector.broadcast %cst_54 : f32 to vector<128x20xf32>
    %268 = arith.maximumf %266, %267 : vector<128x20xf32>
    %269 = arith.addf %246, %268 : vector<128x20xf32>
    %cst_55 = arith.constant dense<0xFF800000> : vector<128xf32>
    %270 = vector.multi_reduction <maximumf>, %255, %cst_55 [1] : vector<128x128xf32> to vector<128xf32>
    %271 = vector.shape_cast %270 : vector<128xf32> to vector<128x1xf32>
    %cst_56 = arith.constant -1.000000e+29 : f32
    %272 = vector.broadcast %cst_56 : f32 to vector<128x1xf32>
    %273 = arith.cmpf ogt, %271, %272 : vector<128x1xf32>
    %274 = arith.select %273, %271, %251 : vector<128x1xi1>, vector<128x1xf32>
    %275 = vector.broadcast %271 : vector<128x1xf32> to vector<128x128xf32>
    %276 = arith.cmpf oeq, %255, %275 : vector<128x128xf32>
    %cst_57 = arith.constant -1.000000e+30 : f32
    %277 = vector.broadcast %cst_57 : f32 to vector<128x128xf32>
    %278 = arith.select %276, %277, %255 : vector<128x128xi1>, vector<128x128xf32>
    %279 = vector.broadcast %274 : vector<128x1xf32> to vector<128x20xf32>
    %280 = vector.broadcast %22 : vector<1x20xf32> to vector<128x20xf32>
    %281 = arith.mulf %279, %280 : vector<128x20xf32>
    %282 = vector.broadcast %23 : vector<1x20xf32> to vector<128x20xf32>
    %283 = arith.addf %281, %282 : vector<128x20xf32>
    %284 = vector.broadcast %274 : vector<128x1xf32> to vector<128x20xf32>
    %285 = vector.broadcast %24 : vector<1x20xf32> to vector<128x20xf32>
    %286 = arith.mulf %284, %285 : vector<128x20xf32>
    %287 = vector.broadcast %25 : vector<1x20xf32> to vector<128x20xf32>
    %288 = arith.addf %286, %287 : vector<128x20xf32>
    %289 = arith.minimumf %283, %288 : vector<128x20xf32>
    %cst_58 = arith.constant 0.000000e+00 : f32
    %290 = vector.broadcast %cst_58 : f32 to vector<128x20xf32>
    %291 = arith.maximumf %289, %290 : vector<128x20xf32>
    %292 = arith.addf %269, %291 : vector<128x20xf32>
    %cst_59 = arith.constant dense<0xFF800000> : vector<128xf32>
    %293 = vector.multi_reduction <maximumf>, %278, %cst_59 [1] : vector<128x128xf32> to vector<128xf32>
    %294 = vector.shape_cast %293 : vector<128xf32> to vector<128x1xf32>
    %cst_60 = arith.constant -1.000000e+29 : f32
    %295 = vector.broadcast %cst_60 : f32 to vector<128x1xf32>
    %296 = arith.cmpf ogt, %294, %295 : vector<128x1xf32>
    %297 = arith.select %296, %294, %274 : vector<128x1xi1>, vector<128x1xf32>
    %298 = vector.broadcast %294 : vector<128x1xf32> to vector<128x128xf32>
    %299 = arith.cmpf oeq, %278, %298 : vector<128x128xf32>
    %cst_61 = arith.constant -1.000000e+30 : f32
    %300 = vector.broadcast %cst_61 : f32 to vector<128x128xf32>
    %301 = arith.select %299, %300, %278 : vector<128x128xi1>, vector<128x128xf32>
    %302 = vector.broadcast %297 : vector<128x1xf32> to vector<128x20xf32>
    %303 = vector.broadcast %22 : vector<1x20xf32> to vector<128x20xf32>
    %304 = arith.mulf %302, %303 : vector<128x20xf32>
    %305 = vector.broadcast %23 : vector<1x20xf32> to vector<128x20xf32>
    %306 = arith.addf %304, %305 : vector<128x20xf32>
    %307 = vector.broadcast %297 : vector<128x1xf32> to vector<128x20xf32>
    %308 = vector.broadcast %24 : vector<1x20xf32> to vector<128x20xf32>
    %309 = arith.mulf %307, %308 : vector<128x20xf32>
    %310 = vector.broadcast %25 : vector<1x20xf32> to vector<128x20xf32>
    %311 = arith.addf %309, %310 : vector<128x20xf32>
    %312 = arith.minimumf %306, %311 : vector<128x20xf32>
    %cst_62 = arith.constant 0.000000e+00 : f32
    %313 = vector.broadcast %cst_62 : f32 to vector<128x20xf32>
    %314 = arith.maximumf %312, %313 : vector<128x20xf32>
    %315 = arith.addf %292, %314 : vector<128x20xf32>
    %cst_63 = arith.constant dense<0xFF800000> : vector<128xf32>
    %316 = vector.multi_reduction <maximumf>, %301, %cst_63 [1] : vector<128x128xf32> to vector<128xf32>
    %317 = vector.shape_cast %316 : vector<128xf32> to vector<128x1xf32>
    %cst_64 = arith.constant -1.000000e+29 : f32
    %318 = vector.broadcast %cst_64 : f32 to vector<128x1xf32>
    %319 = arith.cmpf ogt, %317, %318 : vector<128x1xf32>
    %320 = arith.select %319, %317, %297 : vector<128x1xi1>, vector<128x1xf32>
    %321 = vector.broadcast %317 : vector<128x1xf32> to vector<128x128xf32>
    %322 = arith.cmpf oeq, %301, %321 : vector<128x128xf32>
    %cst_65 = arith.constant -1.000000e+30 : f32
    %323 = vector.broadcast %cst_65 : f32 to vector<128x128xf32>
    %324 = arith.select %322, %323, %301 : vector<128x128xi1>, vector<128x128xf32>
    %325 = vector.broadcast %320 : vector<128x1xf32> to vector<128x20xf32>
    %326 = vector.broadcast %22 : vector<1x20xf32> to vector<128x20xf32>
    %327 = arith.mulf %325, %326 : vector<128x20xf32>
    %328 = vector.broadcast %23 : vector<1x20xf32> to vector<128x20xf32>
    %329 = arith.addf %327, %328 : vector<128x20xf32>
    %330 = vector.broadcast %320 : vector<128x1xf32> to vector<128x20xf32>
    %331 = vector.broadcast %24 : vector<1x20xf32> to vector<128x20xf32>
    %332 = arith.mulf %330, %331 : vector<128x20xf32>
    %333 = vector.broadcast %25 : vector<1x20xf32> to vector<128x20xf32>
    %334 = arith.addf %332, %333 : vector<128x20xf32>
    %335 = arith.minimumf %329, %334 : vector<128x20xf32>
    %cst_66 = arith.constant 0.000000e+00 : f32
    %336 = vector.broadcast %cst_66 : f32 to vector<128x20xf32>
    %337 = arith.maximumf %335, %336 : vector<128x20xf32>
    %338 = arith.addf %315, %337 : vector<128x20xf32>
    %cst_67 = arith.constant dense<0xFF800000> : vector<128xf32>
    %339 = vector.multi_reduction <maximumf>, %324, %cst_67 [1] : vector<128x128xf32> to vector<128xf32>
    %340 = vector.shape_cast %339 : vector<128xf32> to vector<128x1xf32>
    %cst_68 = arith.constant -1.000000e+29 : f32
    %341 = vector.broadcast %cst_68 : f32 to vector<128x1xf32>
    %342 = arith.cmpf ogt, %340, %341 : vector<128x1xf32>
    %343 = arith.select %342, %340, %320 : vector<128x1xi1>, vector<128x1xf32>
    %344 = vector.broadcast %340 : vector<128x1xf32> to vector<128x128xf32>
    %345 = arith.cmpf oeq, %324, %344 : vector<128x128xf32>
    %cst_69 = arith.constant -1.000000e+30 : f32
    %346 = vector.broadcast %cst_69 : f32 to vector<128x128xf32>
    %347 = arith.select %345, %346, %324 : vector<128x128xi1>, vector<128x128xf32>
    %348 = vector.broadcast %343 : vector<128x1xf32> to vector<128x20xf32>
    %349 = vector.broadcast %22 : vector<1x20xf32> to vector<128x20xf32>
    %350 = arith.mulf %348, %349 : vector<128x20xf32>
    %351 = vector.broadcast %23 : vector<1x20xf32> to vector<128x20xf32>
    %352 = arith.addf %350, %351 : vector<128x20xf32>
    %353 = vector.broadcast %343 : vector<128x1xf32> to vector<128x20xf32>
    %354 = vector.broadcast %24 : vector<1x20xf32> to vector<128x20xf32>
    %355 = arith.mulf %353, %354 : vector<128x20xf32>
    %356 = vector.broadcast %25 : vector<1x20xf32> to vector<128x20xf32>
    %357 = arith.addf %355, %356 : vector<128x20xf32>
    %358 = arith.minimumf %352, %357 : vector<128x20xf32>
    %cst_70 = arith.constant 0.000000e+00 : f32
    %359 = vector.broadcast %cst_70 : f32 to vector<128x20xf32>
    %360 = arith.maximumf %358, %359 : vector<128x20xf32>
    %361 = arith.addf %338, %360 : vector<128x20xf32>
    %cst_71 = arith.constant dense<0xFF800000> : vector<128xf32>
    %362 = vector.multi_reduction <maximumf>, %347, %cst_71 [1] : vector<128x128xf32> to vector<128xf32>
    %363 = vector.shape_cast %362 : vector<128xf32> to vector<128x1xf32>
    %cst_72 = arith.constant -1.000000e+29 : f32
    %364 = vector.broadcast %cst_72 : f32 to vector<128x1xf32>
    %365 = arith.cmpf ogt, %363, %364 : vector<128x1xf32>
    %366 = arith.select %365, %363, %343 : vector<128x1xi1>, vector<128x1xf32>
    %367 = vector.broadcast %363 : vector<128x1xf32> to vector<128x128xf32>
    %368 = arith.cmpf oeq, %347, %367 : vector<128x128xf32>
    %cst_73 = arith.constant -1.000000e+30 : f32
    %369 = vector.broadcast %cst_73 : f32 to vector<128x128xf32>
    %370 = arith.select %368, %369, %347 : vector<128x128xi1>, vector<128x128xf32>
    %371 = vector.broadcast %366 : vector<128x1xf32> to vector<128x20xf32>
    %372 = vector.broadcast %22 : vector<1x20xf32> to vector<128x20xf32>
    %373 = arith.mulf %371, %372 : vector<128x20xf32>
    %374 = vector.broadcast %23 : vector<1x20xf32> to vector<128x20xf32>
    %375 = arith.addf %373, %374 : vector<128x20xf32>
    %376 = vector.broadcast %366 : vector<128x1xf32> to vector<128x20xf32>
    %377 = vector.broadcast %24 : vector<1x20xf32> to vector<128x20xf32>
    %378 = arith.mulf %376, %377 : vector<128x20xf32>
    %379 = vector.broadcast %25 : vector<1x20xf32> to vector<128x20xf32>
    %380 = arith.addf %378, %379 : vector<128x20xf32>
    %381 = arith.minimumf %375, %380 : vector<128x20xf32>
    %cst_74 = arith.constant 0.000000e+00 : f32
    %382 = vector.broadcast %cst_74 : f32 to vector<128x20xf32>
    %383 = arith.maximumf %381, %382 : vector<128x20xf32>
    %384 = arith.addf %361, %383 : vector<128x20xf32>
    %cst_75 = arith.constant dense<0xFF800000> : vector<128xf32>
    %385 = vector.multi_reduction <maximumf>, %370, %cst_75 [1] : vector<128x128xf32> to vector<128xf32>
    %386 = vector.shape_cast %385 : vector<128xf32> to vector<128x1xf32>
    %cst_76 = arith.constant -1.000000e+29 : f32
    %387 = vector.broadcast %cst_76 : f32 to vector<128x1xf32>
    %388 = arith.cmpf ogt, %386, %387 : vector<128x1xf32>
    %389 = arith.select %388, %386, %366 : vector<128x1xi1>, vector<128x1xf32>
    %390 = vector.broadcast %386 : vector<128x1xf32> to vector<128x128xf32>
    %391 = arith.cmpf oeq, %370, %390 : vector<128x128xf32>
    %cst_77 = arith.constant -1.000000e+30 : f32
    %392 = vector.broadcast %cst_77 : f32 to vector<128x128xf32>
    %393 = arith.select %391, %392, %370 : vector<128x128xi1>, vector<128x128xf32>
    %394 = vector.broadcast %389 : vector<128x1xf32> to vector<128x20xf32>
    %395 = vector.broadcast %22 : vector<1x20xf32> to vector<128x20xf32>
    %396 = arith.mulf %394, %395 : vector<128x20xf32>
    %397 = vector.broadcast %23 : vector<1x20xf32> to vector<128x20xf32>
    %398 = arith.addf %396, %397 : vector<128x20xf32>
    %399 = vector.broadcast %389 : vector<128x1xf32> to vector<128x20xf32>
    %400 = vector.broadcast %24 : vector<1x20xf32> to vector<128x20xf32>
    %401 = arith.mulf %399, %400 : vector<128x20xf32>
    %402 = vector.broadcast %25 : vector<1x20xf32> to vector<128x20xf32>
    %403 = arith.addf %401, %402 : vector<128x20xf32>
    %404 = arith.minimumf %398, %403 : vector<128x20xf32>
    %cst_78 = arith.constant 0.000000e+00 : f32
    %405 = vector.broadcast %cst_78 : f32 to vector<128x20xf32>
    %406 = arith.maximumf %404, %405 : vector<128x20xf32>
    %407 = arith.addf %384, %406 : vector<128x20xf32>
    %cst_79 = arith.constant dense<0xFF800000> : vector<128xf32>
    %408 = vector.multi_reduction <maximumf>, %393, %cst_79 [1] : vector<128x128xf32> to vector<128xf32>
    %409 = vector.shape_cast %408 : vector<128xf32> to vector<128x1xf32>
    %cst_80 = arith.constant -1.000000e+29 : f32
    %410 = vector.broadcast %cst_80 : f32 to vector<128x1xf32>
    %411 = arith.cmpf ogt, %409, %410 : vector<128x1xf32>
    %412 = arith.select %411, %409, %389 : vector<128x1xi1>, vector<128x1xf32>
    %413 = vector.broadcast %409 : vector<128x1xf32> to vector<128x128xf32>
    %414 = arith.cmpf oeq, %393, %413 : vector<128x128xf32>
    %cst_81 = arith.constant -1.000000e+30 : f32
    %415 = vector.broadcast %cst_81 : f32 to vector<128x128xf32>
    %416 = arith.select %414, %415, %393 : vector<128x128xi1>, vector<128x128xf32>
    %417 = vector.broadcast %412 : vector<128x1xf32> to vector<128x20xf32>
    %418 = vector.broadcast %22 : vector<1x20xf32> to vector<128x20xf32>
    %419 = arith.mulf %417, %418 : vector<128x20xf32>
    %420 = vector.broadcast %23 : vector<1x20xf32> to vector<128x20xf32>
    %421 = arith.addf %419, %420 : vector<128x20xf32>
    %422 = vector.broadcast %412 : vector<128x1xf32> to vector<128x20xf32>
    %423 = vector.broadcast %24 : vector<1x20xf32> to vector<128x20xf32>
    %424 = arith.mulf %422, %423 : vector<128x20xf32>
    %425 = vector.broadcast %25 : vector<1x20xf32> to vector<128x20xf32>
    %426 = arith.addf %424, %425 : vector<128x20xf32>
    %427 = arith.minimumf %421, %426 : vector<128x20xf32>
    %cst_82 = arith.constant 0.000000e+00 : f32
    %428 = vector.broadcast %cst_82 : f32 to vector<128x20xf32>
    %429 = arith.maximumf %427, %428 : vector<128x20xf32>
    %430 = arith.addf %407, %429 : vector<128x20xf32>
    %cst_83 = arith.constant dense<0xFF800000> : vector<128xf32>
    %431 = vector.multi_reduction <maximumf>, %416, %cst_83 [1] : vector<128x128xf32> to vector<128xf32>
    %432 = vector.shape_cast %431 : vector<128xf32> to vector<128x1xf32>
    %cst_84 = arith.constant -1.000000e+29 : f32
    %433 = vector.broadcast %cst_84 : f32 to vector<128x1xf32>
    %434 = arith.cmpf ogt, %432, %433 : vector<128x1xf32>
    %435 = arith.select %434, %432, %412 : vector<128x1xi1>, vector<128x1xf32>
    %436 = vector.broadcast %432 : vector<128x1xf32> to vector<128x128xf32>
    %437 = arith.cmpf oeq, %416, %436 : vector<128x128xf32>
    %cst_85 = arith.constant -1.000000e+30 : f32
    %438 = vector.broadcast %cst_85 : f32 to vector<128x128xf32>
    %439 = arith.select %437, %438, %416 : vector<128x128xi1>, vector<128x128xf32>
    %440 = vector.broadcast %435 : vector<128x1xf32> to vector<128x20xf32>
    %441 = vector.broadcast %22 : vector<1x20xf32> to vector<128x20xf32>
    %442 = arith.mulf %440, %441 : vector<128x20xf32>
    %443 = vector.broadcast %23 : vector<1x20xf32> to vector<128x20xf32>
    %444 = arith.addf %442, %443 : vector<128x20xf32>
    %445 = vector.broadcast %435 : vector<128x1xf32> to vector<128x20xf32>
    %446 = vector.broadcast %24 : vector<1x20xf32> to vector<128x20xf32>
    %447 = arith.mulf %445, %446 : vector<128x20xf32>
    %448 = vector.broadcast %25 : vector<1x20xf32> to vector<128x20xf32>
    %449 = arith.addf %447, %448 : vector<128x20xf32>
    %450 = arith.minimumf %444, %449 : vector<128x20xf32>
    %cst_86 = arith.constant 0.000000e+00 : f32
    %451 = vector.broadcast %cst_86 : f32 to vector<128x20xf32>
    %452 = arith.maximumf %450, %451 : vector<128x20xf32>
    %453 = arith.addf %430, %452 : vector<128x20xf32>
    %cst_87 = arith.constant dense<0xFF800000> : vector<128xf32>
    %454 = vector.multi_reduction <maximumf>, %439, %cst_87 [1] : vector<128x128xf32> to vector<128xf32>
    %455 = vector.shape_cast %454 : vector<128xf32> to vector<128x1xf32>
    %cst_88 = arith.constant -1.000000e+29 : f32
    %456 = vector.broadcast %cst_88 : f32 to vector<128x1xf32>
    %457 = arith.cmpf ogt, %455, %456 : vector<128x1xf32>
    %458 = arith.select %457, %455, %435 : vector<128x1xi1>, vector<128x1xf32>
    %459 = vector.broadcast %455 : vector<128x1xf32> to vector<128x128xf32>
    %460 = arith.cmpf oeq, %439, %459 : vector<128x128xf32>
    %cst_89 = arith.constant -1.000000e+30 : f32
    %461 = vector.broadcast %cst_89 : f32 to vector<128x128xf32>
    %462 = arith.select %460, %461, %439 : vector<128x128xi1>, vector<128x128xf32>
    %463 = vector.broadcast %458 : vector<128x1xf32> to vector<128x20xf32>
    %464 = vector.broadcast %22 : vector<1x20xf32> to vector<128x20xf32>
    %465 = arith.mulf %463, %464 : vector<128x20xf32>
    %466 = vector.broadcast %23 : vector<1x20xf32> to vector<128x20xf32>
    %467 = arith.addf %465, %466 : vector<128x20xf32>
    %468 = vector.broadcast %458 : vector<128x1xf32> to vector<128x20xf32>
    %469 = vector.broadcast %24 : vector<1x20xf32> to vector<128x20xf32>
    %470 = arith.mulf %468, %469 : vector<128x20xf32>
    %471 = vector.broadcast %25 : vector<1x20xf32> to vector<128x20xf32>
    %472 = arith.addf %470, %471 : vector<128x20xf32>
    %473 = arith.minimumf %467, %472 : vector<128x20xf32>
    %cst_90 = arith.constant 0.000000e+00 : f32
    %474 = vector.broadcast %cst_90 : f32 to vector<128x20xf32>
    %475 = arith.maximumf %473, %474 : vector<128x20xf32>
    %476 = arith.addf %453, %475 : vector<128x20xf32>
    %cst_91 = arith.constant dense<0xFF800000> : vector<128xf32>
    %477 = vector.multi_reduction <maximumf>, %462, %cst_91 [1] : vector<128x128xf32> to vector<128xf32>
    %478 = vector.shape_cast %477 : vector<128xf32> to vector<128x1xf32>
    %cst_92 = arith.constant -1.000000e+29 : f32
    %479 = vector.broadcast %cst_92 : f32 to vector<128x1xf32>
    %480 = arith.cmpf ogt, %478, %479 : vector<128x1xf32>
    %481 = arith.select %480, %478, %458 : vector<128x1xi1>, vector<128x1xf32>
    %482 = vector.broadcast %481 : vector<128x1xf32> to vector<128x20xf32>
    %483 = vector.broadcast %22 : vector<1x20xf32> to vector<128x20xf32>
    %484 = arith.mulf %482, %483 : vector<128x20xf32>
    %485 = vector.broadcast %23 : vector<1x20xf32> to vector<128x20xf32>
    %486 = arith.addf %484, %485 : vector<128x20xf32>
    %487 = vector.broadcast %481 : vector<128x1xf32> to vector<128x20xf32>
    %488 = vector.broadcast %24 : vector<1x20xf32> to vector<128x20xf32>
    %489 = arith.mulf %487, %488 : vector<128x20xf32>
    %490 = vector.broadcast %25 : vector<1x20xf32> to vector<128x20xf32>
    %491 = arith.addf %489, %490 : vector<128x20xf32>
    %492 = arith.minimumf %486, %491 : vector<128x20xf32>
    %cst_93 = arith.constant 0.000000e+00 : f32
    %493 = vector.broadcast %cst_93 : f32 to vector<128x20xf32>
    %494 = arith.maximumf %492, %493 : vector<128x20xf32>
    %495 = arith.addf %476, %494 : vector<128x20xf32>
    %c0_94 = arith.constant 0 : index
    %c0_95 = arith.constant 0 : index
    %496 = vector.load %arg7[%c0_94, %c0_95] : memref<20x20xf32, #tpu.memory_space<vmem>>, vector<20x20xf32>
    %cst_96 = arith.constant dense<0.000000e+00> : vector<128x20xf32>
    %497 = tpu.matmul %38, %496, %cst_96 {dimension_numbers = #tpu.dot_dimension_numbers<[1], [0], [0], [1], [0, 0, 1, 1], [], []>} : vector<128x20xf32>, vector<20x20xf32>, vector<128x20xf32> -> vector<128x20xf32>
    %cst_97 = arith.constant dense<0.000000e+00> : vector<128x20xf32>
    %498 = tpu.matmul %495, %496, %cst_97 {dimension_numbers = #tpu.dot_dimension_numbers<[1], [0], [0], [1], [0, 0, 1, 1], [], []>} : vector<128x20xf32>, vector<20x20xf32>, vector<128x20xf32> -> vector<128x20xf32>
    %cst_98 = arith.constant 1.000000e-16 : f32
    %499 = vector.broadcast %cst_98 : f32 to vector<128x20xf32>
    %500 = arith.addf %499, %498 : vector<128x20xf32>
    %501 = arith.divf %497, %500 : vector<128x20xf32>
    %cst_99 = arith.constant dense<0.000000e+00> : vector<128xf32>
    %502 = vector.multi_reduction <add>, %38, %cst_99 [1] : vector<128x20xf32> to vector<128xf32>
    %503 = vector.shape_cast %502 : vector<128xf32> to vector<128x1xf32>
    %504 = arith.mulf %501, %38 : vector<128x20xf32>
    %cst_100 = arith.constant dense<0.000000e+00> : vector<128xf32>
    %505 = vector.multi_reduction <add>, %504, %cst_100 [1] : vector<128x20xf32> to vector<128xf32>
    %506 = vector.shape_cast %505 : vector<128xf32> to vector<128x1xf32>
    %507 = arith.divf %506, %503 : vector<128x1xf32>
    %c0_101 = arith.constant 0 : index
    %c0_102 = arith.constant 0 : index
    %508 = vector.load %arg8[%c0_101, %c0_102] : memref<128x1xf32, #tpu.memory_space<vmem>>, vector<128x1xf32>
    tpu.vector_store %arg8[%c0_101, %c0_102], %507 {strides = array<i32>} : memref<128x1xf32, #tpu.memory_space<vmem>>, vector<128x1xf32>,
    return
  }
  func.func @transform_0(%arg0: i32) -> (i32, i32) {
    %c0_i32 = arith.constant 0 : i32
    %c0_i32_0 = arith.constant 0 : i32
    return %arg0, %c0_i32 : i32, i32
  }
  func.func @transform_1(%arg0: i32) -> (i32, i32) {
    %c0_i32 = arith.constant 0 : i32
    %c0_i32_0 = arith.constant 0 : i32
    return %arg0, %c0_i32 : i32, i32
  }
  func.func @transform_2(%arg0: i32) -> (i32, i32) {
    %c0_i32 = arith.constant 0 : i32
    %c0_i32_0 = arith.constant 0 : i32
    return %c0_i32, %arg0 : i32, i32
  }
  func.func @transform_3(%arg0: i32) -> (i32, i32) {
    %c0_i32 = arith.constant 0 : i32
    %c0_i32_0 = arith.constant 0 : i32
    return %arg0, %c0_i32 : i32, i32
  }
  func.func @transform_4(%arg0: i32) -> (i32, i32) {
    %c0_i32 = arith.constant 0 : i32
    %c0_i32_0 = arith.constant 0 : i32
    return %c0_i32, %arg0 : i32, i32
  }
  func.func @transform_5(%arg0: i32) -> (i32, i32) {
    %c0_i32 = arith.constant 0 : i32
    %c0_i32_0 = arith.constant 0 : i32
    %c0_i32_1 = arith.constant 0 : i32
    return %c0_i32, %c0_i32_0 : i32, i32
  }
  func.func @transform_6(%arg0: i32) -> (i32, i32) {
    %c0_i32 = arith.constant 0 : i32
    %c0_i32_0 = arith.constant 0 : i32
    %c0_i32_1 = arith.constant 0 : i32
    return %c0_i32, %c0_i32_0 : i32, i32
  }
  func.func @transform_7(%arg0: i32) -> (i32, i32) {
    %c0_i32 = arith.constant 0 : i32
    %c0_i32_0 = arith.constant 0 : i32
    return %arg0, %c0_i32 : i32, i32
  }
}

</mosaic_0001>

<bundles_post_ra>
// kernel: tpu_custom_call.1
= control target key start
LH: loop header
LB: loop body
LE: loop exit
PB: predicated region body
PF: predicated region fallthrough
CT: control target
= control target key end

     0   :  { %s6178_s24 = smov 0   ;;  %s6180_s25 = smov 0   ;;  %s12978_s0 = inlined_call_operand.vmem [shape: f32[256,32], index: 0, kind: input, shape index: {}]   ;;  %s12979_s1 = inlined_call_operand.vmem [shape: f32[256,32], index: 1, kind: input, shape index: {}]   ;;  %s12980_s2 = inlined_call_operand.vmem [shape: bf16[32,256], index: 2, kind: input, shape index: {}]   ;;  %s12981_s3 = inlined_call_operand.vmem [shape: s32[256,1], index: 3, kind: input, shape index: {}]   ;;  %s12982_s4 = inlined_call_operand.vmem [shape: s32[1,256], index: 4, kind: input, shape index: {}]   ;;  %s12983_s5 = inlined_call_operand.vmem [shape: f32[4,20], index: 5, kind: input, shape index: {}]   ;;  %s12984_s6 = inlined_call_operand.vmem [shape: f32[20,20], index: 6, kind: input, shape index: {}]   ;;  %s12985_s7 = inlined_call_operand.vmem [shape: f32[256,1], index: 7, kind: output, shape index: {}]  }
   0x1   :  { %s6182_s26 = smov 0  }
   0x2 LB: > { %s6194_s27 = sadd.s32 4294967295, %s6135_s26   ;;  %s6197_s28 = sadd.s32 1, %s6135_s26   ;;  %s6135_s26 = sphi %s6182_s26, %s14491_s26   ;;  %s6131_s25 = sphi %s6180_s25, %s14490_s25   ;;  %s6127_s24 = sphi %s6178_s24, %s14489_s24  }
   0x3   : > { %s73_s29 = ssub.s32 %s6135_s26, %s6197_s28  ;;  %s76_s30 = sadd.s32 1, %s6131_s25 }
   0x4   : > { %p74_p0 = scmp.eq.s32.totalorder %s73_s29, 0  ;;  %p83_p1 = scmp.ne.s32.totalorder %s6131_s25, %s6127_s24 }
   0x5   : > { %p84_p2 = scmp.eq.s32.totalorder %s6135_s26, 0  ;;  %p5941_p4 = scmp.ge.s32.totalorder %s6135_s26, 2 }
   0x6   : > { %s6206_s8 = scalar_select %p74_p0, %s6131_s25, %s76_s30  }
   0x7   : > { %p85_p3 = por %p84_p2, %p83_p1  ;;  %235 = sbr.rel (%p5941_p4) target bundleno = 20 (0x14), region = 24 }
   0xc   : > { %256 = sbr.rel (!%p85_p3) target bundleno = 20 (0x14), region = 36  ;;  %s258_s9 = sand.u32 (%p85_p3), 1, %s6131_s25  }
   0xd   : > { %s5943_s10 = sshll.u32 (%p85_p3), %s6135_s26, 2  ;;  %s5942_s11 = sshll.u32 (%p85_p3), %s258_s9, 4 }
   0xe   : > { %s262_s14 = scalar_lea.vmem (%p85_p3), %s12980_s2, %s5943_s10  ;;  %s260_s15 = scalar_lea.vmem (%p85_p3), [#allocation2], %s5942_s11 }
   0xf   : > { %v279_v0 = vld [vmem:[%s262_s14] sm:$0xf] (%p85_p3)  ;;  %v281_v1 = vld [vmem:[%s262_s14 + $0x8] sm:$0xf] (%p85_p3)  ;;  %v283_v2 = vld [vmem:[%s262_s14 + $0x10] sm:$0xf] (%p85_p3) }
  0x10   : > { %280 = vst [vmem:[%s260_s15] sm:$0xf] (%p85_p3), %v279_v0  ;;  %v285_v3 = vld [vmem:[%s262_s14 + $0x18] sm:$0xf] (%p85_p3) }
  0x11   : > { %282 = vst [vmem:[%s260_s15 + $0x4] sm:$0xf] %v281_v1 }
  0x12   : > { %284 = vst [vmem:[%s260_s15 + $0x8] sm:$0xf] %v283_v2 }
  0x13   : > { %286 = vst [vmem:[%s260_s15 + $0xc] sm:$0xf] %v285_v3 }
  0x14 PF: > { %p5944_p5 = scmp.ge.s32.totalorder %s6135_s26, 1  ;;  %p332_p6 = scmp.lt.s32.totalorder %s6135_s26, 3 }
  0x16   : > { %p333_p7 = pnand %p5944_p5, %p332_p6 }
  0x18   : > { %336 = sbr.rel (%p333_p7) target bundleno = 3170 (0xc62), region = 85 }
  0x1d   : > { %s339_s16 = sand.u32 1, %s6127_s24   ;;  %s5946_s17 = sshll.u32 %s6194_s27, 4  ;;  %vm456_vm0 = vcmask 261120   ;;  %v6137_v26 = vmov 0   ;;  %vm5040_vm1 = vcmask 1043456   ;;  %vm4991_vm2 = vcmask 162816  }
  0x1e   : > { %s5945_s18 = sshll.u32 %s339_s16, 4  ;;  %p389_p8 = scmp.lt.s32.totalorder %s5946_s17, 31  ;;  %6041 = vset.pattern.permute.xlu2 %v6137_v26  ;;  %6042 = vset.pattern.permute.xlu0 %v6137_v26 }
  0x1f   : > { %s341_s19 = scalar_lea.vmem [#allocation2], %s5945_s18  ;;  %6043 = vset.pattern.permute.xlu1 %v6137_v26  ;;  %p406_p9 = scmp.lt.s32.totalorder %s6194_s27, 1 }
  0x20   : > { %v6007_v4 = vld [vmem:[%s341_s19 + $0x8] sm:$0xff]  ;;  %s14493_s17 = smov (!%p389_p8, %s5946_s17), 31  ;;  %v6006_v5 = vld [vmem:[%s341_s19] sm:$0xff] }
  0x21   : > { %487 = vmatpush.bf16.msra.mxu0 %v6007_v4  ;;  %s6218_s20 = sshll.u32 %s14493_s17, 3  ;;  %6008 = vmatpush.bf16.msra.mxu3 %v6007_v4  ;;  %s14495_s27 = smov (!%p406_p9, %s6194_s27), 1 }
  0x22   : > { %s6224_s23 = scalar_lea.vmem %s12978_s0, %s6218_s20  ;;  %s6230_s29 = scalar_lea.vmem %s12979_s1, %s6218_s20 }
  0x23   : > { %v6233_v6 = vld [vmem:[%s6224_s23 + $0x20] sm:$0xff]  ;;  %v417_v10 = vld [vmem:[%s6224_s23 + $0x8] sm:$0xff]  ;;  %v418_v18 = vld [vmem:[%s6224_s23 + $0x10] sm:$0xff]  ;;  %s408_s10 = scalar_lea.vmem %s12982_s4, %s14495_s27  ;;  %s6297_s13 = scalar_lea.vmem %s12981_s3, %s6218_s20 }
  0x24   : > { %v534_v7 = vld [vmem:[%s6230_s29 + $0x20] sm:$0xff]  ;;  %v6241_v14 = vld [vmem:[%s6224_s23 + $0x28] sm:$0xff]  ;;  %v532_v20 = vld [vmem:[%s6230_s29 + $0x10] sm:$0xff] }
  0x25   : > { %v416_v8 = vld [vmem:[%s6224_s23] sm:$0xff]  ;;  %v550_v9 = vmul.f32 %v534_v7, %v6233_v6  ;;  %488 = vmatpush.bf16.msra.mxu0 %v6006_v5  ;;  %v535_v15 = vld [vmem:[%s6230_s29 + $0x28] sm:$0xff]  ;;  %6009 = vmatpush.bf16.msra.mxu3 %v6006_v5  ;;  %v548_v22 = vmul.f32 %v532_v20, %v418_v18  ;;  %v533_v24 = vld [vmem:[%s6230_s29 + $0x18] sm:$0xff]  ;;  %v434_v58 = vpack.c.bf16 %v6241_v14, %v6233_v6 }
  0x26   : > { %v530_v11 = vld [vmem:[%s6230_s29] sm:$0xff]  ;;  %v432_v13 = vpack.c.bf16 %v417_v10, %v416_v8  ;;  %v531_v17 = vld [vmem:[%s6230_s29 + $0x8] sm:$0xff]  ;;  %v551_v21 = vmul.f32 %v535_v15, %v6241_v14  ;;  %v419_v27 = vld [vmem:[%s6224_s23 + $0x18] sm:$0xff] }
  0x27   : > { %v546_v12 = vmul.f32 %v530_v11, %v416_v8  ;;  %v574_v16 = vsel %vm456_vm0, %v550_v9, 0.0  ;;  %v547_v23 = vmul.f32 %v531_v17, %v417_v10  ;;  %v568_v25 = vsel %vm456_vm0, %v548_v22, 0.0  ;;  %v6257_v31 = vld [vmem:[%s6224_s23 + $0x40] sm:$0xff]  ;;  %v422_v33 = vld [vmem:[%s6224_s23 + $0x30] sm:$0xff]  ;;  %v423_v38 = vld [vmem:[%s6224_s23 + $0x38] sm:$0xff] }
  0x28   : > { %575 = vadd.xlane.f32.xlu2 %v574_v16  ;;  %5962 = vmatmul.msk.bf16.vlgmr.msra.gmra.mxu0 %vm456_vm0, %v432_v13  ;;  %v577_v28 = vsel %vm456_vm0, %v551_v21, 0.0  ;;  %v549_v29 = vmul.f32 %v533_v24, %v419_v27  ;;  %v538_v32 = vld [vmem:[%s6230_s29 + $0x40] sm:$0xff]  ;;  %v536_v34 = vld [vmem:[%s6230_s29 + $0x30] sm:$0xff]  ;;  %v537_v39 = vld [vmem:[%s6230_s29 + $0x38] sm:$0xff]  ;;  %v433_v41 = vpack.c.bf16 %v419_v27, %v418_v18  ;;  %v435_v0 = vpack.c.bf16 %v423_v38, %v422_v33 }
  0x29   : > { %v562_v19 = vsel %vm456_vm0, %v546_v12, 0.0  ;;  %569 = vadd.xlane.f32.xlu1 %v568_v25  ;;  %v565_v30 = vsel %vm456_vm0, %v547_v23, 0.0  ;;  %v554_v35 = vmul.f32 %v538_v32, %v6257_v31  ;;  %v552_v37 = vmul.f32 %v536_v34, %v422_v33  ;;  %v425_v44 = vld [vmem:[%s6224_s23 + $0x48] sm:$0xff]  ;;  %v426_v48 = vld [vmem:[%s6224_s23 + $0x50] sm:$0xff]  ;;  %v428_v52 = vld [vmem:[%s6224_s23 + $0x60] sm:$0xff] }
  0x2a   : > { %563 = vadd.xlane.f32.xlu0 %v562_v19  ;;  %v571_v36 = vsel %vm456_vm0, %v549_v29, 0.0  ;;  %v553_v42 = vmul.f32 %v537_v39, %v423_v38  ;;  %v539_v45 = vld [vmem:[%s6230_s29 + $0x48] sm:$0xff]  ;;  %v540_v49 = vld [vmem:[%s6230_s29 + $0x50] sm:$0xff]  ;;  %v427_v55 = vld [vmem:[%s6224_s23 + $0x58] sm:$0xff]  ;;  %v436_v6 = vpack.c.bf16 %v425_v44, %v6257_v31 }
  0x2b   : > { %v586_v40 = vsel %vm456_vm0, %v554_v35, 0.0  ;;  %v580_v43 = vsel %vm456_vm0, %v552_v37, 0.0  ;;  %v555_v47 = vmul.f32 %v539_v45, %v425_v44  ;;  %v556_v50 = vmul.f32 %v540_v49, %v426_v48  ;;  %v429_v54 = vld [vmem:[%s6224_s23 + $0x68] sm:$0xff]  ;;  %v541_v56 = vld [vmem:[%s6230_s29 + $0x58] sm:$0xff]  ;;  %v610_v61 = vld [vmem:[%s6297_s13] sm:$0xff] }
  0x2c   : > { %v583_v46 = vsel %vm456_vm0, %v553_v42, 0.0  ;;  %v438_v57 = vpack.c.bf16 %v429_v54, %v428_v52  ;;  %v557_v59 = vmul.f32 %v541_v56, %v427_v55  ;;  %v611_v62 = vld [vmem:[%s6297_s13 + $0x8] sm:$0xff]  ;;  %v613_v63 = vld [vmem:[%s6297_s13 + $0x18] sm:$0xff]  ;;  %v614_v2 = vld [vmem:[%s6297_s13 + $0x20] sm:$0xff]  ;;  %v437_v10 = vpack.c.bf16 %v427_v55, %v426_v48 }
  0x2d   : > { %v589_v51 = vsel %vm456_vm0, %v555_v47, 0.0  ;;  %v592_v53 = vsel %vm456_vm0, %v556_v50, 0.0  ;;  %v623_v1 = vld [vmem:[%s6297_s13 + $0x68] sm:$0xff]  ;;  %v621_v3 = vld [vmem:[%s6297_s13 + $0x58] sm:$0xff]  ;;  %v612_v4 = vld [vmem:[%s6297_s13 + $0x10] sm:$0xff] }
  0x2e   : > { %5968 = vmatmul.msk.bf16.vlgmr.msra.gmra.mxu3 %vm456_vm0, %v438_v57  ;;  %v595_v60 = vsel %vm456_vm0, %v557_v59, 0.0  ;;  %v615_v5 = vld [vmem:[%s6297_s13 + $0x28] sm:$0xff]  ;;  %v617_v7 = vld [vmem:[%s6297_s13 + $0x38] sm:$0xff]  ;;  %v616_v8 = vld [vmem:[%s6297_s13 + $0x30] sm:$0xff] }
  0x2f   : > { %v618_v9 = vld [vmem:[%s6297_s13 + $0x40] sm:$0xff]  ;;  %v619_v11 = vld [vmem:[%s6297_s13 + $0x48] sm:$0xff]  ;;  %v4990_v12 = vld [vmem:[%s12984_s6 + $0x10] sm:$0xf] }
  0x30   : > { %578 = vadd.xlane.f32.xlu2 %v577_v28  ;;  %5970 = vmatpush.msk.msra.mxu1 %vm5040_vm1, %v4990_v12  ;;  %v4989_v13 = vld [vmem:[%s12984_s6 + $0x8] sm:$0xff]  ;;  %v4988_v14 = vld [vmem:[%s12984_s6] sm:$0xff]  ;;  %v620_v15 = vld [vmem:[%s6297_s13 + $0x50] sm:$0xff] }
  0x31   : > { %572 = vadd.xlane.f32.xlu1 %v571_v36  ;;  %5987 = vmatpush.msk.msra.mxu2 %vm5040_vm1, %v4990_v12  ;;  %v759_v16 = vld [vmem:[%s12983_s5] sm:$0xf]  ;;  %v430_v19 = vld [vmem:[%s6224_s23 + $0x70] sm:$0xff]  ;;  %v431_v20 = vld [vmem:[%s6224_s23 + $0x78] sm:$0xff] }
  0x32   : > { %566 = vadd.xlane.f32.xlu0 %v565_v30  ;;  %6010 = vmatpush.msk.msrb.mxu3 %vm5040_vm1, %v4990_v12  ;;  %v6328_v17 = vperm.slane %v759_v16, 0  ;;  %v6330_v18 = vperm.slane %v759_v16, 2  ;;  %v6334_v21 = vperm.slane %v759_v16, 1  ;;  %v6336_v22 = vperm.slane %v759_v16, 3  ;;  %v6372_v55 = vld [vmem:[%s408_s10] ss:$0 sm:$0xff] }
  0x33   : > { %5058 = vmatpush.msra.mxu1 %v4989_v13  ;;  %5171 = vmatpush.msra.mxu2 %v4989_v13  ;;  %v439_v24 = vpack.c.bf16 %v431_v20, %v430_v19 }
  0x34   : > { %6011 = vmatpush.msrb.mxu3 %v4989_v13 }
  0x35   : > { %5059 = vmatpush.msra.mxu1 %v4988_v14  ;;  %5172 = vmatpush.msra.mxu2 %v4988_v14 }
  0x36   : > { %6012 = vmatpush.msrb.mxu3 %v4988_v14 }
  0x38   : > { %587 = vadd.xlane.f32.xlu2 %v586_v40  ;;  %5963 = vmatmul.msk.bf16.gmra.mxu0 %vm456_vm0, %v433_v41 }
  0x39   : > { %584 = vadd.xlane.f32.xlu1 %v583_v46  ;;  %6013 = vmatpush.msk.msra.mxu3 %vm5040_vm1, %v4990_v12  ;;  %v627_v46 = vlaneseq }
  0x3a   : > { %581 = vadd.xlane.f32.xlu0 %v580_v43 }
  0x3b   : > { %6014 = vmatpush.msra.mxu3 %v4989_v13  ;;  %v6365_v54 = vand.u32 127, %v627_v46 }
  0x3d   : > { %6015 = vmatpush.msra.mxu3 %v4988_v14 }
  0x3e   : > { %5969 = vmatmul.msk.bf16.gmra.mxu3 %vm456_vm0, %v439_v24 }
  0x41   : > { %593 = vadd.xlane.f32.xlu1 %v592_v53  ;;  %v6363_v53 = vshrl.u32 %v627_v46, 7 }
  0x42   : > { %590 = vadd.xlane.f32.xlu0 %v589_v51 }
  0x43   : > { %vm711_vm3 = vcmp.ne.s32.totalorder %v6363_v53, %v6365_v54 }
  0x48   : > { %5964 = vmatmul.msk.bf16.gmra.mxu0 %vm456_vm0, %v434_v58 }
  0x49   : > { %596 = vadd.xlane.f32.xlu1 %v595_v60 }
  0x50   : > { %647 = vperm.xlu2 %6041, %v610_v61  }
  0x56   : > { %650 = vperm.xlu0 %6042, %v611_v62  }
  0x58   : > { %656 = vperm.xlu2 %6041, %v613_v63   ;;  %5965 = vmatmul.msk.bf16.gmra.mxu0 %vm456_vm0, %v435_v0 }
  0x5e   : > { %686 = vperm.xlu0 %6042, %v623_v1  }
  0x60   : > { %659 = vperm.xlu2 %6041, %v614_v2  }
  0x62   : > { %653 = vperm.xlu1 %6043, %v612_v4  }
  0x66   : > { %680 = vperm.xlu0 %6042, %v621_v3  }
  0x68   : > { %662 = vperm.xlu2 %6041, %v615_v5   ;;  %5966 = vmatmul.msk.bf16.gmra.mxu0 %vm456_vm0, %v436_v6 }
  0x6a   : > { %668 = vperm.xlu1 %6043, %v617_v7  }
  0x70   : > { %665 = vperm.xlu2 %6041, %v616_v8  }
  0x72   : > { %674 = vperm.xlu1 %6043, %v619_v11   ;;  %v629_v11 = vadd.s32 8, %v6363_v53 }
  0x74   : > { %vm712_vm6 = vcmp.ne.s32.totalorder %v629_v11, %v6365_v54 }
  0x78   : > { %671 = vperm.xlu2 %6041, %v618_v9   ;;  %5967 = vmatmul.msk.bf16.gmra.mxu0 %vm456_vm0, %v437_v10 }
  0x7a   : > { %677 = vperm.xlu1 %6043, %v620_v15  }
  0x9b   : > { %v576_v23 = vpop.xlane.xlu2 %575 }
  0x9c   : > { %v570_v30 = vpop.xlane.xlu1 %569  ;;  %v765_v0 = vmul.f32 %v6328_v17, %v576_v23  ;;  %v799_v1 = vmul.f32 %v6330_v18, %v576_v23  ;;  %v633_v23 = vadd.s32 40, %v6363_v53 }
  0x9d   : > { %v564_v25 = vpop.xlane.xlu0 %563  ;;  %v763_v37 = vmul.f32 %v6328_v17, %v570_v30  ;;  %v797_v38 = vmul.f32 %v6330_v18, %v570_v30 }
  0x9e   : > { %v761_v26 = vmul.f32 %v6328_v17, %v564_v25  ;;  %v795_v27 = vmul.f32 %v6330_v18, %v564_v25  ;;  %v782_v3 = vadd.f32 %v6334_v21, %v765_v0  ;;  %v816_v4 = vadd.f32 %v6336_v22, %v799_v1 }
  0x9f   : > { %v780_v43 = vadd.f32 %v6334_v21, %v763_v37  ;;  %v814_v44 = vadd.f32 %v6336_v22, %v797_v38  ;;  %vm716_vm9 = vcmp.ne.s32.totalorder %v633_v23, %v6365_v54  ;;  %v630_v1 = vadd.s32 16, %v6363_v53 }
  0xa0   : > { %v778_v28 = vadd.f32 %v6334_v21, %v761_v26  ;;  %v812_v29 = vadd.f32 %v6336_v22, %v795_v27  ;;  %v832_v8 = vmin.f32 %v782_v3, %v816_v4  ;;  %v624_v26 = vld [vmem:[%s6297_s13 + $0x70] sm:$0xff] }
  0xa1   : > { %v830_v49 = vmin.f32 %v780_v43, %v814_v44  ;;  %vm713_vm13 = vcmp.ne.s32.totalorder %v630_v1, %v6365_v54 }
  0xa2   : > { %v828_v31 = vmin.f32 %v778_v28, %v812_v29  ;;  %v6407_v15 = vmax.f32 %v832_v8, 0.0 }
  0xa3   : > { %v579_v32 = vpop.xlane.xlu2 %578  ;;  %v6376_v58 = vmax.f32 %v830_v49, 0.0 }
  0xa4   : > { %v6343_v33 = vmax.f32 %v828_v31, 0.0  ;;  %v573_v45 = vpop.xlane.xlu1 %572  ;;  %v766_v9 = vmul.f32 %v6328_v17, %v579_v32  ;;  %v800_v10 = vmul.f32 %v6330_v18, %v579_v32  ;;  %13653 = vst [vmem:[#allocation7_spill] sm:$0xff] %v6407_v15 }
  0xa5   : > { %v567_v34 = vpop.xlane.xlu0 %566  ;;  %v490_v39 = vpop.f32.mrf.mxu0  ;;  %v764_v50 = vmul.f32 %v6328_v17, %v573_v45  ;;  %v798_v51 = vmul.f32 %v6330_v18, %v573_v45  ;;  %13651 = vst [vmem:[#allocation5_spill] sm:$0xff] %v6376_v58 }
  0xa6   : > { %13649 = vst [vmem:[#allocation3_spill] sm:$0xff] %v6343_v33  ;;  %v762_v35 = vmul.f32 %v6328_v17, %v567_v34  ;;  %v796_v36 = vmul.f32 %v6330_v18, %v567_v34  ;;  %5971 = vmatmul.msk.f32.vlgmr.msra.gmra.mxu1 %vm4991_vm2, %v6343_v33  ;;  %v783_v12 = vadd.f32 %v6334_v21, %v766_v9 }
  0xa7   : > { %v781_v56 = vadd.f32 %v6334_v21, %v764_v50  ;;  %v815_v57 = vadd.f32 %v6336_v22, %v798_v51  ;;  %v817_v13 = vadd.f32 %v6336_v22, %v800_v10 }
  0xa8   : > { %v779_v40 = vadd.f32 %v6334_v21, %v762_v35  ;;  %v813_v41 = vadd.f32 %v6336_v22, %v796_v36 }
  0xa9   : > { %v831_v61 = vmin.f32 %v781_v56, %v815_v57  ;;  %v833_v24 = vmin.f32 %v783_v12, %v817_v13  ;;  %v631_v12 = vadd.s32 24, %v6363_v53 }
  0xaa   : > { %v829_v42 = vmin.f32 %v779_v40, %v813_v41 }
  0xab   : > { %v6355_v47 = vpop.xlane.xlu2 %587  ;;  %v6390_v2 = vmax.f32 %v831_v61, 0.0  ;;  %v6425_v32 = vmax.f32 %v833_v24, 0.0  ;;  %v625_v61 = vld [vmem:[%s6297_s13 + $0x78] sm:$0xff]  ;;  %vm714_vm1 = vcmp.ne.s32.totalorder %v631_v12, %v6365_v54  ;;  %v643_v12 = vadd.s32 120, %v6363_v53 }
  0xac   : > { %v6357_v48 = vmax.f32 %v829_v42, 0.0  ;;  %v585_v30 = vpop.xlane.xlu1 %584  ;;  %v769_v44 = vmul.f32 %v6328_v17, %v6355_v47  ;;  %v803_v45 = vmul.f32 %v6330_v18, %v6355_v47 }
  0xad   : > { %v492_v52 = vpop.f32.mrf.mxu0  ;;  %v582_v60 = vpop.xlane.xlu0 %581  ;;  %13652 = vst [vmem:[#allocation6_spill] sm:$0xff] %v6390_v2  ;;  %v768_v35 = vmul.f32 %v6328_v17, %v585_v30  ;;  %v802_v36 = vmul.f32 %v6330_v18, %v585_v30 }
  0xae   : > { %13650 = vst [vmem:[#allocation4_spill] sm:$0xff] %v6357_v48  ;;  %5972 = vmatmul.msk.f32.gmra.mxu1 %vm4991_vm2, %v6357_v48  ;;  %v767_v16 = vmul.f32 %v6328_v17, %v582_v60  ;;  %v801_v19 = vmul.f32 %v6330_v18, %v582_v60  ;;  %v786_v49 = vadd.f32 %v6334_v21, %v769_v44 }
  0xaf   : > { %13654 = vst [vmem:[#allocation8_spill] sm:$0xff] %v6425_v32  ;;  %v819_v40 = vadd.f32 %v6336_v22, %v802_v36  ;;  %v820_v50 = vadd.f32 %v6336_v22, %v803_v45  ;;  %v636_v36 = vadd.s32 64, %v6363_v53  ;;  %v638_v45 = vadd.s32 80, %v6363_v53 }
  0xb0   : > { %v784_v27 = vadd.f32 %v6334_v21, %v767_v16  ;;  %v818_v28 = vadd.f32 %v6336_v22, %v801_v19 }
  0xb1   : > { %v836_v51 = vmin.f32 %v786_v49, %v820_v50 }
  0xb2   : > { %v834_v34 = vmin.f32 %v784_v27, %v818_v28  ;;  %v634_v28 = vadd.s32 48, %v6363_v53 }
  0xb3   : > { %v648_v59 = vpop.permute.xlu2 %647  ;;  %v6455_v47 = vmax.f32 %v836_v51, 0.0 }
  0xb4   : > { %vm695_vm4 = vcmp.eq.s32.totalorder %v648_v59, %v6372_v55  ;;  %v6437_v41 = vmax.f32 %v834_v34, 0.0  ;;  %v594_v43 = vpop.xlane.xlu1 %593 }
  0xb5   : > { %vm727_vm5 = vmand %vm695_vm4, %vm711_vm3  ;;  %v6385_v63 = vpop.f32.mrf.mxu0  ;;  %v591_v6 = vpop.xlane.xlu0 %590  ;;  %13657 = vst [vmem:[#allocation11_spill] sm:$0xff] %v6455_v47  ;;  %v771_v3 = vmul.f32 %v6328_v17, %v594_v43  ;;  %v805_v4 = vmul.f32 %v6330_v18, %v594_v43 }
  0xb6   : > { %5973 = vmatmul.msk.f32.gmra.mxu1 %vm4991_vm2, %v6376_v58  ;;  %v6383_v62 = vsel %vm727_vm5, %v490_v39, -1e+30  ;;  %v785_v39 = vadd.f32 %v6334_v21, %v768_v35  ;;  %13655 = vst [vmem:[#allocation9_spill] sm:$0xff] %v6437_v41  ;;  %v804_v56 = vmul.f32 %v6330_v18, %v591_v6 }
  0xb7   : > { %860 = vmax.xlane.f32.xlu0 %v6383_v62  ;;  %v788_v9 = vadd.f32 %v6334_v21, %v771_v3  ;;  %v822_v10 = vadd.f32 %v6336_v22, %v805_v4 }
  0xb8   : > { %v835_v42 = vmin.f32 %v785_v39, %v819_v40  ;;  %v821_v60 = vadd.f32 %v6336_v22, %v804_v56  ;;  %v637_v40 = vadd.s32 72, %v6363_v53 }
  0xb9   : > { %v838_v11 = vmin.f32 %v788_v9, %v822_v10  ;;  %v622_v9 = vld [vmem:[%s6297_s13 + $0x60] sm:$0xff] }
  0xba   : > { %v6445_v46 = vmax.f32 %v835_v42, 0.0 }
  0xbb   : > { %v6394_v5 = vpop.permute.xlu2 %656  ;;  %v6476_v16 = vmax.f32 %v838_v11, 0.0  ;;  %v635_v11 = vadd.s32 56, %v6363_v53 }
  0xbc   : > { %13656 = vst [vmem:[#allocation10_spill] sm:$0xff] %v6445_v46  ;;  %v597_v57 = vpop.xlane.xlu1 %596  ;;  %vm698_vm15 = vcmp.eq.s32.totalorder %v6394_v5, %v6372_v55 }
  0xbd   : > { %v6398_v7 = vpop.f32.mrf.mxu0  ;;  %13659 = vst [vmem:[#allocation13_spill] sm:$0xff] %v6476_v16  ;;  %v772_v19 = vmul.f32 %v6328_v17, %v597_v57  ;;  %v806_v23 = vmul.f32 %v6330_v18, %v597_v57  ;;  %vm730_vm3 = vmand %vm698_vm15, %vm714_vm1 }
  0xbe   : > { %5974 = vmatmul.msk.f32.gmra.mxu1 %vm4991_vm2, %v6390_v2  ;;  %v6489_v27 = vsel %vm730_vm3, %v6398_v7, -1e+30  ;;  %vm721_vm3 = vcmp.ne.s32.totalorder %v638_v45, %v6365_v54 }
  0xc3   : > { %v6405_v14 = vpop.permute.xlu2 %659 }
  0xc4   : > { %vm699_vm4 = vcmp.eq.s32.totalorder %v6405_v14, %v6372_v55 }
  0xc5   : > { %v6413_v20 = vpop.f32.mrf.mxu0 }
  0xc6   : > { %5975 = vmatmul.msk.f32.gmra.mxu1 %vm4991_vm2, %v6407_v15 }
  0xc8   : > { %v651_v25 = vpop.permute.xlu0 %650 }
  0xc9   : > { %vm696_vm7 = vcmp.eq.s32.totalorder %v651_v25, %v6372_v55  ;;  %v789_v25 = vadd.f32 %v6334_v21, %v772_v19 }
  0xca   : > { %vm728_vm8 = vmand %vm696_vm7, %vm712_vm6 }
  0xcb   : > { %v6421_v29 = vsel %vm728_vm8, %v492_v52, -1e+30  ;;  %v663_v31 = vpop.permute.xlu2 %662  ;;  %689 = vperm.xlu0 %6042, %v624_v26   ;;  %v770_v52 = vmul.f32 %v6328_v17, %v591_v6  ;;  %v823_v26 = vadd.f32 %v6336_v22, %v806_v23  ;;  %vm717_vm8 = vcmp.ne.s32.totalorder %v634_v28, %v6365_v54 }
  0xcc   : > { %862 = vmax.xlane.f32.xlu2 %v6421_v29  ;;  %vm700_vm10 = vcmp.eq.s32.totalorder %v663_v31, %v6372_v55  ;;  %v639_v28 = vadd.s32 88, %v6363_v53 }
  0xcd   : > { %vm732_vm11 = vmand %vm700_vm10, %vm716_vm9  ;;  %v502_v37 = vpop.f32.mrf.mxu0  ;;  %v787_v59 = vadd.f32 %v6334_v21, %v770_v52  ;;  %v839_v5 = vmin.f32 %v789_v25, %v823_v26 }
  0xce   : > { %5976 = vmatmul.msk.f32.gmra.mxu1 %vm4991_vm2, %v6425_v32  ;;  %v6432_v38 = vsel %vm732_vm11, %v502_v37, -1e+30  ;;  %vm719_vm11 = vcmp.ne.s32.totalorder %v636_v36, %v6365_v54 }
  0xcf   : > { %870 = vmax.xlane.f32.xlu1 %v6432_v38  ;;  %v837_v0 = vmin.f32 %v787_v59, %v821_v60  ;;  %v6496_v30 = vmax.f32 %v839_v5, 0.0  ;;  %v6531_v59 = vpop.f32.mrf.mxu3 }
  0xd0   : > { %v687_v44 = vpop.permute.xlu0 %686 }
  0xd1   : > { %v6463_v8 = vmax.f32 %v837_v0, 0.0  ;;  %13660 = vst [vmem:[#allocation14_spill] sm:$0xff] %v6496_v30  ;;  %v642_v0 = vadd.s32 112, %v6363_v53 }
  0xd3   : > { %13658 = vst [vmem:[#allocation12_spill] sm:$0xff] %v6463_v8  ;;  %v666_v31 = vpop.permute.xlu2 %665 }
  0xd4   : > { %v654_v6 = vpop.permute.xlu1 %653  ;;  %vm701_vm7 = vcmp.eq.s32.totalorder %v666_v31, %v6372_v55 }
  0xd5   : > { %vm697_vm12 = vcmp.eq.s32.totalorder %v654_v6, %v6372_v55  ;;  %v505_v24 = vpop.f32.mrf.mxu0  ;;  %vm733_vm9 = vmand %vm701_vm7, %vm717_vm8 }
  0xd6   : > { %5977 = vmatmul.msk.f32.gmra.mxu1 %vm4991_vm2, %v6437_v41  ;;  %vm729_vm14 = vmand %vm697_vm12, %vm713_vm13  ;;  %v6508_v14 = vsel %vm733_vm9, %v505_v24, -1e+30  ;;  %v641_v24 = vadd.s32 104, %v6363_v53 }
  0xd7   : > { %v6473_v13 = vsel %vm729_vm14, %v6385_v63, -1e+30  ;;  %v632_v63 = vadd.s32 32, %v6363_v53  ;;  %vm720_vm14 = vcmp.ne.s32.totalorder %v637_v40, %v6365_v54 }
  0xd8   : > { %v681_v52 = vpop.permute.xlu0 %680 }
  0xd9   : > { %vm715_vm5 = vcmp.ne.s32.totalorder %v632_v63, %v6365_v54 }
  0xda   : > { %vm731_vm6 = vmand %vm699_vm4, %vm715_vm5 }
  0xdb   : > { %v6501_v35 = vsel %vm731_vm6, %v6413_v20, -1e+30  ;;  %v672_v37 = vpop.permute.xlu2 %671  ;;  %vm725_vm6 = vcmp.ne.s32.totalorder %v642_v0, %v6365_v54 }
  0xdc   : > { %v669_v7 = vpop.permute.xlu1 %668  ;;  %vm703_vm10 = vcmp.eq.s32.totalorder %v672_v37, %v6372_v55 }
  0xdd   : > { %v6498_v34 = vpop.f32.mrf.mxu0  ;;  %vm735_vm12 = vmand %vm703_vm10, %vm719_vm11  ;;  %vm702_vm10 = vcmp.eq.s32.totalorder %v669_v7, %v6372_v55  ;;  %vm718_vm11 = vcmp.ne.s32.totalorder %v635_v11, %v6365_v54 }
  0xde   : > { %5978 = vmatmul.msk.f32.gmra.mxu1 %vm4991_vm2, %v6445_v46 }
  0xe4   : > { %v675_v20 = vpop.permute.xlu1 %674 }
  0xe5   : > { %v510_v39 = vpop.f32.mrf.mxu0  ;;  %vm704_vm13 = vcmp.eq.s32.totalorder %v675_v20, %v6372_v55 }
  0xe6   : > { %5979 = vmatmul.msk.f32.gmra.mxu1 %vm4991_vm2, %v6455_v47  ;;  %v6515_v42 = vsel %vm735_vm12, %v510_v39, -1e+30  ;;  %vm736_vm15 = vmand %vm704_vm13, %vm720_vm14 }
  0xe7   : > { %vm734_vm13 = vmand %vm702_vm10, %vm718_vm11 }
  0xe8   : > { %692 = vperm.xlu1 %6043, %v625_v61   ;;  %v522_v61 = vpop.f32.mrf.mxu3  ;;  %v6569_v63 = vsel %vm734_vm13, %v6498_v34, -1e+30 }
  0xec   : > { %v678_v49 = vpop.permute.xlu1 %677 }
  0xed   : > { %v512_v43 = vpop.f32.mrf.mxu0  ;;  %vm705_vm1 = vcmp.eq.s32.totalorder %v678_v49, %v6372_v55 }
  0xee   : > { %5980 = vmatmul.msk.f32.gmra.mxu1 %vm4991_vm2, %v6463_v8  ;;  %v6521_v50 = vsel %vm736_vm15, %v512_v43, -1e+30  ;;  %vm737_vm4 = vmand %vm705_vm1, %vm721_vm3  ;;  %vm726_vm15 = vcmp.ne.s32.totalorder %v643_v12, %v6365_v54  ;;  %vm708_vm1 = vcmp.eq.s32.totalorder %v687_v44, %v6372_v55  ;;  %vm724_vm3 = vcmp.ne.s32.totalorder %v641_v24, %v6365_v54 }
  0xef   : > { %v640_v44 = vadd.s32 96, %v6363_v53 }
  0xf0   : > { %v525_v3 = vpop.f32.mrf.mxu3 }
  0xf5   : > { %864 = vmax.xlane.f32.xlu0 %v6473_v13  ;;  %v515_v51 = vpop.f32.mrf.mxu0 }
  0xf6   : > { %5981 = vmatmul.msk.f32.gmra.mxu1 %vm4991_vm2, %v6476_v16  ;;  %v6526_v56 = vsel %vm737_vm4, %v515_v51, -1e+30 }
  0xfd   : > { %866 = vmax.xlane.f32.xlu0 %v6489_v27  ;;  %v517_v34 = vpop.f32.mrf.mxu0 }
  0xfe   : > { %5982 = vmatmul.msk.f32.gmra.mxu1 %vm4991_vm2, %v6496_v30 }
 0x105   : > { %868 = vmax.xlane.f32.xlu0 %v6501_v35 }
 0x10d   : > { %872 = vmax.xlane.f32.xlu0 %v6508_v14 }
 0x115   : > { %876 = vmax.xlane.f32.xlu0 %v6515_v42 }
 0x11d   : > { %878 = vmax.xlane.f32.xlu0 %v6521_v50 }
 0x125   : > { %880 = vmax.xlane.f32.xlu0 %v6526_v56 }
 0x12a   : > { %v6529_v57 = vpop.xlane.xlu0 %860 }
 0x12b   : > { %vm924_vm5 = vcmp.eq.f32.partialorder %v6383_v62, %v6529_v57 }
 0x12c   : > { %v940_v60 = vsel %vm924_vm5, -1e+30, %v6383_v62  ;;  %vm740_vm5 = vmand %vm708_vm1, %vm724_vm3 }
 0x12d   : > { %1068 = vmax.xlane.f32.xlu2 %v940_v60  ;;  %v756_v5 = vsel %vm740_vm5, %v522_v61, -1e+30 }
 0x13d   : > { %v690_v1 = vpop.permute.xlu0 %689 }
 0x13e   : > { %vm709_vm7 = vcmp.eq.s32.totalorder %v690_v1, %v6372_v55 }
 0x13f   : > { %v6539_v4 = vpop.xlane.xlu2 %862  ;;  %vm741_vm8 = vmand %vm709_vm7, %vm725_vm6  ;;  %vm706_vm6 = vcmp.eq.s32.totalorder %v681_v52, %v6372_v55  ;;  %vm722_vm7 = vcmp.ne.s32.totalorder %v639_v28, %v6365_v54 }
 0x140   : > { %vm925_vm9 = vcmp.eq.f32.partialorder %v6421_v29, %v6539_v4  ;;  %v6543_v6 = vsel %vm741_vm8, %v525_v3, -1e+30  ;;  %vm738_vm8 = vmand %vm706_vm6, %vm722_vm7 }
 0x141   : > { %v6546_v62 = vsel %vm925_vm9, -1e+30, %v6421_v29  ;;  %888 = vmax.xlane.f32.xlu0 %v6543_v6  ;;  %v754_v7 = vsel %vm738_vm8, %v517_v34, -1e+30 }
 0x142   : > { %1070 = vmax.xlane.f32.xlu1 %v6546_v62  ;;  %v6551_v10 = vpop.xlane.xlu1 %870 }
 0x145   : > { %683 = vperm.xlu2 %6041, %v622_v9  }
 0x15a   : > { %v693_v29 = vpop.permute.xlu1 %692 }
 0x15b   : > { %vm710_vm14 = vcmp.eq.s32.totalorder %v693_v29, %v6372_v55 }
 0x15c   : > { %vm742_vm4 = vmand %vm710_vm14, %vm726_vm15 }
 0x168   : > { %v6557_v19 = vpop.xlane.xlu0 %864 }
 0x169   : > { %vm926_vm12 = vcmp.eq.f32.partialorder %v6473_v13, %v6557_v19 }
 0x16a   : > { %v6562_v23 = vsel %vm926_vm12, -1e+30, %v6473_v13  ;;  %v527_v13 = vpop.f32.mrf.mxu3  ;;  %vm723_vm12 = vcmp.ne.s32.totalorder %v640_v44, %v6365_v54 }
 0x16b   : > { %1072 = vmax.xlane.f32.xlu1 %v6562_v23  ;;  %v6576_v26 = vsel %vm742_vm4, %v527_v13, -1e+30  ;;  %vm929_vm4 = vcmp.eq.f32.partialorder %v6432_v38, %v6551_v10 }
 0x16e   : > { %874 = vmax.xlane.f32.xlu2 %v6569_v63 }
 0x170   : > { %v6574_v25 = vpop.xlane.xlu0 %866 }
 0x171   : > { %vm927_vm15 = vcmp.eq.f32.partialorder %v6489_v27, %v6574_v25 }
 0x172   : > { %v943_v53 = vsel %vm927_vm15, -1e+30, %v6489_v27  ;;  %v945_v27 = vsel %vm929_vm4, -1e+30, %v6432_v38 }
 0x173   : > { %890 = vmax.xlane.f32.xlu1 %v6576_v26 }
 0x176   : > { %886 = vmax.xlane.f32.xlu2 %v756_v5 }
 0x178   : > { %v6580_v31 = vpop.xlane.xlu0 %868 }
 0x179   : > { %vm928_vm3 = vcmp.eq.f32.partialorder %v6501_v35, %v6580_v31 }
 0x17e   : > { %882 = vmax.xlane.f32.xlu2 %v754_v7 }
 0x180   : > { %v6584_v36 = vpop.xlane.xlu0 %872 }
 0x181   : > { %vm930_vm9 = vcmp.eq.f32.partialorder %v6508_v14, %v6584_v36 }
 0x182   : > { %v6589_v37 = vsel %vm930_vm9, -1e+30, %v6508_v14 }
 0x183   : > { %1080 = vmax.xlane.f32.xlu1 %v6589_v37 }
 0x188   : > { %v6592_v39 = vpop.xlane.xlu0 %876 }
 0x189   : > { %vm932_vm11 = vcmp.eq.f32.partialorder %v6515_v42, %v6592_v39 }
 0x18a   : > { %v6608_v45 = vsel %vm932_vm11, -1e+30, %v6515_v42  ;;  %v944_v42 = vsel %vm928_vm3, -1e+30, %v6501_v35 }
 0x190   : > { %v6597_v40 = vpop.xlane.xlu0 %878 }
 0x191   : > { %vm933_vm5 = vcmp.eq.f32.partialorder %v6521_v50, %v6597_v40 }
 0x192   : > { %v949_v52 = vsel %vm933_vm5, -1e+30, %v6521_v50 }
 0x198   : > { %v6612_v51 = vpop.xlane.xlu0 %880 }
 0x1a0   : > { %v6594_v20 = vpop.xlane.xlu2 %1068 }
 0x1a1   : > { %vm1132_vm10 = vcmp.eq.f32.partialorder %v940_v60, %v6594_v20 }
 0x1a2   : > { %v6599_v43 = vsel %vm1132_vm10, -1e+30, %v940_v60  ;;  %vm934_vm10 = vcmp.eq.f32.partialorder %v6526_v56, %v6612_v51 }
 0x1a3   : > { %1276 = vmax.xlane.f32.xlu1 %v6599_v43 }
 0x1a8   : > { %v684_v14 = vpop.permute.xlu2 %683 }
 0x1a9   : > { %vm707_vm13 = vcmp.eq.s32.totalorder %v684_v14, %v6372_v55 }
 0x1aa   : > { %vm739_vm14 = vmand %vm707_vm13, %vm723_vm12 }
 0x1ab   : > { %1084 = vmax.xlane.f32.xlu1 %v6608_v45  ;;  %v755_v49 = vsel %vm739_vm14, %v6531_v59, -1e+30 }
 0x1ac   : > { %884 = vmax.xlane.f32.xlu0 %v755_v49 }
 0x1b4   : > { %1074 = vmax.xlane.f32.xlu0 %v943_v53  ;;  %v6617_v54 = vpop.xlane.xlu0 %888 }
 0x1b5   : > { %13661 = vst [vmem:[#allocation15_spill] sm:$0xff] %v6617_v54  ;;  %vm938_vm1 = vcmp.eq.f32.partialorder %v6543_v6, %v6617_v54  ;;  %v6634_v59 = vpop.xlane.xlu1 %1070 }
 0x1b6   : > { %v6622_v55 = vsel %vm938_vm1, -1e+30, %v6543_v6  ;;  %vm1133_vm8 = vcmp.eq.f32.partialorder %v6546_v62, %v6634_v59  ;;  %v6661_v6 = vsel %vm934_vm10, -1e+30, %v6526_v56 }
 0x1b7   : > { %1096 = vmax.xlane.f32.xlu1 %v6622_v55  ;;  %v6652_v1 = vsel %vm1133_vm8, -1e+30, %v6546_v62 }
 0x1bc   : > { %1076 = vmax.xlane.f32.xlu0 %v944_v42 }
 0x1c4   : > { %1078 = vmax.xlane.f32.xlu0 %v945_v27 }
 0x1cc   : > { %1086 = vmax.xlane.f32.xlu0 %v949_v52 }
 0x1de   : > { %v6636_v60 = vpop.xlane.xlu1 %1072 }
 0x1df   : > { %vm1134_vm6 = vcmp.eq.f32.partialorder %v6562_v23, %v6636_v60 }
 0x1e0   : > { %v1150_v35 = vsel %vm1134_vm6, -1e+30, %v6562_v23 }
 0x1e1   : > { %v6641_v61 = vpop.xlane.xlu2 %874  ;;  %1280 = vmax.xlane.f32.xlu0 %v1150_v35 }
 0x1e2   : > { %vm931_vm7 = vcmp.eq.f32.partialorder %v6569_v63, %v6641_v61 }
 0x1e3   : > { %v947_v38 = vsel %vm931_vm7, -1e+30, %v6569_v63 }
 0x1e4   : > { %1082 = vmax.xlane.f32.xlu2 %v947_v38 }
 0x1e6   : > { %v6673_v29 = vpop.xlane.xlu1 %890 }
 0x1e7   : > { %vm939_vm14 = vcmp.eq.f32.partialorder %v6576_v26, %v6673_v29 }
 0x1e8   : > { %v6686_v13 = vsel %vm939_vm14, -1e+30, %v6576_v26 }
 0x1e9   : > { %v6648_v50 = vpop.xlane.xlu2 %886 }
 0x1ea   : > { %vm937_vm9 = vcmp.eq.f32.partialorder %v756_v5, %v6648_v50 }
 0x1eb   : > { %v953_v0 = vsel %vm937_vm9, -1e+30, %v756_v5 }
 0x1ec   : > { %1094 = vmax.xlane.f32.xlu0 %v953_v0  ;;  %1278 = vmax.xlane.f32.xlu2 %v6652_v1 }
 0x1f1   : > { %v6657_v3 = vpop.xlane.xlu2 %882 }
 0x1f2   : > { %13662 = vst [vmem:[#allocation16_spill] sm:$0xff] %v6657_v3  ;;  %vm935_vm11 = vcmp.eq.f32.partialorder %v754_v7, %v6657_v3 }
 0x1f3   : > { %v951_v9 = vsel %vm935_vm11, -1e+30, %v754_v7 }
 0x1f4   : > { %1088 = vmax.xlane.f32.xlu2 %v6661_v6  ;;  %1090 = vmax.xlane.f32.xlu0 %v951_v9 }
 0x1f6   : > { %v6683_v24 = vpop.xlane.xlu1 %1080 }
 0x1f7   : > { %vm1138_vm1 = vcmp.eq.f32.partialorder %v6589_v37, %v6683_v24 }
 0x1f8   : > { %v1154_v7 = vsel %vm1138_vm1, -1e+30, %v6589_v37 }
 0x216   : > { %v6694_v28 = vpop.xlane.xlu1 %1276 }
 0x217   : > { %vm1340_vm4 = vcmp.eq.f32.partialorder %v6599_v43, %v6694_v28 }
 0x218   : > { %v1356_v14 = vsel %vm1340_vm4, -1e+30, %v6599_v43 }
 0x21f   : > { %v6664_v11 = vpop.xlane.xlu0 %884 }
 0x220   : > { %13663 = vst [vmem:[#allocation17_spill] sm:$0xff] %v6664_v11  ;;  %vm936_vm12 = vcmp.eq.f32.partialorder %v755_v49, %v6664_v11 }
 0x221   : > { %v6667_v62 = vsel %vm936_vm12, -1e+30, %v755_v49  ;;  %v6703_v49 = vpop.xlane.xlu1 %1084 }
 0x222   : > { %1092 = vmax.xlane.f32.xlu1 %v6667_v62  ;;  %vm1140_vm6 = vcmp.eq.f32.partialorder %v6608_v45, %v6703_v49 }
 0x223   : > { %v6708_v37 = vsel %vm1140_vm6, -1e+30, %v6608_v45 }
 0x227   : > { %v6670_v12 = vpop.xlane.xlu0 %1074 }
 0x228   : > { %vm1135_vm13 = vcmp.eq.f32.partialorder %v943_v53, %v6670_v12 }
 0x229   : > { %v6675_v56 = vsel %vm1135_vm13, -1e+30, %v943_v53 }
 0x22a   : > { %1282 = vmax.xlane.f32.xlu2 %v6675_v56  ;;  %v6711_v53 = vpop.xlane.xlu1 %1096 }
 0x22b   : > { %13664 = vst [vmem:[#allocation18_spill] sm:$0xff] %v6711_v53  ;;  %vm1146_vm7 = vcmp.eq.f32.partialorder %v6622_v55, %v6711_v53 }
 0x22f   : > { %v6680_v23 = vpop.xlane.xlu0 %1076 }
 0x230   : > { %vm1136_vm15 = vcmp.eq.f32.partialorder %v944_v42, %v6680_v23 }
 0x231   : > { %v1152_v63 = vsel %vm1136_vm15, -1e+30, %v944_v42  ;;  %v6716_v42 = vsel %vm1146_vm7, -1e+30, %v6622_v55 }
 0x232   : > { %1284 = vmax.xlane.f32.xlu1 %v1152_v63  ;;  %1098 = vmax.xlane.f32.xlu2 %v6686_v13 }
 0x237   : > { %v6691_v5 = vpop.xlane.xlu0 %1078 }
 0x238   : > { %vm1137_vm3 = vcmp.eq.f32.partialorder %v945_v27, %v6691_v5 }
 0x239   : > { %v1153_v34 = vsel %vm1137_vm3, -1e+30, %v945_v27 }
 0x23a   : > { %1286 = vmax.xlane.f32.xlu1 %v1153_v34  ;;  %1288 = vmax.xlane.f32.xlu2 %v1154_v7 }
 0x23f   : > { %v6699_v26 = vpop.xlane.xlu0 %1086 }
 0x240   : > { %vm1141_vm5 = vcmp.eq.f32.partialorder %v949_v52, %v6699_v26 }
 0x241   : > { %v1157_v44 = vsel %vm1141_vm5, -1e+30, %v949_v52 }
 0x242   : > { %1294 = vmax.xlane.f32.xlu1 %v1157_v44  ;;  %1484 = vmax.xlane.f32.xlu2 %v1356_v14 }
 0x24a   : > { %1292 = vmax.xlane.f32.xlu2 %v6708_v37 }
 0x252   : > { %1304 = vmax.xlane.f32.xlu2 %v6716_v42 }
 0x254   : > { %v6719_v43 = vpop.xlane.xlu0 %1280 }
 0x255   : > { %vm1342_vm8 = vcmp.eq.f32.partialorder %v1150_v35, %v6719_v43 }
 0x256   : > { %v1358_v27 = vsel %vm1342_vm8, -1e+30, %v1150_v35 }
 0x257   : > { %1488 = vmax.xlane.f32.xlu1 %v1358_v27  ;;  %v6722_v45 = vpop.xlane.xlu2 %1082 }
 0x258   : > { %13665 = vst [vmem:[#allocation19_spill] sm:$0xff] %v6722_v45  ;;  %vm1139_vm9 = vcmp.eq.f32.partialorder %v947_v38, %v6722_v45 }
 0x259   : > { %v1155_v52 = vsel %vm1139_vm9, -1e+30, %v947_v38 }
 0x25a   : > { %1290 = vmax.xlane.f32.xlu0 %v1155_v52 }
 0x25f   : > { %v6725_v30 = vpop.xlane.xlu0 %1094  ;;  %v6727_v3 = vpop.xlane.xlu2 %1278 }
 0x260   : > { %13666 = vst [vmem:[#allocation20_spill] sm:$0xff] %v6725_v30  ;;  %vm1145_vm10 = vcmp.eq.f32.partialorder %v953_v0, %v6725_v30  ;;  %vm1341_vm11 = vcmp.eq.f32.partialorder %v6652_v1, %v6727_v3 }
 0x261   : > { %13667 = vst [vmem:[#allocation21_spill] sm:$0xff] %v6727_v3  ;;  %v6730_v55 = vsel %vm1145_vm10, -1e+30, %v953_v0  ;;  %v6736_v35 = vsel %vm1341_vm11, -1e+30, %v6652_v1 }
 0x262   : > { %1302 = vmax.xlane.f32.xlu1 %v6730_v55  ;;  %1486 = vmax.xlane.f32.xlu0 %v6736_v35 }
 0x267   : > { %v6739_v38 = vpop.xlane.xlu0 %1090  ;;  %v6741_v53 = vpop.xlane.xlu2 %1088 }
 0x268   : > { %13668 = vst [vmem:[#allocation22_spill] sm:$0xff] %v6739_v38  ;;  %vm1143_vm12 = vcmp.eq.f32.partialorder %v951_v9, %v6739_v38  ;;  %vm1142_vm13 = vcmp.eq.f32.partialorder %v6661_v6, %v6741_v53 }
 0x269   : > { %13669 = vst [vmem:[#allocation23_spill] sm:$0xff] %v6741_v53  ;;  %v6744_v54 = vsel %vm1143_vm12, -1e+30, %v951_v9  ;;  %v6750_v0 = vsel %vm1142_vm13, -1e+30, %v6661_v6 }
 0x26a   : > { %1298 = vmax.xlane.f32.xlu1 %v6744_v54  ;;  %1296 = vmax.xlane.f32.xlu0 %v6750_v0 }
 0x295   : > { %v6753_v1 = vpop.xlane.xlu1 %1092 }
 0x296   : > { %13670 = vst [vmem:[#allocation24_spill] sm:$0xff] %v6753_v1  ;;  %vm1144_vm14 = vcmp.eq.f32.partialorder %v6667_v62, %v6753_v1 }
 0x297   : > { %v6758_v30 = vsel %vm1144_vm14, -1e+30, %v6667_v62 }
 0x298   : > { %1300 = vmax.xlane.f32.xlu2 %v6758_v30 }
 0x29d   : > { %v6761_v9 = vpop.xlane.xlu2 %1282 }
 0x29e   : > { %13671 = vst [vmem:[#allocation25_spill] sm:$0xff] %v6761_v9  ;;  %vm1343_vm15 = vcmp.eq.f32.partialorder %v6675_v56, %v6761_v9 }
 0x29f   : > { %v1359_v6 = vsel %vm1343_vm15, -1e+30, %v6675_v56 }
 0x2a0   : > { %1490 = vmax.xlane.f32.xlu0 %v1359_v6 }
 0x2a5   : > { %v6766_v38 = vpop.xlane.xlu1 %1284  ;;  %v6768_v46 = vpop.xlane.xlu2 %1098 }
 0x2a6   : > { %13672 = vst [vmem:[#allocation26_spill] sm:$0xff] %v6766_v38  ;;  %vm1344_vm1 = vcmp.eq.f32.partialorder %v1152_v63, %v6766_v38  ;;  %vm1147_vm7 = vcmp.eq.f32.partialorder %v6686_v13, %v6768_v46 }
 0x2a7   : > { %13673 = vst [vmem:[#allocation27_spill] sm:$0xff] %v6768_v46  ;;  %v1360_v1 = vsel %vm1344_vm1, -1e+30, %v1152_v63 }
 0x2a8   : > { %1492 = vmax.xlane.f32.xlu2 %v1360_v1 }
 0x2ad   : > { %v6771_v62 = vpop.xlane.xlu1 %1286  ;;  %v6773_v11 = vpop.xlane.xlu2 %1288 }
 0x2ae   : > { %13674 = vst [vmem:[#allocation28_spill] sm:$0xff] %v6771_v62  ;;  %vm1345_vm3 = vcmp.eq.f32.partialorder %v1153_v34, %v6771_v62  ;;  %vm1346_vm4 = vcmp.eq.f32.partialorder %v1154_v7, %v6773_v11 }
 0x2af   : > { %13675 = vst [vmem:[#allocation29_spill] sm:$0xff] %v6773_v11  ;;  %v1361_v53 = vsel %vm1345_vm3, -1e+30, %v1153_v34  ;;  %v6777_v56 = vsel %vm1346_vm4, -1e+30, %v1154_v7 }
 0x2b0   : > { %1494 = vmax.xlane.f32.xlu2 %v1361_v53  ;;  %1496 = vmax.xlane.f32.xlu0 %v6777_v56  ;;  %v1163_v7 = vsel %vm1147_vm7, -1e+30, %v6686_v13 }
 0x2b5   : > { %v6780_v9 = vpop.xlane.xlu1 %1294  ;;  %v6782_v3 = vpop.xlane.xlu2 %1484 }
 0x2b6   : > { %13676 = vst [vmem:[#allocation30_spill] sm:$0xff] %v6780_v9  ;;  %vm1349_vm5 = vcmp.eq.f32.partialorder %v1157_v44, %v6780_v9  ;;  %vm1548_vm6 = vcmp.eq.f32.partialorder %v1356_v14, %v6782_v3 }
 0x2b7   : > { %13677 = vst [vmem:[#allocation31_spill] sm:$0xff] %v6782_v3  ;;  %v1365_v63 = vsel %vm1349_vm5, -1e+30, %v1157_v44  ;;  %v6786_v38 = vsel %vm1548_vm6, -1e+30, %v1356_v14 }
 0x2b8   : > { %1502 = vmax.xlane.f32.xlu2 %v1365_v63  ;;  %1692 = vmax.xlane.f32.xlu0 %v6786_v38 }
 0x2bd   : > { %v6791_v34 = vpop.xlane.xlu2 %1292 }
 0x2be   : > { %13678 = vst [vmem:[#allocation32_spill] sm:$0xff] %v6791_v34  ;;  %vm1348_vm8 = vcmp.eq.f32.partialorder %v6708_v37, %v6791_v34 }
 0x2bf   : > { %v6797_v44 = vsel %vm1348_vm8, -1e+30, %v6708_v37 }
 0x2c0   : > { %1306 = vmax.xlane.f32.xlu0 %v1163_v7 }
 0x2c5   : > { %v6803_v14 = vpop.xlane.xlu2 %1304 }
 0x2c6   : > { %13680 = vst [vmem:[#allocation34_spill] sm:$0xff] %v6803_v14  ;;  %vm1354_vm11 = vcmp.eq.f32.partialorder %v6716_v42, %v6803_v14 }
 0x2c7   : > { %v6811_v37 = vsel %vm1354_vm11, -1e+30, %v6716_v42 }
 0x2c8   : > { %1500 = vmax.xlane.f32.xlu0 %v6797_v44 }
 0x2ca   : > { %v6799_v9 = vpop.xlane.xlu1 %1488 }
 0x2cb   : > { %13679 = vst [vmem:[#allocation33_spill] sm:$0xff] %v6799_v9  ;;  %vm1550_vm9 = vcmp.eq.f32.partialorder %v1358_v27, %v6799_v9 }
 0x2cc   : > { %v1566_v46 = vsel %vm1550_vm9, -1e+30, %v1358_v27 }
 0x2cd   : > { %1696 = vmax.xlane.f32.xlu2 %v1566_v46  ;;  %v6805_v3 = vpop.xlane.xlu0 %1290 }
 0x2ce   : > { %13681 = vst [vmem:[#allocation35_spill] sm:$0xff] %v6805_v3  ;;  %vm1347_vm10 = vcmp.eq.f32.partialorder %v1155_v52, %v6805_v3 }
 0x2cf   : > { %v1363_v13 = vsel %vm1347_vm10, -1e+30, %v1155_v52 }
 0x2d0   : > { %1498 = vmax.xlane.f32.xlu1 %v1363_v13  ;;  %1512 = vmax.xlane.f32.xlu0 %v6811_v37 }
 0x2d5   : > { %v6814_v34 = vpop.xlane.xlu1 %1302  ;;  %v6818_v27 = vpop.xlane.xlu0 %1486 }
 0x2d6   : > { %13682 = vst [vmem:[#allocation36_spill] sm:$0xff] %v6814_v34  ;;  %vm1353_vm12 = vcmp.eq.f32.partialorder %v6730_v55, %v6814_v34  ;;  %vm1549_vm13 = vcmp.eq.f32.partialorder %v6736_v35, %v6818_v27 }
 0x2d7   : > { %13683 = vst [vmem:[#allocation37_spill] sm:$0xff] %v6818_v27  ;;  %v1369_v9 = vsel %vm1353_vm12, -1e+30, %v6730_v55  ;;  %v1565_v52 = vsel %vm1549_vm13, -1e+30, %v6736_v35 }
 0x2d8   : > { %1510 = vmax.xlane.f32.xlu2 %v1369_v9  ;;  %1694 = vmax.xlane.f32.xlu1 %v1565_v52 }
 0x2dd   : > { %v6824_v42 = vpop.xlane.xlu1 %1298  ;;  %v6829_v34 = vpop.xlane.xlu0 %1296 }
 0x2de   : > { %13684 = vst [vmem:[#allocation38_spill] sm:$0xff] %v6824_v42  ;;  %vm1351_vm14 = vcmp.eq.f32.partialorder %v6744_v54, %v6824_v42  ;;  %vm1350_vm15 = vcmp.eq.f32.partialorder %v6750_v0, %v6829_v34 }
 0x2df   : > { %v1367_v14 = vsel %vm1351_vm14, -1e+30, %v6744_v54  ;;  %13685 = vst [vmem:[#allocation39_spill] sm:$0xff] %v6829_v34  ;;  %v6834_v55 = vsel %vm1350_vm15, -1e+30, %v6750_v0 }
 0x2e0   : > { %1506 = vmax.xlane.f32.xlu2 %v1367_v14  ;;  %1504 = vmax.xlane.f32.xlu1 %v6834_v55 }
 0x30b   : > { %v6837_v35 = vpop.xlane.xlu2 %1300 }
 0x30c   : > { %13686 = vst [vmem:[#allocation40_spill] sm:$0xff] %v6837_v35  ;;  %vm1352_vm5 = vcmp.eq.f32.partialorder %v6758_v30, %v6837_v35 }
 0x313   : > { %v6839_v27 = vpop.xlane.xlu0 %1490 }
 0x314   : > { %13687 = vst [vmem:[#allocation41_spill] sm:$0xff] %v6839_v27  ;;  %vm1551_vm1 = vcmp.eq.f32.partialorder %v1359_v6, %v6839_v27 }
 0x315   : > { %v6842_v42 = vsel %vm1551_vm1, -1e+30, %v1359_v6  ;;  %v1368_v6 = vsel %vm1352_vm5, -1e+30, %v6758_v30 }
 0x316   : > { %1698 = vmax.xlane.f32.xlu1 %v6842_v42 }
 0x31b   : > { %v6845_v54 = vpop.xlane.xlu2 %1492 }
 0x31c   : > { %13688 = vst [vmem:[#allocation42_spill] sm:$0xff] %v6845_v54  ;;  %vm1552_vm3 = vcmp.eq.f32.partialorder %v1360_v1, %v6845_v54 }
 0x31d   : > { %v6848_v34 = vsel %vm1552_vm3, -1e+30, %v1360_v1 }
 0x31e   : > { %1700 = vmax.xlane.f32.xlu0 %v6848_v34 }
 0x323   : > { %v6851_v0 = vpop.xlane.xlu2 %1494  ;;  %v6856_v11 = vpop.xlane.xlu0 %1496 }
 0x324   : > { %13689 = vst [vmem:[#allocation43_spill] sm:$0xff] %v6851_v0  ;;  %vm1553_vm4 = vcmp.eq.f32.partialorder %v1361_v53, %v6851_v0  ;;  %vm1554_vm8 = vcmp.eq.f32.partialorder %v6777_v56, %v6856_v11 }
 0x325   : > { %v6854_v3 = vsel %vm1553_vm4, -1e+30, %v1361_v53  ;;  %13690 = vst [vmem:[#allocation44_spill] sm:$0xff] %v6856_v11  ;;  %v1570_v30 = vsel %vm1554_vm8, -1e+30, %v6777_v56 }
 0x326   : > { %1702 = vmax.xlane.f32.xlu0 %v6854_v3 }
 0x32b   : > { %v6862_v54 = vpop.xlane.xlu0 %1692  ;;  %v6864_v1 = vpop.xlane.xlu2 %1502 }
 0x32c   : > { %13691 = vst [vmem:[#allocation45_spill] sm:$0xff] %v6862_v54  ;;  %vm1557_vm6 = vcmp.eq.f32.partialorder %v1365_v63, %v6864_v1  ;;  %vm1756_vm11 = vcmp.eq.f32.partialorder %v6786_v38, %v6862_v54 }
 0x32d   : > { %13692 = vst [vmem:[#allocation46_spill] sm:$0xff] %v6864_v1  ;;  %v6867_v27 = vsel %vm1557_vm6, -1e+30, %v1365_v63  ;;  %v1772_v56 = vsel %vm1756_vm11, -1e+30, %v6786_v38 }
 0x32e   : > { %1508 = vmax.xlane.f32.xlu0 %v1368_v6 }
 0x333   : > { %v6869_v53 = vpop.xlane.xlu0 %1306 }
 0x334   : > { %13693 = vst [vmem:[#allocation47_spill] sm:$0xff] %v6869_v53  ;;  %vm1355_vm7 = vcmp.eq.f32.partialorder %v1163_v7, %v6869_v53 }
 0x335   : > { %v6873_v0 = vsel %vm1355_vm7, -1e+30, %v1163_v7 }
 0x336   : > { %1710 = vmax.xlane.f32.xlu0 %v6867_v27  ;;  %1514 = vmax.xlane.f32.xlu1 %v6873_v0 }
 0x33b   : > { %v6890_v53 = vpop.xlane.xlu0 %1500 }
 0x33c   : > { %13696 = vst [vmem:[#allocation50_spill] sm:$0xff] %v6890_v53  ;;  %vm1556_vm13 = vcmp.eq.f32.partialorder %v6797_v44, %v6890_v53 }
 0x33e   : > { %1704 = vmax.xlane.f32.xlu1 %v1570_v30 }
 0x340   : > { %v6879_v35 = vpop.xlane.xlu2 %1696 }
 0x341   : > { %13694 = vst [vmem:[#allocation48_spill] sm:$0xff] %v6879_v35  ;;  %vm1758_vm9 = vcmp.eq.f32.partialorder %v1566_v46, %v6879_v35 }
 0x342   : > { %v6882_v63 = vsel %vm1758_vm9, -1e+30, %v1566_v46 }
 0x343   : > { %v6884_v1 = vpop.xlane.xlu1 %1498  ;;  %1904 = vmax.xlane.f32.xlu0 %v6882_v63  ;;  %v6908_v35 = vpop.xlane.xlu0 %1512 }
 0x344   : > { %13695 = vst [vmem:[#allocation49_spill] sm:$0xff] %v6884_v1  ;;  %vm1555_vm10 = vcmp.eq.f32.partialorder %v1363_v13, %v6884_v1  ;;  %vm1562_vm15 = vcmp.eq.f32.partialorder %v6811_v37, %v6908_v35 }
 0x345   : > { %v1571_v7 = vsel %vm1555_vm10, -1e+30, %v1363_v13  ;;  %v6905_v13 = vsel %vm1556_vm13, -1e+30, %v6797_v44  ;;  %13699 = vst [vmem:[#allocation53_spill] sm:$0xff] %v6908_v35 }
 0x346   : > { %1706 = vmax.xlane.f32.xlu2 %v1571_v7  ;;  %1900 = vmax.xlane.f32.xlu1 %v1772_v56  ;;  %v6921_v44 = vsel %vm1562_vm15, -1e+30, %v6811_v37 }
 0x34b   : > { %v6893_v11 = vpop.xlane.xlu2 %1510  ;;  %v6901_v1 = vpop.xlane.xlu1 %1694 }
 0x34c   : > { %13697 = vst [vmem:[#allocation51_spill] sm:$0xff] %v6893_v11  ;;  %vm1561_vm12 = vcmp.eq.f32.partialorder %v1369_v9, %v6893_v11  ;;  %vm1757_vm14 = vcmp.eq.f32.partialorder %v1565_v52, %v6901_v1 }
 0x34d   : > { %v6898_v46 = vsel %vm1561_vm12, -1e+30, %v1369_v9  ;;  %13698 = vst [vmem:[#allocation52_spill] sm:$0xff] %v6901_v1  ;;  %v1773_v38 = vsel %vm1757_vm14, -1e+30, %v1565_v52 }
 0x34e   : > { %1718 = vmax.xlane.f32.xlu0 %v6898_v46  ;;  %1708 = vmax.xlane.f32.xlu1 %v6905_v13 }
 0x34f   : > { %1902 = vmax.xlane.f32.xlu2 %v1773_v38 }
 0x353   : > { %v6910_v11 = vpop.xlane.xlu2 %1506  ;;  %v6918_v1 = vpop.xlane.xlu1 %1504 }
 0x354   : > { %13700 = vst [vmem:[#allocation54_spill] sm:$0xff] %v6910_v11  ;;  %vm1559_vm1 = vcmp.eq.f32.partialorder %v1367_v14, %v6910_v11  ;;  %vm1558_vm3 = vcmp.eq.f32.partialorder %v6834_v55, %v6918_v1 }
 0x355   : > { %v6915_v9 = vsel %vm1559_vm1, -1e+30, %v1367_v14  ;;  %13701 = vst [vmem:[#allocation55_spill] sm:$0xff] %v6918_v1  ;;  %v1574_v52 = vsel %vm1558_vm3, -1e+30, %v6834_v55 }
 0x356   : > { %1714 = vmax.xlane.f32.xlu0 %v6915_v9  ;;  %1720 = vmax.xlane.f32.xlu1 %v6921_v44 }
 0x357   : > { %1712 = vmax.xlane.f32.xlu2 %v1574_v52 }
 0x389   : > { %v6927_v35 = vpop.xlane.xlu1 %1698 }
 0x38a   : > { %13702 = vst [vmem:[#allocation56_spill] sm:$0xff] %v6927_v35  ;;  %vm1759_vm4 = vcmp.eq.f32.partialorder %v6842_v42, %v6927_v35 }
 0x38b   : > { %v6932_v14 = vsel %vm1759_vm4, -1e+30, %v6842_v42 }
 0x38c   : > { %1906 = vmax.xlane.f32.xlu2 %v6932_v14 }
 0x391   : > { %v6935_v37 = vpop.xlane.xlu0 %1700 }
 0x392   : > { %13703 = vst [vmem:[#allocation57_spill] sm:$0xff] %v6935_v37  ;;  %vm1760_vm6 = vcmp.eq.f32.partialorder %v6848_v34, %v6935_v37 }
 0x393   : > { %v1776_v42 = vsel %vm1760_vm6, -1e+30, %v6848_v34 }
 0x399   : > { %v6937_v11 = vpop.xlane.xlu0 %1702 }
 0x39a   : > { %13704 = vst [vmem:[#allocation58_spill] sm:$0xff] %v6937_v11  ;;  %vm1761_vm7 = vcmp.eq.f32.partialorder %v6854_v3, %v6937_v11 }
 0x39b   : > { %v1777_v54 = vsel %vm1761_vm7, -1e+30, %v6854_v3 }
 0x3a1   : > { %v6939_v1 = vpop.xlane.xlu0 %1508 }
 0x3a2   : > { %13705 = vst [vmem:[#allocation59_spill] sm:$0xff] %v6939_v1  ;;  %vm1560_vm5 = vcmp.eq.f32.partialorder %v1368_v6, %v6939_v1 }
 0x3a3   : > { %v6942_v55 = vsel %vm1560_vm5, -1e+30, %v1368_v6 }
 0x3a4   : > { %1716 = vmax.xlane.f32.xlu1 %v6942_v55 }
 0x3a9   : > { %v6948_v35 = vpop.xlane.xlu1 %1514  ;;  %v6952_v53 = vpop.xlane.xlu0 %1710 }
 0x3aa   : > { %13706 = vst [vmem:[#allocation60_spill] sm:$0xff] %v6948_v35  ;;  %vm1765_vm9 = vcmp.eq.f32.partialorder %v6867_v27, %v6952_v53  ;;  %vm1563_vm13 = vcmp.eq.f32.partialorder %v6873_v0, %v6948_v35 }
 0x3ab   : > { %13707 = vst [vmem:[#allocation61_spill] sm:$0xff] %v6952_v53  ;;  %v6965_v11 = vsel %vm1765_vm9, -1e+30, %v6867_v27 }
 0x3ac   : > { %1908 = vmax.xlane.f32.xlu1 %v1776_v42 }
 0x3b1   : > { %v6955_v1 = vpop.xlane.xlu1 %1704 }
 0x3b2   : > { %13708 = vst [vmem:[#allocation62_spill] sm:$0xff] %v6955_v1  ;;  %vm1762_vm8 = vcmp.eq.f32.partialorder %v1570_v30, %v6955_v1 }
 0x3b3   : > { %v1778_v6 = vsel %vm1762_vm8, -1e+30, %v1570_v30 }
 0x3b4   : > { %1910 = vmax.xlane.f32.xlu1 %v1777_v54  ;;  %1912 = vmax.xlane.f32.xlu2 %v1778_v6 }
 0x3b6   : > { %v6962_v37 = vpop.xlane.xlu0 %1904 }
 0x3b7   : > { %13710 = vst [vmem:[#allocation64_spill] sm:$0xff] %v6962_v37  ;;  %vm1966_vm12 = vcmp.eq.f32.partialorder %v6882_v63, %v6962_v37 }
 0x3b8   : > { %v6977_v27 = vsel %vm1966_vm12, -1e+30, %v6882_v63 }
 0x3b9   : > { %v6960_v34 = vpop.xlane.xlu2 %1706  ;;  %v6967_v62 = vpop.xlane.xlu1 %1900 }
 0x3ba   : > { %13709 = vst [vmem:[#allocation63_spill] sm:$0xff] %v6960_v34  ;;  %vm1763_vm10 = vcmp.eq.f32.partialorder %v1571_v7, %v6960_v34  ;;  %vm1964_vm11 = vcmp.eq.f32.partialorder %v1772_v56, %v6967_v62 }
 0x3bb   : > { %13711 = vst [vmem:[#allocation65_spill] sm:$0xff] %v6967_v62  ;;  %v1779_v3 = vsel %vm1763_vm10, -1e+30, %v1571_v7  ;;  %v1980_v30 = vsel %vm1964_vm11, -1e+30, %v1772_v56 }
 0x3bc   : > { %1918 = vmax.xlane.f32.xlu1 %v6965_v11  ;;  %1914 = vmax.xlane.f32.xlu0 %v1779_v3  ;;  %v1579_v7 = vsel %vm1563_vm13, -1e+30, %v6873_v0 }
 0x3bd   : > { %2108 = vmax.xlane.f32.xlu2 %v1980_v30 }
 0x3c1   : > { %v6974_v1 = vpop.xlane.xlu0 %1718  ;;  %v6984_v62 = vpop.xlane.xlu1 %1708 }
 0x3c2   : > { %13712 = vst [vmem:[#allocation66_spill] sm:$0xff] %v6974_v1  ;;  %v6980_v53 = vpop.xlane.xlu2 %1902  ;;  %vm1769_vm15 = vcmp.eq.f32.partialorder %v6898_v46, %v6974_v1  ;;  %vm1764_vm1 = vcmp.eq.f32.partialorder %v6905_v13, %v6984_v62 }
 0x3c3   : > { %13713 = vst [vmem:[#allocation67_spill] sm:$0xff] %v6980_v53  ;;  %vm1965_vm14 = vcmp.eq.f32.partialorder %v1773_v38, %v6980_v53  ;;  %v6991_v63 = vsel %vm1769_vm15, -1e+30, %v6898_v46  ;;  %v1780_v0 = vsel %vm1764_vm1, -1e+30, %v6905_v13 }
 0x3c4   : > { %2112 = vmax.xlane.f32.xlu1 %v6977_v27  ;;  %13714 = vst [vmem:[#allocation68_spill] sm:$0xff] %v6984_v62  ;;  %v1981_v56 = vsel %vm1965_vm14, -1e+30, %v1773_v38 }
 0x3c5   : > { %1722 = vmax.xlane.f32.xlu2 %v1579_v7  ;;  %2110 = vmax.xlane.f32.xlu0 %v1981_v56 }
 0x3c9   : > { %v6994_v34 = vpop.xlane.xlu0 %1714  ;;  %v7004_v38 = vpop.xlane.xlu1 %1720 }
 0x3ca   : > { %13715 = vst [vmem:[#allocation69_spill] sm:$0xff] %v6994_v34  ;;  %v6998_v35 = vpop.xlane.xlu2 %1712  ;;  %vm1767_vm4 = vcmp.eq.f32.partialorder %v6915_v9, %v6994_v34  ;;  %vm1770_vm5 = vcmp.eq.f32.partialorder %v6921_v44, %v7004_v38 }
 0x3cb   : > { %13716 = vst [vmem:[#allocation70_spill] sm:$0xff] %v6998_v35  ;;  %vm1766_vm3 = vcmp.eq.f32.partialorder %v1574_v52, %v6998_v35  ;;  %v7007_v1 = vsel %vm1767_vm4, -1e+30, %v6915_v9  ;;  %v1786_v13 = vsel %vm1770_vm5, -1e+30, %v6921_v44 }
 0x3cc   : > { %1926 = vmax.xlane.f32.xlu1 %v6991_v63  ;;  %13717 = vst [vmem:[#allocation71_spill] sm:$0xff] %v7004_v38  ;;  %v1782_v46 = vsel %vm1766_vm3, -1e+30, %v1574_v52 }
 0x3cd   : > { %1916 = vmax.xlane.f32.xlu2 %v1780_v0  ;;  %1920 = vmax.xlane.f32.xlu0 %v1782_v46 }
 0x3d4   : > { %1922 = vmax.xlane.f32.xlu1 %v7007_v1 }
 0x3d5   : > { %1928 = vmax.xlane.f32.xlu2 %v1786_v13 }
 0x3ff   : > { %v7013_v35 = vpop.xlane.xlu2 %1906 }
 0x400   : > { %13718 = vst [vmem:[#allocation72_spill] sm:$0xff] %v7013_v35  ;;  %vm1967_vm6 = vcmp.eq.f32.partialorder %v6932_v14, %v7013_v35 }
 0x401   : > { %v7018_v34 = vsel %vm1967_vm6, -1e+30, %v6932_v14 }
 0x402   : > { %2114 = vmax.xlane.f32.xlu0 %v7018_v34 }
 0x417   : > { %v7021_v9 = vpop.xlane.xlu1 %1716 }
 0x418   : > { %13719 = vst [vmem:[#allocation73_spill] sm:$0xff] %v7021_v9  ;;  %vm1768_vm10 = vcmp.eq.f32.partialorder %v6942_v55, %v7021_v9 }
 0x41f   : > { %v7023_v52 = vpop.xlane.xlu1 %1908 }
 0x420   : > { %13720 = vst [vmem:[#allocation74_spill] sm:$0xff] %v7023_v52  ;;  %vm1968_vm7 = vcmp.eq.f32.partialorder %v1776_v42, %v7023_v52  ;;  %v7046_v52 = vsel %vm1768_vm10, -1e+30, %v6942_v55 }
 0x421   : > { %v7026_v38 = vsel %vm1968_vm7, -1e+30, %v1776_v42 }
 0x422   : > { %2116 = vmax.xlane.f32.xlu2 %v7026_v38 }
 0x427   : > { %v7029_v44 = vpop.xlane.xlu1 %1910  ;;  %v7034_v14 = vpop.xlane.xlu2 %1912 }
 0x428   : > { %13721 = vst [vmem:[#allocation75_spill] sm:$0xff] %v7029_v44  ;;  %vm1969_vm8 = vcmp.eq.f32.partialorder %v1777_v54, %v7029_v44  ;;  %vm1970_vm9 = vcmp.eq.f32.partialorder %v1778_v6, %v7034_v14 }
 0x429   : > { %v7032_v35 = vsel %vm1969_vm8, -1e+30, %v1777_v54  ;;  %13722 = vst [vmem:[#allocation76_spill] sm:$0xff] %v7034_v14  ;;  %v7038_v53 = vsel %vm1970_vm9, -1e+30, %v1778_v6 }
 0x42a   : > { %2118 = vmax.xlane.f32.xlu2 %v7032_v35  ;;  %2120 = vmax.xlane.f32.xlu0 %v7038_v53 }
 0x42f   : > { %v7043_v42 = vpop.xlane.xlu1 %1918  ;;  %v7048_v54 = vpop.xlane.xlu0 %1914 }
 0x430   : > { %13723 = vst [vmem:[#allocation77_spill] sm:$0xff] %v7043_v42  ;;  %vm1971_vm11 = vcmp.eq.f32.partialorder %v1779_v3, %v7048_v54  ;;  %v7052_v44 = vpop.xlane.xlu2 %2108  ;;  %vm1973_vm13 = vcmp.eq.f32.partialorder %v6965_v11, %v7043_v42 }
 0x431   : > { %13724 = vst [vmem:[#allocation78_spill] sm:$0xff] %v7048_v54  ;;  %v1987_v6 = vsel %vm1971_vm11, -1e+30, %v1779_v3  ;;  %vm2172_vm12 = vcmp.eq.f32.partialorder %v1980_v30, %v7052_v44  ;;  %v7060_v55 = vsel %vm1973_vm13, -1e+30, %v6965_v11 }
 0x432   : > { %1924 = vmax.xlane.f32.xlu2 %v7046_v52  ;;  %13725 = vst [vmem:[#allocation79_spill] sm:$0xff] %v7052_v44  ;;  %2122 = vmax.xlane.f32.xlu1 %v1987_v6  ;;  %v2188_v14 = vsel %vm2172_vm12, -1e+30, %v1980_v30 }
 0x433   : > { %2316 = vmax.xlane.f32.xlu0 %v2188_v14 }
 0x437   : > { %v7057_v9 = vpop.xlane.xlu1 %2112 }
 0x438   : > { %13726 = vst [vmem:[#allocation80_spill] sm:$0xff] %v7057_v9  ;;  %v7063_v62 = vpop.xlane.xlu2 %1722  ;;  %v7066_v3 = vpop.xlane.xlu0 %2110  ;;  %vm2174_vm15 = vcmp.eq.f32.partialorder %v6977_v27, %v7057_v9 }
 0x439   : > { %13727 = vst [vmem:[#allocation81_spill] sm:$0xff] %v7063_v62  ;;  %vm1771_vm14 = vcmp.eq.f32.partialorder %v1579_v7, %v7063_v62  ;;  %vm2173_vm1 = vcmp.eq.f32.partialorder %v1981_v56, %v7066_v3  ;;  %v2190_v11 = vsel %vm2174_vm15, -1e+30, %v6977_v27 }
 0x43a   : > { %2126 = vmax.xlane.f32.xlu2 %v7060_v55  ;;  %13728 = vst [vmem:[#allocation82_spill] sm:$0xff] %v7066_v3  ;;  %v1787_v54 = vsel %vm1771_vm14, -1e+30, %v1579_v7  ;;  %v2189_v44 = vsel %vm2173_vm1, -1e+30, %v1981_v56 }
 0x43b   : > { %1930 = vmax.xlane.f32.xlu0 %v1787_v54  ;;  %2318 = vmax.xlane.f32.xlu1 %v2189_v44 }
 0x43f   : > { %v7071_v30 = vpop.xlane.xlu1 %1926 }
 0x440   : > { %13729 = vst [vmem:[#allocation83_spill] sm:$0xff] %v7071_v30  ;;  %v7074_v42 = vpop.xlane.xlu2 %1916  ;;  %v7076_v37 = vpop.xlane.xlu0 %1920  ;;  %vm1977_vm4 = vcmp.eq.f32.partialorder %v6991_v63, %v7071_v30 }
 0x441   : > { %13730 = vst [vmem:[#allocation84_spill] sm:$0xff] %v7074_v42  ;;  %vm1972_vm3 = vcmp.eq.f32.partialorder %v1780_v0, %v7074_v42  ;;  %vm1974_vm5 = vcmp.eq.f32.partialorder %v1782_v46, %v7076_v37  ;;  %v7083_v62 = vsel %vm1977_vm4, -1e+30, %v6991_v63 }
 0x442   : > { %2320 = vmax.xlane.f32.xlu2 %v2190_v11  ;;  %13731 = vst [vmem:[#allocation85_spill] sm:$0xff] %v7076_v37  ;;  %v1988_v7 = vsel %vm1972_vm3, -1e+30, %v1780_v0  ;;  %v1990_v27 = vsel %vm1974_vm5, -1e+30, %v1782_v46 }
 0x443   : > { %2124 = vmax.xlane.f32.xlu0 %v1988_v7  ;;  %2128 = vmax.xlane.f32.xlu1 %v1990_v27 }
 0x447   : > { %v7086_v56 = vpop.xlane.xlu1 %1922 }
 0x448   : > { %13732 = vst [vmem:[#allocation86_spill] sm:$0xff] %v7086_v56  ;;  %v7088_v3 = vpop.xlane.xlu2 %1928  ;;  %vm1975_vm7 = vcmp.eq.f32.partialorder %v7007_v1, %v7086_v56 }
 0x449   : > { %13733 = vst [vmem:[#allocation87_spill] sm:$0xff] %v7088_v3  ;;  %vm1978_vm6 = vcmp.eq.f32.partialorder %v1786_v13, %v7088_v3  ;;  %v7094_v0 = vsel %vm1975_vm7, -1e+30, %v7007_v1 }
 0x44a   : > { %2134 = vmax.xlane.f32.xlu2 %v7083_v62  ;;  %v1994_v30 = vsel %vm1978_vm6, -1e+30, %v1786_v13 }
 0x44b   : > { %2136 = vmax.xlane.f32.xlu0 %v1994_v30 }
 0x452   : > { %2130 = vmax.xlane.f32.xlu2 %v7094_v0 }
 0x475   : > { %v7097_v63 = vpop.xlane.xlu0 %2114 }
 0x476   : > { %13734 = vst [vmem:[#allocation88_spill] sm:$0xff] %v7097_v63  ;;  %vm2175_vm8 = vcmp.eq.f32.partialorder %v7018_v34, %v7097_v63 }
 0x477   : > { %v7102_v46 = vsel %vm2175_vm8, -1e+30, %v7018_v34 }
 0x478   : > { %2322 = vmax.xlane.f32.xlu1 %v7102_v46 }
 0x495   : > { %v7105_v3 = vpop.xlane.xlu2 %2116 }
 0x496   : > { %13735 = vst [vmem:[#allocation89_spill] sm:$0xff] %v7105_v3  ;;  %vm2176_vm9 = vcmp.eq.f32.partialorder %v7026_v38, %v7105_v3 }
 0x497   : > { %v7110_v1 = vsel %vm2176_vm9, -1e+30, %v7026_v38 }
 0x498   : > { %2324 = vmax.xlane.f32.xlu0 %v7110_v1 }
 0x49d   : > { %v7113_v13 = vpop.xlane.xlu2 %2118  ;;  %v7120_v56 = vpop.xlane.xlu0 %2120 }
 0x49e   : > { %13736 = vst [vmem:[#allocation90_spill] sm:$0xff] %v7113_v13  ;;  %vm2177_vm10 = vcmp.eq.f32.partialorder %v7032_v35, %v7113_v13  ;;  %vm2178_vm11 = vcmp.eq.f32.partialorder %v7038_v53, %v7120_v56 }
 0x49f   : > { %v7118_v34 = vsel %vm2177_vm10, -1e+30, %v7032_v35  ;;  %13737 = vst [vmem:[#allocation91_spill] sm:$0xff] %v7120_v56  ;;  %v7126_v38 = vsel %vm2178_vm11, -1e+30, %v7038_v53 }
 0x4a0   : > { %2326 = vmax.xlane.f32.xlu0 %v7118_v34  ;;  %2328 = vmax.xlane.f32.xlu1 %v7126_v38 }
 0x4a5   : > { %v7129_v63 = vpop.xlane.xlu2 %1924  ;;  %v7136_v13 = vpop.xlane.xlu1 %2122 }
 0x4a6   : > { %13738 = vst [vmem:[#allocation92_spill] sm:$0xff] %v7129_v63  ;;  %vm1976_vm12 = vcmp.eq.f32.partialorder %v7046_v52, %v7129_v63  ;;  %vm2179_vm13 = vcmp.eq.f32.partialorder %v1987_v6, %v7136_v13  ;;  %v7143_v53 = vpop.xlane.xlu0 %2316 }
 0x4a7   : > { %v7134_v35 = vsel %vm1976_vm12, -1e+30, %v7046_v52  ;;  %13739 = vst [vmem:[#allocation93_spill] sm:$0xff] %v7136_v13  ;;  %v7140_v56 = vsel %vm2179_vm13, -1e+30, %v1987_v6  ;;  %vm2380_vm14 = vcmp.eq.f32.partialorder %v2188_v14, %v7143_v53 }
 0x4a8   : > { %2132 = vmax.xlane.f32.xlu0 %v7134_v35  ;;  %2330 = vmax.xlane.f32.xlu2 %v7140_v56  ;;  %13740 = vst [vmem:[#allocation94_spill] sm:$0xff] %v7143_v53  ;;  %v7148_v63 = vsel %vm2380_vm14, -1e+30, %v2188_v14 }
 0x4a9   : > { %2524 = vmax.xlane.f32.xlu1 %v7148_v63 }
 0x4ad   : > { %v7146_v3 = vpop.xlane.xlu2 %2126 }
 0x4ae   : > { %13741 = vst [vmem:[#allocation95_spill] sm:$0xff] %v7146_v3  ;;  %v7151_v52 = vpop.xlane.xlu0 %1930  ;;  %v7154_v37 = vpop.xlane.xlu1 %2318  ;;  %vm2181_vm6 = vcmp.eq.f32.partialorder %v7060_v55, %v7146_v3 }
 0x4af   : > { %13742 = vst [vmem:[#allocation96_spill] sm:$0xff] %v7151_v52  ;;  %vm1979_vm15 = vcmp.eq.f32.partialorder %v1787_v54, %v7151_v52  ;;  %vm2381_vm1 = vcmp.eq.f32.partialorder %v2189_v44, %v7154_v37 }
 0x4b0   : > { %13743 = vst [vmem:[#allocation97_spill] sm:$0xff] %v7154_v37  ;;  %v1995_v6 = vsel %vm1979_vm15, -1e+30, %v1787_v54  ;;  %v7159_v42 = vsel %vm2381_vm1, -1e+30, %v2189_v44 }
 0x4b1   : > { %2138 = vmax.xlane.f32.xlu1 %v1995_v6  ;;  %2526 = vmax.xlane.f32.xlu2 %v7159_v42 }
 0x4b5   : > { %v7156_v13 = vpop.xlane.xlu2 %2320 }
 0x4b6   : > { %13744 = vst [vmem:[#allocation98_spill] sm:$0xff] %v7156_v13  ;;  %vm2382_vm3 = vcmp.eq.f32.partialorder %v2190_v11, %v7156_v13  ;;  %v7165_v53 = vpop.xlane.xlu0 %2124  ;;  %v7169_v54 = vpop.xlane.xlu1 %2128 }
 0x4b7   : > { %v7163_v14 = vsel %vm2382_vm3, -1e+30, %v2190_v11  ;;  %13745 = vst [vmem:[#allocation99_spill] sm:$0xff] %v7165_v53  ;;  %vm2180_vm4 = vcmp.eq.f32.partialorder %v1988_v7, %v7165_v53  ;;  %vm2182_vm5 = vcmp.eq.f32.partialorder %v1990_v27, %v7169_v54  ;;  %v7177_v11 = vsel %vm2181_vm6, -1e+30, %v7060_v55 }
 0x4b8   : > { %2528 = vmax.xlane.f32.xlu0 %v7163_v14  ;;  %13746 = vst [vmem:[#allocation100_spill] sm:$0xff] %v7169_v54  ;;  %v2196_v52 = vsel %vm2180_vm4, -1e+30, %v1988_v7  ;;  %v2198_v44 = vsel %vm2182_vm5, -1e+30, %v1990_v27 }
 0x4b9   : > { %2332 = vmax.xlane.f32.xlu1 %v2196_v52  ;;  %2336 = vmax.xlane.f32.xlu2 %v2198_v44 }
 0x4bd   : > { %v7174_v13 = vpop.xlane.xlu2 %2134 }
 0x4be   : > { %13747 = vst [vmem:[#allocation101_spill] sm:$0xff] %v7174_v13  ;;  %v7179_v37 = vpop.xlane.xlu0 %2136  ;;  %vm2185_vm8 = vcmp.eq.f32.partialorder %v7083_v62, %v7174_v13 }
 0x4bf   : > { %13748 = vst [vmem:[#allocation102_spill] sm:$0xff] %v7179_v37  ;;  %vm2186_vm7 = vcmp.eq.f32.partialorder %v1994_v30, %v7179_v37  ;;  %v7186_v54 = vsel %vm2185_vm8, -1e+30, %v7083_v62 }
 0x4c0   : > { %2334 = vmax.xlane.f32.xlu0 %v7177_v11  ;;  %v2202_v7 = vsel %vm2186_vm7, -1e+30, %v1994_v30 }
 0x4c1   : > { %2344 = vmax.xlane.f32.xlu1 %v2202_v7 }
 0x4c5   : > { %v7189_v27 = vpop.xlane.xlu2 %2130 }
 0x4c6   : > { %13749 = vst [vmem:[#allocation103_spill] sm:$0xff] %v7189_v27  ;;  %vm2183_vm9 = vcmp.eq.f32.partialorder %v7094_v0, %v7189_v27 }
 0x4c7   : > { %v7194_v55 = vsel %vm2183_vm9, -1e+30, %v7094_v0 }
 0x4c8   : > { %2342 = vmax.xlane.f32.xlu0 %v7186_v54 }
 0x4d0   : > { %2338 = vmax.xlane.f32.xlu0 %v7194_v55 }
 0x4eb   : > { %v7197_v30 = vpop.xlane.xlu1 %2322 }
 0x4ec   : > { %13750 = vst [vmem:[#allocation104_spill] sm:$0xff] %v7197_v30  ;;  %vm2383_vm10 = vcmp.eq.f32.partialorder %v7102_v46, %v7197_v30 }
 0x4ed   : > { %v7202_v62 = vsel %vm2383_vm10, -1e+30, %v7102_v46 }
 0x4ee   : > { %2530 = vmax.xlane.f32.xlu2 %v7202_v62 }
 0x50b   : > { %v7205_v37 = vpop.xlane.xlu0 %2324 }
 0x50c   : > { %13751 = vst [vmem:[#allocation105_spill] sm:$0xff] %v7205_v37  ;;  %vm2384_vm11 = vcmp.eq.f32.partialorder %v7110_v1, %v7205_v37 }
 0x50d   : > { %v7210_v0 = vsel %vm2384_vm11, -1e+30, %v7110_v1 }
 0x50e   : > { %2532 = vmax.xlane.f32.xlu1 %v7210_v0 }
 0x513   : > { %v7213_v27 = vpop.xlane.xlu0 %2326  ;;  %v7220_v30 = vpop.xlane.xlu1 %2328 }
 0x514   : > { %13752 = vst [vmem:[#allocation106_spill] sm:$0xff] %v7213_v27  ;;  %vm2385_vm12 = vcmp.eq.f32.partialorder %v7118_v34, %v7213_v27  ;;  %vm2386_vm13 = vcmp.eq.f32.partialorder %v7126_v38, %v7220_v30 }
 0x515   : > { %v7218_v46 = vsel %vm2385_vm12, -1e+30, %v7118_v34  ;;  %13753 = vst [vmem:[#allocation107_spill] sm:$0xff] %v7220_v30  ;;  %v7226_v1 = vsel %vm2386_vm13, -1e+30, %v7126_v38 }
 0x516   : > { %2534 = vmax.xlane.f32.xlu1 %v7218_v46  ;;  %2536 = vmax.xlane.f32.xlu2 %v7226_v1 }
 0x51b   : > { %v7229_v13 = vpop.xlane.xlu0 %2132  ;;  %v7236_v27 = vpop.xlane.xlu2 %2330 }
 0x51c   : > { %13754 = vst [vmem:[#allocation108_spill] sm:$0xff] %v7229_v13  ;;  %vm2184_vm14 = vcmp.eq.f32.partialorder %v7134_v35, %v7229_v13  ;;  %vm2387_vm15 = vcmp.eq.f32.partialorder %v7140_v56, %v7236_v27  ;;  %v7245_v30 = vpop.xlane.xlu1 %2524 }
 0x51d   : > { %v7234_v34 = vsel %vm2184_vm14, -1e+30, %v7134_v35  ;;  %13755 = vst [vmem:[#allocation109_spill] sm:$0xff] %v7236_v27  ;;  %v7242_v38 = vsel %vm2387_vm15, -1e+30, %v7140_v56  ;;  %vm2588_vm1 = vcmp.eq.f32.partialorder %v7148_v63, %v7245_v30 }
 0x51e   : > { %2340 = vmax.xlane.f32.xlu1 %v7234_v34  ;;  %2538 = vmax.xlane.f32.xlu0 %v7242_v38  ;;  %13756 = vst [vmem:[#allocation110_spill] sm:$0xff] %v7245_v30  ;;  %v7250_v35 = vsel %vm2588_vm1, -1e+30, %v7148_v63 }
 0x51f   : > { %2732 = vmax.xlane.f32.xlu2 %v7250_v35 }
 0x524   : > { %v7253_v13 = vpop.xlane.xlu1 %2138  ;;  %v7259_v56 = vpop.xlane.xlu2 %2526 }
 0x525   : > { %13757 = vst [vmem:[#allocation111_spill] sm:$0xff] %v7253_v13  ;;  %vm2187_vm3 = vcmp.eq.f32.partialorder %v1995_v6, %v7253_v13  ;;  %vm2589_vm4 = vcmp.eq.f32.partialorder %v7159_v42, %v7259_v56 }
 0x526   : > { %v7256_v27 = vsel %vm2187_vm3, -1e+30, %v1995_v6  ;;  %13758 = vst [vmem:[#allocation112_spill] sm:$0xff] %v7259_v56  ;;  %v7266_v63 = vsel %vm2589_vm4, -1e+30, %v7159_v42 }
 0x527   : > { %2346 = vmax.xlane.f32.xlu2 %v7256_v27  ;;  %2734 = vmax.xlane.f32.xlu0 %v7266_v63 }
 0x52b   : > { %v7263_v37 = vpop.xlane.xlu0 %2528 }
 0x52c   : > { %13759 = vst [vmem:[#allocation113_spill] sm:$0xff] %v7263_v37  ;;  %v7269_v30 = vpop.xlane.xlu1 %2332  ;;  %v7274_v13 = vpop.xlane.xlu2 %2336  ;;  %vm2590_vm9 = vcmp.eq.f32.partialorder %v7163_v14, %v7263_v37 }
 0x52d   : > { %13760 = vst [vmem:[#allocation114_spill] sm:$0xff] %v7269_v30  ;;  %vm2388_vm5 = vcmp.eq.f32.partialorder %v2196_v52, %v7269_v30  ;;  %vm2390_vm6 = vcmp.eq.f32.partialorder %v2198_v44, %v7274_v13 }
 0x52e   : > { %v7272_v6 = vsel %vm2388_vm5, -1e+30, %v2196_v52  ;;  %13761 = vst [vmem:[#allocation115_spill] sm:$0xff] %v7274_v13  ;;  %v2406_v53 = vsel %vm2390_vm6, -1e+30, %v2198_v44 }
 0x52f   : > { %2540 = vmax.xlane.f32.xlu2 %v7272_v6  ;;  %2544 = vmax.xlane.f32.xlu0 %v2406_v53  ;;  %v2606_v44 = vsel %vm2590_vm9, -1e+30, %v7163_v14 }
 0x533   : > { %v7278_v56 = vpop.xlane.xlu0 %2334 }
 0x534   : > { %13762 = vst [vmem:[#allocation116_spill] sm:$0xff] %v7278_v56  ;;  %v7280_v3 = vpop.xlane.xlu1 %2344  ;;  %vm2389_vm7 = vcmp.eq.f32.partialorder %v7177_v11, %v7278_v56 }
 0x535   : > { %13763 = vst [vmem:[#allocation117_spill] sm:$0xff] %v7280_v3  ;;  %vm2394_vm8 = vcmp.eq.f32.partialorder %v2202_v7, %v7280_v3  ;;  %v7286_v52 = vsel %vm2389_vm7, -1e+30, %v7177_v11 }
 0x536   : > { %v2410_v42 = vsel %vm2394_vm8, -1e+30, %v2202_v7  ;;  %2542 = vmax.xlane.f32.xlu1 %v7286_v52 }
 0x537   : > { %2552 = vmax.xlane.f32.xlu2 %v2410_v42 }
 0x53b   : > { %v7291_v13 = vpop.xlane.xlu0 %2342 }
 0x53c   : > { %13764 = vst [vmem:[#allocation118_spill] sm:$0xff] %v7291_v13  ;;  %vm2393_vm10 = vcmp.eq.f32.partialorder %v7186_v54, %v7291_v13 }
 0x53d   : > { %v7297_v3 = vsel %vm2393_vm10, -1e+30, %v7186_v54 }
 0x53e   : > { %2736 = vmax.xlane.f32.xlu1 %v2606_v44 }
 0x543   : > { %v7300_v11 = vpop.xlane.xlu0 %2338 }
 0x544   : > { %13765 = vst [vmem:[#allocation119_spill] sm:$0xff] %v7300_v11  ;;  %vm2391_vm11 = vcmp.eq.f32.partialorder %v7194_v55, %v7300_v11 }
 0x545   : > { %v7305_v7 = vsel %vm2391_vm11, -1e+30, %v7194_v55 }
 0x546   : > { %2550 = vmax.xlane.f32.xlu1 %v7297_v3 }
 0x54e   : > { %2546 = vmax.xlane.f32.xlu1 %v7305_v7 }
 0x561   : > { %v7308_v14 = vpop.xlane.xlu2 %2530 }
 0x562   : > { %13766 = vst [vmem:[#allocation120_spill] sm:$0xff] %v7308_v14  ;;  %vm2591_vm12 = vcmp.eq.f32.partialorder %v7202_v62, %v7308_v14 }
 0x563   : > { %v7313_v54 = vsel %vm2591_vm12, -1e+30, %v7202_v62 }
 0x564   : > { %2738 = vmax.xlane.f32.xlu0 %v7313_v54 }
 0x581   : > { %v7316_v13 = vpop.xlane.xlu1 %2532 }
 0x582   : > { %13767 = vst [vmem:[#allocation121_spill] sm:$0xff] %v7316_v13  ;;  %vm2592_vm13 = vcmp.eq.f32.partialorder %v7210_v0, %v7316_v13 }
 0x583   : > { %v7321_v55 = vsel %vm2592_vm13, -1e+30, %v7210_v0 }
 0x584   : > { %2740 = vmax.xlane.f32.xlu2 %v7321_v55 }
 0x589   : > { %v7324_v11 = vpop.xlane.xlu1 %2534  ;;  %v7331_v14 = vpop.xlane.xlu2 %2536 }
 0x58a   : > { %13768 = vst [vmem:[#allocation122_spill] sm:$0xff] %v7324_v11  ;;  %vm2593_vm14 = vcmp.eq.f32.partialorder %v7218_v46, %v7324_v11  ;;  %vm2594_vm15 = vcmp.eq.f32.partialorder %v7226_v1, %v7331_v14 }
 0x58b   : > { %v7329_v62 = vsel %vm2593_vm14, -1e+30, %v7218_v46  ;;  %13769 = vst [vmem:[#allocation123_spill] sm:$0xff] %v7331_v14  ;;  %v7337_v0 = vsel %vm2594_vm15, -1e+30, %v7226_v1 }
 0x58c   : > { %2742 = vmax.xlane.f32.xlu2 %v7329_v62  ;;  %2744 = vmax.xlane.f32.xlu0 %v7337_v0 }
 0x591   : > { %v7340_v13 = vpop.xlane.xlu1 %2340  ;;  %v7347_v11 = vpop.xlane.xlu0 %2538 }
 0x592   : > { %13770 = vst [vmem:[#allocation124_spill] sm:$0xff] %v7340_v13  ;;  %vm2392_vm1 = vcmp.eq.f32.partialorder %v7234_v34, %v7340_v13  ;;  %vm2595_vm3 = vcmp.eq.f32.partialorder %v7242_v38, %v7347_v11  ;;  %v7356_v14 = vpop.xlane.xlu2 %2732 }
 0x593   : > { %v7345_v46 = vsel %vm2392_vm1, -1e+30, %v7234_v34  ;;  %13771 = vst [vmem:[#allocation125_spill] sm:$0xff] %v7347_v11  ;;  %v7353_v1 = vsel %vm2595_vm3, -1e+30, %v7242_v38  ;;  %vm2796_vm4 = vcmp.eq.f32.partialorder %v7250_v35, %v7356_v14 }
 0x594   : > { %2548 = vmax.xlane.f32.xlu2 %v7345_v46  ;;  %2746 = vmax.xlane.f32.xlu1 %v7353_v1  ;;  %13772 = vst [vmem:[#allocation126_spill] sm:$0xff] %v7356_v14  ;;  %v7361_v34 = vsel %vm2796_vm4, -1e+30, %v7250_v35 }
 0x595   : > { %2940 = vmax.xlane.f32.xlu0 %v7361_v34 }
 0x59a   : > { %v7364_v13 = vpop.xlane.xlu2 %2346  ;;  %v7372_v11 = vpop.xlane.xlu0 %2734 }
 0x59b   : > { %13773 = vst [vmem:[#allocation127_spill] sm:$0xff] %v7364_v13  ;;  %vm2395_vm5 = vcmp.eq.f32.partialorder %v7256_v27, %v7364_v13  ;;  %vm2797_vm6 = vcmp.eq.f32.partialorder %v7266_v63, %v7372_v11 }
 0x59c   : > { %v7369_v38 = vsel %vm2395_vm5, -1e+30, %v7256_v27  ;;  %13774 = vst [vmem:[#allocation128_spill] sm:$0xff] %v7372_v11  ;;  %v7377_v35 = vsel %vm2797_vm6, -1e+30, %v7266_v63 }
 0x59d   : > { %2554 = vmax.xlane.f32.xlu0 %v7369_v38  ;;  %2942 = vmax.xlane.f32.xlu1 %v7377_v35 }
 0x5a2   : > { %v7380_v14 = vpop.xlane.xlu2 %2540  ;;  %v7388_v13 = vpop.xlane.xlu0 %2544 }
 0x5a3   : > { %13775 = vst [vmem:[#allocation129_spill] sm:$0xff] %v7380_v14  ;;  %vm2596_vm7 = vcmp.eq.f32.partialorder %v7272_v6, %v7380_v14  ;;  %vm2598_vm8 = vcmp.eq.f32.partialorder %v2406_v53, %v7388_v13 }
 0x5a4   : > { %v7385_v27 = vsel %vm2596_vm7, -1e+30, %v7272_v6  ;;  %13776 = vst [vmem:[#allocation130_spill] sm:$0xff] %v7388_v13  ;;  %v7391_v11 = vsel %vm2598_vm8, -1e+30, %v2406_v53 }
 0x5a5   : > { %2748 = vmax.xlane.f32.xlu0 %v7385_v27  ;;  %2752 = vmax.xlane.f32.xlu1 %v7391_v11 }
 0x5a9   : > { %v7394_v63 = vpop.xlane.xlu1 %2542 }
 0x5aa   : > { %13777 = vst [vmem:[#allocation131_spill] sm:$0xff] %v7394_v63  ;;  %v7396_v56 = vpop.xlane.xlu2 %2552  ;;  %vm2597_vm11 = vcmp.eq.f32.partialorder %v7286_v52, %v7394_v63 }
 0x5ab   : > { %13778 = vst [vmem:[#allocation132_spill] sm:$0xff] %v7396_v56  ;;  %vm2602_vm9 = vcmp.eq.f32.partialorder %v2410_v42, %v7396_v56  ;;  %v7413_v13 = vsel %vm2597_vm11, -1e+30, %v7286_v52 }
 0x5ac   : > { %v7399_v14 = vsel %vm2602_vm9, -1e+30, %v2410_v42 }
 0x5ad   : > { %2760 = vmax.xlane.f32.xlu0 %v7399_v14 }
 0x5b1   : > { %v7402_v6 = vpop.xlane.xlu1 %2736 }
 0x5b2   : > { %13779 = vst [vmem:[#allocation133_spill] sm:$0xff] %v7402_v6  ;;  %vm2798_vm10 = vcmp.eq.f32.partialorder %v2606_v44, %v7402_v6 }
 0x5b3   : > { %v7405_v30 = vsel %vm2798_vm10, -1e+30, %v2606_v44 }
 0x5b4   : > { %2944 = vmax.xlane.f32.xlu2 %v7405_v30 }
 0x5b9   : > { %v7410_v53 = vpop.xlane.xlu1 %2550 }
 0x5ba   : > { %13780 = vst [vmem:[#allocation134_spill] sm:$0xff] %v7410_v53  ;;  %vm2601_vm12 = vcmp.eq.f32.partialorder %v7297_v3, %v7410_v53 }
 0x5bb   : > { %v7419_v42 = vsel %vm2601_vm12, -1e+30, %v7297_v3 }
 0x5bc   : > { %2750 = vmax.xlane.f32.xlu2 %v7413_v13 }
 0x5c1   : > { %v7422_v44 = vpop.xlane.xlu1 %2546 }
 0x5c2   : > { %13781 = vst [vmem:[#allocation135_spill] sm:$0xff] %v7422_v44  ;;  %vm2599_vm13 = vcmp.eq.f32.partialorder %v7305_v7, %v7422_v44 }
 0x5c3   : > { %v7427_v56 = vsel %vm2599_vm13, -1e+30, %v7305_v7 }
 0x5c4   : > { %2758 = vmax.xlane.f32.xlu2 %v7419_v42 }
 0x5cc   : > { %2754 = vmax.xlane.f32.xlu2 %v7427_v56 }
 0x5d7   : > { %v7430_v52 = vpop.xlane.xlu0 %2738 }
 0x5d8   : > { %13782 = vst [vmem:[#allocation136_spill] sm:$0xff] %v7430_v52  ;;  %vm2799_vm14 = vcmp.eq.f32.partialorder %v7313_v54, %v7430_v52 }
 0x5d9   : > { %v7435_v3 = vsel %vm2799_vm14, -1e+30, %v7313_v54 }
 0x5da   : > { %2946 = vmax.xlane.f32.xlu1 %v7435_v3 }
 0x5f7   : > { %v7438_v53 = vpop.xlane.xlu2 %2740 }
 0x5f8   : > { %13783 = vst [vmem:[#allocation137_spill] sm:$0xff] %v7438_v53  ;;  %vm2800_vm15 = vcmp.eq.f32.partialorder %v7321_v55, %v7438_v53 }
 0x5f9   : > { %v7443_v7 = vsel %vm2800_vm15, -1e+30, %v7321_v55 }
 0x5fa   : > { %2948 = vmax.xlane.f32.xlu0 %v7443_v7 }
 0x5ff   : > { %v7446_v44 = vpop.xlane.xlu2 %2742  ;;  %v7453_v52 = vpop.xlane.xlu0 %2744 }
 0x600   : > { %13784 = vst [vmem:[#allocation138_spill] sm:$0xff] %v7446_v44  ;;  %vm2801_vm1 = vcmp.eq.f32.partialorder %v7329_v62, %v7446_v44  ;;  %vm2802_vm3 = vcmp.eq.f32.partialorder %v7337_v0, %v7453_v52 }
 0x601   : > { %v7451_v54 = vsel %vm2801_vm1, -1e+30, %v7329_v62  ;;  %13785 = vst [vmem:[#allocation139_spill] sm:$0xff] %v7453_v52  ;;  %v7459_v55 = vsel %vm2802_vm3, -1e+30, %v7337_v0 }
 0x602   : > { %2950 = vmax.xlane.f32.xlu0 %v7451_v54  ;;  %2952 = vmax.xlane.f32.xlu1 %v7459_v55 }
 0x607   : > { %v7462_v53 = vpop.xlane.xlu2 %2548  ;;  %v7469_v44 = vpop.xlane.xlu1 %2746 }
 0x608   : > { %13786 = vst [vmem:[#allocation140_spill] sm:$0xff] %v7462_v53  ;;  %vm2600_vm4 = vcmp.eq.f32.partialorder %v7345_v46, %v7462_v53  ;;  %vm2803_vm5 = vcmp.eq.f32.partialorder %v7353_v1, %v7469_v44  ;;  %v7478_v52 = vpop.xlane.xlu0 %2940 }
 0x609   : > { %v7467_v62 = vsel %vm2600_vm4, -1e+30, %v7345_v46  ;;  %13787 = vst [vmem:[#allocation141_spill] sm:$0xff] %v7469_v44  ;;  %v7475_v0 = vsel %vm2803_vm5, -1e+30, %v7353_v1  ;;  %vm3004_vm6 = vcmp.eq.f32.partialorder %v7361_v34, %v7478_v52 }
 0x60a   : > { %2756 = vmax.xlane.f32.xlu0 %v7467_v62  ;;  %2954 = vmax.xlane.f32.xlu2 %v7475_v0  ;;  %13788 = vst [vmem:[#allocation142_spill] sm:$0xff] %v7478_v52  ;;  %v3020_v46 = vsel %vm3004_vm6, -1e+30, %v7361_v34 }
 0x60b   : > { %3148 = vmax.xlane.f32.xlu1 %v3020_v46 }
 0x610   : > { %v7483_v53 = vpop.xlane.xlu0 %2554  ;;  %v7488_v1 = vpop.xlane.xlu1 %2942 }
 0x611   : > { %13789 = vst [vmem:[#allocation143_spill] sm:$0xff] %v7483_v53  ;;  %vm2603_vm7 = vcmp.eq.f32.partialorder %v7369_v38, %v7483_v53  ;;  %vm3005_vm8 = vcmp.eq.f32.partialorder %v7377_v35, %v7488_v1 }
 0x612   : > { %v2619_v44 = vsel %vm2603_vm7, -1e+30, %v7369_v38  ;;  %13790 = vst [vmem:[#allocation144_spill] sm:$0xff] %v7488_v1  ;;  %v3021_v6 = vsel %vm3005_vm8, -1e+30, %v7377_v35 }
 0x613   : > { %2762 = vmax.xlane.f32.xlu1 %v2619_v44  ;;  %3150 = vmax.xlane.f32.xlu2 %v3021_v6 }
 0x618   : > { %v7493_v52 = vpop.xlane.xlu0 %2748  ;;  %v7498_v53 = vpop.xlane.xlu1 %2752 }
 0x619   : > { %13791 = vst [vmem:[#allocation145_spill] sm:$0xff] %v7493_v52  ;;  %vm2804_vm9 = vcmp.eq.f32.partialorder %v7385_v27, %v7493_v52  ;;  %vm2806_vm10 = vcmp.eq.f32.partialorder %v7391_v11, %v7498_v53 }
 0x61a   : > { %v2820_v34 = vsel %vm2804_vm9, -1e+30, %v7385_v27  ;;  %13792 = vst [vmem:[#allocation146_spill] sm:$0xff] %v7498_v53  ;;  %v7503_v38 = vsel %vm2806_vm10, -1e+30, %v7391_v11 }
 0x61b   : > { %2956 = vmax.xlane.f32.xlu1 %v2820_v34  ;;  %2960 = vmax.xlane.f32.xlu2 %v7503_v38 }
 0x620   : > { %v7506_v35 = vpop.xlane.xlu0 %2760 }
 0x621   : > { %13793 = vst [vmem:[#allocation147_spill] sm:$0xff] %v7506_v35  ;;  %vm2810_vm11 = vcmp.eq.f32.partialorder %v7399_v14, %v7506_v35 }
 0x622   : > { %v2826_v52 = vsel %vm2810_vm11, -1e+30, %v7399_v14 }
 0x623   : > { %2968 = vmax.xlane.f32.xlu1 %v2826_v52 }
 0x627   : > { %v7511_v27 = vpop.xlane.xlu2 %2944 }
 0x628   : > { %13794 = vst [vmem:[#allocation148_spill] sm:$0xff] %v7511_v27  ;;  %vm3006_vm12 = vcmp.eq.f32.partialorder %v7405_v30, %v7511_v27 }
 0x629   : > { %v3022_v53 = vsel %vm3006_vm12, -1e+30, %v7405_v30 }
 0x62a   : > { %3152 = vmax.xlane.f32.xlu0 %v3022_v53 }
 0x62f   : > { %v7516_v11 = vpop.xlane.xlu2 %2750 }
 0x630   : > { %13795 = vst [vmem:[#allocation149_spill] sm:$0xff] %v7516_v11  ;;  %vm2805_vm13 = vcmp.eq.f32.partialorder %v7413_v13, %v7516_v11 }
 0x631   : > { %v2821_v1 = vsel %vm2805_vm13, -1e+30, %v7413_v13 }
 0x632   : > { %2958 = vmax.xlane.f32.xlu0 %v2821_v1 }
 0x637   : > { %v7521_v35 = vpop.xlane.xlu2 %2758 }
 0x638   : > { %13796 = vst [vmem:[#allocation150_spill] sm:$0xff] %v7521_v35  ;;  %vm2809_vm14 = vcmp.eq.f32.partialorder %v7419_v42, %v7521_v35 }
 0x639   : > { %v2825_v14 = vsel %vm2809_vm14, -1e+30, %v7419_v42 }
 0x63a   : > { %2966 = vmax.xlane.f32.xlu0 %v2825_v14 }
 0x63f   : > { %v7526_v27 = vpop.xlane.xlu2 %2754 }
 0x640   : > { %13797 = vst [vmem:[#allocation151_spill] sm:$0xff] %v7526_v27  ;;  %vm2807_vm15 = vcmp.eq.f32.partialorder %v7427_v56, %v7526_v27 }
 0x641   : > { %v2823_v30 = vsel %vm2807_vm15, -1e+30, %v7427_v56 }
 0x642   : > { %2962 = vmax.xlane.f32.xlu0 %v2823_v30 }
 0x64d   : > { %v7531_v11 = vpop.xlane.xlu1 %2946 }
 0x64e   : > { %13798 = vst [vmem:[#allocation152_spill] sm:$0xff] %v7531_v11  ;;  %vm3007_vm1 = vcmp.eq.f32.partialorder %v7435_v3, %v7531_v11 }
 0x64f   : > { %v3023_v13 = vsel %vm3007_vm1, -1e+30, %v7435_v3 }
 0x650   : > { %3154 = vmax.xlane.f32.xlu2 %v3023_v13 }
 0x66d   : > { %v7536_v35 = vpop.xlane.xlu0 %2948 }
 0x66e   : > { %13799 = vst [vmem:[#allocation153_spill] sm:$0xff] %v7536_v35  ;;  %vm3008_vm3 = vcmp.eq.f32.partialorder %v7443_v7, %v7536_v35 }
 0x66f   : > { %v7541_v42 = vsel %vm3008_vm3, -1e+30, %v7443_v7 }
 0x670   : > { %3156 = vmax.xlane.f32.xlu1 %v7541_v42 }
 0x675   : > { %v7544_v56 = vpop.xlane.xlu0 %2950  ;;  %v7551_v3 = vpop.xlane.xlu1 %2952 }
 0x676   : > { %13800 = vst [vmem:[#allocation154_spill] sm:$0xff] %v7544_v56  ;;  %vm3009_vm4 = vcmp.eq.f32.partialorder %v7451_v54, %v7544_v56  ;;  %vm3010_vm5 = vcmp.eq.f32.partialorder %v7459_v55, %v7551_v3 }
 0x677   : > { %v7549_v27 = vsel %vm3009_vm4, -1e+30, %v7451_v54  ;;  %13801 = vst [vmem:[#allocation155_spill] sm:$0xff] %v7551_v3  ;;  %v7557_v7 = vsel %vm3010_vm5, -1e+30, %v7459_v55 }
 0x678   : > { %3158 = vmax.xlane.f32.xlu1 %v7549_v27  ;;  %3160 = vmax.xlane.f32.xlu2 %v7557_v7 }
 0x67d   : > { %v7560_v11 = vpop.xlane.xlu0 %2756  ;;  %v7571_v3 = vpop.xlane.xlu2 %2954 }
 0x67e   : > { %13802 = vst [vmem:[#allocation156_spill] sm:$0xff] %v7560_v11  ;;  %vm2808_vm6 = vcmp.eq.f32.partialorder %v7467_v62, %v7560_v11  ;;  %v7568_v56 = vpop.xlane.xlu1 %3148  ;;  %vm3011_vm11 = vcmp.eq.f32.partialorder %v7475_v0, %v7571_v3 }
 0x67f   : > { %v7565_v54 = vsel %vm2808_vm6, -1e+30, %v7467_v62  ;;  %13803 = vst [vmem:[#allocation157_spill] sm:$0xff] %v7568_v56  ;;  %vm3212_vm7 = vcmp.eq.f32.partialorder %v3020_v46, %v7568_v56 }
 0x680   : > { %2964 = vmax.xlane.f32.xlu1 %v7565_v54  ;;  %13804 = vst [vmem:[#allocation158_spill] sm:$0xff] %v7571_v3  ;;  %v7573_v55 = vsel %vm3212_vm7, -1e+30, %v3020_v46 }
 0x681   : > { %3356 = vmax.xlane.f32.xlu2 %v7573_v55 }
 0x686   : > { %v7576_v35 = vpop.xlane.xlu1 %2762  ;;  %v7582_v62 = vpop.xlane.xlu2 %3150 }
 0x687   : > { %13805 = vst [vmem:[#allocation159_spill] sm:$0xff] %v7576_v35  ;;  %vm2811_vm8 = vcmp.eq.f32.partialorder %v2619_v44, %v7576_v35  ;;  %vm3213_vm9 = vcmp.eq.f32.partialorder %v3021_v6, %v7582_v62 }
 0x688   : > { %v7579_v11 = vsel %vm2811_vm8, -1e+30, %v2619_v44  ;;  %13806 = vst [vmem:[#allocation160_spill] sm:$0xff] %v7582_v62  ;;  %v7585_v63 = vsel %vm3213_vm9, -1e+30, %v3021_v6 }
 0x689   : > { %2970 = vmax.xlane.f32.xlu2 %v7579_v11  ;;  %3358 = vmax.xlane.f32.xlu0 %v7585_v63  ;;  %v7597_v44 = vsel %vm3011_vm11, -1e+30, %v7475_v0  ;;  %vm893_vm11 = vcmp.gt.f32.partialorder %v6539_v4, -1e+29 }
 0x68e   : > { %v7588_v46 = vpop.xlane.xlu1 %2956 }
 0x68f   : > { %13807 = vst [vmem:[#allocation161_spill] sm:$0xff] %v7588_v46  ;;  %vm3012_vm10 = vcmp.eq.f32.partialorder %v2820_v34, %v7588_v46 }
 0x690   : > { %v7591_v56 = vsel %vm3012_vm10, -1e+30, %v2820_v34  ;;  %vm892_vm10 = vcmp.gt.f32.partialorder %v6529_v57, -1e+29 }
 0x691   : > { %3164 = vmax.xlane.f32.xlu2 %v7591_v56  ;;  %3162 = vmax.xlane.f32.xlu0 %v7597_v44 }
 0x696   : > { %v7600_v6 = vpop.xlane.xlu1 %2968 }
 0x697   : > { %13808 = vst [vmem:[#allocation162_spill] sm:$0xff] %v7600_v6  ;;  %vm3018_vm12 = vcmp.eq.f32.partialorder %v2826_v52, %v7600_v6 }
 0x698   : > { %v7603_v35 = vsel %vm3018_vm12, -1e+30, %v2826_v52 }
 0x699   : > { %3176 = vmax.xlane.f32.xlu2 %v7603_v35 }
 0x69d   : > { %v7606_v34 = vpop.xlane.xlu0 %3152 }
 0x69e   : > { %13809 = vst [vmem:[#allocation163_spill] sm:$0xff] %v7606_v34  ;;  %vm3214_vm13 = vcmp.eq.f32.partialorder %v3022_v53, %v7606_v34 }
 0x69f   : > { %v7609_v46 = vsel %vm3214_vm13, -1e+30, %v3022_v53  ;;  %v7624_v53 = vpop.xlane.xlu2 %2960  ;;  %vm897_vm13 = vcmp.gt.f32.partialorder %v6551_v10, -1e+29 }
 0x6a0   : > { %3360 = vmax.xlane.f32.xlu1 %v7609_v46  ;;  %13812 = vst [vmem:[#allocation166_spill] sm:$0xff] %v7624_v53  ;;  %vm3014_vm4 = vcmp.eq.f32.partialorder %v7503_v38, %v7624_v53 }
 0x6a5   : > { %v7612_v0 = vpop.xlane.xlu0 %2958 }
 0x6a6   : > { %13810 = vst [vmem:[#allocation164_spill] sm:$0xff] %v7612_v0  ;;  %vm3013_vm14 = vcmp.eq.f32.partialorder %v2821_v1, %v7612_v0 }
 0x6a7   : > { %v7615_v62 = vsel %vm3013_vm14, -1e+30, %v2821_v1  ;;  %vm894_vm14 = vcmp.gt.f32.partialorder %v6557_v19, -1e+29 }
 0x6a8   : > { %3166 = vmax.xlane.f32.xlu1 %v7615_v62 }
 0x6ad   : > { %v7618_v52 = vpop.xlane.xlu0 %2966 }
 0x6ae   : > { %13811 = vst [vmem:[#allocation165_spill] sm:$0xff] %v7618_v52  ;;  %vm3017_vm15 = vcmp.eq.f32.partialorder %v2825_v14, %v7618_v52 }
 0x6af   : > { %v7621_v6 = vsel %vm3017_vm15, -1e+30, %v2825_v14  ;;  %v7641_v14 = vsel %vm3014_vm4, -1e+30, %v7503_v38  ;;  %vm896_vm4 = vcmp.gt.f32.partialorder %v6580_v31, -1e+29 }
 0x6b0   : > { %3174 = vmax.xlane.f32.xlu1 %v7621_v6  ;;  %13817 = vst [vmem:[#allocation171_spill] sm:$0xff] %v7641_v14 }
 0x6b5   : > { %v7626_v34 = vpop.xlane.xlu0 %2962 }
 0x6b6   : > { %13813 = vst [vmem:[#allocation167_spill] sm:$0xff] %v7626_v34  ;;  %vm3015_vm1 = vcmp.eq.f32.partialorder %v2823_v30, %v7626_v34 }
 0x6b7   : > { %v7629_v3 = vsel %vm3015_vm1, -1e+30, %v2823_v30  ;;  %vm895_vm1 = vcmp.gt.f32.partialorder %v6574_v25, -1e+29 }
 0x6b8   : > { %13814 = vst [vmem:[#allocation168_spill] sm:$0xff] %v7629_v3  ;;  %3170 = vmax.xlane.f32.xlu1 %v7629_v3 }
 0x6c3   : > { %v7632_v1 = vpop.xlane.xlu2 %3154 }
 0x6c4   : > { %13815 = vst [vmem:[#allocation169_spill] sm:$0xff] %v7632_v1  ;;  %vm3215_vm3 = vcmp.eq.f32.partialorder %v3023_v13, %v7632_v1 }
 0x6c5   : > { %v7635_v0 = vsel %vm3215_vm3, -1e+30, %v3023_v13 }
 0x6c6   : > { %13816 = vst [vmem:[#allocation170_spill] sm:$0xff] %v7635_v0  ;;  %3362 = vmax.xlane.f32.xlu0 %v7635_v0 }
 0x6ce   : > { %3168 = vmax.xlane.f32.xlu0 %v7641_v14 }
 0x6e3   : > { %v7644_v30 = vpop.xlane.xlu1 %3156 }
 0x6e4   : > { %13818 = vst [vmem:[#allocation172_spill] sm:$0xff] %v7644_v30  ;;  %vm3216_vm5 = vcmp.eq.f32.partialorder %v7541_v42, %v7644_v30 }
 0x6e5   : > { %v7649_v34 = vsel %vm3216_vm5, -1e+30, %v7541_v42  ;;  %vm898_vm5 = vcmp.gt.f32.partialorder %v6584_v36, -1e+29 }
 0x6e6   : > { %13819 = vst [vmem:[#allocation173_spill] sm:$0xff] %v7649_v34  ;;  %3364 = vmax.xlane.f32.xlu2 %v7649_v34 }
 0x6eb   : > { %v7652_v13 = vpop.xlane.xlu1 %3158  ;;  %v7659_v53 = vpop.xlane.xlu2 %3160 }
 0x6ec   : > { %13820 = vst [vmem:[#allocation174_spill] sm:$0xff] %v7652_v13  ;;  %vm3217_vm6 = vcmp.eq.f32.partialorder %v7549_v27, %v7652_v13  ;;  %vm3218_vm7 = vcmp.eq.f32.partialorder %v7557_v7, %v7659_v53 }
 0x6ed   : > { %v7657_v38 = vsel %vm3217_vm6, -1e+30, %v7549_v27  ;;  %13822 = vst [vmem:[#allocation176_spill] sm:$0xff] %v7659_v53  ;;  %v7665_v42 = vsel %vm3218_vm7, -1e+30, %v7557_v7 }
 0x6ee   : > { %13821 = vst [vmem:[#allocation175_spill] sm:$0xff] %v7657_v38  ;;  %3366 = vmax.xlane.f32.xlu2 %v7657_v38  ;;  %3368 = vmax.xlane.f32.xlu0 %v7665_v42  ;;  %vm900_vm6 = vcmp.gt.f32.partialorder %v6592_v39, -1e+29  ;;  %vm901_vm7 = vcmp.gt.f32.partialorder %v6597_v40, -1e+29 }
 0x6ef   : > { %13823 = vst [vmem:[#allocation177_spill] sm:$0xff] %v7665_v42  ;;  %v7720_v42 = vsel %vm894_vm14, %v6557_v19, 0.0 }
 0x6f3   : > { %v7668_v1 = vpop.xlane.xlu1 %2964 }
 0x6f4   : > { %13824 = vst [vmem:[#allocation178_spill] sm:$0xff] %v7668_v1  ;;  %vm3016_vm8 = vcmp.eq.f32.partialorder %v7565_v54, %v7668_v1  ;;  %v7676_v52 = vpop.xlane.xlu2 %3356  ;;  %v7687_v1 = vsel %vm892_vm10, %v6529_v57, 0.0 }
 0x6f5   : > { %v7673_v27 = vsel %vm3016_vm8, -1e+30, %v7565_v54  ;;  %13826 = vst [vmem:[#allocation180_spill] sm:$0xff] %v7676_v52  ;;  %vm3420_vm9 = vcmp.eq.f32.partialorder %v7573_v55, %v7676_v52  ;;  %v7690_v54 = vsel %vm893_vm11, %v6539_v4, 0.0  ;;  %v956_v53 = vmul.f32 %v7687_v1, %v6328_v17 }
 0x6f6   : > { %13825 = vst [vmem:[#allocation179_spill] sm:$0xff] %v7673_v27  ;;  %3172 = vmax.xlane.f32.xlu2 %v7673_v27  ;;  %v7682_v7 = vsel %vm3420_vm9, -1e+30, %v7573_v55  ;;  %v988_v52 = vmul.f32 %v7687_v1, %v6330_v18  ;;  %v957_v55 = vmul.f32 %v7690_v54, %v6328_v17  ;;  %v989_v30 = vmul.f32 %v7690_v54, %v6330_v18 }
 0x6f7   : > { %13827 = vst [vmem:[#allocation181_spill] sm:$0xff] %v7682_v7  ;;  %3564 = vmax.xlane.f32.xlu0 %v7682_v7  ;;  %v972_v4 = vadd.f32 %v956_v53, %v6334_v21  ;;  %vm902_vm8 = vcmp.gt.f32.partialorder %v6612_v51, -1e+29  ;;  %vm1100_vm11 = vcmp.gt.f32.partialorder %v6594_v20, -1e+29 }
 0x6f8   : > { %v1004_v37 = vadd.f32 %v988_v52, %v6336_v22  ;;  %v973_v7 = vadd.f32 %v957_v55, %v6334_v21  ;;  %v1005_v27 = vadd.f32 %v989_v30, %v6336_v22 }
 0x6fc   : > { %v7696_v13 = vpop.xlane.xlu2 %2970  ;;  %v7711_v9 = vpop.xlane.xlu0 %3358 }
 0x6fd   : > { %13828 = vst [vmem:[#allocation182_spill] sm:$0xff] %v7696_v13  ;;  %vm3019_vm12 = vcmp.eq.f32.partialorder %v7579_v11, %v7696_v13  ;;  %v7717_v13 = vsel %vm897_vm13, %v6551_v10, 0.0  ;;  %v958_v10 = vmul.f32 %v7720_v42, %v6328_v17  ;;  %vm3421_vm9 = vcmp.eq.f32.partialorder %v7585_v63, %v7711_v9 }
 0x6fe   : > { %v7705_v57 = vsel %vm3019_vm12, -1e+30, %v7579_v11  ;;  %13830 = vst [vmem:[#allocation184_spill] sm:$0xff] %v7711_v9  ;;  %v1020_v11 = vmin.f32 %v972_v4, %v1004_v37  ;;  %v961_v53 = vmul.f32 %v7717_v13, %v6328_v17  ;;  %v993_v55 = vmul.f32 %v7717_v13, %v6330_v18 }
 0x6ff   : > { %13829 = vst [vmem:[#allocation183_spill] sm:$0xff] %v7705_v57  ;;  %3178 = vmax.xlane.f32.xlu0 %v7705_v57  ;;  %v1021_v57 = vmin.f32 %v973_v7, %v1005_v27  ;;  %v990_v37 = vmul.f32 %v7720_v42, %v6330_v18  ;;  %vm1101_vm12 = vcmp.gt.f32.partialorder %v6634_v59, -1e+29  ;;  %vm1102_vm13 = vcmp.gt.f32.partialorder %v6636_v60, -1e+29 }
 0x700   : > { %v1036_v30 = vmax.f32 %v1020_v11, 0.0  ;;  %v7741_v4 = vadd.f32 %v961_v53, %v6334_v21  ;;  %v7763_v53 = vsel %vm895_vm1, %v6574_v25, 0.0  ;;  %v7781_v25 = vsel %vm900_vm6, %v6592_v39, 0.0 }
 0x701   : > { %v1037_v7 = vmax.f32 %v1021_v57, 0.0  ;;  %v7755_v57 = vadd.f32 %v958_v10, %v6334_v21  ;;  %v7758_v11 = vadd.f32 %v990_v37, %v6336_v22  ;;  %v996_v9 = vmul.f32 %v7781_v25, %v6330_v18 }
 0x702   : > { %vm1106_vm1 = vcmp.gt.f32.partialorder %v6683_v24, -1e+29  ;;  %vm1108_vm6 = vcmp.gt.f32.partialorder %v6703_v49, -1e+29 }
 0x703   : > { %v7776_v10 = vadd.f32 %v1037_v7, %v6357_v48  ;;  %v964_v48 = vmul.f32 %v7781_v25, %v6328_v17  ;;  %v1012_v14 = vadd.f32 %v996_v9, %v6336_v22 }
 0x704   : > { %v7724_v52 = vpop.xlane.xlu2 %3164  ;;  %v7737_v27 = vpop.xlane.xlu0 %3162 }
 0x705   : > { %13831 = vst [vmem:[#allocation185_spill] sm:$0xff] %v7724_v52  ;;  %vm3220_vm15 = vcmp.eq.f32.partialorder %v7591_v56, %v7724_v52  ;;  %vm3219_vm3 = vcmp.eq.f32.partialorder %v7597_v44, %v7737_v27  ;;  %v7747_v52 = vadd.f32 %v993_v55, %v6336_v22  ;;  %v7766_v55 = vadd.f32 %v1036_v30, %v6343_v33 }
 0x706   : > { %v7735_v19 = vsel %vm3220_vm15, -1e+30, %v7591_v56  ;;  %13833 = vst [vmem:[#allocation187_spill] sm:$0xff] %v7737_v27  ;;  %v7752_v56 = vsel %vm3219_vm3, -1e+30, %v7597_v44  ;;  %v7769_v27 = vsel %vm896_vm4, %v6580_v31, 0.0  ;;  %v1022_v31 = vmin.f32 %v7755_v57, %v7758_v11 }
 0x707   : > { %13832 = vst [vmem:[#allocation186_spill] sm:$0xff] %v7735_v19  ;;  %3372 = vmax.xlane.f32.xlu0 %v7735_v19  ;;  %3370 = vmax.xlane.f32.xlu1 %v7752_v56  ;;  %v7772_v44 = vsel %vm898_vm5, %v6584_v36, 0.0  ;;  %v1025_v37 = vmin.f32 %v7741_v4, %v7747_v52  ;;  %v959_v36 = vmul.f32 %v7763_v53, %v6328_v17  ;;  %v7799_v4 = vsel %vm901_vm7, %v6597_v40, 0.0 }
 0x708   : > { %13834 = vst [vmem:[#allocation188_spill] sm:$0xff] %v7752_v56  ;;  %v991_v30 = vmul.f32 %v7763_v53, %v6330_v18  ;;  %v960_v52 = vmul.f32 %v7769_v27, %v6328_v17  ;;  %v992_v39 = vmul.f32 %v7769_v27, %v6330_v18  ;;  %v962_v7 = vmul.f32 %v7772_v44, %v6328_v17 }
 0x709   : > { %13835 = vst [vmem:[#allocation189_spill] sm:$0xff] %v7799_v4  ;;  %v994_v11 = vmul.f32 %v7772_v44, %v6330_v18  ;;  %v7808_v33 = vsel %vm902_vm8, %v6612_v51, 0.0  ;;  %v7816_v40 = vsel %vm3421_vm9, -1e+30, %v7585_v63  ;;  %v975_v19 = vadd.f32 %v959_v36, %v6334_v21 }
 0x70a   : > { %13837 = vst [vmem:[#allocation191_spill] sm:$0xff] %v7808_v33  ;;  %v965_v51 = vmul.f32 %v7799_v4, %v6328_v17  ;;  %v997_v38 = vmul.f32 %v7799_v4, %v6330_v18  ;;  %v1007_v63 = vadd.f32 %v991_v30, %v6336_v22  ;;  %v998_v36 = vmul.f32 %v7808_v33, %v6330_v18 }
 0x70b   : > { %13838 = vst [vmem:[#allocation192_spill] sm:$0xff] %v7816_v40  ;;  %v1008_v34 = vadd.f32 %v992_v39, %v6336_v22  ;;  %v978_v0 = vadd.f32 %v962_v7, %v6334_v21  ;;  %v1010_v30 = vadd.f32 %v994_v11, %v6336_v22  ;;  %vm899_vm15 = vcmp.gt.f32.partialorder %v6641_v61, -1e+29 }
 0x70c   : > { %v7801_v57 = vpop.xlane.xlu2 %3176  ;;  %v981_v39 = vadd.f32 %v965_v51, %v6334_v21  ;;  %v1013_v7 = vadd.f32 %v997_v38, %v6336_v22  ;;  %v1014_v9 = vadd.f32 %v998_v36, %v6336_v22  ;;  %v1038_v36 = vmax.f32 %v1022_v31, 0.0 }
 0x70d   : > { %13836 = vst [vmem:[#allocation190_spill] sm:$0xff] %v7801_v57  ;;  %vm3226_vm10 = vcmp.eq.f32.partialorder %v7603_v35, %v7801_v57  ;;  %v976_v57 = vadd.f32 %v960_v52, %v6334_v21  ;;  %vm1308_vm4 = vcmp.gt.f32.partialorder %v6694_v28, -1e+29  ;;  %vm907_vm5 = vcmp.gt.f32.partialorder %v6673_v29, -1e+29 }
 0x70e   : > { %v7819_v56 = vsel %vm3226_vm10, -1e+30, %v7603_v35  ;;  %v966_v35 = vmul.f32 %v7808_v33, %v6328_v17  ;;  %v7849_v33 = vsel %vm1101_vm12, %v6634_v59, %v7690_v54  ;;  %v1023_v54 = vmin.f32 %v975_v19, %v1007_v63 }
 0x70f   : > { %13839 = vst [vmem:[#allocation193_spill] sm:$0xff] %v7819_v56  ;;  %3566 = vmax.xlane.f32.xlu1 %v7816_v40  ;;  %3384 = vmax.xlane.f32.xlu0 %v7819_v56  ;;  %v7842_v56 = vsel %vm1100_vm11, %v6594_v20, %v7687_v1  ;;  %v980_v40 = vadd.f32 %v964_v48, %v6334_v21  ;;  %vm1103_vm7 = vcmp.gt.f32.partialorder %v6670_v12, -1e+29  ;;  %vm1104_vm9 = vcmp.gt.f32.partialorder %v6680_v23, -1e+29 }
 0x710   : > { %13840 = vst [vmem:[#allocation194_spill] sm:$0xff] %v7849_v33  ;;  %v7857_v20 = vsel %vm1102_vm13, %v6636_v60, %v7720_v42  ;;  %v982_v48 = vadd.f32 %v966_v35, %v6334_v21  ;;  %v1164_v59 = vmul.f32 %v7842_v56, %v6328_v17  ;;  %v1196_v38 = vmul.f32 %v7842_v56, %v6330_v18 }
 0x711   : > { %v1165_v60 = vmul.f32 %v7849_v33, %v6328_v17  ;;  %v1197_v42 = vmul.f32 %v7849_v33, %v6330_v18  ;;  %v1024_v11 = vmin.f32 %v976_v57, %v1008_v34  ;;  %v1166_v51 = vmul.f32 %v7857_v20, %v6328_v17 }
 0x712   : > { %v1041_v35 = vmax.f32 %v1025_v37, 0.0  ;;  %v1028_v45 = vmin.f32 %v980_v40, %v1012_v14  ;;  %v1029_v3 = vmin.f32 %v981_v39, %v1013_v7  ;;  %v1030_v4 = vmin.f32 %v982_v48, %v1014_v9 }
 0x713   : > { %v7851_v52 = vpop.xlane.xlu1 %3360  ;;  %v7881_v33 = vsel %vm899_vm15, %v6641_v61, 0.0  ;;  %v1180_v19 = vadd.f32 %v1164_v59, %v6334_v21  ;;  %v1212_v34 = vadd.f32 %v1196_v38, %v6336_v22  ;;  %v1181_v57 = vadd.f32 %v1165_v60, %v6334_v21 }
 0x714   : > { %13841 = vst [vmem:[#allocation195_spill] sm:$0xff] %v7851_v52  ;;  %vm3422_vm14 = vcmp.eq.f32.partialorder %v7609_v46, %v7851_v52  ;;  %v1026_v52 = vmin.f32 %v978_v0, %v1010_v30  ;;  %v1213_v63 = vadd.f32 %v1197_v42, %v6336_v22  ;;  %v1040_v37 = vmax.f32 %v1024_v11, 0.0 }
 0x715   : > { %v7866_v1 = vsel %vm3422_vm14, -1e+30, %v7609_v46  ;;  %v1198_v46 = vmul.f32 %v7857_v20, %v6330_v18  ;;  %v1182_v0 = vadd.f32 %v1166_v51, %v6334_v21  ;;  %v963_v61 = vmul.f32 %v7881_v33, %v6328_v17 }
 0x716   : > { %13842 = vst [vmem:[#allocation196_spill] sm:$0xff] %v7866_v1  ;;  %3568 = vmax.xlane.f32.xlu2 %v7866_v1  ;;  %v1039_v1 = vmax.f32 %v1023_v54, 0.0  ;;  %v995_v40 = vmul.f32 %v7881_v33, %v6330_v18  ;;  %v7898_v30 = vsel %vm1106_vm1, %v6683_v24, %v7772_v44  ;;  %v1042_v39 = vmax.f32 %v1026_v52, 0.0 }
 0x717   : > { %v1214_v14 = vadd.f32 %v1198_v46, %v6336_v22  ;;  %v1044_v7 = vmax.f32 %v1028_v45, 0.0  ;;  %v1045_v48 = vmax.f32 %v1029_v3, 0.0  ;;  %v7906_v59 = vadd.f32 %v1041_v35, %v6425_v32 }
 0x718   : > { %v1046_v38 = vmax.f32 %v1030_v4, 0.0  ;;  %v1228_v60 = vmin.f32 %v1180_v19, %v1212_v34  ;;  %v1229_v42 = vmin.f32 %v1181_v57, %v1213_v63  ;;  %v1170_v24 = vmul.f32 %v7898_v30, %v6328_v17 }
 0x719   : > { %v1230_v54 = vmin.f32 %v1182_v0, %v1214_v14  ;;  %v1202_v44 = vmul.f32 %v7898_v30, %v6330_v18  ;;  %v1054_v45 = vadd.f32 %v1038_v36, %v6376_v58  ;;  %v7916_v3 = vadd.f32 %v1039_v1, %v6390_v2  ;;  %v13862_v2 = vld [vmem:[#allocation26_spill] sm:$0xff] }
 0x71a   : > { %v1011_v4 = vadd.f32 %v995_v40, %v6336_v22  ;;  %v7921_v52 = vadd.f32 %v1040_v37, %v6407_v15  ;;  %v7924_v11 = vadd.f32 %v1042_v39, %v6437_v41  ;;  %v7927_v51 = vadd.f32 %v1044_v7, %v6455_v47  ;;  %v13872_v41 = vld [vmem:[#allocation33_spill] sm:$0xff] }
 0x71b   : > { %v7890_v31 = vpop.xlane.xlu1 %3166  ;;  %v7930_v46 = vadd.f32 %v1045_v48, %v6463_v8  ;;  %v7933_v35 = vadd.f32 %v1046_v38, %v6476_v16  ;;  %v1244_v1 = vmax.f32 %v1228_v60, 0.0  ;;  %v1245_v36 = vmax.f32 %v1229_v42, 0.0 }
 0x71c   : > { %13843 = vst [vmem:[#allocation197_spill] sm:$0xff] %v7890_v31  ;;  %vm3221_vm3 = vcmp.eq.f32.partialorder %v7615_v62, %v7890_v31  ;;  %v7937_v19 = vsel %vm1308_vm4, %v6694_v28, %v7842_v56  ;;  %v1246_v34 = vmax.f32 %v1230_v54, 0.0  ;;  %v1186_v57 = vadd.f32 %v1170_v24, %v6334_v21 }
 0x71d   : > { %v7903_v9 = vsel %vm3221_vm3, -1e+30, %v7615_v62  ;;  %v979_v62 = vadd.f32 %v963_v61, %v6334_v21  ;;  %v1218_v63 = vadd.f32 %v1202_v44, %v6336_v22  ;;  %v1372_v28 = vmul.f32 %v7937_v19, %v6328_v17 }
 0x71e   : > { %3374 = vmax.xlane.f32.xlu2 %v7903_v9  ;;  %v1404_v56 = vmul.f32 %v7937_v19, %v6330_v18  ;;  %v7957_v61 = vadd.f32 %v1244_v1, %v7766_v55  ;;  %v7960_v40 = vadd.f32 %v1245_v36, %v7776_v10  ;;  %v7963_v39 = vsel %vm907_vm5, %v6673_v29, 0.0 }
 0x71f   : > { %v1027_v0 = vmin.f32 %v979_v62, %v1011_v4  ;;  %13845 = vst [vmem:[#allocation199_spill] sm:$0xff] %v7963_v39  ;;  %vm1105_vm10 = vcmp.gt.f32.partialorder %v6691_v5, -1e+29  ;;  %v1234_v7 = vmin.f32 %v1186_v57, %v1218_v63  ;;  %v7969_v48 = vsel %vm1108_vm6, %v6703_v49, %v7781_v25  ;;  %v13848_v62 = vld [vmem:[#allocation168_spill] sm:$0xff] }
 0x720   : > { %vm1109_vm11 = vcmp.gt.f32.partialorder %v6699_v26, -1e+29  ;;  %v7976_v55 = vadd.f32 %v1246_v34, %v1054_v45  ;;  %vm905_vm12 = vcmp.gt.f32.partialorder %v6648_v50, -1e+29  ;;  %v7981_v29 = vsel %vm1104_vm9, %v6680_v23, %v7769_v27  ;;  %v13846_v27 = vld [vmem:[#allocation189_spill] sm:$0xff] }
 0x721   : > { %v1043_v10 = vmax.f32 %v1027_v0, 0.0  ;;  %v1388_v38 = vadd.f32 %v1372_v28, %v6334_v21  ;;  %v1420_v49 = vadd.f32 %v1404_v56, %v6336_v22  ;;  %v7987_v25 = vsel %vm1105_vm10, %v6691_v5, %v7717_v13 }
 0x722   : > { %vm1310_vm13 = vcmp.gt.f32.partialorder %v6719_v43, -1e+29  ;;  %v7998_v60 = vsel %vm1109_vm11, %v6699_v26, %v13846_v27  ;;  %v1250_v42 = vmax.f32 %v1234_v7, 0.0  ;;  %v1168_v13 = vmul.f32 %v7981_v29, %v6328_v17 }
 0x723   : > { %v7942_v37 = vpop.xlane.xlu1 %3174  ;;  %v1200_v54 = vmul.f32 %v7981_v29, %v6330_v18  ;;  %v1169_v44 = vmul.f32 %v7987_v25, %v6328_v17  ;;  %v1201_v45 = vmul.f32 %v7987_v25, %v6330_v18  ;;  %v8014_v26 = vsel %vm1310_vm13, %v6719_v43, %v7857_v20  ;;  %v13849_v20 = vld [vmem:[#allocation19_spill] sm:$0xff] }
 0x724   : > { %13844 = vst [vmem:[#allocation198_spill] sm:$0xff] %v7942_v37  ;;  %vm3225_vm8 = vcmp.eq.f32.partialorder %v7621_v6, %v7942_v37  ;;  %v1436_v4 = vmin.f32 %v1388_v38, %v1420_v49  ;;  %v1173_v1 = vmul.f32 %v7998_v60, %v6328_v17  ;;  %v1205_v36 = vmul.f32 %v7998_v60, %v6330_v18 }
 0x725   : > { %v7954_v14 = vsel %vm3225_vm8, -1e+30, %v7621_v6  ;;  %v7973_v6 = vsel %vm1103_vm7, %v6670_v12, %v7763_v53  ;;  %v1172_v12 = vmul.f32 %v7969_v48, %v6328_v17  ;;  %v1204_v53 = vmul.f32 %v7969_v48, %v6330_v18 }
 0x726   : > { %3382 = vmax.xlane.f32.xlu2 %v7954_v14  ;;  %v1167_v23 = vmul.f32 %v7973_v6, %v6328_v17  ;;  %v1199_v5 = vmul.f32 %v7973_v6, %v6330_v18  ;;  %vm1107_vm15 = vcmp.gt.f32.partialorder %v13849_v20, -1e+29  ;;  %v1184_v28 = vadd.f32 %v1168_v13, %v6334_v21 }
 0x727   : > { %v1188_v57 = vadd.f32 %v1172_v12, %v6334_v21  ;;  %v1220_v63 = vadd.f32 %v1204_v53, %v6336_v22  ;;  %v1216_v56 = vadd.f32 %v1200_v54, %v6336_v22  ;;  %v1374_v7 = vmul.f32 %v8014_v26, %v6328_v17  ;;  %v13850_v53 = vld [vmem:[#allocation21_spill] sm:$0xff]  ;;  %v13852_v54 = vld [vmem:[#allocation23_spill] sm:$0xff] }
 0x728   : > { %v1183_v43 = vadd.f32 %v1167_v23, %v6334_v21  ;;  %v1215_v0 = vadd.f32 %v1199_v5, %v6336_v22  ;;  %v1185_v38 = vadd.f32 %v1169_v44, %v6334_v21  ;;  %v1217_v49 = vadd.f32 %v1201_v45, %v6336_v22 }
 0x729   : > { %v1406_v12 = vmul.f32 %v8014_v26, %v6330_v18  ;;  %vm1309_vm1 = vcmp.gt.f32.partialorder %v13850_v53, -1e+29  ;;  %v1189_v27 = vadd.f32 %v1173_v1, %v6334_v21  ;;  %v1221_v5 = vadd.f32 %v1205_v36, %v6336_v22  ;;  %v13855_v36 = vld [vmem:[#allocation194_spill] sm:$0xff] }
 0x72a   : > { %v8046_v13 = vsel %vm1107_vm15, %v13849_v20, %v7881_v33  ;;  %vm1110_vm3 = vcmp.gt.f32.partialorder %v13852_v54, -1e+29  ;;  %v8052_v44 = vsel %vm905_vm12, %v6648_v50, 0.0  ;;  %v1452_v45 = vmax.f32 %v1436_v4, 0.0  ;;  %v13856_v4 = vld [vmem:[#allocation191_spill] sm:$0xff] }
 0x72b   : > { %v8006_v24 = vpop.xlane.xlu1 %3170  ;;  %13853 = vst [vmem:[#allocation19_spill] sm:$0xff] %v8052_v44  ;;  %v1231_v16 = vmin.f32 %v1183_v43, %v1215_v0  ;;  %v1232_v8 = vmin.f32 %v1184_v28, %v1216_v56  ;;  %v1390_v1 = vadd.f32 %v1374_v7, %v6334_v21  ;;  %v8058_v58 = vsel %vm1309_vm1, %v13850_v53, %v13855_v36 }
 0x72c   : > { %13847 = vst [vmem:[#allocation189_spill] sm:$0xff] %v8006_v24  ;;  %vm3223_vm14 = vcmp.eq.f32.partialorder %v13848_v62, %v8006_v24  ;;  %v13854_v24 = vld [vmem:[#allocation17_spill] sm:$0xff]  ;;  %v1422_v33 = vadd.f32 %v1406_v12, %v6336_v22  ;;  %v1171_v20 = vmul.f32 %v8046_v13, %v6328_v17  ;;  %v1203_v50 = vmul.f32 %v8046_v13, %v6330_v18 }
 0x72d   : > { %v8023_v34 = vsel %vm3223_vm14, -1e+30, %v13848_v62  ;;  %v1236_v62 = vmin.f32 %v1188_v57, %v1220_v63  ;;  %vm904_vm4 = vcmp.gt.f32.partialorder %v13854_v24, -1e+29  ;;  %v8067_v57 = vsel %vm1110_vm3, %v13852_v54, %v13856_v4  ;;  %v13857_v63 = vld [vmem:[#allocation10_spill] sm:$0xff]  ;;  %v13860_v4 = vld [vmem:[#allocation25_spill] sm:$0xff] }
 0x72e   : > { %3378 = vmax.xlane.f32.xlu2 %v8023_v34  ;;  %v8070_v43 = vadd.f32 %v1043_v10, %v13857_v63  ;;  %v8073_v0 = vadd.f32 %v1250_v42, %v7924_v11  ;;  %v1233_v28 = vmin.f32 %v1185_v38, %v1217_v49  ;;  %v1237_v56 = vmin.f32 %v1189_v27, %v1221_v5 }
 0x72f   : > { %v8076_v7 = vadd.f32 %v1452_v45, %v7957_v61  ;;  %v8079_v12 = vsel %vm904_vm4, %v13854_v24, 0.0  ;;  %v1373_v53 = vmul.f32 %v8058_v58, %v6328_v17  ;;  %v1405_v54 = vmul.f32 %v8058_v58, %v6330_v18 }
 0x730   : > { %13858 = vst [vmem:[#allocation21_spill] sm:$0xff] %v8079_v12  ;;  %v1252_v36 = vmax.f32 %v1236_v62, 0.0  ;;  %v1247_v10 = vmax.f32 %v1231_v16, 0.0  ;;  %v1174_v11 = vmul.f32 %v8067_v57, %v6328_v17  ;;  %v1206_v42 = vmul.f32 %v8067_v57, %v6330_v18  ;;  %v13861_v16 = vld [vmem:[#allocation171_spill] sm:$0xff] }
 0x731   : > { %v1248_v38 = vmax.f32 %v1232_v8, 0.0  ;;  %v1438_v61 = vmin.f32 %v1390_v1, %v1422_v33  ;;  %v1187_v49 = vadd.f32 %v1171_v20, %v6334_v21  ;;  %v1219_v24 = vadd.f32 %v1203_v50, %v6336_v22  ;;  %v13863_v50 = vld [vmem:[#allocation28_spill] sm:$0xff] }
 0x732   : > { %v1249_v5 = vmax.f32 %v1233_v28, 0.0  ;;  %v1253_v45 = vmax.f32 %v1237_v56, 0.0  ;;  %vm1311_vm5 = vcmp.gt.f32.partialorder %v13860_v4, -1e+29  ;;  %v1389_v62 = vadd.f32 %v1373_v53, %v6334_v21 }
 0x733   : > { %v1421_v63 = vadd.f32 %v1405_v54, %v6336_v22  ;;  %vm1312_vm7 = vcmp.gt.f32.partialorder %v13862_v2, -1e+29  ;;  %v8103_v1 = vadd.f32 %v1252_v36, %v7927_v51  ;;  %v1190_v33 = vadd.f32 %v1174_v11, %v6334_v21  ;;  %v13864_v54 = vld [vmem:[#allocation29_spill] sm:$0xff] }
 0x734   : > { %v1222_v20 = vadd.f32 %v1206_v42, %v6336_v22  ;;  %vm1313_vm8 = vcmp.gt.f32.partialorder %v13863_v50, -1e+29  ;;  %v1454_v28 = vmax.f32 %v1438_v61, 0.0  ;;  %v1235_v56 = vmin.f32 %v1187_v49, %v1219_v24  ;;  %v13867_v24 = vld [vmem:[#allocation30_spill] sm:$0xff] }
 0x735   : > { %v8111_v53 = vsel %vm1311_vm5, %v13860_v4, %v7973_v6  ;;  %vm1314_vm9 = vcmp.gt.f32.partialorder %v13864_v54, -1e+29  ;;  %v8118_v51 = vadd.f32 %v1248_v38, %v7921_v52  ;;  %v8121_v36 = vadd.f32 %v1249_v5, %v7906_v59  ;;  %v13865_v6 = vld [vmem:[#allocation20_spill] sm:$0xff] }
 0x736   : > { %v8125_v11 = vsel %vm1312_vm7, %v13862_v2, %v7981_v29  ;;  %v8128_v42 = vadd.f32 %v1253_v45, %v7930_v46  ;;  %vm1113_vm10 = vcmp.gt.f32.partialorder %v13865_v6, -1e+29  ;;  %v1437_v61 = vmin.f32 %v1389_v62, %v1421_v63  ;;  %v13866_v2 = vld [vmem:[#allocation170_spill] sm:$0xff] }
 0x737   : > { %v1375_v52 = vmul.f32 %v8111_v53, %v6328_v17  ;;  %v8139_v59 = vsel %vm1314_vm9, %v13864_v54, %v7898_v30  ;;  %v8144_v46 = vadd.f32 %v1454_v28, %v7976_v55  ;;  %v1251_v29 = vmax.f32 %v1235_v56, 0.0 }
 0x738   : > { %v1407_v63 = vmul.f32 %v8111_v53, %v6330_v18  ;;  %v1408_v38 = vmul.f32 %v8125_v11, %v6330_v18  ;;  %vm1317_vm12 = vcmp.gt.f32.partialorder %v13867_v24, -1e+29  ;;  %v8159_v55 = vsel %vm1113_vm10, %v13865_v6, %v8052_v44  ;;  %v13870_v6 = vld [vmem:[#allocation31_spill] sm:$0xff]  ;;  %v13871_v44 = vld [vmem:[#allocation32_spill] sm:$0xff] }
 0x739   : > { %v8040_v23 = vpop.xlane.xlu0 %3362  ;;  %13868 = vst [vmem:[#allocation17_spill] sm:$0xff] %v8159_v55  ;;  %v1378_v5 = vmul.f32 %v8139_v59, %v6328_v17  ;;  %v1410_v45 = vmul.f32 %v8139_v59, %v6330_v18  ;;  %v1453_v62 = vmax.f32 %v1437_v61, 0.0  ;;  %v8175_v54 = vsel %vm1317_vm12, %v13867_v24, %v7998_v60 }
 0x73a   : > { %13851 = vst [vmem:[#allocation168_spill] sm:$0xff] %v8040_v23  ;;  %vm3423_vm11 = vcmp.eq.f32.partialorder %v13866_v2, %v8040_v23  ;;  %v1423_v28 = vadd.f32 %v1407_v63, %v6336_v22  ;;  %vm1516_vm14 = vcmp.gt.f32.partialorder %v13870_v6, -1e+29  ;;  %vm1316_vm15 = vcmp.gt.f32.partialorder %v13871_v44, -1e+29 }
 0x73b   : > { %v8166_v4 = vsel %vm3423_vm11, -1e+30, %v13866_v2  ;;  %v1424_v2 = vadd.f32 %v1408_v38, %v6336_v22  ;;  %v1394_v63 = vadd.f32 %v1378_v5, %v6334_v21  ;;  %vm1518_vm1 = vcmp.gt.f32.partialorder %v13872_v41, -1e+29 }
 0x73c   : > { %v8189_v60 = vadd.f32 %v1453_v62, %v7960_v40  ;;  %v1381_v38 = vmul.f32 %v8175_v54, %v6328_v17  ;;  %v8210_v24 = vsel %vm1316_vm15, %v13871_v44, %v7969_v48 }
 0x73e   : > { %v1397_v48 = vadd.f32 %v1381_v38, %v6334_v21 }
 0x741   : > { %v8091_v27 = vpop.xlane.xlu0 %3168 }
 0x742   : > { %13859 = vst [vmem:[#allocation23_spill] sm:$0xff] %v8091_v27  ;;  %vm3222_vm6 = vcmp.eq.f32.partialorder %v13861_v16, %v8091_v27 }
 0x743   : > { %v8100_v8 = vsel %vm3222_vm6, -1e+30, %v13861_v16  ;;  %v8115_v16 = vadd.f32 %v1247_v10, %v7916_v3  ;;  %v8133_v3 = vsel %vm1313_vm8, %v13863_v50, %v7987_v25  ;;  %v1238_v10 = vmin.f32 %v1190_v33, %v1222_v20  ;;  %v13869_v20 = vld [vmem:[#allocation24_spill] sm:$0xff] }
 0x744   : > { %3376 = vmax.xlane.f32.xlu1 %v8100_v8  ;;  %v1376_v25 = vmul.f32 %v8125_v11, %v6328_v17  ;;  %v1377_v30 = vmul.f32 %v8133_v3, %v6328_v17  ;;  %v1409_v49 = vmul.f32 %v8133_v3, %v6330_v18  ;;  %vm1112_vm13 = vcmp.gt.f32.partialorder %v13869_v20, -1e+29 }
 0x745   : > { %v1254_v33 = vmax.f32 %v1238_v10, 0.0  ;;  %v1391_v50 = vadd.f32 %v1375_v52, %v6334_v21  ;;  %v8183_v52 = vadd.f32 %v1251_v29, %v8070_v43  ;;  %v8206_v29 = vsel %vm1112_vm13, %v13869_v20, %v8079_v12 }
 0x746   : > { %v1392_v56 = vadd.f32 %v1376_v25, %v6334_v21  ;;  %v1393_v61 = vadd.f32 %v1377_v30, %v6334_v21  ;;  %v1425_v10 = vadd.f32 %v1409_v49, %v6336_v22  ;;  %v1426_v25 = vadd.f32 %v1410_v45, %v6336_v22  ;;  %13873 = vst [vmem:[#allocation194_spill] sm:$0xff] %v8206_v29  ;;  %v13874_v45 = vld [vmem:[#allocation27_spill] sm:$0xff] }
 0x747   : > { %v1413_v30 = vmul.f32 %v8175_v54, %v6330_v18  ;;  %v8197_v49 = vsel %vm1516_vm14, %v13870_v6, %v7937_v19  ;;  %v8200_v43 = vadd.f32 %v1254_v33, %v7933_v35  ;;  %v1439_v40 = vmin.f32 %v1391_v50, %v1423_v28  ;;  %v13875_v50 = vld [vmem:[#allocation35_spill] sm:$0xff] }
 0x748   : > { %v1440_v5 = vmin.f32 %v1392_v56, %v1424_v2  ;;  %vm1115_vm3 = vcmp.gt.f32.partialorder %v13874_v45, -1e+29  ;;  %v1441_v62 = vmin.f32 %v1393_v61, %v1425_v10  ;;  %v8215_v19 = vsel %vm1518_vm1, %v13872_v41, %v8014_v26  ;;  %v13876_v56 = vld [vmem:[#allocation37_spill] sm:$0xff]  ;;  %v13877_v2 = vld [vmem:[#allocation39_spill] sm:$0xff] }
 0x749   : > { %v1442_v35 = vmin.f32 %v1394_v63, %v1426_v25  ;;  %v1580_v33 = vmul.f32 %v8197_v49, %v6328_v17  ;;  %v1612_v20 = vmul.f32 %v8197_v49, %v6330_v18  ;;  %vm1315_vm4 = vcmp.gt.f32.partialorder %v13875_v50, -1e+29 }
 0x74a   : > { %v1429_v44 = vadd.f32 %v1413_v30, %v6336_v22  ;;  %v1380_v28 = vmul.f32 %v8210_v24, %v6328_v17  ;;  %vm1517_vm5 = vcmp.gt.f32.partialorder %v13876_v56, -1e+29  ;;  %v1412_v41 = vmul.f32 %v8210_v24, %v6330_v18 }
 0x74b   : > { %v1582_v26 = vmul.f32 %v8215_v19, %v6328_v17  ;;  %v1614_v6 = vmul.f32 %v8215_v19, %v6330_v18  ;;  %vm1318_vm6 = vcmp.gt.f32.partialorder %v13877_v2, -1e+29  ;;  %v1455_v61 = vmax.f32 %v1439_v40, 0.0 }
 0x74c   : > { %3570 = vmax.xlane.f32.xlu1 %v8166_v4  ;;  %v1456_v10 = vmax.f32 %v1440_v5, 0.0  ;;  %v8238_v63 = vsel %vm1115_vm3, %v13874_v45, %v7963_v39  ;;  %v8242_v25 = vsel %vm1315_vm4, %v13875_v50, %v8046_v13  ;;  %v1457_v38 = vmax.f32 %v1441_v62, 0.0 }
 0x74d   : > { %13878 = vst [vmem:[#allocation191_spill] sm:$0xff] %v8238_v63  ;;  %v1458_v30 = vmax.f32 %v1442_v35, 0.0  ;;  %v1596_v12 = vadd.f32 %v1580_v33, %v6334_v21  ;;  %v8247_v47 = vsel %vm1517_vm5, %v13876_v56, %v8058_v58  ;;  %v1445_v40 = vmin.f32 %v1397_v48, %v1429_v44  ;;  %v13880_v48 = vld [vmem:[#allocation41_spill] sm:$0xff]  ;;  %v13882_v56 = vld [vmem:[#allocation42_spill] sm:$0xff] }
 0x74e   : > { %v1628_v5 = vadd.f32 %v1612_v20, %v6336_v22  ;;  %v1396_v32 = vadd.f32 %v1380_v28, %v6334_v21  ;;  %v8253_v45 = vsel %vm1318_vm6, %v13877_v2, %v8067_v57  ;;  %v1428_v13 = vadd.f32 %v1412_v41, %v6336_v22  ;;  %v13881_v57 = vld [vmem:[#allocation173_spill] sm:$0xff] }
 0x74f   : > { %v1598_v62 = vadd.f32 %v1582_v26, %v6334_v21  ;;  %v1630_v35 = vadd.f32 %v1614_v6, %v6336_v22  ;;  %v1379_v33 = vmul.f32 %v8242_v25, %v6328_v17  ;;  %v1411_v20 = vmul.f32 %v8242_v25, %v6330_v18 }
 0x750   : > { %v1581_v50 = vmul.f32 %v8247_v47, %v6328_v17  ;;  %vm1519_vm7 = vcmp.gt.f32.partialorder %v13880_v48, -1e+29  ;;  %v1613_v44 = vmul.f32 %v8247_v47, %v6330_v18  ;;  %v1382_v28 = vmul.f32 %v8253_v45, %v6328_v17 }
 0x751   : > { %vm1520_vm9 = vcmp.gt.f32.partialorder %v13882_v56, -1e+29  ;;  %v8278_v26 = vadd.f32 %v1455_v61, %v8115_v16  ;;  %v8281_v6 = vadd.f32 %v1456_v10, %v8118_v51  ;;  %v8284_v2 = vadd.f32 %v1457_v38, %v8121_v36 }
 0x752   : > { %v1414_v39 = vmul.f32 %v8253_v45, %v6330_v18  ;;  %v1461_v15 = vmax.f32 %v1445_v40, 0.0  ;;  %v1644_v27 = vmin.f32 %v1596_v12, %v1628_v5  ;;  %v1444_v23 = vmin.f32 %v1396_v32, %v1428_v13  ;;  %v13883_v13 = vld [vmem:[#allocation43_spill] sm:$0xff] }
 0x753   : > { %v1646_v16 = vmin.f32 %v1598_v62, %v1630_v35  ;;  %v1395_v61 = vadd.f32 %v1379_v33, %v6334_v21  ;;  %v1427_v51 = vadd.f32 %v1411_v20, %v6336_v22  ;;  %v8297_v36 = vsel %vm1520_vm9, %v13882_v56, %v8125_v11  ;;  %v13887_v56 = vld [vmem:[#allocation44_spill] sm:$0xff] }
 0x754   : > { %v8300_v10 = vadd.f32 %v1458_v30, %v8073_v0  ;;  %v1597_v38 = vadd.f32 %v1581_v50, %v6334_v21  ;;  %v1629_v32 = vadd.f32 %v1613_v44, %v6336_v22  ;;  %v1398_v12 = vadd.f32 %v1382_v28, %v6334_v21  ;;  %v13885_v50 = vld [vmem:[#allocation175_spill] sm:$0xff] }
 0x755   : > { %vm1521_vm10 = vcmp.gt.f32.partialorder %v13883_v13, -1e+29  ;;  %v8312_v11 = vadd.f32 %v1461_v15, %v8128_v42  ;;  %v1660_v0 = vmax.f32 %v1644_v27, 0.0  ;;  %v1584_v30 = vmul.f32 %v8297_v36, %v6328_v17 }
 0x756   : > { %v1616_v62 = vmul.f32 %v8297_v36, %v6330_v18  ;;  %v1662_v33 = vmax.f32 %v1646_v16, 0.0  ;;  %v1443_v20 = vmin.f32 %v1395_v61, %v1427_v51  ;;  %v1645_v44 = vmin.f32 %v1597_v38, %v1629_v32  ;;  %v13890_v38 = vld [vmem:[#allocation177_spill] sm:$0xff] }
 0x757   : > { %v8325_v15 = vsel %vm1521_vm10, %v13883_v13, %v8133_v3  ;;  %vm1522_vm13 = vcmp.gt.f32.partialorder %v13887_v56, -1e+29  ;;  %v1600_v61 = vadd.f32 %v1584_v30, %v6334_v21  ;;  %v13889_v3 = vld [vmem:[#allocation46_spill] sm:$0xff] }
 0x758   : > { %v1632_v51 = vadd.f32 %v1616_v62, %v6336_v22  ;;  %vm1525_vm14 = vcmp.gt.f32.partialorder %v13889_v3, -1e+29  ;;  %v1585_v32 = vmul.f32 %v8325_v15, %v6328_v17  ;;  %v8356_v30 = vadd.f32 %v1662_v33, %v8144_v46 }
 0x759   : > { %v8260_v58 = vpop.xlane.xlu2 %3364  ;;  %v8360_v62 = vsel %vm1522_vm13, %v13887_v56, %v8139_v59  ;;  %v13895_v56 = vld [vmem:[#allocation179_spill] sm:$0xff] }
 0x75a   : > { %13879 = vst [vmem:[#allocation25_spill] sm:$0xff] %v8260_v58  ;;  %vm3424_vm8 = vcmp.eq.f32.partialorder %v13881_v57, %v8260_v58 }
 0x75b   : > { %v8275_v41 = vsel %vm3424_vm8, -1e+30, %v13881_v57  ;;  %v8291_v57 = vsel %vm1519_vm7, %v13880_v48, %v8111_v53  ;;  %v1430_v53 = vadd.f32 %v1414_v39, %v6336_v22  ;;  %v1460_v39 = vmax.f32 %v1444_v23, 0.0  ;;  %v13886_v48 = vld [vmem:[#allocation36_spill] sm:$0xff] }
 0x75c   : > { %3572 = vmax.xlane.f32.xlu0 %v8275_v41  ;;  %v1583_v40 = vmul.f32 %v8291_v57, %v6328_v17  ;;  %v1615_v5 = vmul.f32 %v8291_v57, %v6330_v18  ;;  %vm1321_vm12 = vcmp.gt.f32.partialorder %v13886_v48, -1e+29 }
 0x75d   : > { %v1446_v42 = vmin.f32 %v1398_v12, %v1430_v53  ;;  %v1617_v12 = vmul.f32 %v8325_v15, %v6330_v18  ;;  %v13891_v53 = vld [vmem:[#allocation45_spill] sm:$0xff]  ;;  %v8353_v13 = vadd.f32 %v1460_v39, %v8103_v1  ;;  %v8371_v1 = vsel %vm1525_vm14, %v13889_v3, %v8175_v54  ;;  %v13898_v3 = vld [vmem:[#allocation48_spill] sm:$0xff] }
 0x75e   : > { %v1599_v28 = vadd.f32 %v1583_v40, %v6334_v21  ;;  %v1631_v23 = vadd.f32 %v1615_v5, %v6336_v22  ;;  %vm1724_vm1 = vcmp.gt.f32.partialorder %v13891_v53, -1e+29  ;;  %v8350_v5 = vadd.f32 %v1660_v0, %v8076_v7 }
 0x75f   : > { %v1661_v7 = vmax.f32 %v1645_v44, 0.0  ;;  %v1462_v46 = vmax.f32 %v1446_v42, 0.0  ;;  %v1648_v39 = vmin.f32 %v1600_v61, %v1632_v51  ;;  %v8375_v59 = vsel %vm1724_vm1, %v13891_v53, %v8197_v49  ;;  %v13896_v49 = vld [vmem:[#allocation50_spill] sm:$0xff] }
 0x760   : > { %v1647_v0 = vmin.f32 %v1599_v28, %v1631_v23  ;;  %v1633_v44 = vadd.f32 %v1617_v12, %v6336_v22  ;;  %v1618_v54 = vmul.f32 %v8360_v62, %v6330_v18  ;;  %v1589_v42 = vmul.f32 %v8371_v1, %v6328_v17 }
 0x761   : > { %v8318_v35 = vpop.xlane.xlu2 %3366  ;;  %v8333_v16 = vpop.xlane.xlu0 %3368  ;;  %vm1524_vm4 = vcmp.gt.f32.partialorder %v13896_v49, -1e+29  ;;  %v1788_v23 = vmul.f32 %v8375_v59, %v6328_v17  ;;  %v1820_v61 = vmul.f32 %v8375_v59, %v6330_v18  ;;  %v1621_v51 = vmul.f32 %v8371_v1, %v6330_v18 }
 0x762   : > { %13884 = vst [vmem:[#allocation171_spill] sm:$0xff] %v8318_v35  ;;  %vm3425_vm11 = vcmp.eq.f32.partialorder %v13885_v50, %v8318_v35  ;;  %vm3426_vm15 = vcmp.eq.f32.partialorder %v13890_v38, %v8333_v16  ;;  %vm1726_vm5 = vcmp.gt.f32.partialorder %v13898_v3, -1e+29  ;;  %v8405_v12 = vadd.f32 %v1661_v7, %v8189_v60 }
 0x763   : > { %v8328_v27 = vsel %vm3425_vm11, -1e+30, %v13885_v50  ;;  %13888 = vst [vmem:[#allocation26_spill] sm:$0xff] %v8333_v16  ;;  %v8347_v40 = vsel %vm3426_vm15, -1e+30, %v13890_v38  ;;  %v1459_v50 = vmax.f32 %v1443_v20, 0.0  ;;  %v8367_v38 = vsel %vm1321_vm12, %v13886_v48, %v8159_v55 }
 0x764   : > { %3574 = vmax.xlane.f32.xlu0 %v8328_v27  ;;  %13892 = vst [vmem:[#allocation28_spill] sm:$0xff] %v8347_v40  ;;  %3576 = vmax.xlane.f32.xlu1 %v8347_v40  ;;  %v1586_v20 = vmul.f32 %v8360_v62, %v6328_v17  ;;  %v1601_v48 = vadd.f32 %v1585_v32, %v6334_v21  ;;  %v1663_v55 = vmax.f32 %v1647_v0, 0.0  ;;  %v1664_v37 = vmax.f32 %v1648_v39, 0.0  ;;  %v13900_v0 = vld [vmem:[#allocation49_spill] sm:$0xff] }
 0x765   : > { %13893 = vst [vmem:[#allocation29_spill] sm:$0xff] %v8367_v38  ;;  %v8402_v32 = vadd.f32 %v1459_v50, %v8183_v52  ;;  %v8408_v53 = vadd.f32 %v1462_v46, %v8200_v43  ;;  %v1634_v52 = vadd.f32 %v1618_v54, %v6336_v22  ;;  %v1605_v50 = vadd.f32 %v1589_v42, %v6334_v21  ;;  %v13904_v42 = vld [vmem:[#allocation55_spill] sm:$0xff] }
 0x766   : > { %v1649_v31 = vmin.f32 %v1601_v48, %v1633_v44  ;;  %v1602_v16 = vadd.f32 %v1586_v20, %v6334_v21  ;;  %v8420_v60 = vsel %vm1726_vm5, %v13898_v3, %v8215_v19  ;;  %v1804_v43 = vadd.f32 %v1788_v23, %v6334_v21  ;;  %v13902_v48 = vld [vmem:[#allocation52_spill] sm:$0xff]  ;;  %v13903_v19 = vld [vmem:[#allocation181_spill] sm:$0xff] }
 0x767   : > { %v1836_v7 = vadd.f32 %v1820_v61, %v6336_v22  ;;  %v1637_v46 = vadd.f32 %v1621_v51, %v6336_v22  ;;  %vm1523_vm7 = vcmp.gt.f32.partialorder %v13900_v0, -1e+29  ;;  %vm1725_vm8 = vcmp.gt.f32.partialorder %v13902_v48, -1e+29 }
 0x768   : > { %v1790_v44 = vmul.f32 %v8420_v60, %v6328_v17  ;;  %v1822_v54 = vmul.f32 %v8420_v60, %v6330_v18  ;;  %vm1526_vm10 = vcmp.gt.f32.partialorder %v13904_v42, -1e+29  ;;  %v8450_v61 = vadd.f32 %v1663_v55, %v8278_v26 }
 0x769   : > { %v8377_v33 = vpop.xlane.xlu2 %3172  ;;  %v8453_v51 = vadd.f32 %v1664_v37, %v8281_v6  ;;  %v8457_v3 = vsel %vm1523_vm7, %v13900_v0, %v8242_v25  ;;  %v1653_v35 = vmin.f32 %v1605_v50, %v1637_v46  ;;  %v8462_v58 = vsel %vm1725_vm8, %v13902_v48, %v8247_v47  ;;  %v13910_v48 = vld [vmem:[#allocation47_spill] sm:$0xff] }
 0x76a   : > { %13894 = vst [vmem:[#allocation20_spill] sm:$0xff] %v8377_v33  ;;  %vm3224_vm3 = vcmp.eq.f32.partialorder %v13895_v56, %v8377_v33  ;;  %v8413_v33 = vsel %vm1524_vm4, %v13896_v49, %v8210_v24  ;;  %v8426_v24 = vpop.xlane.xlu0 %3564  ;;  %v8468_v37 = vsel %vm1526_vm10, %v13904_v42, %v8253_v45  ;;  %v1806_v25 = vadd.f32 %v1790_v44, %v6334_v21  ;;  %v13908_v45 = vld [vmem:[#allocation57_spill] sm:$0xff] }
 0x76b   : > { %v8391_v28 = vsel %vm3224_vm3, -1e+30, %v13895_v56  ;;  %v13899_v56 = vld [vmem:[#allocation40_spill] sm:$0xff]  ;;  %13901 = vst [vmem:[#allocation30_spill] sm:$0xff] %v8426_v24  ;;  %v1588_v39 = vmul.f32 %v8413_v33, %v6328_v17  ;;  %v1620_v20 = vmul.f32 %v8413_v33, %v6330_v18  ;;  %vm3628_vm9 = vcmp.eq.f32.partialorder %v13903_v19, %v8426_v24 }
 0x76c   : > { %13897 = vst [vmem:[#allocation170_spill] sm:$0xff] %v8391_v28  ;;  %3380 = vmax.xlane.f32.xlu0 %v8391_v28  ;;  %vm1320_vm6 = vcmp.gt.f32.partialorder %v13899_v56, -1e+29  ;;  %v8441_v49 = vsel %vm3628_vm9, -1e+30, %v13903_v19  ;;  %v1650_v19 = vmin.f32 %v1602_v16, %v1634_v52  ;;  %v1665_v24 = vmax.f32 %v1649_v31, 0.0 }
 0x76d   : > { %13905 = vst [vmem:[#allocation24_spill] sm:$0xff] %v8441_v49  ;;  %v8447_v23 = vsel %vm1320_vm6, %v13899_v56, %v8206_v29  ;;  %3772 = vmax.xlane.f32.xlu1 %v8441_v49  ;;  %v1852_v56 = vmin.f32 %v1804_v43, %v1836_v7  ;;  %v1604_v55 = vadd.f32 %v1588_v39, %v6334_v21  ;;  %v13907_v16 = vld [vmem:[#allocation56_spill] sm:$0xff]  ;;  %vm1728_vm12 = vcmp.gt.f32.partialorder %v13908_v45, -1e+29 }
 0x76e   : > { %13906 = vst [vmem:[#allocation31_spill] sm:$0xff] %v8447_v23  ;;  %v1636_v26 = vadd.f32 %v1620_v20, %v6336_v22  ;;  %v1838_v6 = vadd.f32 %v1822_v54, %v6336_v22  ;;  %v1587_v31 = vmul.f32 %v8457_v3, %v6328_v17  ;;  %vm1727_vm11 = vcmp.gt.f32.partialorder %v13907_v16, -1e+29  ;;  %v13911_v54 = vld [vmem:[#allocation183_spill] sm:$0xff] }
 0x76f   : > { %v1619_v47 = vmul.f32 %v8457_v3, %v6330_v18  ;;  %v1789_v52 = vmul.f32 %v8462_v58, %v6328_v17  ;;  %v1821_v50 = vmul.f32 %v8462_v58, %v6330_v18  ;;  %v1666_v43 = vmax.f32 %v1650_v19, 0.0 }
 0x770   : > { %v1669_v7 = vmax.f32 %v1653_v35, 0.0  ;;  %v1590_v46 = vmul.f32 %v8468_v37, %v6328_v17  ;;  %v1622_v0 = vmul.f32 %v8468_v37, %v6330_v18  ;;  %v1868_v20 = vmax.f32 %v1852_v56, 0.0 }
 0x771   : > { %vm1323_vm13 = vcmp.gt.f32.partialorder %v13910_v48, -1e+29  ;;  %v8491_v44 = vsel %vm1727_vm11, %v13907_v16, %v8291_v57  ;;  %v1652_v42 = vmin.f32 %v1604_v55, %v1636_v26  ;;  %v1854_v35 = vmin.f32 %v1806_v25, %v1838_v6  ;;  %v13913_v25 = vld [vmem:[#allocation58_spill] sm:$0xff] }
 0x772   : > { %v8486_v39 = vpop.xlane.xlu0 %3178  ;;  %v8497_v19 = vsel %vm1728_vm12, %v13908_v45, %v8297_v36  ;;  %v1603_v56 = vadd.f32 %v1587_v31, %v6334_v21  ;;  %v1635_v49 = vadd.f32 %v1619_v47, %v6336_v22  ;;  %v1805_v28 = vadd.f32 %v1789_v52, %v6334_v21 }
 0x773   : > { %13909 = vst [vmem:[#allocation32_spill] sm:$0xff] %v8486_v39  ;;  %vm3227_vm14 = vcmp.eq.f32.partialorder %v13911_v54, %v8486_v39  ;;  %v1837_v57 = vadd.f32 %v1821_v50, %v6336_v22  ;;  %v1606_v55 = vadd.f32 %v1590_v46, %v6334_v21  ;;  %v1638_v26 = vadd.f32 %v1622_v0, %v6336_v22 }
 0x774   : > { %v8500_v29 = vsel %vm3227_vm14, -1e+30, %v13911_v54  ;;  %v1791_v36 = vmul.f32 %v8491_v44, %v6328_v17  ;;  %vm1729_vm15 = vcmp.gt.f32.partialorder %v13913_v25, -1e+29  ;;  %v8513_v6 = vadd.f32 %v1665_v24, %v8284_v2 }
 0x775   : > { %13912 = vst [vmem:[#allocation33_spill] sm:$0xff] %v8500_v29  ;;  %3386 = vmax.xlane.f32.xlu1 %v8500_v29  ;;  %v1823_v31 = vmul.f32 %v8491_v44, %v6330_v18  ;;  %v1792_v16 = vmul.f32 %v8497_v19, %v6328_v17  ;;  %v1824_v47 = vmul.f32 %v8497_v19, %v6330_v18  ;;  %v1668_v24 = vmax.f32 %v1652_v42, 0.0  ;;  %v13963_v29 = vld [vmem:[#allocation84_spill] sm:$0xff] }
 0x776   : > { %v8522_v52 = vadd.f32 %v1666_v43, %v8300_v10  ;;  %v8525_v50 = vadd.f32 %v1669_v7, %v8312_v11  ;;  %v8531_v2 = vsel %vm1323_vm13, %v13910_v48, %v8238_v63  ;;  %v8534_v45 = vadd.f32 %v1868_v20, %v8350_v5  ;;  %v13915_v7 = vld [vmem:[#allocation61_spill] sm:$0xff]  ;;  %v13916_v5 = vld [vmem:[#allocation62_spill] sm:$0xff] }
 0x777   : > { %13914 = vst [vmem:[#allocation27_spill] sm:$0xff] %v8531_v2  ;;  %v1870_v46 = vmax.f32 %v1854_v35, 0.0  ;;  %v1651_v0 = vmin.f32 %v1603_v56, %v1635_v49  ;;  %v8538_v54 = vsel %vm1729_vm15, %v13913_v25, %v8325_v15  ;;  %v1853_v10 = vmin.f32 %v1805_v28, %v1837_v57  ;;  %v13918_v28 = vld [vmem:[#allocation64_spill] sm:$0xff]  ;;  %v13919_v35 = vld [vmem:[#allocation186_spill] sm:$0xff]  ;;  %v13921_v25 = vld [vmem:[#allocation51_spill] sm:$0xff] }
 0x778   : > { %v1654_v43 = vmin.f32 %v1606_v55, %v1638_v26  ;;  %v1807_v11 = vadd.f32 %v1791_v36, %v6334_v21  ;;  %vm1733_vm1 = vcmp.gt.f32.partialorder %v13915_v7, -1e+29  ;;  %v1839_v39 = vadd.f32 %v1823_v31, %v6336_v22 }
 0x779   : > { %v1808_v48 = vadd.f32 %v1792_v16, %v6334_v21  ;;  %v1840_v42 = vadd.f32 %v1824_v47, %v6336_v22  ;;  %vm1730_vm3 = vcmp.gt.f32.partialorder %v13916_v5, -1e+29  ;;  %v8549_v49 = vadd.f32 %v1668_v24, %v8353_v13 }
 0x77a   : > { %v8546_v20 = vpop.xlane.xlu0 %3372  ;;  %v1793_v15 = vmul.f32 %v8538_v54, %v6328_v17  ;;  %vm1934_vm4 = vcmp.gt.f32.partialorder %v13918_v28, -1e+29  ;;  %v8557_v56 = vadd.f32 %v1870_v46, %v8356_v30  ;;  %v1825_v57 = vmul.f32 %v8538_v54, %v6330_v18  ;;  %v8573_v30 = vpop.xlane.xlu1 %3370 }
 0x77b   : > { %13917 = vst [vmem:[#allocation35_spill] sm:$0xff] %v8546_v20  ;;  %vm3428_vm5 = vcmp.eq.f32.partialorder %v13919_v35, %v8546_v20  ;;  %v8563_v55 = vsel %vm1733_vm1, %v13915_v7, %v8371_v1  ;;  %v1667_v26 = vmax.f32 %v1651_v0, 0.0  ;;  %v1869_v36 = vmax.f32 %v1853_v10, 0.0  ;;  %v13923_v10 = vld [vmem:[#allocation63_spill] sm:$0xff] }
 0x77c   : > { %v8566_v13 = vsel %vm3428_vm5, -1e+30, %v13919_v35  ;;  %vm1529_vm6 = vcmp.gt.f32.partialorder %v13921_v25, -1e+29  ;;  %v8571_v31 = vsel %vm1730_vm3, %v13916_v5, %v8360_v62  ;;  %13922 = vst [vmem:[#allocation39_spill] sm:$0xff] %v8573_v30  ;;  %v1670_v16 = vmax.f32 %v1654_v43, 0.0 }
 0x77d   : > { %13920 = vst [vmem:[#allocation37_spill] sm:$0xff] %v8566_v13  ;;  %3580 = vmax.xlane.f32.xlu1 %v8566_v13  ;;  %v1855_v47 = vmin.f32 %v1807_v11, %v1839_v39  ;;  %v1856_v24 = vmin.f32 %v1808_v48, %v1840_v42  ;;  %v8578_v1 = vsel %vm1934_vm4, %v13918_v28, %v8420_v60  ;;  %vm1731_vm7 = vcmp.gt.f32.partialorder %v13923_v10, -1e+29  ;;  %v13924_v60 = vld [vmem:[#allocation65_spill] sm:$0xff] }
 0x77e   : > { %v1809_v46 = vadd.f32 %v1793_v15, %v6334_v21  ;;  %v1797_v0 = vmul.f32 %v8563_v55, %v6328_v17  ;;  %v1829_v62 = vmul.f32 %v8563_v55, %v6330_v18  ;;  %v1841_v7 = vadd.f32 %v1825_v57, %v6336_v22 }
 0x77f   : > { %v1794_v39 = vmul.f32 %v8571_v31, %v6328_v17  ;;  %v1826_v43 = vmul.f32 %v8571_v31, %v6330_v18  ;;  %vm1932_vm8 = vcmp.gt.f32.partialorder %v13924_v60, -1e+29  ;;  %v8593_v11 = vadd.f32 %v1667_v26, %v8402_v32 }
 0x780   : > { %v8599_v48 = vsel %vm1529_vm6, %v13921_v25, %v8367_v38  ;;  %v1998_v42 = vmul.f32 %v8578_v1, %v6328_v17  ;;  %v2030_v5 = vmul.f32 %v8578_v1, %v6330_v18  ;;  %v8606_v15 = vadd.f32 %v1869_v36, %v8405_v12  ;;  %v13927_v36 = vld [vmem:[#allocation68_spill] sm:$0xff] }
 0x781   : > { %13925 = vst [vmem:[#allocation41_spill] sm:$0xff] %v8599_v48  ;;  %v8609_v28 = vadd.f32 %v1670_v16, %v8408_v53  ;;  %v1871_v32 = vmax.f32 %v1855_v47, 0.0  ;;  %v8613_v35 = vsel %vm1731_vm7, %v13923_v10, %v8457_v3  ;;  %v1872_v57 = vmax.f32 %v1856_v24, 0.0  ;;  %v13930_v10 = vld [vmem:[#allocation192_spill] sm:$0xff] }
 0x782   : > { %v1813_v26 = vadd.f32 %v1797_v0, %v6334_v21  ;;  %v1845_v25 = vadd.f32 %v1829_v62, %v6336_v22  ;;  %v8619_v38 = vsel %vm1932_vm8, %v13924_v60, %v8375_v59  ;;  %v1857_v63 = vmin.f32 %v1809_v46, %v1841_v7  ;;  %v8630_v0 = vpop.xlane.xlu1 %3566  ;;  %v8632_v59 = vpop.xlane.xlu0 %3384  ;;  %v13931_v7 = vld [vmem:[#allocation193_spill] sm:$0xff] }
 0x783   : > { %13926 = vst [vmem:[#allocation173_spill] sm:$0xff] %v8609_v28  ;;  %v1810_v12 = vadd.f32 %v1794_v39, %v6334_v21  ;;  %v1842_v53 = vadd.f32 %v1826_v43, %v6336_v22  ;;  %vm1732_vm9 = vcmp.gt.f32.partialorder %v13927_v36, -1e+29  ;;  %v2014_v16 = vadd.f32 %v1998_v42, %v6334_v21 }
 0x784   : > { %v2046_v3 = vadd.f32 %v2030_v5, %v6336_v22  ;;  %v1795_v47 = vmul.f32 %v8613_v35, %v6328_v17  ;;  %v1827_v24 = vmul.f32 %v8613_v35, %v6330_v18  ;;  %13928 = vst [vmem:[#allocation42_spill] sm:$0xff] %v8630_v0  ;;  %v1996_v46 = vmul.f32 %v8619_v38, %v6328_v17 }
 0x785   : > { %13929 = vst [vmem:[#allocation43_spill] sm:$0xff] %v8632_v59  ;;  %v2028_v62 = vmul.f32 %v8619_v38, %v6330_v18  ;;  %vm3629_vm10 = vcmp.eq.f32.partialorder %v13930_v10, %v8630_v0  ;;  %vm3434_vm11 = vcmp.eq.f32.partialorder %v13931_v7, %v8632_v59  ;;  %v1861_v39 = vmin.f32 %v1813_v26, %v1845_v25  ;;  %v13935_v0 = vld [vmem:[#allocation59_spill] sm:$0xff] }
 0x786   : > { %v8644_v43 = vsel %vm1732_vm9, %v13927_v36, %v8413_v33  ;;  %v8647_v60 = vsel %vm3629_vm10, -1e+30, %v13930_v10  ;;  %v8650_v42 = vsel %vm3434_vm11, -1e+30, %v13931_v7  ;;  %v8653_v5 = vadd.f32 %v1871_v32, %v8450_v61  ;;  %v13936_v36 = vld [vmem:[#allocation67_spill] sm:$0xff]  ;;  %v13941_v10 = vld [vmem:[#allocation196_spill] sm:$0xff] }
 0x787   : > { %13932 = vst [vmem:[#allocation175_spill] sm:$0xff] %v8647_v60  ;;  %v8656_v28 = vadd.f32 %v1872_v57, %v8453_v51  ;;  %vm1528_vm12 = vcmp.gt.f32.partialorder %v13935_v0, -1e+29  ;;  %v1858_v59 = vmin.f32 %v1810_v12, %v1842_v53  ;;  %3774 = vmax.xlane.f32.xlu2 %v8647_v60  ;;  %3592 = vmax.xlane.f32.xlu1 %v8650_v42  ;;  %vm1933_vm13 = vcmp.gt.f32.partialorder %v13936_v36, -1e+29 }
 0x788   : > { %13933 = vst [vmem:[#allocation36_spill] sm:$0xff] %v8650_v42  ;;  %v2062_v33 = vmin.f32 %v2014_v16, %v2046_v3  ;;  %v1811_v26 = vadd.f32 %v1795_v47, %v6334_v21  ;;  %v1843_v25 = vadd.f32 %v1827_v24, %v6336_v22  ;;  %v2012_v61 = vadd.f32 %v1996_v46, %v6334_v21  ;;  %v13938_v16 = vld [vmem:[#allocation60_spill] sm:$0xff] }
 0x789   : > { %13934 = vst [vmem:[#allocation44_spill] sm:$0xff] %v8653_v5  ;;  %v2044_v32 = vadd.f32 %v2028_v62, %v6336_v22  ;;  %v1796_v51 = vmul.f32 %v8644_v43, %v6328_v17  ;;  %v1828_v57 = vmul.f32 %v8644_v43, %v6330_v18  ;;  %v1873_v12 = vmax.f32 %v1857_v63, 0.0  ;;  %v8675_v47 = vpop.xlane.xlu2 %3568  ;;  %v13940_v62 = vld [vmem:[#allocation188_spill] sm:$0xff] }
 0x78a   : > { %v8672_v53 = vsel %vm1528_vm12, %v13935_v0, %v8447_v23  ;;  %vm1531_vm14 = vcmp.gt.f32.partialorder %v13938_v16, -1e+29  ;;  %v1877_v3 = vmax.f32 %v1861_v39, 0.0  ;;  %13939 = vst [vmem:[#allocation177_spill] sm:$0xff] %v8675_v47  ;;  %v1874_v24 = vmax.f32 %v1858_v59, 0.0  ;;  %v13942_v0 = vld [vmem:[#allocation70_spill] sm:$0xff] }
 0x78b   : > { %13937 = vst [vmem:[#allocation46_spill] sm:$0xff] %v8672_v53  ;;  %v8679_v46 = vsel %vm1933_vm13, %v13936_v36, %v8462_v58  ;;  %vm3427_vm15 = vcmp.eq.f32.partialorder %v13940_v62, %v8573_v30  ;;  %vm3630_vm1 = vcmp.eq.f32.partialorder %v13941_v10, %v8675_v47  ;;  %v2078_v63 = vmax.f32 %v2062_v33, 0.0  ;;  %v13944_v58 = vld [vmem:[#allocation66_spill] sm:$0xff] }
 0x78c   : > { %v1859_v7 = vmin.f32 %v1811_v26, %v1843_v25  ;;  %vm1734_vm3 = vcmp.gt.f32.partialorder %v13942_v0, -1e+29  ;;  %v8687_v23 = vsel %vm3630_vm1, -1e+30, %v13941_v10  ;;  %v2060_v39 = vmin.f32 %v2012_v61, %v2044_v32  ;;  %v13945_v26 = vld [vmem:[#allocation74_spill] sm:$0xff] }
 0x78d   : > { %13943 = vst [vmem:[#allocation45_spill] sm:$0xff] %v8687_v23  ;;  %v1812_v59 = vadd.f32 %v1796_v51, %v6334_v21  ;;  %v1844_v5 = vadd.f32 %v1828_v57, %v6336_v22  ;;  %vm1737_vm4 = vcmp.gt.f32.partialorder %v13944_v58, -1e+29  ;;  %3776 = vmax.xlane.f32.xlu0 %v8687_v23  ;;  %v1997_v36 = vmul.f32 %v8679_v46, %v6328_v17 }
 0x78e   : > { %v2029_v33 = vmul.f32 %v8679_v46, %v6330_v18  ;;  %vm1936_vm5 = vcmp.gt.f32.partialorder %v13945_v26, -1e+29  ;;  %v8699_v25 = vsel %vm3427_vm15, -1e+30, %v13940_v62  ;;  %v8702_v61 = vadd.f32 %v1873_v12, %v8513_v6 }
 0x78f   : > { %13946 = vst [vmem:[#allocation179_spill] sm:$0xff] %v8699_v25  ;;  %v8708_v32 = vsel %vm1531_vm14, %v13938_v16, %v8531_v2  ;;  %v8711_v51 = vadd.f32 %v1877_v3, %v8525_v50  ;;  %v8715_v57 = vsel %vm1734_vm3, %v13942_v0, %v8468_v37  ;;  %3578 = vmax.xlane.f32.xlu2 %v8699_v25  ;;  %v13949_v16 = vld [vmem:[#allocation72_spill] sm:$0xff]  ;;  %v2076_v50 = vmax.f32 %v2060_v39, 0.0 }
 0x790   : > { %13947 = vst [vmem:[#allocation50_spill] sm:$0xff] %v8708_v32  ;;  %v8719_v62 = vadd.f32 %v1874_v24, %v8522_v52  ;;  %v8722_v6 = vadd.f32 %v2078_v63, %v8557_v56  ;;  %v8726_v12 = vsel %vm1737_vm4, %v13944_v58, %v8599_v48  ;;  %vm1935_vm6 = vcmp.gt.f32.partialorder %v13949_v16, -1e+29  ;;  %v13953_v58 = vld [vmem:[#allocation77_spill] sm:$0xff] }
 0x791   : > { %13948 = vst [vmem:[#allocation48_spill] sm:$0xff] %v8726_v12  ;;  %v1875_v3 = vmax.f32 %v1859_v7, 0.0  ;;  %v1860_v10 = vmin.f32 %v1812_v59, %v1844_v5  ;;  %v8731_v37 = vsel %vm1936_vm5, %v13945_v26, %v8497_v19  ;;  %v2013_v0 = vadd.f32 %v1997_v36, %v6334_v21  ;;  %v8739_v63 = vpop.xlane.xlu2 %3374  ;;  %v13951_v5 = vld [vmem:[#allocation75_spill] sm:$0xff]  ;;  %v13952_v19 = vld [vmem:[#allocation76_spill] sm:$0xff] }
 0x792   : > { %v2045_v52 = vadd.f32 %v2029_v33, %v6336_v22  ;;  %v1798_v56 = vmul.f32 %v8715_v57, %v6328_v17  ;;  %v1830_v24 = vmul.f32 %v8715_v57, %v6330_v18  ;;  %13950 = vst [vmem:[#allocation40_spill] sm:$0xff] %v8739_v63  ;;  %v8743_v7 = vsel %vm1935_vm6, %v13949_v16, %v8491_v44  ;;  %v13955_v16 = vld [vmem:[#allocation78_spill] sm:$0xff] }
 0x793   : > { %vm1937_vm7 = vcmp.gt.f32.partialorder %v13951_v5, -1e+29  ;;  %vm1938_vm8 = vcmp.gt.f32.partialorder %v13952_v19, -1e+29  ;;  %vm3429_vm9 = vcmp.eq.f32.partialorder %v7903_v9, %v8739_v63  ;;  %v2000_v39 = vmul.f32 %v8731_v37, %v6328_v17 }
 0x794   : > { %v2032_v59 = vmul.f32 %v8731_v37, %v6330_v18  ;;  %vm1941_vm10 = vcmp.gt.f32.partialorder %v13953_v58, -1e+29  ;;  %v8755_v36 = vsel %vm3429_vm9, -1e+30, %v7903_v9  ;;  %v8758_v44 = vadd.f32 %v2076_v50, %v8534_v45  ;;  %v13956_v45 = vld [vmem:[#allocation79_spill] sm:$0xff] }
 0x795   : > { %13954 = vst [vmem:[#allocation49_spill] sm:$0xff] %v8755_v36  ;;  %v8761_v33 = vadd.f32 %v1875_v3, %v8593_v11  ;;  %v8763_v26 = vmax.f32 %v1860_v10, 0.0  ;;  %vm1939_vm11 = vcmp.gt.f32.partialorder %v13955_v16, -1e+29  ;;  %3582 = vmax.xlane.f32.xlu0 %v8755_v36  ;;  %v2061_v48 = vmin.f32 %v2013_v0, %v2045_v52 }
 0x796   : > { %v8769_v2 = vsel %vm1937_vm7, %v13951_v5, %v8538_v54  ;;  %v8773_v9 = vsel %vm1938_vm8, %v13952_v19, %v8571_v31  ;;  %vm2140_vm12 = vcmp.gt.f32.partialorder %v13956_v45, -1e+29  ;;  %v8777_v11 = vadd.f32 %v1798_v56, %v6334_v21 }
 0x797   : > { %v8780_v50 = vadd.f32 %v1830_v24, %v6336_v22  ;;  %v1999_v3 = vmul.f32 %v8743_v7, %v6328_v17  ;;  %v8786_v10 = vsel %vm1941_vm10, %v13953_v58, %v8563_v55  ;;  %v2031_v54 = vmul.f32 %v8743_v7, %v6330_v18 }
 0x798   : > { %v2016_v31 = vadd.f32 %v2000_v39, %v6334_v21  ;;  %v2048_v0 = vadd.f32 %v2032_v59, %v6336_v22  ;;  %v8794_v52 = vsel %vm1939_vm11, %v13955_v16, %v8613_v35  ;;  %v2001_v56 = vmul.f32 %v8769_v2, %v6328_v17  ;;  %v13957_v59 = vld [vmem:[#allocation80_spill] sm:$0xff] }
 0x799   : > { %v2033_v24 = vmul.f32 %v8769_v2, %v6330_v18  ;;  %v2002_v55 = vmul.f32 %v8773_v9, %v6328_v17  ;;  %v8804_v5 = vsel %vm2140_vm12, %v13956_v45, %v8619_v38  ;;  %v2034_v19 = vmul.f32 %v8773_v9, %v6330_v18  ;;  %v8813_v58 = vpop.xlane.xlu2 %3382  ;;  %v13959_v45 = vld [vmem:[#allocation82_spill] sm:$0xff] }
 0x79a   : > { %v2005_v35 = vmul.f32 %v8786_v10, %v6328_v17  ;;  %v2037_v39 = vmul.f32 %v8786_v10, %v6330_v18  ;;  %vm2142_vm13 = vcmp.gt.f32.partialorder %v13957_v59, -1e+29  ;;  %13958 = vst [vmem:[#allocation52_spill] sm:$0xff] %v8813_v58  ;;  %v2003_v16 = vmul.f32 %v8794_v52, %v6328_v17 }
 0x79b   : > { %v2035_v38 = vmul.f32 %v8794_v52, %v6330_v18  ;;  %vm2141_vm14 = vcmp.gt.f32.partialorder %v13959_v45, -1e+29  ;;  %vm3433_vm15 = vcmp.eq.f32.partialorder %v7954_v14, %v8813_v58  ;;  %v2015_v63 = vadd.f32 %v1999_v3, %v6334_v21 }
 0x79c   : > { %v2204_v47 = vmul.f32 %v8804_v5, %v6328_v17  ;;  %v2236_v30 = vmul.f32 %v8804_v5, %v6330_v18  ;;  %v8828_v20 = vsel %vm3433_vm15, -1e+30, %v7954_v14  ;;  %v2047_v36 = vadd.f32 %v2031_v54, %v6336_v22 }
 0x79d   : > { %13960 = vst [vmem:[#allocation181_spill] sm:$0xff] %v8828_v20  ;;  %v2064_v25 = vmin.f32 %v2016_v31, %v2048_v0  ;;  %v2017_v23 = vadd.f32 %v2001_v56, %v6334_v21  ;;  %v8834_v60 = vsel %vm2142_vm13, %v13957_v59, %v8578_v1  ;;  %3590 = vmax.xlane.f32.xlu0 %v8828_v20  ;;  %v2077_v56 = vmax.f32 %v2061_v48, 0.0 }
 0x79e   : > { %v2049_v3 = vadd.f32 %v2033_v24, %v6336_v22  ;;  %v2018_v58 = vadd.f32 %v2002_v55, %v6334_v21  ;;  %v2050_v42 = vadd.f32 %v2034_v19, %v6336_v22  ;;  %v8842_v14 = vsel %vm2141_vm14, %v13959_v45, %v8679_v46 }
 0x79f   : > { %v2021_v54 = vadd.f32 %v2005_v35, %v6334_v21  ;;  %v2053_v31 = vadd.f32 %v2037_v39, %v6336_v22  ;;  %v2019_v0 = vadd.f32 %v2003_v16, %v6334_v21  ;;  %v2051_v1 = vadd.f32 %v2035_v38, %v6336_v22  ;;  %v13961_v16 = vld [vmem:[#allocation73_spill] sm:$0xff] }
 0x7a0   : > { %v2220_v59 = vadd.f32 %v2204_v47, %v6334_v21  ;;  %v2252_v24 = vadd.f32 %v2236_v30, %v6336_v22  ;;  %v2206_v55 = vmul.f32 %v8834_v60, %v6328_v17  ;;  %v1862_v46 = vmin.f32 %v8777_v11, %v8780_v50 }
 0x7a1   : > { %v2238_v19 = vmul.f32 %v8834_v60, %v6330_v18  ;;  %v2205_v35 = vmul.f32 %v8842_v14, %v6328_v17  ;;  %v2237_v39 = vmul.f32 %v8842_v14, %v6330_v18  ;;  %v2063_v48 = vmin.f32 %v2015_v63, %v2047_v36  ;;  %v8861_v38 = vpop.xlane.xlu2 %3378 }
 0x7a2   : > { %vm1736_vm1 = vcmp.gt.f32.partialorder %v13961_v16, -1e+29  ;;  %v2080_v47 = vmax.f32 %v2064_v25, 0.0  ;;  %v2065_v30 = vmin.f32 %v2017_v23, %v2049_v3  ;;  %13962 = vst [vmem:[#allocation55_spill] sm:$0xff] %v8861_v38  ;;  %v2066_v45 = vmin.f32 %v2018_v58, %v2050_v42  ;;  %v13964_v42 = vld [vmem:[#allocation85_spill] sm:$0xff] }
 0x7a3   : > { %v2069_v20 = vmin.f32 %v2021_v54, %v2053_v31  ;;  %v2067_v13 = vmin.f32 %v2019_v0, %v2051_v1  ;;  %vm3431_vm3 = vcmp.eq.f32.partialorder %v8023_v34, %v8861_v38  ;;  %v2268_v11 = vmin.f32 %v2220_v59, %v2252_v24 }
 0x7a4   : > { %v2222_v50 = vadd.f32 %v2206_v55, %v6334_v21  ;;  %vm1940_vm4 = vcmp.gt.f32.partialorder %v13963_v29, -1e+29  ;;  %v8868_v40 = vsel %vm3431_vm3, -1e+30, %v8023_v34  ;;  %v2254_v63 = vadd.f32 %v2238_v19, %v6336_v22 }
 0x7a5   : > { %v2221_v23 = vadd.f32 %v2205_v35, %v6334_v21  ;;  %v2253_v25 = vadd.f32 %v2237_v39, %v6336_v22  ;;  %vm1942_vm5 = vcmp.gt.f32.partialorder %v13964_v42, -1e+29  ;;  %3586 = vmax.xlane.f32.xlu0 %v8868_v40  ;;  %v8877_v36 = vadd.f32 %v8763_v26, %v8549_v49  ;;  %v13970_v35 = vld [vmem:[#allocation90_spill] sm:$0xff] }
 0x7a6   : > { %v2093_v58 = vadd.f32 %v2077_v56, %v8606_v15  ;;  %v8880_v3 = vmax.f32 %v1862_v46, 0.0  ;;  %v2081_v34 = vmax.f32 %v2065_v30, 0.0  ;;  %v8882_v54 = vmax.f32 %v2063_v48, 0.0  ;;  %v13968_v46 = vld [vmem:[#allocation81_spill] sm:$0xff] }
 0x7a7   : > { %v8888_v31 = vsel %vm1736_vm1, %v13961_v16, %v8672_v53  ;;  %v2082_v0 = vmax.f32 %v2066_v45, 0.0  ;;  %v8892_v1 = vsel %vm1940_vm4, %v13963_v29, %v8644_v43  ;;  %v8895_v49 = vadd.f32 %v2080_v47, %v8656_v28 }
 0x7a8   : > { %13965 = vst [vmem:[#allocation56_spill] sm:$0xff] %v8880_v3  ;;  %v2085_v15 = vmax.f32 %v2069_v20, 0.0  ;;  %v2083_v26 = vmax.f32 %v2067_v13, 0.0  ;;  %v8899_v56 = vsel %vm1942_vm5, %v13964_v42, %v8715_v57  ;;  %v2284_v59 = vmax.f32 %v2268_v11, 0.0  ;;  %v13969_v20 = vld [vmem:[#allocation89_spill] sm:$0xff]  ;;  %v13973_v11 = vld [vmem:[#allocation91_spill] sm:$0xff] }
 0x7a9   : > { %13966 = vst [vmem:[#allocation57_spill] sm:$0xff] %v8882_v54  ;;  %v2270_v24 = vmin.f32 %v2222_v50, %v2254_v63  ;;  %v2269_v55 = vmin.f32 %v2221_v23, %v2253_v25  ;;  %vm1739_vm6 = vcmp.gt.f32.partialorder %v13968_v46, -1e+29  ;;  %v8903_v19 = vadd.f32 %v2081_v34, %v8702_v61  ;;  %v13974_v63 = vld [vmem:[#allocation83_spill] sm:$0xff] }
 0x7aa   : > { %13967 = vst [vmem:[#allocation47_spill] sm:$0xff] %v8888_v31  ;;  %v2004_v29 = vmul.f32 %v8892_v1, %v6328_v17  ;;  %v2036_v28 = vmul.f32 %v8892_v1, %v6330_v18  ;;  %vm2144_vm7 = vcmp.gt.f32.partialorder %v13969_v20, -1e+29  ;;  %v8911_v13 = vadd.f32 %v2082_v0, %v8719_v62  ;;  %v13972_v62 = vld [vmem:[#allocation88_spill] sm:$0xff]  ;;  %v13977_v0 = vld [vmem:[#allocation94_spill] sm:$0xff] }
 0x7ab   : > { %v2006_v43 = vmul.f32 %v8899_v56, %v6328_v17  ;;  %v2038_v57 = vmul.f32 %v8899_v56, %v6330_v18  ;;  %vm2145_vm8 = vcmp.gt.f32.partialorder %v13970_v35, -1e+29  ;;  %v8919_v61 = vadd.f32 %v2085_v15, %v8711_v51 }
 0x7ac   : > { %v8922_v39 = vadd.f32 %v2083_v26, %v8761_v33  ;;  %v8926_v48 = vsel %vm1739_vm6, %v13968_v46, %v8708_v32  ;;  %vm2143_vm9 = vcmp.gt.f32.partialorder %v13972_v62, -1e+29  ;;  %v8930_v16 = vadd.f32 %v2284_v59, %v8758_v44  ;;  %v13978_v59 = vld [vmem:[#allocation95_spill] sm:$0xff] }
 0x7ad   : > { %13971 = vst [vmem:[#allocation183_spill] sm:$0xff] %v8926_v48  ;;  %v2286_v47 = vmax.f32 %v2270_v24, 0.0  ;;  %v2285_v30 = vmax.f32 %v2269_v55, 0.0  ;;  %v8934_v45 = vsel %vm2144_vm7, %v13969_v20, %v8731_v37  ;;  %v2020_v51 = vadd.f32 %v2004_v29, %v6334_v21 }
 0x7ae   : > { %v2052_v33 = vadd.f32 %v2036_v28, %v6336_v22  ;;  %vm2146_vm10 = vcmp.gt.f32.partialorder %v13973_v11, -1e+29  ;;  %v8941_v50 = vsel %vm2145_vm8, %v13970_v35, %v8769_v2  ;;  %vm1945_vm11 = vcmp.gt.f32.partialorder %v13974_v63, -1e+29  ;;  %v13976_v2 = vld [vmem:[#allocation93_spill] sm:$0xff] }
 0x7af   : > { %v2022_v44 = vadd.f32 %v2006_v43, %v6334_v21  ;;  %v2054_v23 = vadd.f32 %v2038_v57, %v6336_v22  ;;  %v8948_v37 = vsel %vm2143_vm9, %v13972_v62, %v8743_v7  ;;  %v2208_v42 = vmul.f32 %v8934_v45, %v6328_v17  ;;  %v13980_v57 = vld [vmem:[#allocation97_spill] sm:$0xff] }
 0x7b0   : > { %v2240_v34 = vmul.f32 %v8934_v45, %v6330_v18  ;;  %vm2147_vm12 = vcmp.gt.f32.partialorder %v13976_v2, -1e+29  ;;  %vm2348_vm13 = vcmp.gt.f32.partialorder %v13977_v0, -1e+29  ;;  %v8960_v15 = vsel %vm2146_vm10, %v13973_v11, %v8773_v9  ;;  %v13981_v11 = vld [vmem:[#allocation98_spill] sm:$0xff] }
 0x7b1   : > { %v2209_v7 = vmul.f32 %v8941_v50, %v6328_v17  ;;  %v2241_v26 = vmul.f32 %v8941_v50, %v6330_v18  ;;  %vm2149_vm14 = vcmp.gt.f32.partialorder %v13978_v59, -1e+29  ;;  %v8968_v24 = vadd.f32 %v2286_v47, %v8722_v6 }
 0x7b2   : > { %v8970_v55 = vadd.f32 %v2285_v30, %v2093_v58  ;;  %v8974_v46 = vsel %vm1945_vm11, %v13974_v63, %v8726_v12  ;;  %v2068_v29 = vmin.f32 %v2020_v51, %v2052_v33  ;;  %v2070_v9 = vmin.f32 %v2022_v44, %v2054_v23 }
 0x7b3   : > { %13979 = vst [vmem:[#allocation61_spill] sm:$0xff] %v8974_v46  ;;  %v2207_v28 = vmul.f32 %v8948_v37, %v6328_v17  ;;  %v8980_v20 = vsel %vm2147_vm12, %v13976_v2, %v8794_v52  ;;  %v8984_v43 = vsel %vm2348_vm13, %v13977_v0, %v8804_v5  ;;  %v2210_v6 = vmul.f32 %v8960_v15, %v6328_v17 }
 0x7b4   : > { %v2242_v58 = vmul.f32 %v8960_v15, %v6330_v18  ;;  %vm2349_vm15 = vcmp.gt.f32.partialorder %v13980_v57, -1e+29  ;;  %v8993_v35 = vsel %vm2149_vm14, %v13978_v59, %v8786_v10  ;;  %v2224_v62 = vadd.f32 %v2208_v42, %v6334_v21 }
 0x7b5   : > { %v2256_v52 = vadd.f32 %v2240_v34, %v6336_v22  ;;  %v2225_v47 = vadd.f32 %v2209_v7, %v6334_v21  ;;  %v2257_v5 = vadd.f32 %v2241_v26, %v6336_v22  ;;  %v2211_v30 = vmul.f32 %v8980_v20, %v6328_v17 }
 0x7b6   : > { %v2243_v51 = vmul.f32 %v8980_v20, %v6330_v18  ;;  %v2412_v33 = vmul.f32 %v8984_v43, %v6328_v17  ;;  %vm2350_vm1 = vcmp.gt.f32.partialorder %v13981_v11, -1e+29  ;;  %v2444_v10 = vmul.f32 %v8984_v43, %v6330_v18 }
 0x7b7   : > { %v8950_v25 = vpop.xlane.xlu1 %3376  ;;  %v9010_v63 = vsel %vm2349_vm15, %v13980_v57, %v8842_v14  ;;  %v2213_v44 = vmul.f32 %v8993_v35, %v6328_v17  ;;  %v2245_v23 = vmul.f32 %v8993_v35, %v6330_v18  ;;  %v2239_v34 = vmul.f32 %v8948_v37, %v6330_v18 }
 0x7b8   : > { %13975 = vst [vmem:[#allocation58_spill] sm:$0xff] %v8950_v25  ;;  %v2226_v2 = vadd.f32 %v2210_v6, %v6334_v21  ;;  %v2258_v0 = vadd.f32 %v2242_v58, %v6336_v22  ;;  %v2272_v14 = vmin.f32 %v2224_v62, %v2256_v52  ;;  %v2273_v7 = vmin.f32 %v2225_v47, %v2257_v5 }
 0x7b9   : > { %v9026_v26 = vsel %vm2350_vm1, %v13981_v11, %v8834_v60  ;;  %v2227_v57 = vadd.f32 %v2211_v30, %v6334_v21  ;;  %v2259_v38 = vadd.f32 %v2243_v51, %v6336_v22  ;;  %v2413_v6 = vmul.f32 %v9010_v63, %v6328_v17 }
 0x7ba   : > { %v2445_v58 = vmul.f32 %v9010_v63, %v6330_v18  ;;  %v2428_v62 = vadd.f32 %v2412_v33, %v6334_v21  ;;  %v2460_v60 = vadd.f32 %v2444_v10, %v6336_v22  ;;  %v2229_v52 = vadd.f32 %v2213_v44, %v6334_v21 }
 0x7bb   : > { %v2084_v47 = vmax.f32 %v2068_v29, 0.0  ;;  %v2274_v5 = vmin.f32 %v2226_v2, %v2258_v0  ;;  %v2414_v30 = vmul.f32 %v9026_v26, %v6328_v17  ;;  %v2446_v51 = vmul.f32 %v9026_v26, %v6330_v18 }
 0x7bc   : > { %v9046_v11 = vmax.f32 %v2070_v9, 0.0  ;;  %v9049_v12 = vadd.f32 %v2207_v28, %v6334_v21  ;;  %v9052_v33 = vadd.f32 %v2239_v34, %v6336_v22  ;;  %v2288_v10 = vmax.f32 %v2272_v14, 0.0  ;;  %v13986_v9 = vld [vmem:[#allocation99_spill] sm:$0xff]  ;;  %v13987_v28 = vld [vmem:[#allocation92_spill] sm:$0xff] }
 0x7bd   : > { %v2275_v44 = vmin.f32 %v2227_v57, %v2259_v38  ;;  %v2461_v29 = vadd.f32 %v2445_v58, %v6336_v22  ;;  %vm3430_vm4 = vcmp.eq.f32.partialorder %v8100_v8, %v8950_v25  ;;  %v2289_v2 = vmax.f32 %v2273_v7, 0.0 }
 0x7be   : > { %13983 = vst [vmem:[#allocation64_spill] sm:$0xff] %v9046_v11  ;;  %v2476_v0 = vmin.f32 %v2428_v62, %v2460_v60  ;;  %vm2148_vm5 = vcmp.gt.f32.partialorder %v13986_v9, -1e+29  ;;  %v2290_v53 = vmax.f32 %v2274_v5, 0.0  ;;  %vm1944_vm6 = vcmp.gt.f32.partialorder %v13987_v28, -1e+29 }
 0x7bf   : > { %v9016_v42 = vpop.xlane.xlu1 %3570  ;;  %13984 = vst [vmem:[#allocation186_spill] sm:$0xff] %v9049_v12  ;;  %v2430_v34 = vadd.f32 %v2414_v30, %v6334_v21  ;;  %v2462_v14 = vadd.f32 %v2446_v51, %v6336_v22  ;;  %v9063_v38 = vadd.f32 %v2084_v47, %v8877_v36  ;;  %v9071_v7 = vsel %vm3430_vm4, -1e+30, %v8100_v8  ;;  %v13988_v60 = vld [vmem:[#allocation100_spill] sm:$0xff]  ;;  %v13991_v51 = vld [vmem:[#allocation105_spill] sm:$0xff] }
 0x7c0   : > { %13982 = vst [vmem:[#allocation62_spill] sm:$0xff] %v9016_v42  ;;  %vm3631_vm3 = vcmp.eq.f32.partialorder %v8166_v4, %v9016_v42  ;;  %v2291_v58 = vmax.f32 %v2275_v44, 0.0  ;;  %vm2150_vm7 = vcmp.gt.f32.partialorder %v13988_v60, -1e+29  ;;  %v2492_v36 = vmax.f32 %v2476_v0, 0.0 }
 0x7c1   : > { %v9029_v59 = vsel %vm3631_vm3, -1e+30, %v8166_v4  ;;  %v2261_v4 = vadd.f32 %v2245_v23, %v6336_v22  ;;  %13985 = vst [vmem:[#allocation51_spill] sm:$0xff] %v9052_v33  ;;  %v2429_v23 = vadd.f32 %v2413_v6, %v6334_v21  ;;  %v9068_v6 = vadd.f32 %v2288_v10, %v8895_v49  ;;  %v13990_v49 = vld [vmem:[#allocation96_spill] sm:$0xff] }
 0x7c2   : > { %3778 = vmax.xlane.f32.xlu2 %v9029_v59  ;;  %vm1947_vm8 = vcmp.gt.f32.partialorder %v13990_v49, -1e+29  ;;  %v9085_v8 = vadd.f32 %v2290_v53, %v8911_v13  ;;  %v9088_v5 = vadd.f32 %v2289_v2, %v8903_v19  ;;  %v2478_v30 = vmin.f32 %v2430_v34, %v2462_v14  ;;  %v13995_v2 = vld [vmem:[#allocation101_spill] sm:$0xff] }
 0x7c3   : > { %v2277_v32 = vmin.f32 %v2229_v52, %v2261_v4  ;;  %v2477_v62 = vmin.f32 %v2429_v23, %v2461_v29  ;;  %v9076_v52 = vsel %vm2148_vm5, %v13986_v9, %v8892_v1  ;;  %v9081_v4 = vsel %vm1944_vm6, %v13987_v28, %v8888_v31  ;;  %v13994_v23 = vld [vmem:[#allocation107_spill] sm:$0xff] }
 0x7c4   : > { %13989 = vst [vmem:[#allocation63_spill] sm:$0xff] %v9081_v4  ;;  %vm2352_vm9 = vcmp.gt.f32.partialorder %v13991_v51, -1e+29  ;;  %v9093_v1 = vsel %vm2150_vm7, %v13988_v60, %v8899_v56  ;;  %v2212_v10 = vmul.f32 %v9076_v52, %v6328_v17  ;;  %v2244_v44 = vmul.f32 %v9076_v52, %v6330_v18 }
 0x7c5   : > { %v2293_v47 = vmax.f32 %v2277_v32, 0.0  ;;  %v13992_v32 = vld [vmem:[#allocation106_spill] sm:$0xff]  ;;  %v9101_v53 = vadd.f32 %v2291_v58, %v8922_v39  ;;  %v2493_v19 = vmax.f32 %v2477_v62, 0.0  ;;  %v9105_v13 = vsel %vm1947_vm8, %v13990_v49, %v8926_v48  ;;  %v14004_v48 = vld [vmem:[#allocation28_spill] sm:$0xff] }
 0x7c6   : > { %vm2353_vm10 = vcmp.gt.f32.partialorder %v13992_v32, -1e+29  ;;  %13993 = vst [vmem:[#allocation65_spill] sm:$0xff] %v9105_v13  ;;  %vm2354_vm11 = vcmp.gt.f32.partialorder %v13994_v23, -1e+29  ;;  %v9109_v56 = vadd.f32 %v2492_v36, %v8930_v16  ;;  %v9117_v0 = vsel %vm2352_vm9, %v13991_v51, %v8934_v45  ;;  %v13998_v36 = vld [vmem:[#allocation109_spill] sm:$0xff] }
 0x7c7   : > { %v9112_v29 = vadd.f32 %v2293_v47, %v8919_v61  ;;  %vm2153_vm12 = vcmp.gt.f32.partialorder %v13995_v2, -1e+29  ;;  %v2214_v9 = vmul.f32 %v9093_v1, %v6328_v17  ;;  %v2494_v28 = vmax.f32 %v2478_v30, 0.0  ;;  %v13999_v51 = vld [vmem:[#allocation112_spill] sm:$0xff] }
 0x7c8   : > { %v9125_v34 = vsel %vm2353_vm10, %v13992_v32, %v8941_v50  ;;  %v2228_v61 = vadd.f32 %v2212_v10, %v6334_v21  ;;  %v2260_v16 = vadd.f32 %v2244_v44, %v6336_v22  ;;  %v9133_v45 = vsel %vm2354_vm11, %v13994_v23, %v8960_v15  ;;  %v14002_v23 = vld [vmem:[#allocation104_spill] sm:$0xff] }
 0x7c9   : > { %v9139_v58 = vadd.f32 %v2493_v19, %v8970_v55  ;;  %v9143_v50 = vsel %vm2153_vm12, %v13995_v2, %v8974_v46  ;;  %v2416_v62 = vmul.f32 %v9117_v0, %v6328_v17  ;;  %v2448_v60 = vmul.f32 %v9117_v0, %v6330_v18  ;;  %v13997_v55 = vld [vmem:[#allocation110_spill] sm:$0xff]  ;;  %v14001_v19 = vld [vmem:[#allocation113_spill] sm:$0xff] }
 0x7ca   : > { %3584 = vmax.xlane.f32.xlu2 %v9071_v7  ;;  %13996 = vst [vmem:[#allocation68_spill] sm:$0xff] %v9143_v50  ;;  %v2417_v15 = vmul.f32 %v9125_v34, %v6328_v17  ;;  %vm2556_vm14 = vcmp.gt.f32.partialorder %v13997_v55, -1e+29  ;;  %vm2355_vm15 = vcmp.gt.f32.partialorder %v13998_v36, -1e+29  ;;  %v2246_v49 = vmul.f32 %v9093_v1, %v6330_v18 }
 0x7cb   : > { %v2418_v47 = vmul.f32 %v9133_v45, %v6328_v17  ;;  %v2450_v30 = vmul.f32 %v9133_v45, %v6330_v18  ;;  %vm2557_vm1 = vcmp.gt.f32.partialorder %v13999_v51, -1e+29  ;;  %v9164_v10 = vadd.f32 %v2214_v9, %v6334_v21 }
 0x7cc   : > { %v2276_v44 = vmin.f32 %v2228_v61, %v2260_v16  ;;  %v9167_v32 = vadd.f32 %v2494_v28, %v8968_v24  ;;  %vm2558_vm3 = vcmp.gt.f32.partialorder %v14001_v19, -1e+29  ;;  %vm2351_vm4 = vcmp.gt.f32.partialorder %v14002_v23, -1e+29 }
 0x7cd   : > { %14000 = vst [vmem:[#allocation192_spill] sm:$0xff] %v9164_v10  ;;  %v2432_v2 = vadd.f32 %v2416_v62, %v6334_v21  ;;  %v9174_v57 = vsel %vm2556_vm14, %v13997_v55, %v8984_v43  ;;  %v9178_v46 = vsel %vm2355_vm15, %v13998_v36, %v8980_v20  ;;  %v2464_v9 = vadd.f32 %v2448_v60, %v6336_v22 }
 0x7ce   : > { %v2433_v61 = vadd.f32 %v2417_v15, %v6334_v21  ;;  %v9185_v28 = vsel %vm2557_vm1, %v13999_v51, %v9010_v63  ;;  %v2434_v62 = vadd.f32 %v2418_v47, %v6334_v21  ;;  %v2466_v43 = vadd.f32 %v2450_v30, %v6336_v22  ;;  %v14003_v47 = vld [vmem:[#allocation114_spill] sm:$0xff] }
 0x7cf   : > { %v9119_v39 = vpop.xlane.xlu0 %3572  ;;  %v9193_v20 = vsel %vm2558_vm3, %v14001_v19, %v9026_v26  ;;  %v2620_v60 = vmul.f32 %v9174_v57, %v6328_v17  ;;  %v2419_v63 = vmul.f32 %v9178_v46, %v6328_v17  ;;  %v2451_v15 = vmul.f32 %v9178_v46, %v6330_v18 }
 0x7d0   : > { %vm3632_vm13 = vcmp.eq.f32.partialorder %v8275_v41, %v9119_v39  ;;  %v2652_v55 = vmul.f32 %v9174_v57, %v6330_v18  ;;  %v2621_v26 = vmul.f32 %v9185_v28, %v6328_v17  ;;  %v2653_v36 = vmul.f32 %v9185_v28, %v6330_v18 }
 0x7d1   : > { %v9136_v14 = vsel %vm3632_vm13, -1e+30, %v8275_v41  ;;  %v2449_v41 = vmul.f32 %v9125_v34, %v6330_v18  ;;  %vm2356_vm6 = vcmp.gt.f32.partialorder %v14003_v47, -1e+29  ;;  %v2480_v51 = vmin.f32 %v2432_v2, %v2464_v9 }
 0x7d2   : > { %3780 = vmax.xlane.f32.xlu1 %v9136_v14  ;;  %v2654_v19 = vmul.f32 %v9193_v20, %v6330_v18  ;;  %v2292_v31 = vmax.f32 %v2276_v44, 0.0  ;;  %v9226_v25 = vsel %vm2351_vm4, %v14002_v23, %v8948_v37  ;;  %v2482_v2 = vmin.f32 %v2434_v62, %v2466_v43 }
 0x7d3   : > { %v2465_v24 = vadd.f32 %v2449_v41, %v6336_v22  ;;  %v2435_v9 = vadd.f32 %v2419_v63, %v6334_v21  ;;  %v2467_v54 = vadd.f32 %v2451_v15, %v6336_v22  ;;  %v9235_v3 = vsel %vm2356_vm6, %v14003_v47, %v9076_v52 }
 0x7d4   : > { %v2636_v44 = vadd.f32 %v2620_v60, %v6334_v21  ;;  %v2668_v37 = vadd.f32 %v2652_v55, %v6336_v22  ;;  %v2637_v23 = vadd.f32 %v2621_v26, %v6334_v21  ;;  %v2670_v43 = vadd.f32 %v2654_v19, %v6336_v22  ;;  %v14007_v55 = vld [vmem:[#allocation170_spill] sm:$0xff] }
 0x7d5   : > { %v2481_v42 = vmin.f32 %v2433_v61, %v2465_v24  ;;  %v2415_v61 = vmul.f32 %v9226_v25, %v6328_v17  ;;  %v2496_v24 = vmax.f32 %v2480_v51, 0.0  ;;  %v2420_v60 = vmul.f32 %v9235_v3, %v6328_v17 }
 0x7d6   : > { %v2452_v15 = vmul.f32 %v9235_v3, %v6330_v18  ;;  %v2498_v26 = vmax.f32 %v2482_v2, 0.0  ;;  %v2483_v47 = vmin.f32 %v2435_v9, %v2467_v54  ;;  %v2684_v19 = vmin.f32 %v2636_v44, %v2668_v37 }
 0x7d7   : > { %v9187_v16 = vpop.xlane.xlu0 %3574  ;;  %v9213_v30 = vpop.xlane.xlu1 %3576  ;;  %v2497_v63 = vmax.f32 %v2481_v42, 0.0  ;;  %v9262_v42 = vadd.f32 %v2292_v31, %v9063_v38  ;;  %v9266_v12 = vadd.f32 %v2415_v61, %v6334_v21  ;;  %v9270_v2 = vmul.f32 %v9226_v25, %v6330_v18 }
 0x7d8   : > { %vm3633_vm5 = vcmp.eq.f32.partialorder %v8328_v27, %v9187_v16  ;;  %vm3634_vm7 = vcmp.eq.f32.partialorder %v14004_v48, %v9213_v30  ;;  %v9273_v54 = vadd.f32 %v2496_v24, %v9068_v6  ;;  %v2436_v38 = vadd.f32 %v2420_v60, %v6334_v21  ;;  %v14015_v6 = vld [vmem:[#allocation116_spill] sm:$0xff]  ;;  %v14019_v60 = vld [vmem:[#allocation115_spill] sm:$0xff] }
 0x7d9   : > { %v9204_v41 = vsel %vm3633_vm5, -1e+30, %v8328_v27  ;;  %v2622_v27 = vmul.f32 %v9193_v20, %v6328_v17  ;;  %v9229_v11 = vsel %vm3634_vm7, -1e+30, %v14004_v48  ;;  %v2669_v48 = vadd.f32 %v2653_v36, %v6336_v22  ;;  %v14008_v36 = vld [vmem:[#allocation108_spill] sm:$0xff]  ;;  %14011 = vst [vmem:[#allocation188_spill] sm:$0xff] %v9266_v12 }
 0x7da   : > { %3782 = vmax.xlane.f32.xlu1 %v9204_v41  ;;  %14005 = vst [vmem:[#allocation193_spill] sm:$0xff] %v9229_v11  ;;  %3784 = vmax.xlane.f32.xlu2 %v9229_v11  ;;  %vm2152_vm9 = vcmp.gt.f32.partialorder %v14008_v36, -1e+29  ;;  %v2468_v44 = vadd.f32 %v2452_v15, %v6336_v22  ;;  %v9285_v37 = vadd.f32 %v2498_v26, %v9085_v8  ;;  %vm2357_vm11 = vcmp.gt.f32.partialorder %v14015_v6, -1e+29  ;;  %v14020_v15 = vld [vmem:[#allocation123_spill] sm:$0xff] }
 0x7db   : > { %v2638_v62 = vadd.f32 %v2622_v27, %v6334_v21  ;;  %v9259_v27 = vadd.f32 %v2246_v49, %v6336_v22  ;;  %v2685_v33 = vmin.f32 %v2637_v23, %v2669_v48  ;;  %14012 = vst [vmem:[#allocation196_spill] sm:$0xff] %v9270_v2  ;;  %v9276_v49 = vadd.f32 %v2497_v63, %v9088_v5  ;;  %v14014_v48 = vld [vmem:[#allocation111_spill] sm:$0xff]  ;;  %v14016_v5 = vld [vmem:[#allocation121_spill] sm:$0xff]  ;;  %v14021_v8 = vld [vmem:[#allocation24_spill] sm:$0xff] }
 0x7dc   : > { %v9280_v31 = vsel %vm2152_vm9, %v14008_v36, %v9081_v4  ;;  %v2499_v23 = vmax.f32 %v2483_v47, 0.0  ;;  %vm2155_vm10 = vcmp.gt.f32.partialorder %v14014_v48, -1e+29  ;;  %v2700_v61 = vmax.f32 %v2684_v19, 0.0  ;;  %v14022_v36 = vld [vmem:[#allocation125_spill] sm:$0xff] }
 0x7dd   : > { %14010 = vst [vmem:[#allocation60_spill] sm:$0xff] %v9259_v27  ;;  %v2686_v9 = vmin.f32 %v2638_v62, %v2670_v43  ;;  %v2701_v24 = vmax.f32 %v2685_v33, 0.0  ;;  %vm2560_vm12 = vcmp.gt.f32.partialorder %v14016_v5, -1e+29  ;;  %v14017_v62 = vld [vmem:[#allocation122_spill] sm:$0xff]  ;;  %v2373_v26 = vsel %vm2357_vm11, %v14015_v6, %v8993_v35 }
 0x7de   : > { %14013 = vst [vmem:[#allocation70_spill] sm:$0xff] %v9280_v31  ;;  %vm2561_vm13 = vcmp.gt.f32.partialorder %v14017_v62, -1e+29  ;;  %vm2358_vm14 = vcmp.gt.f32.partialorder %v14019_v60, -1e+29  ;;  %v9304_v47 = vadd.f32 %v2499_v23, %v9101_v53  ;;  %v9310_v19 = vsel %vm2155_vm10, %v14014_v48, %v9105_v13  ;;  %v14031_v13 = vld [vmem:[#allocation33_spill] sm:$0xff] }
 0x7df   : > { %v9246_v52 = vpop.xlane.xlu0 %3380  ;;  %v2702_v63 = vmax.f32 %v2686_v9, 0.0  ;;  %vm2562_vm15 = vcmp.gt.f32.partialorder %v14020_v15, -1e+29  ;;  %vm2563_vm3 = vcmp.gt.f32.partialorder %v14022_v36, -1e+29  ;;  %14024 = vst [vmem:[#allocation72_spill] sm:$0xff] %v9310_v19  ;;  %v9314_v9 = vsel %vm2560_vm12, %v14016_v5, %v9117_v0 }
 0x7e0   : > { %14006 = vst [vmem:[#allocation59_spill] sm:$0xff] %v9246_v52  ;;  %vm3432_vm8 = vcmp.eq.f32.partialorder %v14007_v55, %v9246_v52  ;;  %v9291_v43 = vpop.xlane.xlu1 %3772  ;;  %v9318_v35 = vsel %vm2561_vm13, %v14017_v62, %v9125_v34  ;;  %v9325_v53 = vadd.f32 %v2701_v24, %v9139_v58  ;;  %v9333_v0 = vsel %vm2562_vm15, %v14020_v15, %v9133_v45  ;;  %v14026_v24 = vld [vmem:[#allocation126_spill] sm:$0xff] }
 0x7e1   : > { %v9256_v51 = vsel %vm3432_vm8, -1e+30, %v14007_v55  ;;  %14018 = vst [vmem:[#allocation66_spill] sm:$0xff] %v9291_v43  ;;  %vm3836_vm1 = vcmp.eq.f32.partialorder %v14021_v8, %v9291_v43  ;;  %v2484_v55 = vmin.f32 %v2436_v38, %v2468_v44  ;;  %v9322_v38 = vadd.f32 %v2700_v61, %v9109_v56 }
 0x7e2   : > { %14009 = vst [vmem:[#allocation67_spill] sm:$0xff] %v9256_v51  ;;  %3588 = vmax.xlane.f32.xlu1 %v9256_v51  ;;  %v9301_v33 = vsel %vm3836_vm1, -1e+30, %v14021_v8  ;;  %v9329_v44 = vsel %vm2358_vm14, %v14019_v60, %v9093_v1  ;;  %v9336_v23 = vadd.f32 %v2702_v63, %v9167_v32  ;;  %v2421_v34 = vmul.f32 %v2373_v26, %v6328_v17  ;;  %v14028_v60 = vld [vmem:[#allocation129_spill] sm:$0xff] }
 0x7e3   : > { %14023 = vst [vmem:[#allocation74_spill] sm:$0xff] %v9301_v33  ;;  %3980 = vmax.xlane.f32.xlu2 %v9301_v33  ;;  %v2453_v48 = vmul.f32 %v2373_v26, %v6330_v18  ;;  %v9342_v56 = vsel %vm2563_vm3, %v14022_v36, %v9178_v46  ;;  %v2500_v58 = vmax.f32 %v2484_v55, 0.0  ;;  %v2624_v1 = vmul.f32 %v9314_v9, %v6328_v17  ;;  %v14027_v46 = vld [vmem:[#allocation128_spill] sm:$0xff]  ;;  %v14030_v36 = vld [vmem:[#allocation118_spill] sm:$0xff] }
 0x7e4   : > { %14025 = vst [vmem:[#allocation75_spill] sm:$0xff] %v9329_v44  ;;  %v2656_v6 = vmul.f32 %v9314_v9, %v6330_v18  ;;  %v2625_v45 = vmul.f32 %v9318_v35, %v6328_v17  ;;  %v2657_v32 = vmul.f32 %v9318_v35, %v6330_v18  ;;  %v2626_v61 = vmul.f32 %v9333_v0, %v6328_v17 }
 0x7e5   : > { %vm2764_vm4 = vcmp.gt.f32.partialorder %v14026_v24, -1e+29  ;;  %vm2765_vm5 = vcmp.gt.f32.partialorder %v14027_v46, -1e+29  ;;  %v2658_v5 = vmul.f32 %v9333_v0, %v6330_v18  ;;  %v2627_v62 = vmul.f32 %v9342_v56, %v6328_v17 }
 0x7e6   : > { %v2659_v63 = vmul.f32 %v9342_v56, %v6330_v18  ;;  %vm2564_vm6 = vcmp.gt.f32.partialorder %v14028_v60, -1e+29  ;;  %v2437_v8 = vadd.f32 %v2421_v34, %v6334_v21  ;;  %v2469_v55 = vadd.f32 %v2453_v48, %v6336_v22 }
 0x7e7   : > { %vm2361_vm7 = vcmp.gt.f32.partialorder %v14030_v36, -1e+29  ;;  %v2640_v4 = vadd.f32 %v2624_v1, %v6334_v21  ;;  %v9373_v12 = vsel %vm2764_vm4, %v14026_v24, %v9174_v57  ;;  %v9377_v10 = vsel %vm2765_vm5, %v14027_v46, %v9185_v28 }
 0x7e8   : > { %v9363_v15 = vpop.xlane.xlu1 %3386  ;;  %v2672_v34 = vadd.f32 %v2656_v6, %v6336_v22  ;;  %v2641_v48 = vadd.f32 %v2625_v45, %v6334_v21  ;;  %v2673_v44 = vadd.f32 %v2657_v32, %v6336_v22  ;;  %v9387_v1 = vsel %vm2564_vm6, %v14028_v60, %v9235_v3  ;;  %v14033_v32 = vld [vmem:[#allocation131_spill] sm:$0xff] }
 0x7e9   : > { %14029 = vst [vmem:[#allocation76_spill] sm:$0xff] %v9363_v15  ;;  %vm3435_vm8 = vcmp.eq.f32.partialorder %v14031_v13, %v9363_v15  ;;  %v2642_v57 = vadd.f32 %v2626_v61, %v6334_v21  ;;  %v2674_v28 = vadd.f32 %v2658_v5, %v6336_v22  ;;  %v2643_v24 = vadd.f32 %v2627_v62, %v6334_v21  ;;  %v14034_v62 = vld [vmem:[#allocation133_spill] sm:$0xff] }
 0x7ea   : > { %v9380_v27 = vsel %vm3435_vm8, -1e+30, %v14031_v13  ;;  %v2675_v13 = vadd.f32 %v2659_v63, %v6336_v22  ;;  %v2828_v6 = vmul.f32 %v9373_v12, %v6328_v17  ;;  %v2860_v45 = vmul.f32 %v9373_v12, %v6330_v18 }
 0x7eb   : > { %14032 = vst [vmem:[#allocation77_spill] sm:$0xff] %v9380_v27  ;;  %3594 = vmax.xlane.f32.xlu2 %v9380_v27  ;;  %v2829_v3 = vmul.f32 %v9377_v10, %v6328_v17  ;;  %vm2565_vm9 = vcmp.gt.f32.partialorder %v14033_v32, -1e+29  ;;  %v9402_v46 = vadd.f32 %v2500_v58, %v9262_v42  ;;  %v2861_v61 = vmul.f32 %v9377_v10, %v6330_v18 }
 0x7ec   : > { %v2628_v5 = vmul.f32 %v9387_v1, %v6328_v17  ;;  %vm2766_vm10 = vcmp.gt.f32.partialorder %v14034_v62, -1e+29  ;;  %v2485_v63 = vmin.f32 %v2437_v8, %v2469_v55  ;;  %v9413_v60 = vsel %vm2361_vm7, %v14030_v36, %v9143_v50  ;;  %v14042_v50 = vld [vmem:[#allocation127_spill] sm:$0xff] }
 0x7ed   : > { %14035 = vst [vmem:[#allocation78_spill] sm:$0xff] %v9413_v60  ;;  %v2688_v2 = vmin.f32 %v2640_v4, %v2672_v34  ;;  %v2660_v42 = vmul.f32 %v9387_v1, %v6330_v18  ;;  %v2689_v58 = vmin.f32 %v2641_v48, %v2673_v44  ;;  %v2690_v27 = vmin.f32 %v2642_v57, %v2674_v28  ;;  %v14037_v48 = vld [vmem:[#allocation137_spill] sm:$0xff] }
 0x7ee   : > { %v2691_v11 = vmin.f32 %v2643_v24, %v2675_v13  ;;  %v9418_v15 = vsel %vm2565_vm9, %v14033_v32, %v2373_v26  ;;  %v2844_v33 = vadd.f32 %v2828_v6, %v6334_v21  ;;  %v2876_v8 = vadd.f32 %v2860_v45, %v6336_v22  ;;  %v14038_v26 = vld [vmem:[#allocation37_spill] sm:$0xff]  ;;  %v14040_v6 = vld [vmem:[#allocation120_spill] sm:$0xff] }
 0x7ef   : > { %v2845_v55 = vadd.f32 %v2829_v3, %v6334_v21  ;;  %v9425_v36 = vsel %vm2766_vm10, %v14034_v62, %v9193_v20  ;;  %v2877_v34 = vadd.f32 %v2861_v61, %v6336_v22  ;;  %v2644_v44 = vadd.f32 %v2628_v5, %v6334_v21  ;;  %v14041_v5 = vld [vmem:[#allocation124_spill] sm:$0xff] }
 0x7f0   : > { %v9427_v4 = vpop.xlane.xlu1 %3580  ;;  %vm2768_vm11 = vcmp.gt.f32.partialorder %v14037_v48, -1e+29  ;;  %v2676_v57 = vadd.f32 %v2660_v42, %v6336_v22  ;;  %v2629_v28 = vmul.f32 %v9418_v15, %v6328_v17  ;;  %v2661_v20 = vmul.f32 %v9418_v15, %v6330_v18 }
 0x7f1   : > { %14036 = vst [vmem:[#allocation79_spill] sm:$0xff] %v9427_v4  ;;  %vm3636_vm12 = vcmp.eq.f32.partialorder %v14038_v26, %v9427_v4  ;;  %v2501_v13 = vmax.f32 %v2485_v63, 0.0  ;;  %vm2559_vm13 = vcmp.gt.f32.partialorder %v14040_v6, -1e+29  ;;  %v2830_v45 = vmul.f32 %v9425_v36, %v6328_v17 }
 0x7f2   : > { %v9440_v24 = vsel %vm3636_vm12, -1e+30, %v14038_v26  ;;  %v2862_v3 = vmul.f32 %v9425_v36, %v6330_v18  ;;  %v2704_v32 = vmax.f32 %v2688_v2, 0.0  ;;  %v2705_v61 = vmax.f32 %v2689_v58, 0.0 }
 0x7f3   : > { %14039 = vst [vmem:[#allocation80_spill] sm:$0xff] %v9440_v24  ;;  %3788 = vmax.xlane.f32.xlu2 %v9440_v24  ;;  %vm2360_vm14 = vcmp.gt.f32.partialorder %v14041_v5, -1e+29  ;;  %v9451_v62 = vsel %vm2768_vm11, %v14037_v48, %v9314_v9  ;;  %v2706_v42 = vmax.f32 %v2690_v27, 0.0  ;;  %v2707_v63 = vmax.f32 %v2691_v11, 0.0  ;;  %v14043_v9 = vld [vmem:[#allocation138_spill] sm:$0xff] }
 0x7f4   : > { %v2892_v26 = vmin.f32 %v2844_v33, %v2876_v8  ;;  %vm2363_vm15 = vcmp.gt.f32.partialorder %v14042_v50, -1e+29  ;;  %v2893_v4 = vmin.f32 %v2845_v55, %v2877_v34  ;;  %v2692_v51 = vmin.f32 %v2644_v44, %v2676_v57 }
 0x7f5   : > { %v2645_v52 = vadd.f32 %v2629_v28, %v6334_v21  ;;  %v2677_v43 = vadd.f32 %v2661_v20, %v6336_v22  ;;  %v2846_v2 = vadd.f32 %v2830_v45, %v6334_v21  ;;  %v2878_v58 = vadd.f32 %v2862_v3, %v6336_v22 }
 0x7f6   : > { %v2832_v24 = vmul.f32 %v9451_v62, %v6328_v17  ;;  %vm2769_vm1 = vcmp.gt.f32.partialorder %v14043_v9, -1e+29  ;;  %v9462_v11 = vadd.f32 %v2501_v13, %v9112_v29  ;;  %v9468_v27 = vsel %vm2559_vm13, %v14040_v6, %v9226_v25  ;;  %v14048_v6 = vld [vmem:[#allocation139_spill] sm:$0xff] }
 0x7f7   : > { %14044 = vst [vmem:[#allocation82_spill] sm:$0xff] %v9468_v27  ;;  %v9471_v33 = vadd.f32 %v2704_v32, %v9273_v54  ;;  %v2864_v8 = vmul.f32 %v9451_v62, %v6330_v18  ;;  %v9476_v55 = vadd.f32 %v2705_v61, %v9276_v49  ;;  %v9479_v34 = vadd.f32 %v2706_v42, %v9285_v37  ;;  %v14054_v32 = vld [vmem:[#allocation142_spill] sm:$0xff]  ;;  %v14055_v61 = vld [vmem:[#allocation144_spill] sm:$0xff] }
 0x7f8   : > { %v9485_v29 = vsel %vm2360_vm14, %v14041_v5, %v9280_v31  ;;  %v9488_v25 = vadd.f32 %v2707_v63, %v9304_v47  ;;  %v2908_v54 = vmax.f32 %v2892_v26, 0.0  ;;  %v2909_v44 = vmax.f32 %v2893_v4, 0.0 }
 0x7f9   : > { %14045 = vst [vmem:[#allocation73_spill] sm:$0xff] %v9485_v29  ;;  %v9494_v49 = vsel %vm2363_vm15, %v14042_v50, %v9310_v19  ;;  %v9498_v37 = vsel %vm2769_vm1, %v14043_v9, %v9318_v35  ;;  %v2708_v48 = vmax.f32 %v2692_v51, 0.0  ;;  %v2693_v57 = vmin.f32 %v2645_v52, %v2677_v43  ;;  %v14049_v50 = vld [vmem:[#allocation36_spill] sm:$0xff]  ;;  %v14050_v35 = vld [vmem:[#allocation175_spill] sm:$0xff]  ;;  %v14051_v51 = vld [vmem:[#allocation141_spill] sm:$0xff] }
 0x7fa   : > { %14046 = vst [vmem:[#allocation84_spill] sm:$0xff] %v9494_v49  ;;  %v2894_v28 = vmin.f32 %v2846_v2, %v2878_v58  ;;  %v9501_v20 = vadd.f32 %v2832_v24, %v6334_v21  ;;  %v9503_v47 = vpop.xlane.xlu1 %3592  ;;  %v9505_v13 = vpop.xlane.xlu2 %3774  ;;  %v9508_v4 = vadd.f32 %v2864_v8, %v6336_v22  ;;  %vm2770_vm3 = vcmp.gt.f32.partialorder %v14048_v6, -1e+29 }
 0x7fb   : > { %14047 = vst [vmem:[#allocation85_spill] sm:$0xff] %v9503_v47  ;;  %vm3642_vm4 = vcmp.eq.f32.partialorder %v14049_v50, %v9503_v47  ;;  %vm3837_vm5 = vcmp.eq.f32.partialorder %v14050_v35, %v9505_v13  ;;  %v2833_v52 = vmul.f32 %v9498_v37, %v6328_v17  ;;  %vm2771_vm6 = vcmp.gt.f32.partialorder %v14051_v51, -1e+29 }
 0x7fc   : > { %v9519_v43 = vsel %vm3642_vm4, -1e+30, %v14049_v50  ;;  %v9522_v24 = vsel %vm3837_vm5, -1e+30, %v14050_v35  ;;  %v9525_v45 = vadd.f32 %v2908_v54, %v9322_v38  ;;  %v9528_v3 = vadd.f32 %v2909_v44, %v9325_v53  ;;  %v14056_v38 = vld [vmem:[#allocation145_spill] sm:$0xff] }
 0x7fd   : > { %14052 = vst [vmem:[#allocation81_spill] sm:$0xff] %v9519_v43  ;;  %vm2972_vm7 = vcmp.gt.f32.partialorder %v14054_v32, -1e+29  ;;  %vm2973_vm8 = vcmp.gt.f32.partialorder %v14055_v61, -1e+29  ;;  %3800 = vmax.xlane.f32.xlu2 %v9519_v43  ;;  %v9534_v5 = vadd.f32 %v2708_v48, %v9402_v46  ;;  %v9536_v42 = vmax.f32 %v2693_v57, 0.0  ;;  %3982 = vmax.xlane.f32.xlu0 %v9522_v24 }
 0x7fe   : > { %14053 = vst [vmem:[#allocation89_spill] sm:$0xff] %v9522_v24  ;;  %v9540_v63 = vsel %vm2770_vm3, %v14048_v6, %v9333_v0  ;;  %vm2772_vm9 = vcmp.gt.f32.partialorder %v14056_v38, -1e+29  ;;  %v9544_v53 = vmax.f32 %v2894_v28, 0.0  ;;  %v2865_v26 = vmul.f32 %v9498_v37, %v6330_v18  ;;  %v14057_v46 = vld [vmem:[#allocation148_spill] sm:$0xff]  ;;  %v14059_v57 = vld [vmem:[#allocation45_spill] sm:$0xff] }
 0x7ff   : > { %v9550_v2 = vsel %vm2771_vm6, %v14051_v51, %v9342_v56  ;;  %vm2974_vm10 = vcmp.gt.f32.partialorder %v14057_v46, -1e+29  ;;  %v2896_v58 = vmin.f32 %v9501_v20, %v9508_v4  ;;  %v9556_v0 = vadd.f32 %v2833_v52, %v6334_v21  ;;  %v14066_v24 = vld [vmem:[#allocation153_spill] sm:$0xff] }
 0x800   : > { %v9560_v9 = vsel %vm2972_vm7, %v14054_v32, %v9373_v12  ;;  %v9564_v8 = vsel %vm2973_vm8, %v14055_v61, %v9377_v10  ;;  %v9566_v54 = vpop.xlane.xlu0 %3776  ;;  %v2834_v56 = vmul.f32 %v9540_v63, %v6328_v17  ;;  %v2866_v44 = vmul.f32 %v9540_v63, %v6330_v18  ;;  %v14060_v12 = vld [vmem:[#allocation134_spill] sm:$0xff]  ;;  %v14063_v61 = vld [vmem:[#allocation179_spill] sm:$0xff] }
 0x801   : > { %14058 = vst [vmem:[#allocation90_spill] sm:$0xff] %v9566_v54  ;;  %v9574_v48 = vsel %vm2772_vm9, %v14056_v38, %v9387_v1  ;;  %vm3838_vm11 = vcmp.eq.f32.partialorder %v14059_v57, %v9566_v54  ;;  %vm2569_vm12 = vcmp.gt.f32.partialorder %v14060_v12, -1e+29  ;;  %v2835_v10 = vmul.f32 %v9550_v2, %v6328_v17  ;;  %v14067_v54 = vld [vmem:[#allocation49_spill] sm:$0xff] }
 0x802   : > { %v2867_v28 = vmul.f32 %v9550_v2, %v6330_v18  ;;  %v9585_v20 = vsel %vm2974_vm10, %v14057_v46, %v9425_v36  ;;  %v9587_v4 = vpop.xlane.xlu2 %3578  ;;  %v9590_v1 = vsel %vm3838_vm11, -1e+30, %v14059_v57  ;;  %v2881_v6 = vadd.f32 %v2865_v26, %v6336_v22  ;;  %v14064_v57 = vld [vmem:[#allocation149_spill] sm:$0xff] }
 0x803   : > { %14061 = vst [vmem:[#allocation88_spill] sm:$0xff] %v9587_v4  ;;  %v3036_v50 = vmul.f32 %v9560_v9, %v6328_v17  ;;  %v3068_v35 = vmul.f32 %v9560_v9, %v6330_v18  ;;  %v3037_v52 = vmul.f32 %v9564_v8, %v6328_v17  ;;  %3984 = vmax.xlane.f32.xlu1 %v9590_v1  ;;  %vm2773_vm14 = vcmp.gt.f32.partialorder %v14064_v57, -1e+29 }
 0x804   : > { %14062 = vst [vmem:[#allocation91_spill] sm:$0xff] %v9590_v1  ;;  %v3069_v36 = vmul.f32 %v9564_v8, %v6330_v18  ;;  %v2836_v51 = vmul.f32 %v9574_v48, %v6328_v17  ;;  %v2868_v32 = vmul.f32 %v9574_v48, %v6330_v18  ;;  %vm3635_vm13 = vcmp.eq.f32.partialorder %v14063_v61, %v9587_v4 }
 0x805   : > { %v2850_v38 = vadd.f32 %v2834_v56, %v6334_v21  ;;  %v3038_v26 = vmul.f32 %v9585_v20, %v6328_v17  ;;  %v3070_v46 = vmul.f32 %v9585_v20, %v6330_v18  ;;  %v2882_v19 = vadd.f32 %v2866_v44, %v6336_v22 }
 0x806   : > { %v2851_v31 = vadd.f32 %v2835_v10, %v6334_v21  ;;  %v2883_v47 = vadd.f32 %v2867_v28, %v6336_v22  ;;  %v9618_v43 = vsel %vm3635_vm13, -1e+30, %v14063_v61  ;;  %v3052_v27 = vadd.f32 %v3036_v50, %v6334_v21 }
 0x807   : > { %14065 = vst [vmem:[#allocation83_spill] sm:$0xff] %v9618_v43  ;;  %v3084_v56 = vadd.f32 %v3068_v35, %v6336_v22  ;;  %v3053_v1 = vadd.f32 %v3037_v52, %v6334_v21  ;;  %vm2976_vm15 = vcmp.gt.f32.partialorder %v14066_v24, -1e+29  ;;  %3786 = vmax.xlane.f32.xlu0 %v9618_v43  ;;  %v3085_v4 = vadd.f32 %v3069_v36, %v6336_v22  ;;  %v14068_v43 = vld [vmem:[#allocation140_spill] sm:$0xff] }
 0x808   : > { %v2852_v44 = vadd.f32 %v2836_v51, %v6334_v21  ;;  %v2884_v10 = vadd.f32 %v2868_v32, %v6336_v22  ;;  %v9630_v28 = vsel %vm2773_vm14, %v14064_v57, %v9418_v15  ;;  %v9632_v61 = vpop.xlane.xlu0 %3582  ;;  %v2912_v50 = vmax.f32 %v2896_v58, 0.0 }
 0x809   : > { %v3054_v35 = vadd.f32 %v3038_v26, %v6334_v21  ;;  %v3086_v52 = vadd.f32 %v3070_v46, %v6336_v22  ;;  %vm3637_vm1 = vcmp.eq.f32.partialorder %v14067_v54, %v9632_v61  ;;  %v2897_v36 = vmin.f32 %v9556_v0, %v2881_v6 }
 0x80a   : > { %vm2568_vm3 = vcmp.gt.f32.partialorder %v14068_v43, -1e+29  ;;  %v9642_v51 = vsel %vm2976_vm15, %v14066_v24, %v9451_v62  ;;  %v9645_v15 = vsel %vm3637_vm1, -1e+30, %v14067_v54  ;;  %v2898_v32 = vmin.f32 %v2850_v38, %v2882_v19 }
 0x80b   : > { %v2899_v58 = vmin.f32 %v2851_v31, %v2883_v47  ;;  %v2837_v26 = vmul.f32 %v9630_v28, %v6328_v17  ;;  %v2869_v46 = vmul.f32 %v9630_v28, %v6330_v18  ;;  %3790 = vmax.xlane.f32.xlu1 %v9645_v15  ;;  %v9654_v0 = vadd.f32 %v9536_v42, %v9462_v11 }
 0x80c   : > { %v3100_v6 = vmin.f32 %v3052_v27, %v3084_v56  ;;  %v3101_v62 = vmin.f32 %v3053_v1, %v3085_v4  ;;  %v2900_v24 = vmin.f32 %v2852_v44, %v2884_v10  ;;  %v2926_v54 = vadd.f32 %v9544_v53, %v9336_v23 }
 0x80d   : > { %v9662_v31 = vsel %vm2569_vm12, %v14060_v12, %v9413_v60  ;;  %v3102_v19 = vmin.f32 %v3054_v35, %v3086_v52  ;;  %v3040_v47 = vmul.f32 %v9642_v51, %v6328_v17  ;;  %v9667_v38 = vadd.f32 %v2912_v50, %v9471_v33  ;;  %v14071_v33 = vld [vmem:[#allocation143_spill] sm:$0xff]  ;;  %v14073_v50 = vld [vmem:[#allocation154_spill] sm:$0xff]  ;;  %v14074_v35 = vld [vmem:[#allocation181_spill] sm:$0xff] }
 0x80e   : > { %14069 = vst [vmem:[#allocation93_spill] sm:$0xff] %v9662_v31  ;;  %v2913_v11 = vmax.f32 %v2897_v36, 0.0  ;;  %v9673_v27 = vsel %vm2568_vm3, %v14068_v43, %v9485_v29  ;;  %v3072_v23 = vmul.f32 %v9642_v51, %v6330_v18  ;;  %v2914_v42 = vmax.f32 %v2898_v32, 0.0  ;;  %v14075_v36 = vld [vmem:[#allocation155_spill] sm:$0xff]  ;;  %v14076_v32 = vld [vmem:[#allocation158_spill] sm:$0xff] }
 0x80f   : > { %14070 = vst [vmem:[#allocation94_spill] sm:$0xff] %v9673_v27  ;;  %v2915_v53 = vmax.f32 %v2899_v58, 0.0  ;;  %v2853_v12 = vadd.f32 %v2837_v26, %v6334_v21  ;;  %v2885_v4 = vadd.f32 %v2869_v46, %v6336_v22  ;;  %v3116_v1 = vmax.f32 %v3100_v6, 0.0 }
 0x810   : > { %v3117_v57 = vmax.f32 %v3101_v62, 0.0  ;;  %vm2571_vm4 = vcmp.gt.f32.partialorder %v14071_v33, -1e+29  ;;  %v2916_v56 = vmax.f32 %v2900_v24, 0.0  ;;  %v9680_v44 = vpop.xlane.xlu0 %3590  ;;  %v3118_v10 = vmax.f32 %v3102_v19, 0.0  ;;  %v14078_v62 = vld [vmem:[#allocation157_spill] sm:$0xff] }
 0x811   : > { %14072 = vst [vmem:[#allocation95_spill] sm:$0xff] %v9680_v44  ;;  %v3056_v43 = vadd.f32 %v3040_v47, %v6334_v21  ;;  %vm2977_vm5 = vcmp.gt.f32.partialorder %v14073_v50, -1e+29  ;;  %vm3641_vm6 = vcmp.eq.f32.partialorder %v14074_v35, %v9680_v44  ;;  %v3088_v52 = vadd.f32 %v3072_v23, %v6336_v22  ;;  %v14080_v47 = vld [vmem:[#allocation150_spill] sm:$0xff] }
 0x812   : > { %vm2978_vm7 = vcmp.gt.f32.partialorder %v14075_v36, -1e+29  ;;  %vm2979_vm8 = vcmp.gt.f32.partialorder %v14076_v32, -1e+29  ;;  %v9690_v58 = vsel %vm3641_vm6, -1e+30, %v14074_v35  ;;  %v9693_v26 = vadd.f32 %v2914_v42, %v9479_v34 }
 0x813   : > { %14077 = vst [vmem:[#allocation97_spill] sm:$0xff] %v9690_v58  ;;  %v9696_v46 = vadd.f32 %v2913_v11, %v9476_v55  ;;  %v2901_v6 = vmin.f32 %v2853_v12, %v2885_v4  ;;  %vm3180_vm9 = vcmp.gt.f32.partialorder %v14078_v62, -1e+29  ;;  %3798 = vmax.xlane.f32.xlu1 %v9690_v58  ;;  %v9701_v24 = vadd.f32 %v2915_v53, %v9488_v25 }
 0x814   : > { %v9707_v19 = vsel %vm2571_vm4, %v14071_v33, %v9494_v49  ;;  %vm2777_vm10 = vcmp.gt.f32.partialorder %v14080_v47, -1e+29  ;;  %v2993_v55 = vsel %vm2977_vm5, %v14073_v50, %v9498_v37  ;;  %v9713_v34 = vadd.f32 %v3116_v1, %v9525_v45  ;;  %v14085_v50 = vld [vmem:[#allocation163_spill] sm:$0xff] }
 0x815   : > { %14079 = vst [vmem:[#allocation98_spill] sm:$0xff] %v9707_v19  ;;  %v9716_v11 = vadd.f32 %v3117_v57, %v9528_v3  ;;  %v9720_v25 = vsel %vm2978_vm7, %v14075_v36, %v9540_v63  ;;  %v9724_v23 = vsel %vm2979_vm8, %v14076_v32, %v9550_v2  ;;  %v9727_v42 = vadd.f32 %v2916_v56, %v9534_v5  ;;  %v14084_v56 = vld [vmem:[#allocation161_spill] sm:$0xff] }
 0x816   : > { %v9729_v53 = vadd.f32 %v3118_v10, %v2926_v54  ;;  %v3104_v37 = vmin.f32 %v3056_v43, %v3088_v52  ;;  %v9733_v45 = vsel %vm3180_vm9, %v14078_v62, %v9560_v9  ;;  %v2917_v3 = vmax.f32 %v2901_v6, 0.0  ;;  %v14082_v9 = vld [vmem:[#allocation160_spill] sm:$0xff] }
 0x817   : > { %v9737_v12 = vsel %vm2777_vm10, %v14080_v47, %v9662_v31  ;;  %v3041_v63 = vmul.f32 %v2993_v55, %v6328_v17  ;;  %v3073_v2 = vmul.f32 %v2993_v55, %v6330_v18  ;;  %v3042_v5 = vmul.f32 %v9720_v25, %v6328_v17  ;;  %v14087_v6 = vld [vmem:[#allocation172_spill] sm:$0xff] }
 0x818   : > { %14081 = vst [vmem:[#allocation99_spill] sm:$0xff] %v9737_v12  ;;  %v3074_v54 = vmul.f32 %v9720_v25, %v6330_v18  ;;  %v3043_v4 = vmul.f32 %v9724_v23, %v6328_v17  ;;  %vm3181_vm11 = vcmp.gt.f32.partialorder %v14082_v9, -1e+29  ;;  %v9748_v1 = vpop.xlane.xlu0 %3586  ;;  %v3244_v57 = vmul.f32 %v9733_v45, %v6328_v17 }
 0x819   : > { %14083 = vst [vmem:[#allocation92_spill] sm:$0xff] %v9748_v1  ;;  %v3075_v33 = vmul.f32 %v9724_v23, %v6330_v18  ;;  %vm2980_vm12 = vcmp.gt.f32.partialorder %v14084_v56, -1e+29  ;;  %vm3639_vm13 = vcmp.eq.f32.partialorder %v8868_v40, %v9748_v1  ;;  %v3120_v10 = vmax.f32 %v3104_v37, 0.0 }
 0x81a   : > { %v3276_v43 = vmul.f32 %v9733_v45, %v6330_v18  ;;  %vm3182_vm14 = vcmp.gt.f32.partialorder %v14085_v50, -1e+29  ;;  %v9761_v35 = vsel %vm3639_vm13, -1e+30, %v8868_v40  ;;  %v3057_v52 = vadd.f32 %v3041_v63, %v6334_v21 }
 0x81b   : > { %14086 = vst [vmem:[#allocation100_spill] sm:$0xff] %v9761_v35  ;;  %v3089_v36 = vadd.f32 %v3073_v2, %v6336_v22  ;;  %v9767_v32 = vsel %vm3181_vm11, %v14082_v9, %v9564_v8  ;;  %vm3184_vm15 = vcmp.gt.f32.partialorder %v14087_v6, -1e+29  ;;  %3794 = vmax.xlane.f32.xlu1 %v9761_v35  ;;  %v9772_v62 = vadd.f32 %v2917_v3, %v9654_v0 }
 0x81c   : > { %v3058_v47 = vadd.f32 %v3042_v5, %v6334_v21  ;;  %v3090_v40 = vadd.f32 %v3074_v54, %v6336_v22  ;;  %v9778_v37 = vsel %vm2980_vm12, %v14084_v56, %v9574_v48  ;;  %v3260_v63 = vadd.f32 %v3244_v57, %v6334_v21  ;;  %v14088_v5 = vld [vmem:[#allocation164_spill] sm:$0xff] }
 0x81d   : > { %v3059_v8 = vadd.f32 %v3043_v4, %v6334_v21  ;;  %v3091_v2 = vadd.f32 %v3075_v33, %v6336_v22  ;;  %v9785_v9 = vsel %vm3182_vm14, %v14085_v50, %v9585_v20  ;;  %v3292_v0 = vadd.f32 %v3276_v43, %v6336_v22 }
 0x81e   : > { %v3245_v3 = vmul.f32 %v9767_v32, %v6328_v17  ;;  %vm2981_vm1 = vcmp.gt.f32.partialorder %v14088_v5, -1e+29  ;;  %v3200_v48 = vsel %vm3184_vm15, %v14087_v6, %v9642_v51  ;;  %v9794_v54 = vadd.f32 %v3120_v10, %v9667_v38  ;;  %v14089_v51 = vld [vmem:[#allocation174_spill] sm:$0xff]  ;;  %v14090_v10 = vld [vmem:[#allocation156_spill] sm:$0xff] }
 0x81f   : > { %v3105_v4 = vmin.f32 %v3057_v52, %v3089_v36  ;;  %v3277_v57 = vmul.f32 %v9767_v32, %v6330_v18  ;;  %v3044_v20 = vmul.f32 %v9778_v37, %v6328_v17  ;;  %v3076_v33 = vmul.f32 %v9778_v37, %v6330_v18 }
 0x820   : > { %v3246_v56 = vmul.f32 %v9785_v9, %v6328_v17  ;;  %v3278_v43 = vmul.f32 %v9785_v9, %v6330_v18  ;;  %vm3185_vm3 = vcmp.gt.f32.partialorder %v14089_v51, -1e+29  ;;  %v3106_v38 = vmin.f32 %v3058_v47, %v3090_v40  ;;  %v14091_v40 = vld [vmem:[#allocation176_spill] sm:$0xff] }
 0x821   : > { %vm2776_vm4 = vcmp.gt.f32.partialorder %v14090_v10, -1e+29  ;;  %v9810_v50 = vsel %vm2981_vm1, %v14088_v5, %v9630_v28  ;;  %v3248_v52 = vmul.f32 %v3200_v48, %v6328_v17  ;;  %v3308_v36 = vmin.f32 %v3260_v63, %v3292_v0 }
 0x822   : > { %v3107_v6 = vmin.f32 %v3059_v8, %v3091_v2  ;;  %v3261_v1 = vadd.f32 %v3245_v3, %v6334_v21  ;;  %v3280_v31 = vmul.f32 %v3200_v48, %v6330_v18  ;;  %v3293_v49 = vadd.f32 %v3277_v57, %v6336_v22 }
 0x823   : > { %v3060_v29 = vadd.f32 %v3044_v20, %v6334_v21  ;;  %v9818_v47 = vsel %vm3185_vm3, %v14089_v51, %v2993_v55  ;;  %vm3186_vm5 = vcmp.gt.f32.partialorder %v14091_v40, -1e+29  ;;  %v3092_v28 = vadd.f32 %v3076_v33, %v6336_v22 }
 0x824   : > { %v3262_v5 = vadd.f32 %v3246_v56, %v6334_v21  ;;  %v3294_v63 = vadd.f32 %v3278_v43, %v6336_v22  ;;  %v3045_v8 = vmul.f32 %v9810_v50, %v6328_v17  ;;  %v3121_v2 = vmax.f32 %v3105_v4, 0.0 }
 0x825   : > { %v9830_v0 = vsel %vm2776_vm4, %v14090_v10, %v9673_v27  ;;  %v3077_v55 = vmul.f32 %v9810_v50, %v6330_v18  ;;  %v3264_v3 = vadd.f32 %v3248_v52, %v6334_v21  ;;  %v3296_v57 = vadd.f32 %v3280_v31, %v6336_v22  ;;  %v14093_v10 = vld [vmem:[#allocation159_spill] sm:$0xff] }
 0x826   : > { %14092 = vst [vmem:[#allocation96_spill] sm:$0xff] %v9830_v0  ;;  %v3249_v20 = vmul.f32 %v9818_v47, %v6328_v17  ;;  %v3281_v33 = vmul.f32 %v9818_v47, %v6330_v18  ;;  %v9842_v4 = vsel %vm3186_vm5, %v14091_v40, %v9720_v25  ;;  %v3122_v56 = vmax.f32 %v3106_v38, 0.0  ;;  %v14094_v25 = vld [vmem:[#allocation180_spill] sm:$0xff] }
 0x827   : > { %v3324_v43 = vmax.f32 %v3308_v36, 0.0  ;;  %v3123_v51 = vmax.f32 %v3107_v6, 0.0  ;;  %vm2779_vm6 = vcmp.gt.f32.partialorder %v14093_v10, -1e+29  ;;  %v3309_v27 = vmin.f32 %v3261_v1, %v3293_v49  ;;  %v14095_v49 = vld [vmem:[#allocation25_spill] sm:$0xff] }
 0x828   : > { %v3108_v60 = vmin.f32 %v3060_v29, %v3092_v28  ;;  %v3310_v52 = vmin.f32 %v3262_v5, %v3294_v63  ;;  %v3061_v31 = vadd.f32 %v3045_v8, %v6334_v21  ;;  %v3093_v35 = vadd.f32 %v3077_v55, %v6336_v22 }
 0x829   : > { %v3250_v58 = vmul.f32 %v9842_v4, %v6328_v17  ;;  %v3282_v44 = vmul.f32 %v9842_v4, %v6330_v18  ;;  %vm3388_vm7 = vcmp.gt.f32.partialorder %v14094_v25, -1e+29  ;;  %v3312_v38 = vmin.f32 %v3264_v3, %v3296_v57 }
 0x82a   : > { %v3265_v36 = vadd.f32 %v3249_v20, %v6334_v21  ;;  %v3297_v6 = vadd.f32 %v3281_v33, %v6336_v22  ;;  %vm3392_vm8 = vcmp.gt.f32.partialorder %v14095_v49, -1e+29  ;;  %v9856_v29 = vadd.f32 %v3122_v56, %v9693_v26 }
 0x82b   : > { %v3137_v1 = vadd.f32 %v3121_v2, %v9696_v46  ;;  %v9860_v40 = vadd.f32 %v3123_v51, %v9701_v24  ;;  %v9866_v28 = vsel %vm2779_vm6, %v14093_v10, %v9707_v19  ;;  %v9869_v5 = vadd.f32 %v3324_v43, %v9713_v34  ;;  %v14097_v34 = vld [vmem:[#allocation171_spill] sm:$0xff]  ;;  %v14098_v43 = vld [vmem:[#allocation178_spill] sm:$0xff]  ;;  %v14099_v51 = vld [vmem:[#allocation184_spill] sm:$0xff] }
 0x82c   : > { %14096 = vst [vmem:[#allocation105_spill] sm:$0xff] %v9866_v28  ;;  %v3325_v63 = vmax.f32 %v3309_v27, 0.0  ;;  %v3124_v8 = vmax.f32 %v3108_v60, 0.0  ;;  %v9873_v26 = vsel %vm3388_vm7, %v14094_v25, %v9733_v45  ;;  %v3326_v55 = vmax.f32 %v3310_v52, 0.0 }
 0x82d   : > { %v3266_v46 = vadd.f32 %v3250_v58, %v6334_v21  ;;  %v3298_v24 = vadd.f32 %v3282_v44, %v6336_v22  ;;  %v3408_v2 = vsel %vm3392_vm8, %v14095_v49, %v3200_v48  ;;  %v3109_v57 = vmin.f32 %v3061_v31, %v3093_v35  ;;  %v14101_v49 = vld [vmem:[#allocation26_spill] sm:$0xff] }
 0x82e   : > { %v3328_v20 = vmax.f32 %v3312_v38, 0.0  ;;  %v3313_v33 = vmin.f32 %v3265_v36, %v3297_v6  ;;  %v3452_v60 = vmul.f32 %v9873_v26, %v6328_v17  ;;  %v3484_v27 = vmul.f32 %v9873_v26, %v6330_v18 }
 0x82f   : > { %vm3393_vm10 = vcmp.gt.f32.partialorder %v14097_v34, -1e+29  ;;  %v9891_v58 = vadd.f32 %v3325_v63, %v9716_v11  ;;  %v3456_v45 = vmul.f32 %v3408_v2, %v6328_v17  ;;  %v3488_v35 = vmul.f32 %v3408_v2, %v6330_v18 }
 0x830   : > { %vm3600_vm11 = vcmp.gt.f32.partialorder %v9119_v39, -1e+29  ;;  %v9898_v48 = vadd.f32 %v3124_v8, %v9727_v42  ;;  %v3314_v56 = vmin.f32 %v3266_v46, %v3298_v24  ;;  %vm2984_vm12 = vcmp.gt.f32.partialorder %v14098_v43, -1e+29 }
 0x831   : > { %vm3389_vm13 = vcmp.gt.f32.partialorder %v14099_v51, -1e+29  ;;  %v9905_v11 = vmax.f32 %v3109_v57, 0.0  ;;  %v9908_v10 = vadd.f32 %v3328_v20, %v9794_v54  ;;  %v3409_v52 = vsel %vm3393_vm10, %v14097_v34, %v9818_v47  ;;  %v14103_v34 = vld [vmem:[#allocation187_spill] sm:$0xff] }
 0x832   : > { %v3329_v31 = vmax.f32 %v3313_v33, 0.0  ;;  %v3468_v42 = vadd.f32 %v3452_v60, %v6334_v21  ;;  %v3500_v25 = vadd.f32 %v3484_v27, %v6336_v22  ;;  %v3616_v38 = vsel %vm3600_vm11, %v9119_v39, %v3408_v2 }
 0x833   : > { %v9917_v36 = vsel %vm2984_vm12, %v14098_v43, %v9830_v0  ;;  %v3472_v54 = vadd.f32 %v3456_v45, %v6334_v21  ;;  %v3504_v6 = vadd.f32 %v3488_v35, %v6336_v22  ;;  %v3330_v47 = vmax.f32 %v3314_v56, 0.0 }
 0x834   : > { %14100 = vst [vmem:[#allocation106_spill] sm:$0xff] %v9917_v36  ;;  %vm3394_vm14 = vcmp.gt.f32.partialorder %v14101_v49, -1e+29  ;;  %v3457_v63 = vmul.f32 %v3409_v52, %v6328_v17  ;;  %v3489_v8 = vmul.f32 %v3409_v52, %v6330_v18  ;;  %v3664_v46 = vmul.f32 %v3616_v38, %v6328_v17 }
 0x835   : > { %v9878_v3 = vpop.xlane.xlu2 %3778  ;;  %v3516_v24 = vmin.f32 %v3468_v42, %v3500_v25  ;;  %vm3601_vm3 = vcmp.gt.f32.partialorder %v9187_v16, -1e+29  ;;  %v9941_v20 = vadd.f32 %v3329_v31, %v3137_v1  ;;  %v3520_v60 = vmin.f32 %v3472_v54, %v3504_v6 }
 0x836   : > { %vm3839_vm9 = vcmp.eq.f32.partialorder %v9029_v59, %v9878_v3  ;;  %v3410_v27 = vsel %vm3394_vm14, %v14101_v49, %v9842_v4  ;;  %vm3187_vm4 = vcmp.gt.f32.partialorder %v14103_v34, -1e+29  ;;  %v3505_v1 = vadd.f32 %v3489_v8, %v6336_v22 }
 0x837   : > { %v9888_v44 = vsel %vm3839_vm9, -1e+30, %v9029_v59  ;;  %v9903_v59 = vadd.f32 %v3326_v55, %v9729_v53  ;;  %v9921_v53 = vsel %vm3389_vm13, %v14099_v51, %v9767_v32  ;;  %v14102_v55 = vld [vmem:[#allocation185_spill] sm:$0xff]  ;;  %v3696_v32 = vmul.f32 %v3616_v38, %v6330_v18 }
 0x838   : > { %3986 = vmax.xlane.f32.xlu0 %v9888_v44  ;;  %vm3188_vm15 = vcmp.gt.f32.partialorder %v14102_v55, -1e+29  ;;  %v3453_v2 = vmul.f32 %v9921_v53, %v6328_v17  ;;  %v3485_v33 = vmul.f32 %v9921_v53, %v6330_v18  ;;  %v3680_v35 = vadd.f32 %v3664_v46, %v6334_v21 }
 0x839   : > { %v9951_v45 = vsel %vm3188_vm15, %v14102_v55, %v9778_v37  ;;  %v3712_v56 = vadd.f32 %v3696_v32, %v6336_v22  ;;  %vm3602_vm5 = vcmp.gt.f32.partialorder %v9213_v30, -1e+29  ;;  %v3617_v4 = vsel %vm3601_vm3, %v9187_v16, %v3409_v52 }
 0x83a   : > { %v9960_v43 = vadd.f32 %v3330_v47, %v9856_v29  ;;  %v9962_v51 = vmax.f32 %v3516_v24, 0.0  ;;  %v9965_v37 = vadd.f32 %v3453_v2, %v6334_v21  ;;  %v3458_v31 = vmul.f32 %v3410_v27, %v6328_v17 }
 0x83b   : > { %v9969_v42 = vadd.f32 %v3485_v33, %v6336_v22  ;;  %v9973_v25 = vsel %vm3187_vm4, %v14103_v34, %v9724_v23  ;;  %v9977_v16 = vmul.f32 %v9951_v45, %v6328_v17  ;;  %v3536_v29 = vmax.f32 %v3520_v60, 0.0  ;;  %v14104_v23 = vld [vmem:[#allocation30_spill] sm:$0xff]  ;;  %v14106_v60 = vld [vmem:[#allocation20_spill] sm:$0xff] }
 0x83c   : > { %v3490_v52 = vmul.f32 %v3410_v27, %v6330_v18  ;;  %v9981_v54 = vsel %vm3602_vm5, %v9213_v30, %v3410_v27  ;;  %v3665_v6 = vmul.f32 %v3617_v4, %v6328_v17  ;;  %v3697_v47 = vmul.f32 %v3617_v4, %v6330_v18 }
 0x83d   : > { %v9928_v39 = vpop.xlane.xlu2 %3584  ;;  %vm3596_vm8 = vcmp.gt.f32.partialorder %v14104_v23, -1e+29  ;;  %v3474_v55 = vadd.f32 %v3458_v31, %v6334_v21  ;;  %v3666_v30 = vmul.f32 %v9981_v54, %v6328_v17  ;;  %v3698_v24 = vmul.f32 %v9981_v54, %v6330_v18 }
 0x83e   : > { %vm3638_vm1 = vcmp.eq.f32.partialorder %v9071_v7, %v9928_v39  ;;  %vm3192_vm9 = vcmp.gt.f32.partialorder %v14106_v60, -1e+29  ;;  %v3713_v27 = vadd.f32 %v3697_v47, %v6336_v22  ;;  %v10016_v31 = vmul.f32 %v9973_v25, %v6330_v18 }
 0x83f   : > { %v9939_v57 = vsel %vm3638_vm1, -1e+30, %v9071_v7  ;;  %v3473_v7 = vadd.f32 %v3457_v63, %v6334_v21  ;;  %v3728_v63 = vmin.f32 %v3680_v35, %v3712_v56  ;;  %v10012_v56 = vmul.f32 %v9973_v25, %v6328_v17 }
 0x840   : > { %3792 = vmax.xlane.f32.xlu0 %v9939_v57  ;;  %v3682_v47 = vadd.f32 %v3666_v30, %v6334_v21  ;;  %v10029_v19 = vsel %vm3192_vm9, %v14106_v60, %v9917_v36 }
 0x841   : > { %v3521_v8 = vmin.f32 %v3473_v7, %v3505_v1  ;;  %v3744_v34 = vmax.f32 %v3728_v63, 0.0  ;;  %v3612_v7 = vsel %vm3596_vm8, %v14104_v23, %v9873_v26  ;;  %v3714_v26 = vadd.f32 %v3698_v24, %v6336_v22  ;;  %v14107_v23 = vld [vmem:[#allocation195_spill] sm:$0xff]  ;;  %14108 = vst [vmem:[#allocation101_spill] sm:$0xff] %v10029_v19 }
 0x842   : > { %vm3390_vm10 = vcmp.gt.f32.partialorder %v14107_v23, -1e+29  ;;  %v3660_v0 = vmul.f32 %v3612_v7, %v6328_v17  ;;  %v3692_v30 = vmul.f32 %v3612_v7, %v6330_v18 }
 0x843   : > { %v3730_v60 = vmin.f32 %v3682_v47, %v3714_v26 }
 0x845   : > { %v3781_v49 = vpop.xlane.xlu1 %3780 }
 0x846   : > { %vm3808_vm6 = vcmp.gt.f32.partialorder %v3781_v49, -1e+29  ;;  %vm3840_vm7 = vcmp.eq.f32.partialorder %v9136_v14, %v3781_v49 }
 0x847   : > { %v9988_v46 = vsel %vm3808_vm6, %v3781_v49, %v3616_v38  ;;  %v9991_v32 = vsel %vm3840_vm7, -1e+30, %v9136_v14  ;;  %v3506_v38 = vadd.f32 %v3490_v52, %v6336_v22  ;;  %v3681_v14 = vadd.f32 %v3665_v6, %v6334_v21 }
 0x848   : > { %14105 = vst [vmem:[#allocation107_spill] sm:$0xff] %v9988_v46  ;;  %v3872_v2 = vmul.f32 %v9988_v46, %v6328_v17  ;;  %v3904_v33 = vmul.f32 %v9988_v46, %v6330_v18  ;;  %3988 = vmax.xlane.f32.xlu2 %v9991_v32  ;;  %v3284_v52 = vmul.f32 %v9951_v45, %v6330_v18  ;;  %v3537_v49 = vmax.f32 %v3521_v8, 0.0  ;;  %v14109_v8 = vld [vmem:[#allocation165_spill] sm:$0xff] }
 0x849   : > { %v3552_v6 = vadd.f32 %v3536_v29, %v9908_v10  ;;  %vm2985_vm13 = vcmp.gt.f32.partialorder %v14109_v8, -1e+29 }
 0x84a   : > { %v3888_v1 = vadd.f32 %v3872_v2, %v6334_v21  ;;  %v3920_v35 = vadd.f32 %v3904_v33, %v6336_v22  ;;  %v3522_v2 = vmin.f32 %v3474_v55, %v3506_v38  ;;  %v3729_v33 = vmin.f32 %v3681_v14, %v3713_v27  ;;  %v14110_v55 = vld [vmem:[#allocation66_spill] sm:$0xff] }
 0x84b   : > { %v3760_v10 = vadd.f32 %v3744_v34, %v3552_v6  ;;  %vm3804_vm14 = vcmp.gt.f32.partialorder %v14110_v55, -1e+29  ;;  %v14112_v14 = vld [vmem:[#allocation182_spill] sm:$0xff] }
 0x84c   : > { %v3936_v63 = vmin.f32 %v3888_v1, %v3920_v35  ;;  %vm2987_vm15 = vcmp.gt.f32.partialorder %v14112_v14, -1e+29  ;;  %v3820_v6 = vsel %vm3804_vm14, %v14110_v55, %v3612_v7  ;;  %v3708_v7 = vadd.f32 %v3692_v30, %v6336_v22 }
 0x84d   : > { %v3783_v46 = vpop.xlane.xlu1 %3782  ;;  %v10047_v35 = vpop.xlane.xlu2 %3784 }
 0x84e   : > { %v3952_v29 = vmax.f32 %v3936_v63, 0.0  ;;  %vm3809_vm11 = vcmp.gt.f32.partialorder %v3783_v46, -1e+29  ;;  %vm3841_vm12 = vcmp.eq.f32.partialorder %v9204_v41, %v3783_v46  ;;  %vm3810_vm3 = vcmp.gt.f32.partialorder %v10047_v35, -1e+29 }
 0x84f   : > { %v10035_v24 = vsel %vm3809_vm11, %v3783_v46, %v3617_v4  ;;  %v10038_v38 = vsel %vm3841_vm12, -1e+30, %v9204_v41  ;;  %v3553_v4 = vadd.f32 %v3537_v49, %v9941_v20  ;;  %v3745_v46 = vmax.f32 %v3729_v33, 0.0  ;;  %v14114_v41 = vld [vmem:[#allocation59_spill] sm:$0xff] }
 0x850   : > { %14111 = vst [vmem:[#allocation110_spill] sm:$0xff] %v10035_v24  ;;  %v10041_v27 = vadd.f32 %v3952_v29, %v3760_v10  ;;  %v3873_v34 = vmul.f32 %v10035_v24, %v6328_v17  ;;  %v3905_v1 = vmul.f32 %v10035_v24, %v6330_v18  ;;  %3990 = vmax.xlane.f32.xlu2 %v10038_v38  ;;  %vm3400_vm1 = vcmp.gt.f32.partialorder %v14114_v41, -1e+29 }
 0x851   : > { %v10058_v63 = vsel %vm3810_vm3, %v10047_v35, %v9981_v54  ;;  %v3538_v10 = vmax.f32 %v3522_v2, 0.0  ;;  %v3676_v29 = vadd.f32 %v3660_v0, %v6334_v21  ;;  %v3746_v33 = vmax.f32 %v3730_v60, 0.0  ;;  %v14117_v60 = vld [vmem:[#allocation67_spill] sm:$0xff] }
 0x852   : > { %14113 = vst [vmem:[#allocation109_spill] sm:$0xff] %v10041_v27  ;;  %v3889_v47 = vadd.f32 %v3873_v34, %v6334_v21  ;;  %v3921_v26 = vadd.f32 %v3905_v1, %v6336_v22  ;;  %v3874_v20 = vmul.f32 %v10058_v63, %v6328_v17  ;;  %v3906_v49 = vmul.f32 %v10058_v63, %v6330_v18 }
 0x853   : > { %14115 = vst [vmem:[#allocation112_spill] sm:$0xff] %v10058_v63  ;;  %v10068_v55 = vsel %vm3400_vm1, %v14114_v41, %v10029_v19  ;;  %v3868_v54 = vmul.f32 %v3820_v6, %v6328_v17  ;;  %v3900_v2 = vmul.f32 %v3820_v6, %v6330_v18  ;;  %v3761_v27 = vadd.f32 %v3745_v46, %v3553_v4 }
 0x854   : > { %14116 = vst [vmem:[#allocation113_spill] sm:$0xff] %v10068_v55  ;;  %v3937_v34 = vmin.f32 %v3889_v47, %v3921_v26  ;;  %v3890_v0 = vadd.f32 %v3874_v20, %v6334_v21  ;;  %v3922_v1 = vadd.f32 %v3906_v49, %v6336_v22  ;;  %v3554_v30 = vadd.f32 %v3538_v10, %v9960_v43 }
 0x855   : > { %v3589_v36 = vpop.xlane.xlu1 %3588  ;;  %v10084_v26 = vadd.f32 %v9977_v16, %v6334_v21  ;;  %v10087_v20 = vadd.f32 %v3284_v52, %v6336_v22  ;;  %v10093_v4 = vsel %vm3390_vm10, %v14107_v23, %v9785_v9  ;;  %v3884_v46 = vadd.f32 %v3868_v54, %v6334_v21 }
 0x856   : > { %v3953_v24 = vmax.f32 %v3937_v34, 0.0  ;;  %vm3608_vm4 = vcmp.gt.f32.partialorder %v3589_v36, -1e+29  ;;  %vm3640_vm5 = vcmp.eq.f32.partialorder %v14117_v60, %v3589_v36  ;;  %v3938_v63 = vmin.f32 %v3890_v0, %v3922_v1 }
 0x857   : > { %v10077_v41 = vsel %vm3608_vm4, %v3589_v36, %v10068_v55  ;;  %v10080_v47 = vsel %vm3640_vm5, -1e+30, %v14117_v60  ;;  %v3762_v36 = vadd.f32 %v3746_v33, %v3554_v30  ;;  %v3916_v10 = vadd.f32 %v3900_v2, %v6336_v22 }
 0x858   : > { %14118 = vst [vmem:[#allocation104_spill] sm:$0xff] %v10077_v41  ;;  %v10095_v43 = vadd.f32 %v3953_v24, %v3761_v27  ;;  %3796 = vmax.xlane.f32.xlu2 %v10080_v47  ;;  %v3954_v16 = vmax.f32 %v3938_v63, 0.0  ;;  %v10104_v52 = vsel %vm2985_vm13, %v14109_v8, %v9737_v12  ;;  %v3267_v9 = vadd.f32 %v10012_v56, %v6334_v21 }
 0x859   : > { %14119 = vst [vmem:[#allocation114_spill] sm:$0xff] %v10104_v52  ;;  %v3299_v23 = vadd.f32 %v10016_v31, %v6336_v22  ;;  %v3724_v24 = vmin.f32 %v3676_v29, %v3708_v7  ;;  %v3548_v27 = vadd.f32 %v9962_v51, %v9869_v5  ;;  %v3517_v49 = vmin.f32 %v9965_v37, %v9969_v42  ;;  %v14121_v29 = vld [vmem:[#allocation197_spill] sm:$0xff]  ;;  %v14122_v5 = vld [vmem:[#allocation35_spill] sm:$0xff]  ;;  %v3981_v51 = vpop.xlane.xlu2 %3980 }
 0x85a   : > { %v10118_v63 = vsel %vm2987_vm15, %v14112_v14, %v9866_v28  ;;  %v10120_v8 = vadd.f32 %v3954_v16, %v3762_v36  ;;  %v3454_v56 = vmul.f32 %v10093_v4, %v6328_v17  ;;  %v3486_v31 = vmul.f32 %v10093_v4, %v6330_v18  ;;  %v14123_v14 = vld [vmem:[#allocation74_spill] sm:$0xff] }
 0x85b   : > { %14120 = vst [vmem:[#allocation28_spill] sm:$0xff] %v10118_v63  ;;  %vm3189_vm6 = vcmp.gt.f32.partialorder %v14121_v29, -1e+29  ;;  %vm3396_vm7 = vcmp.gt.f32.partialorder %v14122_v5, -1e+29  ;;  %v3316_v37 = vmin.f32 %v10084_v26, %v10087_v20  ;;  %v3932_v42 = vmin.f32 %v3884_v46, %v3916_v10  ;;  %v14124_v26 = vld [vmem:[#allocation32_spill] sm:$0xff] }
 0x85c   : > { %vm4012_vm8 = vcmp.gt.f32.partialorder %v3981_v51, -1e+29  ;;  %vm4044_vm9 = vcmp.eq.f32.partialorder %v14123_v14, %v3981_v51  ;;  %v3315_v33 = vmin.f32 %v3267_v9, %v3299_v23  ;;  %v3740_v7 = vmax.f32 %v3724_v24, 0.0  ;;  %v14125_v20 = vld [vmem:[#allocation79_spill] sm:$0xff]  ;;  %v14127_v9 = vld [vmem:[#allocation76_spill] sm:$0xff] }
 0x85d   : > { %v10131_v34 = vsel %vm4012_vm8, %v3981_v51, %v3820_v6  ;;  %v10134_v54 = vsel %vm4044_vm9, -1e+30, %v14123_v14  ;;  %v10138_v2 = vsel %vm3189_vm6, %v14121_v29, %v9810_v50  ;;  %v3412_v0 = vsel %vm3396_vm7, %v14122_v5, %v9951_v45  ;;  %v14126_v50 = vld [vmem:[#allocation39_spill] sm:$0xff]  ;;  %v14128_v29 = vld [vmem:[#allocation193_spill] sm:$0xff]  ;;  %v14129_v51 = vld [vmem:[#allocation42_spill] sm:$0xff] }
 0x85e   : > { %v4076_v1 = vmul.f32 %v10131_v34, %v6328_v17  ;;  %v4108_v60 = vmul.f32 %v10131_v34, %v6330_v18  ;;  %4188 = vmax.xlane.f32.xlu0 %v10134_v54  ;;  %v3470_v6 = vadd.f32 %v3454_v56, %v6334_v21  ;;  %v3502_v30 = vadd.f32 %v3486_v31, %v6336_v22 }
 0x85f   : > { %vm3195_vm10 = vcmp.gt.f32.partialorder %v14124_v26, -1e+29  ;;  %vm3604_vm11 = vcmp.gt.f32.partialorder %v14125_v20, -1e+29  ;;  %vm3395_vm12 = vcmp.gt.f32.partialorder %v14126_v50, -1e+29  ;;  %v3253_v10 = vmul.f32 %v10138_v2, %v6328_v17 }
 0x860   : > { %v3948_v36 = vmax.f32 %v3932_v42, 0.0  ;;  %v4092_v45 = vadd.f32 %v4076_v1, %v6334_v21  ;;  %v4124_v46 = vadd.f32 %v4108_v60, %v6336_v22  ;;  %v3756_v16 = vadd.f32 %v3740_v7, %v3548_v27 }
 0x861   : > { %vm3403_vm13 = vcmp.gt.f32.partialorder %v14127_v9, -1e+29  ;;  %v3460_v23 = vmul.f32 %v3412_v0, %v6328_v17  ;;  %v3492_v24 = vmul.f32 %v3412_v0, %v6330_v18  ;;  %v3620_v56 = vsel %vm3604_vm11, %v14125_v20, %v3412_v0  ;;  %v3595_v14 = vpop.xlane.xlu2 %3594 }
 0x862   : > { %v4140_v31 = vmin.f32 %v4092_v45, %v4124_v46  ;;  %vm3842_vm14 = vcmp.eq.f32.partialorder %v14128_v29, %v10047_v35  ;;  %v3285_v5 = vmul.f32 %v10138_v2, %v6330_v18  ;;  %vm3597_vm15 = vcmp.gt.f32.partialorder %v14129_v51, -1e+29 }
 0x863   : > { %v10169_v27 = vsel %vm3195_vm10, %v14124_v26, %v10118_v63  ;;  %v10173_v42 = vsel %vm3395_vm12, %v14126_v50, %v9973_v25  ;;  %v3964_v7 = vadd.f32 %v3948_v36, %v3756_v16  ;;  %vm3611_vm1 = vcmp.gt.f32.partialorder %v3595_v14, -1e+29 }
 0x864   : > { %14130 = vst [vmem:[#allocation170_spill] sm:$0xff] %v10169_v27  ;;  %v10177_v35 = vsel %vm3403_vm13, %v14127_v9, %v10169_v27  ;;  %v4156_v0 = vmax.f32 %v4140_v31, 0.0  ;;  %v3668_v1 = vmul.f32 %v3620_v56, %v6328_v17  ;;  %v3700_v60 = vmul.f32 %v3620_v56, %v6330_v18 }
 0x865   : > { %14131 = vst [vmem:[#allocation108_spill] sm:$0xff] %v10177_v35  ;;  %v10182_v20 = vsel %vm3611_vm1, %v3595_v14, %v10177_v35  ;;  %v10185_v26 = vsel %vm3842_vm14, -1e+30, %v14128_v29  ;;  %v10189_v25 = vadd.f32 %v9905_v11, %v9772_v62  ;;  %v3476_v50 = vadd.f32 %v3460_v23, %v6334_v21 }
 0x866   : > { %14132 = vst [vmem:[#allocation111_spill] sm:$0xff] %v10182_v20  ;;  %v3508_v36 = vadd.f32 %v3492_v24, %v6336_v22  ;;  %3992 = vmax.xlane.f32.xlu0 %v10185_v26  ;;  %v10194_v45 = vadd.f32 %v4156_v0, %v3964_v7  ;;  %v3533_v46 = vmax.f32 %v3517_v49, 0.0  ;;  %v3331_v16 = vmax.f32 %v3315_v33, 0.0  ;;  %v14133_v24 = vld [vmem:[#allocation177_spill] sm:$0xff] }
 0x867   : > { %v3332_v9 = vmax.f32 %v3316_v37, 0.0  ;;  %v3613_v31 = vsel %vm3597_vm15, %v14129_v51, %v9921_v53  ;;  %v3518_v29 = vmin.f32 %v3470_v6, %v3502_v30  ;;  %v3269_v62 = vadd.f32 %v3253_v10, %v6334_v21  ;;  %v14134_v6 = vld [vmem:[#allocation77_spill] sm:$0xff] }
 0x868   : > { %v3301_v11 = vadd.f32 %v3285_v5, %v6336_v22  ;;  %v3459_v23 = vmul.f32 %v10173_v42, %v6328_v17  ;;  %vm3598_vm3 = vcmp.gt.f32.partialorder %v14133_v24, -1e+29  ;;  %v3684_v7 = vadd.f32 %v3668_v1, %v6334_v21 }
 0x869   : > { %v3716_v49 = vadd.f32 %v3700_v60, %v6336_v22  ;;  %v3491_v37 = vmul.f32 %v10173_v42, %v6330_v18  ;;  %v3524_v33 = vmin.f32 %v3476_v50, %v3508_v36  ;;  %v3661_v53 = vmul.f32 %v3613_v31, %v6328_v17  ;;  %v3789_v36 = vpop.xlane.xlu2 %3788 }
 0x86a   : > { %vm3805_vm4 = vcmp.gt.f32.partialorder %v9505_v13, -1e+29  ;;  %vm3643_vm5 = vcmp.eq.f32.partialorder %v14134_v6, %v3595_v14  ;;  %v10213_v30 = vadd.f32 %v3533_v46, %v9891_v58  ;;  %v10216_v10 = vadd.f32 %v3331_v16, %v9860_v40 }
 0x86b   : > { %v3348_v5 = vadd.f32 %v3332_v9, %v9898_v48  ;;  %v3693_v51 = vmul.f32 %v3613_v31, %v6330_v18  ;;  %v3534_v0 = vmax.f32 %v3518_v29, 0.0  ;;  %v3317_v1 = vmin.f32 %v3269_v62, %v3301_v11  ;;  %v14135_v29 = vld [vmem:[#allocation40_spill] sm:$0xff] }
 0x86c   : > { %v3614_v60 = vsel %vm3598_vm3, %v14133_v24, %v10093_v4  ;;  %v3475_v50 = vadd.f32 %v3459_v23, %v6334_v21  ;;  %v3732_v35 = vmin.f32 %v3684_v7, %v3716_v49  ;;  %v3821_v14 = vsel %vm3805_vm4, %v9505_v13, %v3613_v31  ;;  %v14136_v24 = vld [vmem:[#allocation90_spill] sm:$0xff] }
 0x86d   : > { %vm3812_vm6 = vcmp.gt.f32.partialorder %v3789_v36, -1e+29  ;;  %v10225_v58 = vsel %vm3643_vm5, -1e+30, %v14134_v6  ;;  %v3540_v40 = vmax.f32 %v3524_v33, 0.0  ;;  %v3677_v48 = vadd.f32 %v3661_v53, %v6334_v21  ;;  %v14137_v53 = vld [vmem:[#allocation88_spill] sm:$0xff] }
 0x86e   : > { %v3507_v46 = vadd.f32 %v3491_v37, %v6336_v22  ;;  %v10229_v16 = vsel %vm3812_vm6, %v3789_v36, %v3620_v56  ;;  %3802 = vmax.xlane.f32.xlu0 %v10225_v58  ;;  %v3709_v4 = vadd.f32 %v3693_v51, %v6336_v22  ;;  %v3662_v9 = vmul.f32 %v3614_v60, %v6328_v17  ;;  %v14138_v6 = vld [vmem:[#allocation80_spill] sm:$0xff] }
 0x86f   : > { %v3876_v13 = vmul.f32 %v10229_v16, %v6328_v17  ;;  %v3908_v31 = vmul.f32 %v10229_v16, %v6330_v18  ;;  %vm3397_vm7 = vcmp.gt.f32.partialorder %v14135_v29, -1e+29  ;;  %v3869_v62 = vmul.f32 %v3821_v14, %v6328_v17 }
 0x870   : > { %v3901_v11 = vmul.f32 %v3821_v14, %v6330_v18  ;;  %v3694_v56 = vmul.f32 %v3614_v60, %v6330_v18  ;;  %v3748_v23 = vmax.f32 %v3732_v35, 0.0  ;;  %vm3806_vm8 = vcmp.gt.f32.partialorder %v14136_v24, -1e+29 }
 0x871   : > { %v3892_v7 = vadd.f32 %v3876_v13, %v6334_v21  ;;  %v3924_v49 = vadd.f32 %v3908_v31, %v6336_v22  ;;  %v3556_v37 = vadd.f32 %v3540_v40, %v3348_v5  ;;  %v3523_v33 = vmin.f32 %v3475_v50, %v3507_v46 }
 0x872   : > { %vm3603_vm9 = vcmp.gt.f32.partialorder %v14137_v53, -1e+29  ;;  %vm3844_vm10 = vcmp.eq.f32.partialorder %v14138_v6, %v3789_v36  ;;  %v3725_v51 = vmin.f32 %v3677_v48, %v3709_v4  ;;  %v3678_v55 = vadd.f32 %v3662_v9, %v6334_v21 }
 0x873   : > { %v3413_v27 = vsel %vm3397_vm7, %v14135_v29, %v10138_v2  ;;  %v3940_v19 = vmin.f32 %v3892_v7, %v3924_v49  ;;  %v3885_v35 = vadd.f32 %v3869_v62, %v6334_v21  ;;  %v3917_v63 = vadd.f32 %v3901_v11, %v6336_v22  ;;  %v3983_v29 = vpop.xlane.xlu0 %3982 }
 0x874   : > { %v3710_v13 = vadd.f32 %v3694_v56, %v6336_v22  ;;  %v3822_v5 = vsel %vm3806_vm8, %v14136_v24, %v3614_v60  ;;  %v3764_v50 = vadd.f32 %v3748_v23, %v3556_v37  ;;  %v10256_v40 = vsel %vm3603_vm9, %v14137_v53, %v10173_v42  ;;  %v14139_v56 = vld [vmem:[#allocation89_spill] sm:$0xff] }
 0x875   : > { %v3956_v36 = vmax.f32 %v3940_v19, 0.0  ;;  %v10259_v48 = vsel %vm3844_vm10, -1e+30, %v14138_v6  ;;  %v10262_v2 = vadd.f32 %v3534_v0, %v9903_v59  ;;  %v3333_v46 = vmax.f32 %v3317_v1, 0.0 }
 0x876   : > { %v10264_v4 = vmax.f32 %v3523_v33, 0.0  ;;  %v3461_v9 = vmul.f32 %v3413_v27, %v6328_v17  ;;  %3996 = vmax.xlane.f32.xlu0 %v10259_v48  ;;  %v3870_v60 = vmul.f32 %v3822_v5, %v6328_v17  ;;  %v3902_v31 = vmul.f32 %v3822_v5, %v6330_v18 }
 0x877   : > { %vm3605_vm11 = vcmp.gt.f32.partialorder %v9632_v61, -1e+29  ;;  %v10271_v19 = vadd.f32 %v3956_v36, %v3764_v50  ;;  %v3933_v42 = vmin.f32 %v3885_v35, %v3917_v63  ;;  %v3667_v59 = vmul.f32 %v10256_v40, %v6328_v17  ;;  %v3985_v50 = vpop.xlane.xlu1 %3984 }
 0x878   : > { %v3699_v0 = vmul.f32 %v10256_v40, %v6330_v18  ;;  %v3493_v1 = vmul.f32 %v3413_v27, %v6330_v18  ;;  %v3741_v62 = vmax.f32 %v3725_v51, 0.0  ;;  %v3726_v11 = vmin.f32 %v3678_v55, %v3710_v13 }
 0x879   : > { %vm4013_vm12 = vcmp.gt.f32.partialorder %v3983_v29, -1e+29  ;;  %vm4045_vm13 = vcmp.eq.f32.partialorder %v14139_v56, %v3983_v29  ;;  %v3477_v23 = vadd.f32 %v3461_v9, %v6334_v21  ;;  %v3621_v24 = vsel %vm3605_vm11, %v9632_v61, %v3413_v27 }
 0x87a   : > { %v10281_v7 = vsel %vm4013_vm12, %v3983_v29, %v3821_v14  ;;  %v10284_v63 = vsel %vm4045_vm13, -1e+30, %v14139_v56  ;;  %v3886_v49 = vadd.f32 %v3870_v60, %v6334_v21  ;;  %v3918_v37 = vadd.f32 %v3902_v31, %v6336_v22  ;;  %v14140_v60 = vld [vmem:[#allocation91_spill] sm:$0xff] }
 0x87b   : > { %v4077_v33 = vmul.f32 %v10281_v7, %v6328_v17  ;;  %v4109_v55 = vmul.f32 %v10281_v7, %v6330_v18  ;;  %4190 = vmax.xlane.f32.xlu1 %v10284_v63  ;;  %v3949_v53 = vmax.f32 %v3933_v42, 0.0  ;;  %v3683_v61 = vadd.f32 %v3667_v59, %v6334_v21 }
 0x87c   : > { %v3715_v27 = vadd.f32 %v3699_v0, %v6336_v22  ;;  %v3509_v14 = vadd.f32 %v3493_v1, %v6336_v22  ;;  %v3669_v6 = vmul.f32 %v3621_v24, %v6328_v17  ;;  %v3701_v51 = vmul.f32 %v3621_v24, %v6330_v18  ;;  %v14141_v1 = vld [vmem:[#allocation198_spill] sm:$0xff] }
 0x87d   : > { %v4093_v35 = vadd.f32 %v4077_v33, %v6334_v21  ;;  %v4125_v13 = vadd.f32 %v4109_v55, %v6336_v22  ;;  %v3757_v36 = vadd.f32 %v3741_v62, %v10213_v30  ;;  %v3742_v9 = vmax.f32 %v3726_v11, 0.0 }
 0x87e   : > { %vm4014_vm14 = vcmp.gt.f32.partialorder %v3985_v50, -1e+29  ;;  %vm4046_vm15 = vcmp.eq.f32.partialorder %v14140_v60, %v3985_v50  ;;  %v3934_v31 = vmin.f32 %v3886_v49, %v3918_v37  ;;  %vm3193_vm1 = vcmp.gt.f32.partialorder %v14141_v1, -1e+29  ;;  %v3787_v37 = vpop.xlane.xlu0 %3786 }
 0x87f   : > { %v4141_v42 = vmin.f32 %v4093_v35, %v4125_v13  ;;  %v10302_v59 = vsel %vm4014_vm14, %v3985_v50, %v3822_v5  ;;  %v10305_v0 = vsel %vm4046_vm15, -1e+30, %v14140_v60  ;;  %v3965_v29 = vadd.f32 %v3949_v53, %v3757_v36 }
 0x880   : > { %v3525_v56 = vmin.f32 %v3477_v23, %v3509_v14  ;;  %v4078_v33 = vmul.f32 %v10302_v59, %v6328_v17  ;;  %v4110_v30 = vmul.f32 %v10302_v59, %v6330_v18  ;;  %4192 = vmax.xlane.f32.xlu2 %v10305_v0  ;;  %v3731_v62 = vmin.f32 %v3683_v61, %v3715_v27  ;;  %v14142_v23 = vld [vmem:[#allocation83_spill] sm:$0xff] }
 0x881   : > { %v3685_v11 = vadd.f32 %v3669_v6, %v6334_v21  ;;  %v3717_v5 = vadd.f32 %v3701_v51, %v6336_v22  ;;  %v4157_v49 = vmax.f32 %v4141_v42, 0.0  ;;  %vm3811_vm3 = vcmp.gt.f32.partialorder %v3787_v37, -1e+29  ;;  %v3791_v42 = vpop.xlane.xlu1 %3790 }
 0x882   : > { %v4094_v55 = vadd.f32 %v4078_v33, %v6334_v21  ;;  %v4126_v53 = vadd.f32 %v4110_v30, %v6336_v22  ;;  %vm3843_vm4 = vcmp.eq.f32.partialorder %v14142_v23, %v3787_v37  ;;  %v3950_v14 = vmax.f32 %v3934_v31, 0.0 }
 0x883   : > { %v10319_v35 = vsel %vm3811_vm3, %v3787_v37, %v10256_v40  ;;  %v10322_v13 = vsel %vm3843_vm4, -1e+30, %v14142_v23  ;;  %v10324_v61 = vadd.f32 %v4157_v49, %v3965_v29  ;;  %v3349_v27 = vadd.f32 %v3333_v46, %v10189_v25  ;;  %v14149_v23 = vld [vmem:[#allocation196_spill] sm:$0xff] }
 0x884   : > { %v4142_v6 = vmin.f32 %v4094_v55, %v4126_v53  ;;  %v3875_v51 = vmul.f32 %v10319_v35, %v6328_v17  ;;  %v3907_v50 = vmul.f32 %v10319_v35, %v6330_v18  ;;  %3994 = vmax.xlane.f32.xlu1 %v10322_v13  ;;  %v3758_v36 = vadd.f32 %v3742_v9, %v10262_v2  ;;  %v14146_v9 = vld [vmem:[#allocation52_spill] sm:$0xff] }
 0x885   : > { %14143 = vst [vmem:[#allocation116_spill] sm:$0xff] %v10324_v61  ;;  %v3555_v40 = vadd.f32 %v10264_v4, %v10216_v10  ;;  %v3747_v60 = vmax.f32 %v3731_v62, 0.0  ;;  %v3733_v31 = vmin.f32 %v3685_v11, %v3717_v5  ;;  %vm3813_vm5 = vcmp.gt.f32.partialorder %v3791_v42, -1e+29 }
 0x886   : > { %v4158_v29 = vmax.f32 %v4142_v6, 0.0  ;;  %v3891_v25 = vadd.f32 %v3875_v51, %v6334_v21  ;;  %v3923_v46 = vadd.f32 %v3907_v50, %v6336_v22  ;;  %v3966_v33 = vadd.f32 %v3950_v14, %v3758_v36 }
 0x887   : > { %v3541_v30 = vmax.f32 %v3525_v56, 0.0  ;;  %v10337_v49 = vsel %vm3813_vm5, %v3791_v42, %v3621_v24  ;;  %vm3845_vm6 = vcmp.eq.f32.partialorder %v9645_v15, %v3791_v42  ;;  %vm3401_vm7 = vcmp.gt.f32.partialorder %v14146_v9, -1e+29  ;;  %v14148_v56 = vld [vmem:[#allocation95_spill] sm:$0xff]  ;;  %v14154_v42 = vld [vmem:[#allocation60_spill] sm:$0xff] }
 0x888   : > { %14144 = vst [vmem:[#allocation121_spill] sm:$0xff] %v10337_v49  ;;  %v3939_v37 = vmin.f32 %v3891_v25, %v3923_v46  ;;  %v3877_v2 = vmul.f32 %v10337_v49, %v6328_v17  ;;  %v3909_v10 = vmul.f32 %v10337_v49, %v6330_v18  ;;  %v10345_v4 = vsel %vm3845_vm6, -1e+30, %v9645_v15  ;;  %v14150_v15 = vld [vmem:[#allocation75_spill] sm:$0xff]  ;;  %v14156_v46 = vld [vmem:[#allocation82_spill] sm:$0xff] }
 0x889   : > { %14145 = vst [vmem:[#allocation122_spill] sm:$0xff] %v10345_v4  ;;  %v3763_v62 = vadd.f32 %v3747_v60, %v3555_v40  ;;  %v3749_v11 = vmax.f32 %v3733_v31, 0.0  ;;  %3998 = vmax.xlane.f32.xlu2 %v10345_v4  ;;  %v10349_v24 = vadd.f32 %v4158_v29, %v3966_v33  ;;  %vm3609_vm8 = vcmp.gt.f32.partialorder %v14148_v56, -1e+29  ;;  %v14155_v29 = vld [vmem:[#allocation192_spill] sm:$0xff] }
 0x88a   : > { %v3955_v5 = vmax.f32 %v3939_v37, 0.0  ;;  %v3893_v55 = vadd.f32 %v3877_v2, %v6334_v21  ;;  %v3925_v53 = vadd.f32 %v3909_v10, %v6336_v22  ;;  %v2463_v14 = vadd.f32 %v14149_v23, %v6336_v22  ;;  %v14158_v10 = vld [vmem:[#allocation97_spill] sm:$0xff] }
 0x88b   : > { %14147 = vst [vmem:[#allocation115_spill] sm:$0xff] %v10349_v24  ;;  %v2422_v6 = vmul.f32 %v14150_v15, %v6328_v17  ;;  %v2454_v51 = vmul.f32 %v14150_v15, %v6330_v18  ;;  %v10364_v50 = vsel %vm3193_vm1, %v14141_v1, %v10104_v52  ;;  %v3557_v36 = vadd.f32 %v3541_v30, %v3349_v27  ;;  %v3799_v27 = vpop.xlane.xlu1 %3798  ;;  %v14173_v52 = vld [vmem:[#allocation64_spill] sm:$0xff] }
 0x88c   : > { %14151 = vst [vmem:[#allocation123_spill] sm:$0xff] %v10364_v50  ;;  %v10368_v40 = vsel %vm3401_vm7, %v14146_v9, %v10364_v50  ;;  %v10370_v60 = vadd.f32 %v3955_v5, %v3763_v62  ;;  %v3941_v31 = vmin.f32 %v3893_v55, %v3925_v53  ;;  %v2278_v25 = vmin.f32 %v14155_v29, %v14154_v42  ;;  %v14159_v9 = vld [vmem:[#allocation188_spill] sm:$0xff]  ;;  %v14160_v5 = vld [vmem:[#allocation130_spill] sm:$0xff] }
 0x88d   : > { %14152 = vst [vmem:[#allocation24_spill] sm:$0xff] %v10368_v40  ;;  %v2623_v33 = vmul.f32 %v14156_v46, %v6328_v17  ;;  %v2655_v37 = vmul.f32 %v14156_v46, %v6330_v18  ;;  %v10380_v1 = vsel %vm3609_vm8, %v14148_v56, %v10368_v40  ;;  %v3765_v30 = vadd.f32 %v3749_v11, %v3557_v36  ;;  %v14163_v42 = vld [vmem:[#allocation136_spill] sm:$0xff]  ;;  %v14165_v36 = vld [vmem:[#allocation186_spill] sm:$0xff] }
 0x88e   : > { %14153 = vst [vmem:[#allocation125_spill] sm:$0xff] %v10370_v60  ;;  %v3957_v2 = vmax.f32 %v3941_v31, 0.0  ;;  %vm3817_vm9 = vcmp.gt.f32.partialorder %v3799_v27, -1e+29  ;;  %vm3849_vm10 = vcmp.eq.f32.partialorder %v14158_v10, %v3799_v27  ;;  %v2479_v62 = vmin.f32 %v14159_v9, %v2463_v14  ;;  %v14166_v31 = vld [vmem:[#allocation51_spill] sm:$0xff] }
 0x88f   : > { %14157 = vst [vmem:[#allocation126_spill] sm:$0xff] %v10380_v1  ;;  %vm2566_vm11 = vcmp.gt.f32.partialorder %v14160_v5, -1e+29  ;;  %v10386_v55 = vsel %vm3817_vm9, %v3799_v27, %v10380_v1  ;;  %v10389_v53 = vsel %vm3849_vm10, -1e+30, %v14158_v10  ;;  %v2438_v23 = vadd.f32 %v2422_v6, %v6334_v21  ;;  %v14168_v1 = vld [vmem:[#allocation152_spill] sm:$0xff] }
 0x890   : > { %14161 = vst [vmem:[#allocation128_spill] sm:$0xff] %v10386_v55  ;;  %v2470_v56 = vadd.f32 %v2454_v51, %v6336_v22  ;;  %vm2767_vm12 = vcmp.gt.f32.partialorder %v14163_v42, -1e+29  ;;  %v10394_v11 = vadd.f32 %v3957_v2, %v3765_v30  ;;  %v14167_v29 = vmin.f32 %v14165_v36, %v14166_v31  ;;  %v14169_v51 = vld [vmem:[#allocation173_spill] sm:$0xff]  ;;  %v14170_v10 = vld [vmem:[#allocation56_spill] sm:$0xff] }
 0x891   : > { %14162 = vst [vmem:[#allocation129_spill] sm:$0xff] %v10389_v53  ;;  %v2639_v9 = vadd.f32 %v2623_v33, %v6334_v21  ;;  %v2671_v27 = vadd.f32 %v2655_v37, %v6336_v22  ;;  %vm2975_vm13 = vcmp.gt.f32.partialorder %v14168_v1, -1e+29  ;;  %4006 = vmax.xlane.f32.xlu2 %v10389_v53  ;;  %v2582_v6 = vsel %vm2566_vm11, %v14160_v5, %v14150_v15  ;;  %v14171_v30 = vld [vmem:[#allocation44_spill] sm:$0xff]  ;;  %v14172_v2 = vld [vmem:[#allocation57_spill] sm:$0xff] }
 0x892   : > { %14164 = vst [vmem:[#allocation118_spill] sm:$0xff] %v10394_v11  ;;  %v2287_v14 = vmax.f32 %v14167_v29, 0.0  ;;  %v1894_v40 = vadd.f32 %v14170_v10, %v14169_v51  ;;  %v2095_v50 = vadd.f32 %v14172_v2, %v14171_v30  ;;  %v2783_v36 = vsel %vm2767_vm12, %v14163_v42, %v14156_v46  ;;  %v14175_v30 = vld [vmem:[#allocation169_spill] sm:$0xff] }
 0x893   : > { %v2294_v31 = vmax.f32 %v2278_v25, 0.0  ;;  %v2495_v33 = vmax.f32 %v2479_v62, 0.0  ;;  %v2486_v29 = vmin.f32 %v2438_v23, %v2470_v56  ;;  %v2991_v37 = vsel %vm2975_vm13, %v14168_v1, %v2783_v36  ;;  %v10414_v5 = vpop.xlane.xlu1 %3794  ;;  %v14176_v25 = vld [vmem:[#allocation100_spill] sm:$0xff]  ;;  %v14179_v56 = vld [vmem:[#allocation146_spill] sm:$0xff] }
 0x894   : > { %v2102_v28 = vadd.f32 %v14173_v52, %v1894_v40  ;;  %v2303_v12 = vadd.f32 %v2287_v14, %v2095_v50  ;;  %v2687_v11 = vmin.f32 %v2639_v9, %v2671_v27  ;;  %v2630_v15 = vmul.f32 %v2582_v6, %v6328_v17  ;;  %14174 = vst [vmem:[#allocation33_spill] sm:$0xff] %v10414_v5  ;;  %v14177_v52 = vld [vmem:[#allocation168_spill] sm:$0xff]  ;;  %v14180_v9 = vld [vmem:[#allocation166_spill] sm:$0xff] }
 0x895   : > { %v2831_v51 = vmul.f32 %v2783_v36, %v6328_v17  ;;  %v2863_v10 = vmul.f32 %v2783_v36, %v6330_v18  ;;  %vm3183_vm14 = vcmp.gt.f32.partialorder %v14175_v30, -1e+29  ;;  %vm3847_vm15 = vcmp.eq.f32.partialorder %v14176_v25, %v10414_v5 }
 0x896   : > { %v3039_v46 = vmul.f32 %v2991_v37, %v6328_v17  ;;  %v3071_v1 = vmul.f32 %v2991_v37, %v6330_v18  ;;  %vm3391_vm1 = vcmp.gt.f32.partialorder %v14177_v52, -1e+29  ;;  %v10425_v50 = vsel %vm3847_vm15, -1e+30, %v14176_v25 }
 0x897   : > { %14178 = vst [vmem:[#allocation131_spill] sm:$0xff] %v10425_v50  ;;  %v2310_v40 = vadd.f32 %v2294_v31, %v2102_v28  ;;  %v2511_v62 = vadd.f32 %v2495_v33, %v2303_v12  ;;  %v2502_v23 = vmax.f32 %v2486_v29, 0.0  ;;  %vm2774_vm3 = vcmp.gt.f32.partialorder %v14179_v56, -1e+29  ;;  %v14181_v28 = vld [vmem:[#allocation62_spill] sm:$0xff] }
 0x898   : > { %v2703_v42 = vmax.f32 %v2687_v11, 0.0  ;;  %v2662_v14 = vmul.f32 %v2582_v6, %v6330_v18  ;;  %vm2982_vm4 = vcmp.gt.f32.partialorder %v14180_v9, -1e+29  ;;  %v3199_v27 = vsel %vm3183_vm14, %v14175_v30, %v2991_v37 }
 0x899   : > { %4002 = vmax.xlane.f32.xlu2 %v10425_v50  ;;  %v2847_v2 = vadd.f32 %v2831_v51, %v6334_v21  ;;  %v2879_v36 = vadd.f32 %v2863_v10, %v6336_v22  ;;  %v3407_v25 = vsel %vm3391_vm1, %v14177_v52, %v3199_v27  ;;  %vm3599_vm5 = vcmp.gt.f32.partialorder %v14181_v28, -1e+29 }
 0x89a   : > { %v2646_v12 = vadd.f32 %v2630_v15, %v6334_v21  ;;  %v2790_v11 = vsel %vm2774_vm3, %v14179_v56, %v2582_v6  ;;  %v3055_v31 = vadd.f32 %v3039_v46, %v6334_v21  ;;  %v3087_v33 = vadd.f32 %v3071_v1, %v6336_v22 }
 0x89b   : > { %v2998_v29 = vsel %vm2982_vm4, %v14180_v9, %v2790_v11  ;;  %v3247_v37 = vmul.f32 %v3199_v27, %v6328_v17  ;;  %v3279_v51 = vmul.f32 %v3199_v27, %v6330_v18  ;;  %vm3807_vm6 = vcmp.gt.f32.partialorder %v9878_v3, -1e+29  ;;  %v14182_v27 = vld [vmem:[#allocation23_spill] sm:$0xff] }
 0x89c   : > { %v2678_v10 = vadd.f32 %v2662_v14, %v6336_v22  ;;  %v3455_v30 = vmul.f32 %v3407_v25, %v6328_v17  ;;  %v3487_v15 = vmul.f32 %v3407_v25, %v6330_v18  ;;  %v3615_v6 = vsel %vm3599_vm5, %v14181_v28, %v3407_v25 }
 0x89d   : > { %v2719_v52 = vadd.f32 %v2703_v42, %v2511_v62  ;;  %v2895_v46 = vmin.f32 %v2847_v2, %v2879_v36  ;;  %v2838_v1 = vmul.f32 %v2790_v11, %v6328_v17  ;;  %v2870_v56 = vmul.f32 %v2790_v11, %v6330_v18 }
 0x89e   : > { %v3103_v9 = vmin.f32 %v3055_v31, %v3087_v33  ;;  %v3046_v5 = vmul.f32 %v2998_v29, %v6328_v17  ;;  %vm3190_vm7 = vcmp.gt.f32.partialorder %v14182_v27, -1e+29  ;;  %v3823_v50 = vsel %vm3807_vm6, %v9878_v3, %v3615_v6 }
 0x89f   : > { %v3263_v14 = vadd.f32 %v3247_v37, %v6334_v21  ;;  %v3295_v55 = vadd.f32 %v3279_v51, %v6336_v22  ;;  %v3663_v53 = vmul.f32 %v3615_v6, %v6328_v17  ;;  %v3695_v62 = vmul.f32 %v3615_v6, %v6330_v18  ;;  %v14183_v6 = vld [vmem:[#allocation58_spill] sm:$0xff] }
 0x8a0   : > { %v2694_v42 = vmin.f32 %v2646_v12, %v2678_v10  ;;  %v3078_v2 = vmul.f32 %v2998_v29, %v6330_v18  ;;  %v3471_v36 = vadd.f32 %v3455_v30, %v6334_v21  ;;  %v3503_v25 = vadd.f32 %v3487_v15, %v6336_v22 }
 0x8a1   : > { %v2911_v28 = vmax.f32 %v2895_v46, 0.0  ;;  %v3206_v11 = vsel %vm3190_vm7, %v14182_v27, %v2998_v29  ;;  %v3871_v3 = vmul.f32 %v3823_v50, %v6328_v17  ;;  %v3903_v31 = vmul.f32 %v3823_v50, %v6330_v18 }
 0x8a2   : > { %v2854_v33 = vadd.f32 %v2838_v1, %v6334_v21  ;;  %v2886_v37 = vadd.f32 %v2870_v56, %v6336_v22  ;;  %v3119_v51 = vmax.f32 %v3103_v9, 0.0  ;;  %vm3398_vm8 = vcmp.gt.f32.partialorder %v14183_v6, -1e+29 }
 0x8a3   : > { %v3062_v12 = vadd.f32 %v3046_v5, %v6334_v21  ;;  %v3311_v10 = vmin.f32 %v3263_v14, %v3295_v55  ;;  %v3679_v30 = vadd.f32 %v3663_v53, %v6334_v21  ;;  %v3711_v15 = vadd.f32 %v3695_v62, %v6336_v22 }
 0x8a4   : > { %v3094_v29 = vadd.f32 %v3078_v2, %v6336_v22  ;;  %v3519_v46 = vmin.f32 %v3471_v36, %v3503_v25  ;;  %v3254_v27 = vmul.f32 %v3206_v11, %v6328_v17  ;;  %vm3606_vm9 = vcmp.gt.f32.partialorder %v9928_v39, -1e+29 }
 0x8a5   : > { %v3286_v1 = vmul.f32 %v3206_v11, %v6330_v18  ;;  %v3887_v56 = vadd.f32 %v3871_v3, %v6334_v21  ;;  %v3919_v9 = vadd.f32 %v3903_v31, %v6336_v22  ;;  %v3414_v5 = vsel %vm3398_vm8, %v14183_v6, %v3206_v11 }
 0x8a6   : > { %v2518_v55 = vadd.f32 %v2502_v23, %v2310_v40  ;;  %v2710_v14 = vmax.f32 %v2694_v42, 0.0  ;;  %v2927_v53 = vadd.f32 %v2911_v28, %v2719_v52  ;;  %v2902_v60 = vmin.f32 %v2854_v33, %v2886_v37 }
 0x8a7   : > { %v3327_v62 = vmax.f32 %v3311_v10, 0.0  ;;  %v3727_v24 = vmin.f32 %v3679_v30, %v3711_v15  ;;  %v3622_v2 = vsel %vm3606_vm9, %v9928_v39, %v3414_v5  ;;  %v3110_v25 = vmin.f32 %v3062_v12, %v3094_v29 }
 0x8a8   : > { %v3135_v36 = vadd.f32 %v3119_v51, %v2927_v53  ;;  %v3462_v49 = vmul.f32 %v3414_v5, %v6328_v17  ;;  %v3494_v4 = vmul.f32 %v3414_v5, %v6330_v18  ;;  %v3535_v61 = vmax.f32 %v3519_v46, 0.0 }
 0x8a9   : > { %v3270_v3 = vadd.f32 %v3254_v27, %v6334_v21  ;;  %v3302_v31 = vadd.f32 %v3286_v1, %v6336_v22  ;;  %v3935_v11 = vmin.f32 %v3887_v56, %v3919_v9  ;;  %v3670_v23 = vmul.f32 %v3622_v2, %v6328_v17 }
 0x8aa   : > { %v3702_v52 = vmul.f32 %v3622_v2, %v6330_v18  ;;  %v3343_v39 = vadd.f32 %v3327_v62, %v3135_v36  ;;  %v3743_v42 = vmax.f32 %v3727_v24, 0.0  ;;  %v3478_v37 = vadd.f32 %v3462_v49, %v6334_v21 }
 0x8ab   : > { %v3987_v40 = vpop.xlane.xlu0 %3986  ;;  %v3510_v51 = vadd.f32 %v3494_v4, %v6336_v22  ;;  %v2918_v10 = vmax.f32 %v2902_v60, 0.0  ;;  %v3318_v24 = vmin.f32 %v3270_v3, %v3302_v31  ;;  %v3686_v15 = vadd.f32 %v3670_v23, %v6334_v21  ;;  %v10500_v60 = vpop.xlane.xlu2 %3800 }
 0x8ac   : > { %vm4015_vm10 = vcmp.gt.f32.partialorder %v3987_v40, -1e+29  ;;  %vm4047_vm11 = vcmp.eq.f32.partialorder %v9888_v44, %v3987_v40  ;;  %v3551_v30 = vadd.f32 %v3535_v61, %v3343_v39  ;;  %v2726_v29 = vadd.f32 %v2710_v14, %v2518_v55 }
 0x8ad   : > { %v10484_v28 = vsel %vm4015_vm10, %v3987_v40, %v3823_v50  ;;  %v10487_v33 = vsel %vm4047_vm11, -1e+30, %v9888_v44  ;;  %v3951_v50 = vmax.f32 %v3935_v11, 0.0  ;;  %v3718_v44 = vadd.f32 %v3702_v52, %v6336_v22 }
 0x8ae   : > { %v4079_v6 = vmul.f32 %v10484_v28, %v6328_v17  ;;  %v4111_v12 = vmul.f32 %v10484_v28, %v6330_v18  ;;  %4194 = vmax.xlane.f32.xlu1 %v10487_v33  ;;  %v3126_v46 = vmax.f32 %v3110_v25, 0.0  ;;  %v3759_v27 = vadd.f32 %v3743_v42, %v3551_v30 }
 0x8af   : > { %v3526_v1 = vmin.f32 %v3478_v37, %v3510_v51  ;;  %v2934_v9 = vadd.f32 %v2918_v10, %v2726_v29  ;;  %v3334_v5 = vmax.f32 %v3318_v24, 0.0  ;;  %v3734_v62 = vmin.f32 %v3686_v15, %v3718_v44 }
 0x8b0   : > { %v4095_v49 = vadd.f32 %v4079_v6, %v6334_v21  ;;  %v4127_v4 = vadd.f32 %v4111_v12, %v6336_v22  ;;  %v3967_v53 = vadd.f32 %v3951_v50, %v3759_v27  ;;  %v14184_v12 = vld [vmem:[#allocation107_spill] sm:$0xff] }
 0x8b1   : > { %v3142_v3 = vadd.f32 %v3126_v46, %v2934_v9  ;;  %v3542_v14 = vmax.f32 %v3526_v1, 0.0  ;;  %v3750_v52 = vmax.f32 %v3734_v62, 0.0 }
 0x8b2   : > { %v4143_v56 = vmin.f32 %v4095_v49, %v4127_v4 }
 0x8b3   : > { %v3793_v61 = vpop.xlane.xlu0 %3792  ;;  %v3350_v23 = vadd.f32 %v3334_v5, %v3142_v3  ;;  %v14186_v5 = vld [vmem:[#allocation109_spill] sm:$0xff] }
 0x8b4   : > { %v4159_v36 = vmax.f32 %v4143_v56, 0.0  ;;  %vm3814_vm12 = vcmp.gt.f32.partialorder %v3793_v61, -1e+29  ;;  %vm3846_vm13 = vcmp.eq.f32.partialorder %v9939_v57, %v3793_v61  ;;  %v14187_v3 = vld [vmem:[#allocation81_spill] sm:$0xff] }
 0x8b5   : > { %v10503_v31 = vsel %vm3814_vm12, %v3793_v61, %v3622_v2  ;;  %v10506_v55 = vsel %vm3846_vm13, -1e+30, %v9939_v57  ;;  %v3558_v42 = vadd.f32 %v3542_v14, %v3350_v23  ;;  %vm3850_vm4 = vcmp.eq.f32.partialorder %v14187_v3, %v10500_v60 }
 0x8b6   : > { %v3878_v25 = vmul.f32 %v10503_v31, %v6328_v17  ;;  %v3910_v11 = vmul.f32 %v10503_v31, %v6330_v18  ;;  %4000 = vmax.xlane.f32.xlu1 %v10506_v55  ;;  %v10513_v40 = vadd.f32 %v4159_v36, %v3967_v53 }
 0x8b7   : > { %v3766_v51 = vadd.f32 %v3750_v52, %v3558_v42 }
 0x8b8   : > { %v3894_v39 = vadd.f32 %v3878_v25, %v6334_v21  ;;  %v3926_v2 = vadd.f32 %v3910_v11, %v6336_v22  ;;  %v10556_v11 = vsel %vm3850_vm4, -1e+30, %v14187_v3 }
 0x8ba   : > { %v3942_v57 = vmin.f32 %v3894_v39, %v3926_v2 }
 0x8bb   : > { %v3989_v37 = vpop.xlane.xlu2 %3988 }
 0x8bc   : > { %v3958_v6 = vmax.f32 %v3942_v57, 0.0  ;;  %vm4016_vm14 = vcmp.gt.f32.partialorder %v3989_v37, -1e+29  ;;  %vm4048_vm15 = vcmp.eq.f32.partialorder %v9991_v32, %v3989_v37 }
 0x8bd   : > { %v10519_v10 = vsel %vm4016_vm14, %v3989_v37, %v14184_v12  ;;  %v10522_v30 = vsel %vm4048_vm15, -1e+30, %v9991_v32  ;;  %v14185_v32 = vld [vmem:[#allocation110_spill] sm:$0xff] }
 0x8be   : > { %v10524_v24 = vadd.f32 %v3958_v6, %v3766_v51  ;;  %v4080_v50 = vmul.f32 %v10519_v10, %v6328_v17  ;;  %v4112_v15 = vmul.f32 %v10519_v10, %v6330_v18  ;;  %4196 = vmax.xlane.f32.xlu0 %v10522_v30 }
 0x8c0   : > { %v4096_v44 = vadd.f32 %v4080_v50, %v6334_v21  ;;  %v4128_v49 = vadd.f32 %v4112_v15, %v6336_v22 }
 0x8c2   : > { %v4144_v4 = vmin.f32 %v4096_v44, %v4128_v49 }
 0x8c3   : > { %v3991_v29 = vpop.xlane.xlu2 %3990 }
 0x8c4   : > { %v4160_v46 = vmax.f32 %v4144_v4, 0.0  ;;  %vm4017_vm1 = vcmp.gt.f32.partialorder %v3991_v29, -1e+29  ;;  %vm4049_vm3 = vcmp.eq.f32.partialorder %v10038_v38, %v3991_v29 }
 0x8c5   : > { %v10535_v27 = vsel %vm4017_vm1, %v3991_v29, %v14185_v32  ;;  %v10538_v1 = vsel %vm4049_vm3, -1e+30, %v10038_v38 }
 0x8c6   : > { %v4081_v56 = vmul.f32 %v10535_v27, %v6328_v17  ;;  %v4113_v9 = vmul.f32 %v10535_v27, %v6330_v18  ;;  %4198 = vmax.xlane.f32.xlu0 %v10538_v1  ;;  %v10546_v53 = vadd.f32 %v4160_v46, %v14186_v5 }
 0x8c8   : > { %v4097_v61 = vadd.f32 %v4081_v56, %v6334_v21  ;;  %v4129_v62 = vadd.f32 %v4113_v9, %v6336_v22 }
 0x8ca   : > { %v4145_v36 = vmin.f32 %v4097_v61, %v4129_v62 }
 0x8cb   : > { %v3797_v38 = vpop.xlane.xlu2 %3796 }
 0x8cc   : > { %v4161_v14 = vmax.f32 %v4145_v36, 0.0  ;;  %vm3816_vm5 = vcmp.gt.f32.partialorder %v3797_v38, -1e+29  ;;  %vm3848_vm6 = vcmp.eq.f32.partialorder %v10080_v47, %v3797_v38 }
 0x8cd   : > { %v10553_v25 = vsel %vm3816_vm5, %v3797_v38, %v10077_v41  ;;  %v10571_v57 = vsel %vm3848_vm6, -1e+30, %v10080_v47 }
 0x8ce   : > { %14188 = vst [vmem:[#allocation133_spill] sm:$0xff] %v10553_v25  ;;  %4008 = vmax.xlane.f32.xlu0 %v10556_v11  ;;  %v10560_v23 = vadd.f32 %v4161_v14, %v10095_v43 }
 0x8d1   : > { %v4189_v52 = vpop.xlane.xlu0 %4188 }
 0x8d2   : > { %vm4220_vm7 = vcmp.gt.f32.partialorder %v4189_v52, -1e+29  ;;  %vm4252_vm10 = vcmp.eq.f32.partialorder %v10134_v54, %v4189_v52 }
 0x8d3   : > { %v10564_v39 = vsel %vm4220_vm7, %v4189_v52, %v10131_v34  ;;  %v14189_v34 = vld [vmem:[#allocation112_spill] sm:$0xff]  ;;  %v10598_v9 = vsel %vm4252_vm10, -1e+30, %v10134_v54 }
 0x8d4   : > { %v4284_v2 = vmul.f32 %v10564_v39, %v6328_v17  ;;  %v4316_v42 = vmul.f32 %v10564_v39, %v6330_v18 }
 0x8d6   : > { %4004 = vmax.xlane.f32.xlu0 %v10571_v57  ;;  %v4300_v43 = vadd.f32 %v4284_v2, %v6334_v21  ;;  %v4332_v37 = vadd.f32 %v4316_v42, %v6336_v22 }
 0x8d8   : > { %v4348_v51 = vmin.f32 %v4300_v43, %v4332_v37 }
 0x8d9   : > { %v3993_v6 = vpop.xlane.xlu0 %3992 }
 0x8da   : > { %v4364_v12 = vmax.f32 %v4348_v51, 0.0  ;;  %vm4018_vm8 = vcmp.gt.f32.partialorder %v3993_v6, -1e+29  ;;  %vm4050_vm9 = vcmp.eq.f32.partialorder %v10185_v26, %v3993_v6 }
 0x8db   : > { %v10578_v50 = vsel %vm4018_vm8, %v3993_v6, %v14189_v34  ;;  %v10581_v15 = vsel %vm4050_vm9, -1e+30, %v10185_v26 }
 0x8dc   : > { %v4082_v47 = vmul.f32 %v10578_v50, %v6328_v17  ;;  %v4114_v44 = vmul.f32 %v10578_v50, %v6330_v18  ;;  %4200 = vmax.xlane.f32.xlu1 %v10581_v15  ;;  %v10589_v49 = vadd.f32 %v4364_v12, %v10194_v45 }
 0x8de   : > { %v4098_v4 = vadd.f32 %v4082_v47, %v6334_v21  ;;  %v4130_v29 = vadd.f32 %v4114_v44, %v6336_v22 }
 0x8e0   : > { %v4146_v46 = vmin.f32 %v4098_v4, %v4130_v29 }
 0x8e1   : > { %v3803_v26 = vpop.xlane.xlu0 %3802 }
 0x8e2   : > { %v4162_v32 = vmax.f32 %v4146_v46, 0.0  ;;  %vm3819_vm11 = vcmp.gt.f32.partialorder %v3803_v26, -1e+29  ;;  %vm3851_vm12 = vcmp.eq.f32.partialorder %v10225_v58, %v3803_v26  ;;  %v14191_v46 = vld [vmem:[#allocation116_spill] sm:$0xff] }
 0x8e3   : > { %v10595_v56 = vsel %vm3819_vm11, %v3803_v26, %v10182_v20  ;;  %v10609_v62 = vsel %vm3851_vm12, -1e+30, %v10225_v58 }
 0x8e4   : > { %14190 = vst [vmem:[#allocation137_spill] sm:$0xff] %v10595_v56  ;;  %4396 = vmax.xlane.f32.xlu1 %v10598_v9  ;;  %v10602_v45 = vadd.f32 %v4162_v32, %v10120_v8 }
 0x8e9   : > { %v3997_v5 = vpop.xlane.xlu0 %3996 }
 0x8ea   : > { %vm4020_vm13 = vcmp.gt.f32.partialorder %v3997_v5, -1e+29  ;;  %vm4052_vm1 = vcmp.eq.f32.partialorder %v10259_v48, %v3997_v5 }
 0x8eb   : > { %v10606_v61 = vsel %vm4020_vm13, %v3997_v5, %v10229_v16  ;;  %v10634_v51 = vsel %vm4052_vm1, -1e+30, %v10259_v48 }
 0x8ec   : > { %v4084_v36 = vmul.f32 %v10606_v61, %v6328_v17  ;;  %v4116_v54 = vmul.f32 %v10606_v61, %v6330_v18  ;;  %4010 = vmax.xlane.f32.xlu1 %v10609_v62 }
 0x8ee   : > { %v4191_v8 = vpop.xlane.xlu1 %4190  ;;  %v4100_v3 = vadd.f32 %v4084_v36, %v6334_v21  ;;  %v4132_v38 = vadd.f32 %v4116_v54, %v6336_v22 }
 0x8ef   : > { %vm4221_vm14 = vcmp.gt.f32.partialorder %v4191_v8, -1e+29  ;;  %vm4253_vm15 = vcmp.eq.f32.partialorder %v10284_v63, %v4191_v8 }
 0x8f0   : > { %v10620_v16 = vsel %vm4221_vm14, %v4191_v8, %v10281_v7  ;;  %v4148_v58 = vmin.f32 %v4100_v3, %v4132_v38  ;;  %v10623_v14 = vsel %vm4253_vm15, -1e+30, %v10284_v63 }
 0x8f1   : > { %v4285_v52 = vmul.f32 %v10620_v16, %v6328_v17  ;;  %v4317_v2 = vmul.f32 %v10620_v16, %v6330_v18  ;;  %4398 = vmax.xlane.f32.xlu2 %v10623_v14 }
 0x8f2   : > { %v4164_v42 = vmax.f32 %v4148_v58, 0.0  ;;  %v14193_v58 = vld [vmem:[#allocation121_spill] sm:$0xff] }
 0x8f3   : > { %v4301_v43 = vadd.f32 %v4285_v52, %v6334_v21  ;;  %v4333_v7 = vadd.f32 %v4317_v2, %v6336_v22  ;;  %v4193_v37 = vpop.xlane.xlu2 %4192 }
 0x8f4   : > { %vm4222_vm3 = vcmp.gt.f32.partialorder %v4193_v37, -1e+29  ;;  %4204 = vmax.xlane.f32.xlu1 %v10634_v51  ;;  %vm4254_vm4 = vcmp.eq.f32.partialorder %v10305_v0, %v4193_v37  ;;  %v10639_v63 = vadd.f32 %v4164_v42, %v10271_v19  ;;  %v14194_v42 = vld [vmem:[#allocation115_spill] sm:$0xff] }
 0x8f5   : > { %v4349_v6 = vmin.f32 %v4301_v43, %v4333_v7  ;;  %v10642_v12 = vsel %vm4222_vm3, %v4193_v37, %v10302_v59  ;;  %v10645_v34 = vsel %vm4254_vm4, -1e+30, %v10305_v0 }
 0x8f6   : > { %v4286_v47 = vmul.f32 %v10642_v12, %v6328_v17  ;;  %v4318_v48 = vmul.f32 %v10642_v12, %v6330_v18  ;;  %4400 = vmax.xlane.f32.xlu0 %v10645_v34 }
 0x8f7   : > { %v4365_v44 = vmax.f32 %v4349_v6, 0.0  ;;  %v3995_v4 = vpop.xlane.xlu1 %3994 }
 0x8f8   : > { %vm4019_vm5 = vcmp.gt.f32.partialorder %v3995_v4, -1e+29  ;;  %v4302_v19 = vadd.f32 %v4286_v47, %v6334_v21  ;;  %v4334_v29 = vadd.f32 %v4318_v48, %v6336_v22  ;;  %vm4051_vm6 = vcmp.eq.f32.partialorder %v10322_v13, %v3995_v4 }
 0x8f9   : > { %v10656_v59 = vsel %vm4019_vm5, %v3995_v4, %v10319_v35  ;;  %v10659_v0 = vsel %vm4051_vm6, -1e+30, %v10322_v13  ;;  %v10662_v26 = vadd.f32 %v4365_v44, %v14191_v46  ;;  %v14192_v13 = vld [vmem:[#allocation122_spill] sm:$0xff]  ;;  %v14195_v44 = vld [vmem:[#allocation125_spill] sm:$0xff] }
 0x8fa   : > { %v4083_v32 = vmul.f32 %v10656_v59, %v6328_v17  ;;  %v4115_v5 = vmul.f32 %v10656_v59, %v6330_v18  ;;  %v4350_v36 = vmin.f32 %v4302_v19, %v4334_v29  ;;  %4202 = vmax.xlane.f32.xlu2 %v10659_v0 }
 0x8fc   : > { %v4099_v54 = vadd.f32 %v4083_v32, %v6334_v21  ;;  %v4131_v35 = vadd.f32 %v4115_v5, %v6336_v22  ;;  %v4366_v8 = vmax.f32 %v4350_v36, 0.0  ;;  %v3999_v3 = vpop.xlane.xlu2 %3998  ;;  %v14196_v32 = vld [vmem:[#allocation129_spill] sm:$0xff]  ;;  %v14197_v5 = vld [vmem:[#allocation128_spill] sm:$0xff] }
 0x8fd   : > { %vm4021_vm7 = vcmp.gt.f32.partialorder %v3999_v3, -1e+29  ;;  %vm4053_vm8 = vcmp.eq.f32.partialorder %v14192_v13, %v3999_v3 }
 0x8fe   : > { %v4147_v38 = vmin.f32 %v4099_v54, %v4131_v35  ;;  %v10673_v52 = vsel %vm4021_vm7, %v3999_v3, %v14193_v58  ;;  %v10676_v2 = vsel %vm4053_vm8, -1e+30, %v14192_v13  ;;  %v10679_v43 = vadd.f32 %v4366_v8, %v14194_v42  ;;  %v14199_v35 = vld [vmem:[#allocation118_spill] sm:$0xff]  ;;  %v14201_v13 = vld [vmem:[#allocation131_spill] sm:$0xff] }
 0x8ff   : > { %v4085_v7 = vmul.f32 %v10673_v52, %v6328_v17  ;;  %v4117_v37 = vmul.f32 %v10673_v52, %v6330_v18  ;;  %4206 = vmax.xlane.f32.xlu0 %v10676_v2 }
 0x900   : > { %v4163_v6 = vmax.f32 %v4147_v38, 0.0 }
 0x901   : > { %v4101_v47 = vadd.f32 %v4085_v7, %v6334_v21  ;;  %v4133_v48 = vadd.f32 %v4117_v37, %v6336_v22 }
 0x902   : > { %v10689_v4 = vadd.f32 %v4163_v6, %v14195_v44 }
 0x903   : > { %v4149_v19 = vmin.f32 %v4101_v47, %v4133_v48 }
 0x904   : > { %v4007_v29 = vpop.xlane.xlu2 %4006 }
 0x905   : > { %v4165_v46 = vmax.f32 %v4149_v19, 0.0  ;;  %vm4025_vm9 = vcmp.gt.f32.partialorder %v4007_v29, -1e+29  ;;  %vm4057_vm10 = vcmp.eq.f32.partialorder %v14196_v32, %v4007_v29 }
 0x906   : > { %v10693_v36 = vsel %vm4025_vm9, %v4007_v29, %v14197_v5  ;;  %v10696_v54 = vsel %vm4057_vm10, -1e+30, %v14196_v32 }
 0x907   : > { %14198 = vst [vmem:[#allocation37_spill] sm:$0xff] %v10693_v36  ;;  %4214 = vmax.xlane.f32.xlu0 %v10696_v54  ;;  %v10700_v8 = vadd.f32 %v4165_v46, %v14199_v35 }
 0x90c   : > { %v10702_v3 = vpop.xlane.xlu2 %4002 }
 0x90d   : > { %14200 = vst [vmem:[#allocation120_spill] sm:$0xff] %v10702_v3  ;;  %vm4055_vm11 = vcmp.eq.f32.partialorder %v14201_v13, %v10702_v3 }
 0x90e   : > { %v10707_v38 = vsel %vm4055_vm11, -1e+30, %v14201_v13 }
 0x90f   : > { %4210 = vmax.xlane.f32.xlu0 %v10707_v38 }
 0x921   : > { %v4195_v58 = vpop.xlane.xlu1 %4194 }
 0x922   : > { %vm4223_vm12 = vcmp.gt.f32.partialorder %v4195_v58, -1e+29  ;;  %vm4255_vm13 = vcmp.eq.f32.partialorder %v10487_v33, %v4195_v58 }
 0x923   : > { %v10712_v42 = vsel %vm4223_vm12, %v4195_v58, %v10484_v28  ;;  %v10715_v7 = vsel %vm4255_vm13, -1e+30, %v10487_v33 }
 0x924   : > { %v4287_v37 = vmul.f32 %v10712_v42, %v6328_v17  ;;  %v4319_v6 = vmul.f32 %v10712_v42, %v6330_v18  ;;  %4402 = vmax.xlane.f32.xlu2 %v10715_v7 }
 0x926   : > { %v4303_v47 = vadd.f32 %v4287_v37, %v6334_v21  ;;  %v4335_v48 = vadd.f32 %v4319_v6, %v6336_v22 }
 0x928   : > { %v4351_v44 = vmin.f32 %v4303_v47, %v4335_v48 }
 0x929   : > { %v4001_v19 = vpop.xlane.xlu1 %4000 }
 0x92a   : > { %v4367_v29 = vmax.f32 %v4351_v44, 0.0  ;;  %vm4022_vm14 = vcmp.gt.f32.partialorder %v4001_v19, -1e+29  ;;  %vm4054_vm15 = vcmp.eq.f32.partialorder %v10506_v55, %v4001_v19 }
 0x92b   : > { %v10726_v28 = vsel %vm4022_vm14, %v4001_v19, %v10503_v31  ;;  %v10729_v33 = vsel %vm4054_vm15, -1e+30, %v10506_v55 }
 0x92c   : > { %v4086_v46 = vmul.f32 %v10726_v28, %v6328_v17  ;;  %v4118_v32 = vmul.f32 %v10726_v28, %v6330_v18  ;;  %4208 = vmax.xlane.f32.xlu2 %v10729_v33  ;;  %v10737_v35 = vadd.f32 %v4367_v29, %v10513_v40 }
 0x92e   : > { %v4102_v13 = vadd.f32 %v4086_v46, %v6334_v21  ;;  %v4134_v58 = vadd.f32 %v4118_v32, %v6336_v22 }
 0x930   : > { %v4150_v31 = vmin.f32 %v4102_v13, %v4134_v58 }
 0x931   : > { %v4197_v37 = vpop.xlane.xlu0 %4196 }
 0x932   : > { %v4166_v6 = vmax.f32 %v4150_v31, 0.0  ;;  %vm4224_vm1 = vcmp.gt.f32.partialorder %v4197_v37, -1e+29  ;;  %vm4256_vm5 = vcmp.eq.f32.partialorder %v10522_v30, %v4197_v37 }
 0x933   : > { %v10742_v55 = vsel %vm4224_vm1, %v4197_v37, %v10519_v10 }
 0x934   : > { %v4288_v47 = vmul.f32 %v10742_v55, %v6328_v17  ;;  %v4320_v48 = vmul.f32 %v10742_v55, %v6330_v18  ;;  %v10749_v40 = vadd.f32 %v4166_v6, %v10524_v24 }
 0x936   : > { %v4304_v44 = vadd.f32 %v4288_v47, %v6334_v21  ;;  %v4336_v19 = vadd.f32 %v4320_v48, %v6336_v22 }
 0x938   : > { %v4352_v29 = vmin.f32 %v4304_v44, %v4336_v19 }
 0x939   : > { %v4199_v46 = vpop.xlane.xlu0 %4198 }
 0x93a   : > { %v4368_v32 = vmax.f32 %v4352_v29, 0.0  ;;  %vm4225_vm3 = vcmp.gt.f32.partialorder %v4199_v46, -1e+29  ;;  %vm4257_vm7 = vcmp.eq.f32.partialorder %v10538_v1, %v4199_v46 }
 0x93b   : > { %v10754_v10 = vsel %vm4225_vm3, %v4199_v46, %v10535_v27 }
 0x93c   : > { %v4289_v13 = vmul.f32 %v10754_v10, %v6328_v17  ;;  %v4321_v58 = vmul.f32 %v10754_v10, %v6330_v18  ;;  %v10761_v24 = vadd.f32 %v4368_v32, %v10546_v53  ;;  %v10781_v32 = vsel %vm4256_vm5, -1e+30, %v10522_v30 }
 0x93e   : > { %v4305_v31 = vadd.f32 %v4289_v13, %v6334_v21  ;;  %v4337_v6 = vadd.f32 %v4321_v58, %v6336_v22  ;;  %v10793_v58 = vsel %vm4257_vm7, -1e+30, %v10538_v1 }
 0x940   : > { %v4353_v47 = vmin.f32 %v4305_v31, %v4337_v6 }
 0x941   : > { %v10765_v48 = vpop.xlane.xlu0 %4008 }
 0x942   : > { %v4369_v44 = vmax.f32 %v4353_v47, 0.0  ;;  %vm4058_vm4 = vcmp.eq.f32.partialorder %v10556_v11, %v10765_v48 }
 0x943   : > { %v10770_v27 = vsel %vm4058_vm4, -1e+30, %v10556_v11 }
 0x944   : > { %4216 = vmax.xlane.f32.xlu1 %v10770_v27  ;;  %v10774_v19 = vadd.f32 %v4369_v44, %v10560_v23 }
 0x949   : > { %v4005_v53 = vpop.xlane.xlu0 %4004 }
 0x94a   : > { %vm4024_vm6 = vcmp.gt.f32.partialorder %v4005_v53, -1e+29  ;;  %vm4056_vm9 = vcmp.eq.f32.partialorder %v10571_v57, %v4005_v53 }
 0x94b   : > { %v10778_v29 = vsel %vm4024_vm6, %v4005_v53, %v10553_v25  ;;  %v10812_v53 = vsel %vm4056_vm9, -1e+30, %v10571_v57 }
 0x94c   : > { %14202 = vst [vmem:[#allocation124_spill] sm:$0xff] %v10778_v29  ;;  %4404 = vmax.xlane.f32.xlu1 %v10781_v32 }
 0x94f   : > { %v4201_v13 = vpop.xlane.xlu1 %4200 }
 0x950   : > { %vm4226_vm8 = vcmp.gt.f32.partialorder %v4201_v13, -1e+29  ;;  %vm4258_vm12 = vcmp.eq.f32.partialorder %v10581_v15, %v4201_v13 }
 0x951   : > { %v10786_v11 = vsel %vm4226_vm8, %v4201_v13, %v10578_v50  ;;  %v10825_v57 = vsel %vm4258_vm12, -1e+30, %v10581_v15 }
 0x952   : > { %v4290_v23 = vmul.f32 %v10786_v11, %v6328_v17  ;;  %v4322_v37 = vmul.f32 %v10786_v11, %v6330_v18 }
 0x954   : > { %4406 = vmax.xlane.f32.xlu1 %v10793_v58  ;;  %v4306_v30 = vadd.f32 %v4290_v23, %v6334_v21  ;;  %v4338_v31 = vadd.f32 %v4322_v37, %v6336_v22 }
 0x956   : > { %v4354_v46 = vmin.f32 %v4306_v30, %v4338_v31 }
 0x957   : > { %v4397_v6 = vpop.xlane.xlu1 %4396 }
 0x958   : > { %v4370_v50 = vmax.f32 %v4354_v46, 0.0  ;;  %vm4428_vm10 = vcmp.gt.f32.partialorder %v4397_v6, -1e+29  ;;  %vm4460_vm11 = vcmp.eq.f32.partialorder %v10598_v9, %v4397_v6 }
 0x959   : > { %v10801_v47 = vsel %vm4428_vm10, %v4397_v6, %v10564_v39  ;;  %v10804_v1 = vsel %vm4460_vm11, -1e+30, %v10598_v9 }
 0x95a   : > { %v4492_v44 = vmul.f32 %v10801_v47, %v6328_v17  ;;  %v4524_v23 = vmul.f32 %v10801_v47, %v6330_v18  ;;  %4604 = vmax.xlane.f32.xlu2 %v10804_v1  ;;  %v10815_v37 = vadd.f32 %v4370_v50, %v10602_v45 }
 0x95c   : > { %4212 = vmax.xlane.f32.xlu1 %v10812_v53  ;;  %v4508_v39 = vadd.f32 %v4492_v44, %v6334_v21  ;;  %v4540_v9 = vadd.f32 %v4524_v23, %v6336_v22 }
 0x95e   : > { %v4556_v30 = vmin.f32 %v4508_v39, %v4540_v9 }
 0x95f   : > { %v4011_v31 = vpop.xlane.xlu1 %4010 }
 0x960   : > { %vm4027_vm13 = vcmp.gt.f32.partialorder %v4011_v31, -1e+29  ;;  %v4572_v46 = vmax.f32 %v4556_v30, 0.0  ;;  %vm4059_vm1 = vcmp.eq.f32.partialorder %v10609_v62, %v4011_v31 }
 0x961   : > { %v10822_v6 = vsel %vm4027_vm13, %v4011_v31, %v10595_v56  ;;  %v10850_v30 = vsel %vm4059_vm1, -1e+30, %v10609_v62 }
 0x962   : > { %14203 = vst [vmem:[#allocation127_spill] sm:$0xff] %v10822_v6  ;;  %4408 = vmax.xlane.f32.xlu2 %v10825_v57  ;;  %v10829_v45 = vadd.f32 %v4572_v46, %v10589_v49 }
 0x964   : > { %v4399_v50 = vpop.xlane.xlu2 %4398 }
 0x965   : > { %vm4429_vm14 = vcmp.gt.f32.partialorder %v4399_v50, -1e+29  ;;  %vm4461_vm15 = vcmp.eq.f32.partialorder %v10623_v14, %v4399_v50 }
 0x966   : > { %v10833_v13 = vsel %vm4429_vm14, %v4399_v50, %v10620_v16  ;;  %v10836_v44 = vsel %vm4461_vm15, -1e+30, %v10623_v14 }
 0x967   : > { %v4493_v15 = vmul.f32 %v10833_v13, %v6328_v17  ;;  %v4525_v23 = vmul.f32 %v10833_v13, %v6330_v18  ;;  %4606 = vmax.xlane.f32.xlu0 %v10836_v44  ;;  %v4205_v49 = vpop.xlane.xlu1 %4204 }
 0x968   : > { %vm4228_vm3 = vcmp.gt.f32.partialorder %v4205_v49, -1e+29  ;;  %vm4260_vm6 = vcmp.eq.f32.partialorder %v10634_v51, %v4205_v49 }
 0x969   : > { %v4509_v39 = vadd.f32 %v4493_v15, %v6334_v21  ;;  %v4541_v16 = vadd.f32 %v4525_v23, %v6336_v22  ;;  %v10847_v9 = vsel %vm4228_vm3, %v4205_v49, %v10606_v61  ;;  %v4401_v14 = vpop.xlane.xlu0 %4400 }
 0x96a   : > { %v4292_v31 = vmul.f32 %v10847_v9, %v6328_v17  ;;  %v4324_v46 = vmul.f32 %v10847_v9, %v6330_v18  ;;  %vm4430_vm4 = vcmp.gt.f32.partialorder %v4401_v14, -1e+29  ;;  %4218 = vmax.xlane.f32.xlu2 %v10850_v30  ;;  %vm4462_vm5 = vcmp.eq.f32.partialorder %v10645_v34, %v4401_v14 }
 0x96b   : > { %v4557_v50 = vmin.f32 %v4509_v39, %v4541_v16  ;;  %v10859_v15 = vsel %vm4430_vm4, %v4401_v14, %v10642_v12  ;;  %v10862_v61 = vsel %vm4462_vm5, -1e+30, %v10645_v34 }
 0x96c   : > { %v4308_v62 = vadd.f32 %v4292_v31, %v6334_v21  ;;  %v4340_v23 = vadd.f32 %v4324_v46, %v6336_v22  ;;  %v4494_v3 = vmul.f32 %v10859_v15, %v6328_v17  ;;  %v4526_v56 = vmul.f32 %v10859_v15, %v6330_v18  ;;  %4608 = vmax.xlane.f32.xlu1 %v10862_v61 }
 0x96d   : > { %v4203_v25 = vpop.xlane.xlu2 %4202  ;;  %v4573_v12 = vmax.f32 %v4557_v50, 0.0 }
 0x96e   : > { %v4356_v39 = vmin.f32 %v4308_v62, %v4340_v23  ;;  %v4510_v34 = vadd.f32 %v4494_v3, %v6334_v21  ;;  %v4542_v16 = vadd.f32 %v4526_v56, %v6336_v22  ;;  %vm4227_vm7 = vcmp.gt.f32.partialorder %v4203_v25, -1e+29 }
 0x96f   : > { %v10875_v14 = vsel %vm4227_vm7, %v4203_v25, %v10656_v59  ;;  %vm4259_vm8 = vcmp.eq.f32.partialorder %v10659_v0, %v4203_v25  ;;  %v10879_v31 = vadd.f32 %v4573_v12, %v10662_v26  ;;  %v10889_v56 = vsel %vm4260_vm6, -1e+30, %v10634_v51 }
 0x970   : > { %v4372_v46 = vmax.f32 %v4356_v39, 0.0  ;;  %v4558_v20 = vmin.f32 %v4510_v34, %v4542_v16  ;;  %v4291_v49 = vmul.f32 %v10875_v14, %v6328_v17  ;;  %v4323_v50 = vmul.f32 %v10875_v14, %v6330_v18 }
 0x971   : > { %v10886_v3 = vsel %vm4259_vm8, -1e+30, %v10659_v0 }
 0x972   : > { %v4307_v59 = vadd.f32 %v4291_v49, %v6334_v21  ;;  %v4339_v25 = vadd.f32 %v4323_v50, %v6336_v22  ;;  %4410 = vmax.xlane.f32.xlu0 %v10886_v3  ;;  %v4207_v26 = vpop.xlane.xlu0 %4206  ;;  %4412 = vmax.xlane.f32.xlu2 %v10889_v56  ;;  %v4574_v62 = vmax.f32 %v4558_v20, 0.0  ;;  %v10896_v23 = vadd.f32 %v4372_v46, %v10639_v63 }
 0x973   : > { %vm4229_vm9 = vcmp.gt.f32.partialorder %v4207_v26, -1e+29  ;;  %vm4261_vm10 = vcmp.eq.f32.partialorder %v10676_v2, %v4207_v26 }
 0x974   : > { %v4355_v0 = vmin.f32 %v4307_v59, %v4339_v25  ;;  %v10900_v51 = vsel %vm4229_vm9, %v4207_v26, %v10673_v52  ;;  %v10903_v12 = vsel %vm4261_vm10, -1e+30, %v10676_v2  ;;  %v10906_v39 = vadd.f32 %v4574_v62, %v10679_v43 }
 0x975   : > { %v4293_v34 = vmul.f32 %v10900_v51, %v6328_v17  ;;  %v4325_v20 = vmul.f32 %v10900_v51, %v6330_v18  ;;  %4414 = vmax.xlane.f32.xlu1 %v10903_v12 }
 0x976   : > { %v4371_v63 = vmax.f32 %v4355_v0, 0.0 }
 0x977   : > { %v4309_v16 = vadd.f32 %v4293_v34, %v6334_v21  ;;  %v4341_v52 = vadd.f32 %v4325_v20, %v6336_v22 }
 0x978   : > { %v10916_v46 = vadd.f32 %v4371_v63, %v10689_v4 }
 0x979   : > { %v4357_v2 = vmin.f32 %v4309_v16, %v4341_v52 }
 0x97a   : > { %v4215_v49 = vpop.xlane.xlu0 %4214 }
 0x97b   : > { %v4373_v43 = vmax.f32 %v4357_v2, 0.0  ;;  %vm4233_vm11 = vcmp.gt.f32.partialorder %v4215_v49, -1e+29  ;;  %vm4265_vm12 = vcmp.eq.f32.partialorder %v10696_v54, %v4215_v49 }
 0x97c   : > { %v10920_v50 = vsel %vm4233_vm11, %v4215_v49, %v10693_v36  ;;  %v10923_v59 = vsel %vm4265_vm12, -1e+30, %v10696_v54 }
 0x97d   : > { %14204 = vst [vmem:[#allocation138_spill] sm:$0xff] %v10920_v50  ;;  %4422 = vmax.xlane.f32.xlu1 %v10923_v59  ;;  %v10927_v25 = vadd.f32 %v4373_v43, %v10700_v8 }
 0x982   : > { %v10929_v26 = vpop.xlane.xlu0 %4210 }
 0x983   : > { %14205 = vst [vmem:[#allocation139_spill] sm:$0xff] %v10929_v26  ;;  %vm4263_vm13 = vcmp.eq.f32.partialorder %v10707_v38, %v10929_v26 }
 0x984   : > { %v10934_v4 = vsel %vm4263_vm13, -1e+30, %v10707_v38 }
 0x985   : > { %4418 = vmax.xlane.f32.xlu1 %v10934_v4 }
 0x997   : > { %v4403_v62 = vpop.xlane.xlu2 %4402 }
 0x998   : > { %vm4431_vm14 = vcmp.gt.f32.partialorder %v4403_v62, -1e+29  ;;  %vm4463_vm15 = vcmp.eq.f32.partialorder %v10715_v7, %v4403_v62 }
 0x999   : > { %v10939_v54 = vsel %vm4431_vm14, %v4403_v62, %v10712_v42  ;;  %v10942_v8 = vsel %vm4463_vm15, -1e+30, %v10715_v7 }
 0x99a   : > { %v4495_v0 = vmul.f32 %v10939_v54, %v6328_v17  ;;  %v4527_v34 = vmul.f32 %v10939_v54, %v6330_v18  ;;  %4610 = vmax.xlane.f32.xlu0 %v10942_v8 }
 0x99c   : > { %v4511_v38 = vadd.f32 %v4495_v0, %v6334_v21  ;;  %v4543_v20 = vadd.f32 %v4527_v34, %v6336_v22 }
 0x99e   : > { %v4559_v63 = vmin.f32 %v4511_v38, %v4543_v20  ;;  %v14208_v38 = vld [vmem:[#allocation34_spill] sm:$0xff] }
 0x99f   : > { %v4209_v16 = vpop.xlane.xlu2 %4208  ;;  %vm1322_vm6 = vcmp.gt.f32.partialorder %v14208_v38, -1e+29 }
 0x9a0   : > { %vm4230_vm1 = vcmp.gt.f32.partialorder %v4209_v16, -1e+29  ;;  %vm4262_vm3 = vcmp.eq.f32.partialorder %v10729_v33, %v4209_v16  ;;  %v4575_v42 = vmax.f32 %v4559_v63, 0.0 }
 0x9a1   : > { %v10953_v7 = vsel %vm4230_vm1, %v4209_v16, %v10726_v28  ;;  %v10956_v52 = vsel %vm4262_vm3, -1e+30, %v10729_v33  ;;  %v14206_v28 = vld [vmem:[#allocation15_spill] sm:$0xff]  ;;  %v14207_v33 = vld [vmem:[#allocation18_spill] sm:$0xff]  ;;  %v14209_v16 = vld [vmem:[#allocation53_spill] sm:$0xff] }
 0x9a2   : > { %v4294_v2 = vmul.f32 %v10953_v7, %v6328_v17  ;;  %v4326_v49 = vmul.f32 %v10953_v7, %v6330_v18  ;;  %4416 = vmax.xlane.f32.xlu0 %v10956_v52  ;;  %v10964_v43 = vadd.f32 %v4575_v42, %v10737_v35  ;;  %vm906_vm4 = vcmp.gt.f32.partialorder %v14206_v28, -1e+29  ;;  %v14210_v42 = vld [vmem:[#allocation71_spill] sm:$0xff] }
 0x9a3   : > { %vm1114_vm5 = vcmp.gt.f32.partialorder %v14207_v33, -1e+29  ;;  %v10972_v63 = vsel %vm906_vm4, %v14206_v28, 0.0  ;;  %vm1530_vm7 = vcmp.gt.f32.partialorder %v14209_v16, -1e+29  ;;  %v14212_v28 = vld [vmem:[#allocation102_spill] sm:$0xff] }
 0x9a4   : > { %v4310_v62 = vadd.f32 %v4294_v2, %v6334_v21  ;;  %v4342_v0 = vadd.f32 %v4326_v49, %v6336_v22  ;;  %v10977_v35 = vsel %vm1114_vm5, %v14207_v33, %v10972_v63  ;;  %vm1738_vm8 = vcmp.gt.f32.partialorder %v14210_v42, -1e+29  ;;  %v14213_v33 = vld [vmem:[#allocation117_spill] sm:$0xff] }
 0x9a5   : > { %v10985_v49 = vsel %vm1322_vm6, %v14208_v38, %v10977_v35  ;;  %vm2154_vm10 = vcmp.gt.f32.partialorder %v14212_v28, -1e+29  ;;  %vm2362_vm11 = vcmp.gt.f32.partialorder %v14213_v33, -1e+29  ;;  %v14214_v38 = vld [vmem:[#allocation132_spill] sm:$0xff] }
 0x9a6   : > { %v4358_v34 = vmin.f32 %v4310_v62, %v4342_v0  ;;  %v14211_v62 = vld [vmem:[#allocation87_spill] sm:$0xff]  ;;  %v10990_v0 = vsel %vm1530_vm7, %v14209_v16, %v10985_v49  ;;  %vm2570_vm12 = vcmp.gt.f32.partialorder %v14214_v38, -1e+29  ;;  %vm3818_vm4 = vcmp.gt.f32.partialorder %v10500_v60, -1e+29 }
 0x9a7   : > { %vm1946_vm9 = vcmp.gt.f32.partialorder %v14211_v62, -1e+29  ;;  %v14216_v16 = vld [vmem:[#allocation147_spill] sm:$0xff]  ;;  %vm4026_vm5 = vcmp.gt.f32.partialorder %v10765_v48, -1e+29 }
 0x9a8   : > { %v4374_v20 = vmax.f32 %v4358_v34, 0.0  ;;  %v10995_v34 = vsel %vm1738_vm8, %v14210_v42, %v10990_v0  ;;  %vm2778_vm13 = vcmp.gt.f32.partialorder %v14216_v16, -1e+29  ;;  %v14218_v42 = vld [vmem:[#allocation162_spill] sm:$0xff] }
 0x9a9   : > { %vm2986_vm14 = vcmp.gt.f32.partialorder %v14218_v42, -1e+29 }
 0x9aa   : > { %v10981_v2 = vadd.f32 %v4374_v20, %v10749_v40  ;;  %v11000_v40 = vsel %vm1946_vm9, %v14211_v62, %v10995_v34  ;;  %v14220_v62 = vld [vmem:[#allocation190_spill] sm:$0xff] }
 0x9ab   : > { %v11005_v20 = vsel %vm2154_vm10, %v14212_v28, %v11000_v40  ;;  %vm3194_vm15 = vcmp.gt.f32.partialorder %v14220_v62, -1e+29  ;;  %v14222_v28 = vld [vmem:[#allocation43_spill] sm:$0xff] }
 0x9ac   : > { %14215 = vst [vmem:[#allocation36_spill] sm:$0xff] %v11005_v20  ;;  %v11010_v26 = vsel %vm2362_vm11, %v14213_v33, %v11005_v20  ;;  %vm3402_vm1 = vcmp.gt.f32.partialorder %v14222_v28, -1e+29  ;;  %v14224_v33 = vld [vmem:[#allocation85_spill] sm:$0xff] }
 0x9ad   : > { %14217 = vst [vmem:[#allocation175_spill] sm:$0xff] %v11010_v26  ;;  %v11015_v41 = vsel %vm2570_vm12, %v14214_v38, %v11010_v26  ;;  %vm3610_vm3 = vcmp.gt.f32.partialorder %v14224_v33, -1e+29 }
 0x9ae   : > { %14219 = vst [vmem:[#allocation141_spill] sm:$0xff] %v11015_v41  ;;  %v11020_v36 = vsel %vm2778_vm13, %v14216_v16, %v11015_v41 }
 0x9af   : > { %14221 = vst [vmem:[#allocation142_spill] sm:$0xff] %v11020_v36  ;;  %v11025_v5 = vsel %vm2986_vm14, %v14218_v42, %v11020_v36 }
 0x9b0   : > { %14223 = vst [vmem:[#allocation144_spill] sm:$0xff] %v11025_v5  ;;  %v11030_v20 = vsel %vm3194_vm15, %v14220_v62, %v11025_v5 }
 0x9b1   : > { %14225 = vst [vmem:[#allocation145_spill] sm:$0xff] %v11030_v20  ;;  %v11035_v38 = vsel %vm3402_vm1, %v14222_v28, %v11030_v20 }
 0x9b2   : > { %14226 = vst [vmem:[#allocation148_spill] sm:$0xff] %v11035_v38  ;;  %v11040_v16 = vsel %vm3610_vm3, %v14224_v33, %v11035_v38 }
 0x9b3   : > { %14227 = vst [vmem:[#allocation45_spill] sm:$0xff] %v11040_v16  ;;  %v11044_v42 = vsel %vm3818_vm4, %v10500_v60, %v11040_v16 }
 0x9b4   : > { %14228 = vst [vmem:[#allocation134_spill] sm:$0xff] %v11044_v42  ;;  %v11048_v62 = vsel %vm4026_vm5, %v10765_v48, %v11044_v42 }
 0x9b5   : > { %14229 = vst [vmem:[#allocation179_spill] sm:$0xff] %v11048_v62 }
 0x9b7   : > { %v4217_v36 = vpop.xlane.xlu1 %4216 }
 0x9b8   : > { %vm4234_vm6 = vcmp.gt.f32.partialorder %v4217_v36, -1e+29  ;;  %vm4266_vm11 = vcmp.eq.f32.partialorder %v10770_v27, %v4217_v36 }
 0x9b9   : > { %v11051_v5 = vsel %vm4234_vm6, %v4217_v36, %v11048_v62  ;;  %v11098_v36 = vsel %vm4266_vm11, -1e+30, %v10770_v27 }
 0x9bf   : > { %v4405_v28 = vpop.xlane.xlu1 %4404 }
 0x9c0   : > { %vm4432_vm7 = vcmp.gt.f32.partialorder %v4405_v28, -1e+29  ;;  %vm4464_vm8 = vcmp.eq.f32.partialorder %v10781_v32, %v4405_v28 }
 0x9c1   : > { %v11055_v33 = vsel %vm4432_vm7, %v4405_v28, %v10742_v55  ;;  %v11058_v38 = vsel %vm4464_vm8, -1e+30, %v10781_v32 }
 0x9c2   : > { %v4496_v60 = vmul.f32 %v11055_v33, %v6328_v17  ;;  %v4528_v48 = vmul.f32 %v11055_v33, %v6330_v18  ;;  %4612 = vmax.xlane.f32.xlu2 %v11058_v38 }
 0x9c4   : > { %v4512_v62 = vadd.f32 %v4496_v60, %v6334_v21  ;;  %v4544_v42 = vadd.f32 %v4528_v48, %v6336_v22 }
 0x9c6   : > { %v4560_v16 = vmin.f32 %v4512_v62, %v4544_v42 }
 0x9c7   : > { %v4407_v20 = vpop.xlane.xlu1 %4406 }
 0x9c8   : > { %vm4433_vm9 = vcmp.gt.f32.partialorder %v4407_v20, -1e+29  ;;  %vm4465_vm10 = vcmp.eq.f32.partialorder %v10793_v58, %v4407_v20  ;;  %v4576_v55 = vmax.f32 %v4560_v16, 0.0 }
 0x9c9   : > { %v11069_v32 = vsel %vm4433_vm9, %v4407_v20, %v10754_v10  ;;  %v11072_v28 = vsel %vm4465_vm10, -1e+30, %v10793_v58 }
 0x9ca   : > { %v4497_v41 = vmul.f32 %v11069_v32, %v6328_v17  ;;  %v4529_v60 = vmul.f32 %v11069_v32, %v6330_v18  ;;  %4614 = vmax.xlane.f32.xlu2 %v11072_v28  ;;  %v11080_v42 = vadd.f32 %v4576_v55, %v10761_v24 }
 0x9cc   : > { %v4513_v62 = vadd.f32 %v4497_v41, %v6334_v21  ;;  %v4545_v16 = vadd.f32 %v4529_v60, %v6336_v22 }
 0x9cd   : > { %v4605_v20 = vpop.xlane.xlu2 %4604 }
 0x9ce   : > { %v4561_v10 = vmin.f32 %v4513_v62, %v4545_v16  ;;  %vm4636_vm12 = vcmp.gt.f32.partialorder %v4605_v20, -1e+29  ;;  %vm4668_vm13 = vcmp.eq.f32.partialorder %v10804_v1, %v4605_v20 }
 0x9cf   : > { %v4213_v58 = vpop.xlane.xlu1 %4212  ;;  %v11087_v48 = vsel %vm4636_vm12, %v4605_v20, %v10801_v47  ;;  %v4684_v26 = vsel %vm4668_vm13, -1e+30, %v10804_v1 }
 0x9d0   : > { %vm4232_vm14 = vcmp.gt.f32.partialorder %v4213_v58, -1e+29  ;;  %v4700_v24 = vmul.f32 %v11087_v48, %v6328_v17  ;;  %v4732_v41 = vmul.f32 %v11087_v48, %v6330_v18  ;;  %4812 = vmax.xlane.f32.xlu0 %v4684_v26  ;;  %v4577_v47 = vmax.f32 %v4561_v10, 0.0 }
 0x9d1   : > { %v11095_v55 = vsel %vm4232_vm14, %v4213_v58, %v10778_v29  ;;  %vm4264_vm15 = vcmp.eq.f32.partialorder %v10812_v53, %v4213_v58 }
 0x9d2   : > { %14230 = vst [vmem:[#allocation149_spill] sm:$0xff] %v11095_v55  ;;  %4424 = vmax.xlane.f32.xlu2 %v11098_v36  ;;  %v4716_v60 = vadd.f32 %v4700_v24, %v6334_v21  ;;  %v4748_v1 = vadd.f32 %v4732_v41, %v6336_v22  ;;  %v11104_v62 = vadd.f32 %v4577_v47, %v10774_v19  ;;  %v11120_v58 = vsel %vm4264_vm15, -1e+30, %v10812_v53 }
 0x9d4   : > { %v4764_v16 = vmin.f32 %v4716_v60, %v4748_v1 }
 0x9d5   : > { %v4409_v20 = vpop.xlane.xlu2 %4408 }
 0x9d6   : > { %vm4434_vm1 = vcmp.gt.f32.partialorder %v4409_v20, -1e+29  ;;  %vm4466_vm3 = vcmp.eq.f32.partialorder %v10825_v57, %v4409_v20  ;;  %v4780_v26 = vmax.f32 %v4764_v16, 0.0 }
 0x9d7   : > { %v11109_v27 = vsel %vm4434_vm1, %v4409_v20, %v10786_v11  ;;  %v11112_v10 = vsel %vm4466_vm3, -1e+30, %v10825_v57 }
 0x9d8   : > { %v4498_v24 = vmul.f32 %v11109_v27, %v6328_v17  ;;  %v4530_v19 = vmul.f32 %v11109_v27, %v6330_v18  ;;  %4616 = vmax.xlane.f32.xlu0 %v11112_v10  ;;  %v11123_v41 = vadd.f32 %v4780_v26, %v10829_v45 }
 0x9da   : > { %4420 = vmax.xlane.f32.xlu2 %v11120_v58  ;;  %v4607_v11 = vpop.xlane.xlu0 %4606  ;;  %v4514_v57 = vadd.f32 %v4498_v24, %v6334_v21  ;;  %v4546_v47 = vadd.f32 %v4530_v19, %v6336_v22 }
 0x9db   : > { %vm4637_vm4 = vcmp.gt.f32.partialorder %v4607_v11, -1e+29  ;;  %vm4669_vm5 = vcmp.eq.f32.partialorder %v10836_v44, %v4607_v11 }
 0x9dc   : > { %v11130_v60 = vsel %vm4637_vm4, %v4607_v11, %v10833_v13  ;;  %v4562_v1 = vmin.f32 %v4514_v57, %v4546_v47  ;;  %v4685_v53 = vsel %vm4669_vm5, -1e+30, %v10836_v44 }
 0x9dd   : > { %v4701_v45 = vmul.f32 %v11130_v60, %v6328_v17  ;;  %v4733_v16 = vmul.f32 %v11130_v60, %v6330_v18  ;;  %4814 = vmax.xlane.f32.xlu1 %v4685_v53  ;;  %v4219_v20 = vpop.xlane.xlu2 %4218 }
 0x9de   : > { %vm4235_vm6 = vcmp.gt.f32.partialorder %v4219_v20, -1e+29  ;;  %vm4267_vm7 = vcmp.eq.f32.partialorder %v10850_v30, %v4219_v20  ;;  %v4578_v26 = vmax.f32 %v4562_v1, 0.0 }
 0x9df   : > { %v4717_v24 = vadd.f32 %v4701_v45, %v6334_v21  ;;  %v4749_v13 = vadd.f32 %v4733_v16, %v6336_v22  ;;  %v4609_v19 = vpop.xlane.xlu1 %4608  ;;  %v11141_v11 = vsel %vm4235_vm6, %v4219_v20, %v10822_v6  ;;  %v11144_v44 = vsel %vm4267_vm7, -1e+30, %v10850_v30 }
 0x9e0   : > { %14231 = vst [vmem:[#allocation153_spill] sm:$0xff] %v11141_v11  ;;  %vm4638_vm8 = vcmp.gt.f32.partialorder %v4609_v19, -1e+29  ;;  %4426 = vmax.xlane.f32.xlu0 %v11144_v44  ;;  %vm4670_vm9 = vcmp.eq.f32.partialorder %v10862_v61, %v4609_v19  ;;  %v11157_v16 = vadd.f32 %v4578_v26, %v10815_v37 }
 0x9e1   : > { %v11149_v57 = vsel %vm4638_vm8, %v4609_v19, %v10859_v15  ;;  %v4686_v47 = vsel %vm4670_vm9, -1e+30, %v10862_v61  ;;  %v4765_v1 = vmin.f32 %v4717_v24, %v4749_v13 }
 0x9e2   : > { %v4702_v53 = vmul.f32 %v11149_v57, %v6328_v17  ;;  %v4734_v45 = vmul.f32 %v11149_v57, %v6330_v18  ;;  %4816 = vmax.xlane.f32.xlu2 %v4686_v47 }
 0x9e3   : > { %v4781_v30 = vmax.f32 %v4765_v1, 0.0 }
 0x9e4   : > { %v4718_v20 = vadd.f32 %v4702_v53, %v6334_v21  ;;  %v4750_v6 = vadd.f32 %v4734_v45, %v6336_v22 }
 0x9e5   : > { %v4411_v15 = vpop.xlane.xlu0 %4410  ;;  %v4413_v19 = vpop.xlane.xlu2 %4412  ;;  %v11162_v61 = vadd.f32 %v4781_v30, %v10879_v31 }
 0x9e6   : > { %vm4435_vm10 = vcmp.gt.f32.partialorder %v4411_v15, -1e+29  ;;  %vm4467_vm11 = vcmp.eq.f32.partialorder %v10886_v3, %v4411_v15  ;;  %vm4436_vm12 = vcmp.gt.f32.partialorder %v4413_v19, -1e+29  ;;  %vm4468_vm13 = vcmp.eq.f32.partialorder %v10889_v56, %v4413_v19 }
 0x9e7   : > { %v11166_v24 = vsel %vm4435_vm10, %v4411_v15, %v10875_v14  ;;  %v11169_v13 = vsel %vm4467_vm11, -1e+30, %v10886_v3  ;;  %v11172_v37 = vsel %vm4436_vm12, %v4413_v19, %v10847_v9  ;;  %v11185_v9 = vsel %vm4468_vm13, -1e+30, %v10889_v56 }
 0x9e8   : > { %14232 = vst [vmem:[#allocation49_spill] sm:$0xff] %v11166_v24  ;;  %v4499_v26 = vmul.f32 %v11166_v24, %v6328_v17  ;;  %v4531_v31 = vmul.f32 %v11166_v24, %v6330_v18  ;;  %4618 = vmax.xlane.f32.xlu1 %v11169_v13  ;;  %v4415_v47 = vpop.xlane.xlu1 %4414  ;;  %v4500_v14 = vmul.f32 %v11172_v37, %v6328_v17 }
 0x9e9   : > { %14233 = vst [vmem:[#allocation140_spill] sm:$0xff] %v11172_v37  ;;  %v4532_v3 = vmul.f32 %v11172_v37, %v6330_v18  ;;  %vm4437_vm14 = vcmp.gt.f32.partialorder %v4415_v47, -1e+29  ;;  %vm4469_vm15 = vcmp.eq.f32.partialorder %v10903_v12, %v4415_v47  ;;  %v4766_v1 = vmin.f32 %v4718_v20, %v4750_v6  ;;  %4620 = vmax.xlane.f32.xlu0 %v11185_v9 }
 0x9ea   : > { %14234 = vst [vmem:[#allocation143_spill] sm:$0xff] %v11185_v9  ;;  %v4515_v53 = vadd.f32 %v4499_v26, %v6334_v21  ;;  %v4547_v45 = vadd.f32 %v4531_v31, %v6336_v22  ;;  %v11191_v30 = vsel %vm4437_vm14, %v4415_v47, %v10900_v51  ;;  %v4516_v15 = vadd.f32 %v4500_v14, %v6334_v21 }
 0x9eb   : > { %14235 = vst [vmem:[#allocation154_spill] sm:$0xff] %v11191_v30  ;;  %v4501_v19 = vmul.f32 %v11191_v30, %v6328_v17  ;;  %v4533_v56 = vmul.f32 %v11191_v30, %v6330_v18  ;;  %v4548_v29 = vadd.f32 %v4532_v3, %v6336_v22  ;;  %v11201_v6 = vsel %vm4469_vm15, -1e+30, %v10903_v12 }
 0x9ec   : > { %14236 = vst [vmem:[#allocation181_spill] sm:$0xff] %v11201_v6  ;;  %v4563_v20 = vmin.f32 %v4515_v53, %v4547_v45  ;;  %4622 = vmax.xlane.f32.xlu2 %v11201_v6  ;;  %v4782_v51 = vmax.f32 %v4766_v1, 0.0 }
 0x9ed   : > { %v4517_v26 = vadd.f32 %v4501_v19, %v6334_v21  ;;  %v4549_v31 = vadd.f32 %v4533_v56, %v6336_v22  ;;  %v4564_v47 = vmin.f32 %v4516_v15, %v4548_v29  ;;  %v14245_v15 = vld [vmem:[#allocation16_spill] sm:$0xff] }
 0x9ee   : > { %v11207_v14 = vadd.f32 %v4782_v51, %v10906_v39  ;;  %v4579_v9 = vmax.f32 %v4563_v20, 0.0  ;;  %vm903_vm5 = vcmp.gt.f32.partialorder %v14245_v15, -1e+29 }
 0x9ef   : > { %v4565_v30 = vmin.f32 %v4517_v26, %v4549_v31  ;;  %v4580_v37 = vmax.f32 %v4564_v47, 0.0  ;;  %v919_v56 = vsel %vm903_vm5, %v14245_v15, 0.0  ;;  %v14246_v47 = vld [vmem:[#allocation7_spill] sm:$0xff] }
 0x9f0   : > { %14237 = vst [vmem:[#allocation155_spill] sm:$0xff] %v11207_v14  ;;  %v4423_v3 = vpop.xlane.xlu1 %4422  ;;  %v11210_v12 = vadd.f32 %v4579_v9, %v10916_v46  ;;  %v544_v9 = vld [vmem:[%s6230_s29 + $0x70] sm:$0xff]  ;;  %v967_v51 = vmul.f32 %v919_v56, %v6328_v17  ;;  %v999_v26 = vmul.f32 %v919_v56, %v6330_v18 }
 0x9f1   : > { %vm4441_vm1 = vcmp.gt.f32.partialorder %v4423_v3, -1e+29  ;;  %vm4473_vm3 = vcmp.eq.f32.partialorder %v10923_v59, %v4423_v3  ;;  %v11214_v1 = vadd.f32 %v4580_v37, %v10896_v23  ;;  %v4581_v53 = vmax.f32 %v4565_v30, 0.0  ;;  %v6109_v37 = vld [vmem:[%s6224_s23 + $0x70] sm:$0xff] }
 0x9f2   : > { %14238 = vst [vmem:[#allocation158_spill] sm:$0xff] %v11210_v12  ;;  %v11217_v29 = vsel %vm4441_vm1, %v4423_v3, %v10920_v50  ;;  %v11220_v39 = vsel %vm4473_vm3, -1e+30, %v10923_v59  ;;  %v560_v30 = vmul.f32 %v6109_v37, %v544_v9  ;;  %v970_v59 = vmul.f32 %v10972_v63, %v6328_v17  ;;  %v14250_v9 = vld [vmem:[#allocation4_spill] sm:$0xff] }
 0x9f3   : > { %14239 = vst [vmem:[#allocation157_spill] sm:$0xff] %v11214_v1  ;;  %v11223_v45 = vadd.f32 %v4581_v53, %v10927_v25  ;;  %v1002_v25 = vmul.f32 %v10972_v63, %v6330_v18  ;;  %v11249_v3 = vsel %vm4991_vm2, %v14246_v47, 0.0  ;;  %v14248_v63 = vld [vmem:[#allocation3_spill] sm:$0xff]  ;;  %v11257_v37 = vsel %vm4991_vm2, %v14250_v9, 0.0  ;;  %v14257_v47 = vld [vmem:[#allocation9_spill] sm:$0xff]  ;;  %v14259_v9 = vld [vmem:[#allocation6_spill] sm:$0xff] }
 0x9f4   : > { %14240 = vst [vmem:[#allocation150_spill] sm:$0xff] %v11217_v29  ;;  %4630 = vmax.xlane.f32.xlu2 %v11220_v39  ;;  %v604_v19 = vsel %vm456_vm0, %v560_v30, 0.0  ;;  %v986_v20 = vadd.f32 %v970_v59, %v6334_v21  ;;  %v11253_v53 = vsel %vm4991_vm2, %v14248_v63, 0.0  ;;  %v14252_v30 = vld [vmem:[#allocation8_spill] sm:$0xff]  ;;  %v11272_v63 = vsel %vm4991_vm2, %v14257_v47, 0.0  ;;  %v14268_v47 = vld [vmem:[#allocation199_spill] sm:$0xff] }
 0x9f5   : > { %14241 = vst [vmem:[#allocation160_spill] sm:$0xff] %v11220_v39  ;;  %v11261_v59 = vsel %vm4991_vm2, %v14252_v30, 0.0  ;;  %v14261_v30 = vld [vmem:[#allocation5_spill] sm:$0xff]  ;;  %v14278_v39 = vld [vmem:[#allocation191_spill] sm:$0xff] }
 0x9f6   : > { %14242 = vst [vmem:[#allocation161_spill] sm:$0xff] %v11223_v45  ;;  %v1179_v12 = vmul.f32 %v14278_v39, %v6328_v17 }
 0x9f7   : > { %14247 = vst [vmem:[#allocation164_spill] sm:$0xff] %v11249_v3 }
 0x9f8   : > { %v11226_v46 = vpop.xlane.xlu1 %4418  ;;  %14249 = vst [vmem:[#allocation174_spill] sm:$0xff] %v11253_v53 }
 0x9f9   : > { %14243 = vst [vmem:[#allocation163_spill] sm:$0xff] %v11226_v46  ;;  %vm4471_vm4 = vcmp.eq.f32.partialorder %v10934_v4, %v11226_v46  ;;  %v11276_v46 = vsel %vm4991_vm2, %v14259_v9, 0.0 }
 0x9fa   : > { %v11232_v23 = vsel %vm4471_vm4, -1e+30, %v10934_v4  ;;  %v1018_v4 = vadd.f32 %v1002_v25, %v6336_v22  ;;  %14251 = vst [vmem:[#allocation156_spill] sm:$0xff] %v11257_v37  ;;  %v14254_v25 = vld [vmem:[#allocation11_spill] sm:$0xff]  ;;  %v14269_v37 = vld [vmem:[#allocation13_spill] sm:$0xff] }
 0x9fb   : > { %14244 = vst [vmem:[#allocation172_spill] sm:$0xff] %v11232_v23  ;;  %v11265_v15 = vsel %vm4991_vm2, %v14254_v25, 0.0  ;;  %v14263_v25 = vld [vmem:[#allocation12_spill] sm:$0xff]  ;;  %v11296_v9 = vsel %vm4991_vm2, %v14269_v37, 0.0  ;;  %v14274_v37 = vld [vmem:[#allocation21_spill] sm:$0xff] }
 0x9fc   : > { %4626 = vmax.xlane.f32.xlu2 %v11232_v23  ;;  %v1034_v31 = vmin.f32 %v986_v20, %v1018_v4  ;;  %14253 = vst [vmem:[#allocation176_spill] sm:$0xff] %v11261_v59  ;;  %v1015_v20 = vadd.f32 %v999_v26, %v6336_v22  ;;  %v14256_v4 = vld [vmem:[#allocation22_spill] sm:$0xff]  ;;  %v11280_v59 = vsel %vm4991_vm2, %v14261_v30, 0.0 }
 0x9fd   : > { %14255 = vst [vmem:[#allocation159_spill] sm:$0xff] %v11265_v15  ;;  %vm1111_vm6 = vcmp.gt.f32.partialorder %v14256_v4, -1e+29  ;;  %v11284_v15 = vsel %vm4991_vm2, %v14263_v25, 0.0  ;;  %v1003_v25 = vmul.f32 %v14268_v47, %v6330_v18 }
 0x9fe   : > { %14258 = vst [vmem:[#allocation180_spill] sm:$0xff] %v11272_v63  ;;  %v11290_v3 = vmax.f32 %v1034_v31, 0.0  ;;  %v971_v63 = vmul.f32 %v14268_v47, %v6328_v17  ;;  %v1000_v47 = vmul.f32 %v14274_v37, %v6330_v18 }
 0x9ff   : > { %14260 = vst [vmem:[#allocation25_spill] sm:$0xff] %v11276_v46  ;;  %v14271_v46 = vld [vmem:[#allocation14_spill] sm:$0xff] }
 0xa00   : > { %14262 = vst [vmem:[#allocation171_spill] sm:$0xff] %v11280_v59  ;;  %v11300_v30 = vsel %vm4991_vm2, %v14271_v46, 0.0 }
 0xa01   : > { %14264 = vst [vmem:[#allocation178_spill] sm:$0xff] %v11284_v15  ;;  %v14273_v15 = vld [vmem:[#allocation19_spill] sm:$0xff] }
 0xa02   : > { %14267 = vst [vmem:[#allocation26_spill] sm:$0xff] %v11290_v3  ;;  %v1001_v31 = vmul.f32 %v14273_v15, %v6330_v18 }
 0xa03   : > { %14270 = vst [vmem:[#allocation185_spill] sm:$0xff] %v11296_v9  ;;  %v968_v9 = vmul.f32 %v14274_v37, %v6328_v17 }
 0xa04   : > { %605 = vadd.xlane.f32.xlu2 %v604_v19  ;;  %v983_v19 = vadd.f32 %v967_v51, %v6334_v21  ;;  %v14265_v51 = vld [vmem:[#allocation10_spill] sm:$0xff]  ;;  %14272 = vst [vmem:[#allocation187_spill] sm:$0xff] %v11300_v30  ;;  %v1178_v30 = vmul.f32 %v10977_v35, %v6328_v17  ;;  %v11342_v3 = vadd.f32 %v1001_v31, %v6336_v22 }
 0xa05   : > { %v11288_v26 = vsel %vm4991_vm2, %v14265_v51, 0.0  ;;  %v969_v51 = vmul.f32 %v14273_v15, %v6328_v17 }
 0xa06   : > { %14266 = vst [vmem:[#allocation184_spill] sm:$0xff] %v11288_v26  ;;  %v11309_v26 = vsel %vm1111_vm6, %v14256_v4, %v919_v56  ;;  %v1031_v53 = vmin.f32 %v983_v19, %v1015_v20  ;;  %v11331_v4 = vadd.f32 %v971_v63, %v6334_v21  ;;  %v11347_v63 = vadd.f32 %v968_v9, %v6334_v21  ;;  %v14277_v9 = vld [vmem:[#allocation194_spill] sm:$0xff] }
 0xa07   : > { %v1175_v15 = vmul.f32 %v11309_v26, %v6328_v17  ;;  %v1207_v19 = vmul.f32 %v11309_v26, %v6330_v18  ;;  %v1194_v31 = vadd.f32 %v1178_v30, %v6334_v21  ;;  %v1176_v1 = vmul.f32 %v14277_v9, %v6328_v17 }
 0xa08   : > { %v1047_v23 = vmax.f32 %v1031_v53, 0.0  ;;  %v1211_v30 = vmul.f32 %v14278_v39, %v6330_v18 }
 0xa09   : > { %v1191_v53 = vadd.f32 %v1175_v15, %v6334_v21 }
 0xa0d   : > { %v4611_v59 = vpop.xlane.xlu0 %4610 }
 0xa0e   : > { %vm4639_vm7 = vcmp.gt.f32.partialorder %v4611_v59, -1e+29  ;;  %vm4671_vm8 = vcmp.eq.f32.partialorder %v10942_v8, %v4611_v59 }
 0xa0f   : > { %v11319_v50 = vsel %vm4639_vm7, %v4611_v59, %v10939_v54  ;;  %v4687_v56 = vsel %vm4671_vm8, -1e+30, %v10942_v8  ;;  %v11334_v54 = vadd.f32 %v1003_v25, %v6336_v22  ;;  %v11337_v8 = vadd.f32 %v969_v51, %v6334_v21  ;;  %v14276_v51 = vld [vmem:[#allocation17_spill] sm:$0xff] }
 0xa10   : > { %14275 = vst [vmem:[#allocation30_spill] sm:$0xff] %v11319_v50  ;;  %v4703_v20 = vmul.f32 %v11319_v50, %v6328_v17  ;;  %v4735_v37 = vmul.f32 %v11319_v50, %v6330_v18  ;;  %4818 = vmax.xlane.f32.xlu1 %v4687_v56  ;;  %v1210_v59 = vmul.f32 %v10977_v35, %v6330_v18 }
 0xa11   : > { %v1016_v25 = vadd.f32 %v1000_v47, %v6336_v22  ;;  %v1177_v50 = vmul.f32 %v14276_v51, %v6328_v17  ;;  %v1209_v35 = vmul.f32 %v14276_v51, %v6330_v18  ;;  %v1208_v47 = vmul.f32 %v14277_v9, %v6330_v18 }
 0xa12   : > { %v4719_v45 = vadd.f32 %v4703_v20, %v6334_v21  ;;  %v4751_v56 = vadd.f32 %v4735_v37, %v6336_v22  ;;  %v1223_v20 = vadd.f32 %v1207_v19, %v6336_v22  ;;  %v1226_v37 = vadd.f32 %v1210_v59, %v6336_v22 }
 0xa13   : > { %v1193_v19 = vadd.f32 %v1177_v50, %v6334_v21  ;;  %v1225_v59 = vadd.f32 %v1209_v35, %v6336_v22  ;;  %v1192_v50 = vadd.f32 %v1176_v1, %v6334_v21  ;;  %v1033_v1 = vmin.f32 %v11337_v8, %v11342_v3 }
 0xa14   : > { %v4767_v29 = vmin.f32 %v4719_v45, %v4751_v56  ;;  %v543_v45 = vld [vmem:[%s6230_s29 + $0x68] sm:$0xff]  ;;  %v1239_v9 = vmin.f32 %v1191_v53, %v1223_v20  ;;  %v1227_v53 = vadd.f32 %v1211_v30, %v6336_v22  ;;  %v14282_v20 = vld [vmem:[#allocation38_spill] sm:$0xff]  ;;  %v1063_v30 = vadd.f32 %v1047_v23, %v14271_v46 }
 0xa15   : > { %v4417_v14 = vpop.xlane.xlu0 %4416  ;;  %vm1319_vm11 = vcmp.gt.f32.partialorder %v14282_v20, -1e+29 }
 0xa16   : > { %vm4438_vm9 = vcmp.gt.f32.partialorder %v4417_v14, -1e+29  ;;  %vm4470_vm10 = vcmp.eq.f32.partialorder %v10956_v52, %v4417_v14  ;;  %v4783_v15 = vmax.f32 %v4767_v29, 0.0 }
 0xa17   : > { %v11371_v56 = vsel %vm4438_vm9, %v4417_v14, %v10953_v7  ;;  %v11374_v51 = vsel %vm4470_vm10, -1e+30, %v10956_v52  ;;  %v1224_v7 = vadd.f32 %v1208_v47, %v6336_v22  ;;  %v1195_v14 = vadd.f32 %v1179_v12, %v6334_v21  ;;  %v6110_v52 = vld [vmem:[%s6224_s23 + $0x68] sm:$0xff] }
 0xa18   : > { %14279 = vst [vmem:[#allocation20_spill] sm:$0xff] %v11371_v56  ;;  %v4502_v39 = vmul.f32 %v11371_v56, %v6328_v17  ;;  %v4534_v6 = vmul.f32 %v11371_v56, %v6330_v18  ;;  %4624 = vmax.xlane.f32.xlu1 %v11374_v51  ;;  %v11382_v29 = vadd.f32 %v4783_v15, %v10964_v43  ;;  %v14283_v15 = vld [vmem:[#allocation54_spill] sm:$0xff] }
 0xa19   : > { %14280 = vst [vmem:[#allocation195_spill] sm:$0xff] %v11374_v51  ;;  %v559_v35 = vmul.f32 %v6110_v52, %v543_v45  ;;  %v1035_v43 = vmin.f32 %v11331_v4, %v11334_v54  ;;  %v1386_v47 = vmul.f32 %v10985_v49, %v6328_v17  ;;  %v1418_v12 = vmul.f32 %v10985_v49, %v6330_v18 }
 0xa1a   : > { %14281 = vst [vmem:[#allocation165_spill] sm:$0xff] %v11382_v29  ;;  %v4518_v24 = vadd.f32 %v4502_v39, %v6334_v21  ;;  %v4550_v56 = vadd.f32 %v4534_v6, %v6336_v22  ;;  %v1032_v45 = vmin.f32 %v11347_v63, %v1016_v25  ;;  %vm1527_vm12 = vcmp.gt.f32.partialorder %v14283_v15, -1e+29  ;;  %v14284_v63 = vld [vmem:[#allocation29_spill] sm:$0xff] }
 0xa1b   : > { %v1242_v6 = vmin.f32 %v1194_v31, %v1226_v37  ;;  %v1241_v52 = vmin.f32 %v1193_v19, %v1225_v59  ;;  %v1335_v4 = vsel %vm1319_vm11, %v14282_v20, %v11309_v26  ;;  %v601_v3 = vsel %vm456_vm0, %v559_v35, 0.0 }
 0xa1c   : > { %v4566_v39 = vmin.f32 %v4518_v24, %v4550_v56  ;;  %v1255_v54 = vmax.f32 %v1239_v9, 0.0  ;;  %v1240_v8 = vmin.f32 %v1192_v50, %v1224_v7  ;;  %v1243_v29 = vmin.f32 %v1195_v14, %v1227_v53 }
 0xa1d   : > { %v1402_v49 = vadd.f32 %v1386_v47, %v6334_v21  ;;  %v1434_v23 = vadd.f32 %v1418_v12, %v6336_v22  ;;  %v1385_v25 = vmul.f32 %v14284_v63, %v6328_v17  ;;  %v1543_v24 = vsel %vm1527_vm12, %v14283_v15, %v1335_v4 }
 0xa1e   : > { %v4582_v51 = vmax.f32 %v4566_v39, 0.0  ;;  %v1417_v31 = vmul.f32 %v14284_v63, %v6330_v18  ;;  %v1383_v26 = vmul.f32 %v1335_v4, %v6328_v17  ;;  %v1415_v37 = vmul.f32 %v1335_v4, %v6330_v18  ;;  %v14294_v63 = vld [vmem:[#allocation46_spill] sm:$0xff] }
 0xa1f   : > { %v11418_v59 = vmax.f32 %v1035_v43, 0.0  ;;  %v11420_v56 = vmax.f32 %v1033_v1, 0.0  ;;  %v11422_v9 = vmax.f32 %v1032_v45, 0.0  ;;  %v11424_v50 = vmax.f32 %v1242_v6, 0.0  ;;  %v14291_v45 = vld [vmem:[#allocation31_spill] sm:$0xff] }
 0xa20   : > { %602 = vadd.xlane.f32.xlu1 %v601_v3  ;;  %v11416_v19 = vadd.f32 %v4582_v51, %v10981_v2  ;;  %v11426_v7 = vmax.f32 %v1241_v52, 0.0  ;;  %v1271_v14 = vadd.f32 %v1255_v54, %v1063_v30  ;;  %v11428_v35 = vmax.f32 %v1240_v8, 0.0  ;;  %v14293_v3 = vld [vmem:[#allocation41_spill] sm:$0xff] }
 0xa21   : > { %14285 = vst [vmem:[#allocation66_spill] sm:$0xff] %v11418_v59  ;;  %v1591_v53 = vmul.f32 %v1543_v24, %v6328_v17  ;;  %v11431_v20 = vmax.f32 %v1243_v29, 0.0  ;;  %v1450_v47 = vmin.f32 %v1402_v49, %v1434_v23  ;;  %v1401_v2 = vadd.f32 %v1385_v25, %v6334_v21  ;;  %v14292_v29 = vld [vmem:[#allocation27_spill] sm:$0xff] }
 0xa22   : > { %14286 = vst [vmem:[#allocation182_spill] sm:$0xff] %v11420_v56  ;;  %v1623_v51 = vmul.f32 %v1543_v24, %v6330_v18  ;;  %v1433_v43 = vadd.f32 %v1417_v31, %v6336_v22  ;;  %v1399_v1 = vadd.f32 %v1383_v26, %v6334_v21  ;;  %v1431_v12 = vadd.f32 %v1415_v37, %v6336_v22  ;;  %v14295_v26 = vld [vmem:[#allocation69_spill] sm:$0xff] }
 0xa23   : > { %14287 = vst [vmem:[#allocation59_spill] sm:$0xff] %v11422_v9  ;;  %v1384_v30 = vmul.f32 %v14291_v45, %v6328_v17  ;;  %v1416_v15 = vmul.f32 %v14291_v45, %v6330_v18  ;;  %v1387_v39 = vmul.f32 %v14292_v29, %v6328_v17  ;;  %v1419_v6 = vmul.f32 %v14292_v29, %v6330_v18  ;;  %v14296_v45 = vld [vmem:[#allocation50_spill] sm:$0xff] }
 0xa24   : > { %14288 = vst [vmem:[#allocation67_spill] sm:$0xff] %v11426_v7  ;;  %v1594_v52 = vmul.f32 %v10990_v0, %v6328_v17  ;;  %v1626_v4 = vmul.f32 %v10990_v0, %v6330_v18  ;;  %v1593_v54 = vmul.f32 %v14293_v3, %v6328_v17  ;;  %v1625_v8 = vmul.f32 %v14293_v3, %v6330_v18  ;;  %v14298_v9 = vld [vmem:[#allocation86_spill] sm:$0xff] }
 0xa25   : > { %14289 = vst [vmem:[#allocation197_spill] sm:$0xff] %v11428_v35  ;;  %v1607_v49 = vadd.f32 %v1591_v53, %v6334_v21  ;;  %v1639_v23 = vadd.f32 %v1623_v51, %v6336_v22  ;;  %v1592_v25 = vmul.f32 %v14294_v63, %v6328_v17  ;;  %v1624_v31 = vmul.f32 %v14294_v63, %v6330_v18 }
 0xa26   : > { %14290 = vst [vmem:[#allocation35_spill] sm:$0xff] %v11431_v20  ;;  %vm1735_vm13 = vcmp.gt.f32.partialorder %v14295_v26, -1e+29  ;;  %v1449_v37 = vmin.f32 %v1401_v2, %v1433_v43  ;;  %v1447_v0 = vmin.f32 %v1399_v1, %v1431_v12  ;;  %v1595_v29 = vmul.f32 %v14296_v45, %v6328_v17 }
 0xa27   : > { %v1627_v3 = vmul.f32 %v14296_v45, %v6330_v18  ;;  %v1400_v53 = vadd.f32 %v1384_v30, %v6334_v21  ;;  %v1432_v51 = vadd.f32 %v1416_v15, %v6336_v22  ;;  %v1403_v46 = vadd.f32 %v1387_v39, %v6334_v21 }
 0xa28   : > { %v1435_v20 = vadd.f32 %v1419_v6, %v6336_v22  ;;  %v1610_v63 = vadd.f32 %v1594_v52, %v6334_v21  ;;  %v1642_v59 = vadd.f32 %v1626_v4, %v6336_v22  ;;  %v1609_v2 = vadd.f32 %v1593_v54, %v6334_v21  ;;  %v14297_v6 = vld [vmem:[#allocation48_spill] sm:$0xff] }
 0xa29   : > { %v1751_v43 = vsel %vm1735_vm13, %v14295_v26, %v1543_v24  ;;  %v1641_v1 = vadd.f32 %v1625_v8, %v6336_v22  ;;  %v1655_v12 = vmin.f32 %v1607_v49, %v1639_v23  ;;  %v1608_v45 = vadd.f32 %v1592_v25, %v6334_v21 }
 0xa2a   : > { %v1640_v30 = vadd.f32 %v1624_v31, %v6336_v22  ;;  %v1611_v15 = vadd.f32 %v1595_v29, %v6334_v21  ;;  %v1643_v39 = vadd.f32 %v1627_v3, %v6336_v22  ;;  %v1801_v52 = vmul.f32 %v14297_v6, %v6328_v17 }
 0xa2b   : > { %v1833_v4 = vmul.f32 %v14297_v6, %v6330_v18  ;;  %v11482_v54 = vmax.f32 %v1450_v47, 0.0  ;;  %v1463_v24 = vmax.f32 %v1447_v0, 0.0  ;;  %v1799_v8 = vmul.f32 %v1751_v43, %v6328_v17 }
 0xa2c   : > { %v1831_v49 = vmul.f32 %v1751_v43, %v6330_v18  ;;  %v11486_v23 = vmax.f32 %v1449_v37, 0.0  ;;  %v1448_v25 = vmin.f32 %v1400_v53, %v1432_v51  ;;  %v1451_v31 = vmin.f32 %v1403_v46, %v1435_v20  ;;  %v14300_v53 = vld [vmem:[#allocation47_spill] sm:$0xff] }
 0xa2d   : > { %v1658_v26 = vmin.f32 %v1610_v63, %v1642_v59  ;;  %v1657_v29 = vmin.f32 %v1609_v2, %v1641_v1  ;;  %v1671_v3 = vmax.f32 %v1655_v12, 0.0  ;;  %v1656_v35 = vmin.f32 %v1608_v45, %v1640_v30 }
 0xa2e   : > { %vm1943_vm14 = vcmp.gt.f32.partialorder %v14298_v9, -1e+29  ;;  %v1659_v7 = vmin.f32 %v1611_v15, %v1643_v39  ;;  %v1817_v6 = vadd.f32 %v1801_v52, %v6334_v21  ;;  %v1849_v47 = vadd.f32 %v1833_v4, %v6336_v22 }
 0xa2f   : > { %v1802_v0 = vmul.f32 %v10995_v34, %v6328_v17  ;;  %v1479_v56 = vadd.f32 %v1463_v24, %v1271_v14  ;;  %v1834_v37 = vmul.f32 %v10995_v34, %v6330_v18  ;;  %v1815_v46 = vadd.f32 %v1799_v8, %v6334_v21 }
 0xa30   : > { %v1847_v59 = vadd.f32 %v1831_v49, %v6336_v22  ;;  %v11497_v20 = vmax.f32 %v1448_v25, 0.0  ;;  %v1800_v51 = vmul.f32 %v14300_v53, %v6328_v17  ;;  %v1832_v63 = vmul.f32 %v14300_v53, %v6330_v18 }
 0xa31   : > { %v11504_v2 = vsel %vm1943_vm14, %v14298_v9, %v1751_v43  ;;  %v11506_v1 = vmax.f32 %v1451_v31, 0.0  ;;  %v11508_v14 = vmax.f32 %v1658_v26, 0.0  ;;  %v11510_v34 = vmax.f32 %v1657_v29, 0.0  ;;  %v14305_v26 = vld [vmem:[#allocation61_spill] sm:$0xff] }
 0xa32   : > { %14299 = vst [vmem:[#allocation74_spill] sm:$0xff] %v11497_v20  ;;  %v1687_v12 = vadd.f32 %v1671_v3, %v1479_v56  ;;  %v11512_v45 = vmax.f32 %v1656_v35, 0.0  ;;  %v11514_v30 = vmax.f32 %v1659_v7, 0.0  ;;  %v1865_v15 = vmin.f32 %v1817_v6, %v1849_v47  ;;  %v14304_v7 = vld [vmem:[#allocation183_spill] sm:$0xff] }
 0xa33   : > { %14301 = vst [vmem:[#allocation32_spill] sm:$0xff] %v11506_v1  ;;  %v1818_v39 = vadd.f32 %v1802_v0, %v6334_v21  ;;  %v1850_v52 = vadd.f32 %v1834_v37, %v6336_v22  ;;  %v1863_v4 = vmin.f32 %v1815_v46, %v1847_v59  ;;  %v2007_v9 = vmul.f32 %v11504_v2, %v6328_v17  ;;  %v14306_v59 = vld [vmem:[#allocation63_spill] sm:$0xff] }
 0xa34   : > { %14302 = vst [vmem:[#allocation79_spill] sm:$0xff] %v11512_v45  ;;  %v2039_v43 = vmul.f32 %v11504_v2, %v6330_v18  ;;  %v1816_v8 = vadd.f32 %v1800_v51, %v6334_v21  ;;  %v1848_v56 = vadd.f32 %v1832_v63, %v6336_v22  ;;  %v1803_v35 = vmul.f32 %v14304_v7, %v6328_v17 }
 0xa35   : > { %14303 = vst [vmem:[#allocation39_spill] sm:$0xff] %v11514_v30  ;;  %v4613_v24 = vpop.xlane.xlu2 %4612  ;;  %v1835_v49 = vmul.f32 %v14304_v7, %v6330_v18  ;;  %v2009_v29 = vmul.f32 %v14305_v26, %v6328_v17  ;;  %v2041_v3 = vmul.f32 %v14305_v26, %v6330_v18  ;;  %v2023_v0 = vadd.f32 %v2007_v9, %v6334_v21 }
 0xa36   : > { %vm4640_vm15 = vcmp.gt.f32.partialorder %v4613_v24, -1e+29  ;;  %vm4672_vm1 = vcmp.eq.f32.partialorder %v11058_v38, %v4613_v24  ;;  %v2042_v37 = vmul.f32 %v11000_v40, %v6330_v18  ;;  %v11547_v46 = vmax.f32 %v1865_v15, 0.0 }
 0xa37   : > { %v11530_v25 = vsel %vm4640_vm15, %v4613_v24, %v11055_v33  ;;  %v4688_v31 = vsel %vm4672_vm1, -1e+30, %v11058_v38  ;;  %v2055_v33 = vadd.f32 %v2039_v43, %v6336_v22  ;;  %v2010_v38 = vmul.f32 %v11000_v40, %v6328_v17 }
 0xa38   : > { %v4704_v6 = vmul.f32 %v11530_v25, %v6328_v17  ;;  %v4736_v47 = vmul.f32 %v11530_v25, %v6330_v18  ;;  %4820 = vmax.xlane.f32.xlu0 %v4688_v31  ;;  %v2008_v53 = vmul.f32 %v14306_v59, %v6328_v17  ;;  %v1866_v24 = vmin.f32 %v1818_v39, %v1850_v52 }
 0xa39   : > { %v1879_v7 = vmax.f32 %v1863_v4, 0.0  ;;  %v1864_v9 = vmin.f32 %v1816_v8, %v1848_v56  ;;  %v2040_v43 = vmul.f32 %v14306_v59, %v6330_v18  ;;  %v1819_v31 = vadd.f32 %v1803_v35, %v6334_v21  ;;  %v14307_v56 = vld [vmem:[#allocation65_spill] sm:$0xff]  ;;  %v14309_v59 = vld [vmem:[#allocation68_spill] sm:$0xff] }
 0xa3a   : > { %v4720_v51 = vadd.f32 %v4704_v6, %v6334_v21  ;;  %v4752_v63 = vadd.f32 %v4736_v47, %v6336_v22  ;;  %v1851_v26 = vadd.f32 %v1835_v49, %v6336_v22  ;;  %v2025_v40 = vadd.f32 %v2009_v29, %v6334_v21 }
 0xa3b   : > { %v2057_v30 = vadd.f32 %v2041_v3, %v6336_v22  ;;  %v2071_v1 = vmin.f32 %v2023_v0, %v2055_v33  ;;  %v2026_v6 = vadd.f32 %v2010_v38, %v6334_v21  ;;  %v2058_v47 = vadd.f32 %v2042_v37, %v6336_v22  ;;  %v14308_v3 = vld [vmem:[#allocation103_spill] sm:$0xff] }
 0xa3c   : > { %v4768_v15 = vmin.f32 %v4720_v51, %v4752_v63  ;;  %v2024_v52 = vadd.f32 %v2008_v53, %v6334_v21  ;;  %v2056_v8 = vadd.f32 %v2040_v43, %v6336_v22  ;;  %v2011_v35 = vmul.f32 %v14307_v56, %v6328_v17 }
 0xa3d   : > { %v4615_v39 = vpop.xlane.xlu2 %4614  ;;  %vm2151_vm5 = vcmp.gt.f32.partialorder %v14308_v3, -1e+29  ;;  %v11578_v37 = vmax.f32 %v1866_v24, 0.0  ;;  %v2249_v53 = vmul.f32 %v14309_v59, %v6330_v18  ;;  %v1895_v51 = vadd.f32 %v1879_v7, %v1687_v12 }
 0xa3e   : > { %vm4641_vm3 = vcmp.gt.f32.partialorder %v4615_v39, -1e+29  ;;  %vm4673_vm4 = vcmp.eq.f32.partialorder %v11072_v28, %v4615_v39  ;;  %v4784_v4 = vmax.f32 %v4768_v15, 0.0  ;;  %v11586_v63 = vmax.f32 %v1864_v9, 0.0 }
 0xa3f   : > { %v11567_v49 = vsel %vm4641_vm3, %v4615_v39, %v11069_v32  ;;  %v4689_v29 = vsel %vm4673_vm4, -1e+30, %v11072_v28  ;;  %v2043_v32 = vmul.f32 %v14307_v56, %v6330_v18  ;;  %v2217_v28 = vmul.f32 %v14309_v59, %v6328_v17 }
 0xa40   : > { %v4705_v0 = vmul.f32 %v11567_v49, %v6328_v17  ;;  %v4737_v33 = vmul.f32 %v11567_v49, %v6330_v18  ;;  %4822 = vmax.xlane.f32.xlu0 %v4689_v29  ;;  %v11576_v38 = vadd.f32 %v4784_v4, %v11080_v42  ;;  %14310 = vst [vmem:[#allocation76_spill] sm:$0xff] %v11586_v63  ;;  %v2087_v24 = vmax.f32 %v2071_v1, 0.0 }
 0xa41   : > { %v1867_v42 = vmin.f32 %v1819_v31, %v1851_v26  ;;  %v2073_v39 = vmin.f32 %v2025_v40, %v2057_v30  ;;  %v11594_v4 = vsel %vm2151_vm5, %v14308_v3, %v11504_v2  ;;  %v2074_v56 = vmin.f32 %v2026_v6, %v2058_v47 }
 0xa42   : > { %v4721_v43 = vadd.f32 %v4705_v0, %v6334_v21  ;;  %v4753_v15 = vadd.f32 %v4737_v33, %v6336_v22  ;;  %v2072_v29 = vmin.f32 %v2024_v52, %v2056_v8  ;;  %v2027_v59 = vadd.f32 %v2011_v35, %v6334_v21 }
 0xa43   : > { %v4813_v12 = vpop.xlane.xlu0 %4812  ;;  %v2059_v9 = vadd.f32 %v2043_v32, %v6336_v22  ;;  %v11599_v0 = vadd.f32 %v2217_v28, %v6334_v21  ;;  %v11602_v30 = vadd.f32 %v2249_v53, %v6336_v22  ;;  %v2215_v2 = vmul.f32 %v11594_v4, %v6328_v17 }
 0xa44   : > { %v4769_v7 = vmin.f32 %v4721_v43, %v4753_v15  ;;  %vm4844_vm6 = vcmp.gt.f32.partialorder %v4813_v12, -1e+29  ;;  %v11616_v52 = vmax.f32 %v1867_v42, 0.0  ;;  %v11618_v8 = vmax.f32 %v2073_v39, 0.0  ;;  %v14313_v43 = vld [vmem:[#allocation36_spill] sm:$0xff] }
 0xa45   : > { %v4425_v1 = vpop.xlane.xlu2 %4424  ;;  %v4860_v31 = vsel %vm4844_vm6, %v4813_v12, %v11087_v48  ;;  %v2247_v48 = vmul.f32 %v11594_v4, %v6330_v18  ;;  %v11623_v3 = vadd.f32 %v2087_v24, %v1895_v51  ;;  %v11625_v33 = vmax.f32 %v2074_v56, 0.0 }
 0xa46   : > { %vm4442_vm7 = vcmp.gt.f32.partialorder %v4425_v1, -1e+29  ;;  %vm4474_vm8 = vcmp.eq.f32.partialorder %v11098_v36, %v4425_v1  ;;  %v4876_v26 = vmul.f32 %v4860_v31, %v6328_v17  ;;  %v4908_v40 = vmul.f32 %v4860_v31, %v6330_v18  ;;  %14311 = vst [vmem:[#allocation193_spill] sm:$0xff] %v11616_v52 }
 0xa47   : > { %v11611_v6 = vsel %vm4442_vm7, %v4425_v1, %v11051_v5  ;;  %v11614_v47 = vsel %vm4474_vm8, -1e+30, %v11098_v36  ;;  %v4785_v35 = vmax.f32 %v4769_v7, 0.0  ;;  %v11629_v36 = vmax.f32 %v2072_v29, 0.0  ;;  %v14315_v7 = vld [vmem:[#allocation72_spill] sm:$0xff] }
 0xa48   : > { %4632 = vmax.xlane.f32.xlu0 %v11614_v47  ;;  %v4892_v32 = vadd.f32 %v4876_v26, %v6334_v21  ;;  %v4924_v28 = vadd.f32 %v4908_v40, %v6336_v22  ;;  %v2075_v53 = vmin.f32 %v2027_v59, %v2059_v9  ;;  %v2218_v15 = vmul.f32 %v14313_v43, %v6328_v17  ;;  %v14314_v59 = vld [vmem:[#allocation70_spill] sm:$0xff] }
 0xa49   : > { %14312 = vst [vmem:[#allocation42_spill] sm:$0xff] %v11629_v36  ;;  %v11634_v42 = vadd.f32 %v4785_v35, %v11104_v62  ;;  %v2250_v39 = vmul.f32 %v14313_v43, %v6330_v18  ;;  %v11641_v24 = vadd.f32 %v2215_v2, %v6334_v21  ;;  %v11644_v29 = vadd.f32 %v2247_v48, %v6336_v22  ;;  %v542_v35 = vld [vmem:[%s6230_s29 + $0x60] sm:$0xff] }
 0xa4a   : > { %v4940_v56 = vmin.f32 %v4892_v32, %v4924_v28  ;;  %v2216_v12 = vmul.f32 %v14314_v59, %v6328_v17  ;;  %v2248_v62 = vmul.f32 %v14314_v59, %v6330_v18  ;;  %v2219_v9 = vmul.f32 %v14315_v7, %v6328_v17 }
 0xa4b   : > { %v4617_v1 = vpop.xlane.xlu0 %4616  ;;  %v2251_v31 = vmul.f32 %v14315_v7, %v6330_v18  ;;  %v2279_v59 = vmin.f32 %v11641_v24, %v11644_v29  ;;  %v14320_v29 = vld [vmem:[#allocation175_spill] sm:$0xff] }
 0xa4c   : > { %vm4642_vm9 = vcmp.gt.f32.partialorder %v4617_v1, -1e+29  ;;  %vm4674_vm10 = vcmp.eq.f32.partialorder %v11112_v10, %v4617_v1  ;;  %v4956_v2 = vmax.f32 %v4940_v56, 0.0 }
 0xa4d   : > { %v4421_v26 = vpop.xlane.xlu2 %4420  ;;  %v11656_v40 = vsel %vm4642_vm9, %v4617_v1, %v11109_v27  ;;  %v4690_v48 = vsel %vm4674_vm10, -1e+30, %v11112_v10  ;;  %v11670_v27 = vadd.f32 %v2218_v15, %v6334_v21  ;;  %v11673_v10 = vadd.f32 %v2250_v39, %v6336_v22  ;;  %v6111_v15 = vld [vmem:[%s6224_s23 + $0x60] sm:$0xff] }
 0xa4e   : > { %14316 = vst [vmem:[#allocation177_spill] sm:$0xff] %v11656_v40  ;;  %vm4440_vm11 = vcmp.gt.f32.partialorder %v4421_v26, -1e+29  ;;  %vm4472_vm12 = vcmp.eq.f32.partialorder %v11120_v58, %v4421_v26  ;;  %v4706_v32 = vmul.f32 %v11656_v40, %v6328_v17  ;;  %v4738_v28 = vmul.f32 %v11656_v40, %v6330_v18  ;;  %4824 = vmax.xlane.f32.xlu1 %v4690_v48 }
 0xa4f   : > { %v4972_v43 = vadd.f32 %v4956_v2, %v11123_v41  ;;  %v11667_v56 = vsel %vm4440_vm11, %v4421_v26, %v11095_v55  ;;  %v11678_v7 = vsel %vm4472_vm12, -1e+30, %v11120_v58  ;;  %v11680_v1 = vmax.f32 %v2075_v53, 0.0 }
 0xa50   : > { %14317 = vst [vmem:[#allocation77_spill] sm:$0xff] %v11667_v56  ;;  %v4815_v48 = vpop.xlane.xlu1 %4814  ;;  %v4722_v41 = vadd.f32 %v4706_v32, %v6334_v21  ;;  %v4754_v2 = vadd.f32 %v4738_v28, %v6336_v22  ;;  %4628 = vmax.xlane.f32.xlu0 %v11678_v7  ;;  %v558_v39 = vmul.f32 %v6111_v15, %v542_v35 }
 0xa51   : > { %14318 = vst [vmem:[#allocation40_spill] sm:$0xff] %v11678_v7  ;;  %5988 = vmatmul.msk.f32.vlgmr.msra.gmra.mxu2 %vm4991_vm2, %v4972_v43  ;;  %v11688_v26 = vadd.f32 %v2216_v12, %v6334_v21  ;;  %v11691_v58 = vadd.f32 %v2248_v62, %v6336_v22  ;;  %v11694_v53 = vadd.f32 %v2219_v9, %v6334_v21  ;;  %vm4845_vm13 = vcmp.gt.f32.partialorder %v4815_v48, -1e+29  ;;  %v14321_v43 = vld [vmem:[#allocation119_spill] sm:$0xff] }
 0xa52   : > { %14319 = vst [vmem:[#allocation90_spill] sm:$0xff] %v11680_v1  ;;  %v11697_v24 = vadd.f32 %v2251_v31, %v6336_v22  ;;  %v2426_v32 = vmul.f32 %v14320_v29, %v6328_v17  ;;  %v4861_v28 = vsel %vm4845_vm13, %v4815_v48, %v11130_v60  ;;  %v4770_v35 = vmin.f32 %v4722_v41, %v4754_v2  ;;  %v545_v31 = vld [vmem:[%s6230_s29 + $0x78] sm:$0xff]  ;;  %s12780_s29 = scalar_lea.vmem %s12985_s7, %s6218_s20 }
 0xa53   : > { %v2458_v12 = vmul.f32 %v14320_v29, %v6330_v18  ;;  %vm2359_vm14 = vcmp.gt.f32.partialorder %v14321_v43, -1e+29  ;;  %v4877_v62 = vmul.f32 %v4861_v28, %v6328_v17  ;;  %v4909_v9 = vmul.f32 %v4861_v28, %v6330_v18  ;;  %v4427_v15 = vpop.xlane.xlu0 %4426 }
 0xa54   : > { %vm4443_vm15 = vcmp.gt.f32.partialorder %v4427_v15, -1e+29  ;;  %vm4475_vm1 = vcmp.eq.f32.partialorder %v11144_v44, %v4427_v15  ;;  %v598_v51 = vsel %vm456_vm0, %v558_v39, 0.0  ;;  %v4786_v1 = vmax.f32 %v4770_v35, 0.0 }
 0xa55   : > { %v4893_v60 = vadd.f32 %v4877_v62, %v6334_v21  ;;  %v4925_v48 = vadd.f32 %v4909_v9, %v6336_v22  ;;  %v11713_v41 = vsel %vm4443_vm15, %v4427_v15, %v11141_v11  ;;  %v11716_v2 = vsel %vm4475_vm1, -1e+30, %v11144_v44  ;;  %v4817_v29 = vpop.xlane.xlu2 %4816  ;;  %v6112_v9 = vld [vmem:[%s6224_s23 + $0x78] sm:$0xff] }
 0xa56   : > { %14322 = vst [vmem:[#allocation88_spill] sm:$0xff] %v11713_v41  ;;  %v11719_v28 = vadd.f32 %v2426_v32, %v6334_v21  ;;  %v11723_v52 = vsel %vm2359_vm14, %v14321_v43, %v11594_v4  ;;  %4634 = vmax.xlane.f32.xlu1 %v11716_v2  ;;  %vm4846_vm3 = vcmp.gt.f32.partialorder %v4817_v29, -1e+29  ;;  %v11727_v39 = vadd.f32 %v4786_v1, %v11157_v16 }
 0xa57   : > { %14323 = vst [vmem:[#allocation80_spill] sm:$0xff] %v11716_v2  ;;  %v11730_v35 = vadd.f32 %v2458_v12, %v6336_v22  ;;  %v4941_v62 = vmin.f32 %v4893_v60, %v4925_v48  ;;  %v4862_v44 = vsel %vm4846_vm3, %v4817_v29, %v11149_v57  ;;  %v561_v15 = vmul.f32 %v6112_v9, %v545_v31 }
 0xa58   : > { %14324 = vst [vmem:[#allocation89_spill] sm:$0xff] %v11727_v39  ;;  %v14325_v4 = vmin.f32 %v11599_v0, %v11602_v30  ;;  %v4878_v36 = vmul.f32 %v4862_v44, %v6328_v17  ;;  %v4910_v16 = vmul.f32 %v4862_v44, %v6330_v18  ;;  %599 = vadd.xlane.f32.xlu0 %v598_v51  ;;  %v11743_v1 = vmax.f32 %v2279_v59, 0.0  ;;  %v14326_v59 = vld [vmem:[#allocation78_spill] sm:$0xff]  ;;  %v14327_v0 = vld [vmem:[#allocation49_spill] sm:$0xff] }
 0xa59   : > { %v2423_v57 = vmul.f32 %v11723_v52, %v6328_v17  ;;  %v2455_v12 = vmul.f32 %v11723_v52, %v6330_v18  ;;  %v4957_v31 = vmax.f32 %v4941_v62, 0.0  ;;  %v2425_v29 = vmul.f32 %v14326_v59, %v6328_v17 }
 0xa5a   : > { %v11739_v43 = vmax.f32 %v14325_v4, 0.0  ;;  %v4894_v30 = vadd.f32 %v4878_v36, %v6334_v21  ;;  %v4926_v48 = vadd.f32 %v4910_v16, %v6336_v22  ;;  %v607_v62 = vsel %vm456_vm0, %v561_v15, 0.0 }
 0xa5b   : > { %v4619_v44 = vpop.xlane.xlu1 %4618  ;;  %v4973_v9 = vadd.f32 %v4957_v31, %v11162_v61  ;;  %v2457_v4 = vmul.f32 %v14326_v59, %v6330_v18  ;;  %v11765_v16 = vadd.f32 %v2423_v57, %v6334_v21  ;;  %v11768_v51 = vadd.f32 %v2455_v12, %v6336_v22  ;;  %v14329_v31 = vld [vmem:[#allocation73_spill] sm:$0xff] }
 0xa5c   : > { %vm4643_vm4 = vcmp.gt.f32.partialorder %v4619_v44, -1e+29  ;;  %vm4675_vm5 = vcmp.eq.f32.partialorder %v11169_v13, %v4619_v44  ;;  %v4942_v36 = vmin.f32 %v4894_v30, %v4926_v48  ;;  %v4621_v15 = vpop.xlane.xlu0 %4620  ;;  %v2424_v59 = vmul.f32 %v14329_v31, %v6328_v17  ;;  %v14332_v48 = vld [vmem:[#allocation143_spill] sm:$0xff] }
 0xa5d   : > { %v11771_v60 = vsel %vm4643_vm4, %v4619_v44, %v14327_v0  ;;  %v4691_v61 = vsel %vm4675_vm5, -1e+30, %v11169_v13  ;;  %5989 = vmatmul.msk.f32.gmra.mxu2 %vm4991_vm2, %v4973_v9  ;;  %vm4644_vm0 = vcmp.gt.f32.partialorder %v4621_v15, -1e+29  ;;  %v2456_v12 = vmul.f32 %v14329_v31, %v6330_v18  ;;  %v14330_v0 = vld [vmem:[#allocation140_spill] sm:$0xff]  ;;  %v14334_v31 = vld [vmem:[#allocation181_spill] sm:$0xff] }
 0xa5e   : > { %14328 = vst [vmem:[#allocation91_spill] sm:$0xff] %v11771_v60  ;;  %v4707_v30 = vmul.f32 %v11771_v60, %v6328_v17  ;;  %v4739_v57 = vmul.f32 %v11771_v60, %v6330_v18  ;;  %4826 = vmax.xlane.f32.xlu2 %v4691_v61  ;;  %608 = vadd.xlane.f32.xlu1 %v607_v62  ;;  %v4958_v9 = vmax.f32 %v4942_v36, 0.0  ;;  %v14333_v61 = vld [vmem:[#allocation135_spill] sm:$0xff] }
 0xa5f   : > { %v11784_v13 = vsel %vm4644_vm0, %v4621_v15, %v14330_v0  ;;  %vm4676_vm6 = vcmp.eq.f32.partialorder %v14332_v48, %v4621_v15  ;;  %v4623_v44 = vpop.xlane.xlu2 %4622  ;;  %vm2567_vm7 = vcmp.gt.f32.partialorder %v14333_v61, -1e+29  ;;  %v14335_v0 = vld [vmem:[#allocation155_spill] sm:$0xff]  ;;  %v2311_v41 = vadd.f32 %v11743_v1, %v11623_v3 }
 0xa60   : > { %14331 = vst [vmem:[#allocation198_spill] sm:$0xff] %v11784_v13  ;;  %v4723_v32 = vadd.f32 %v4707_v30, %v6334_v21  ;;  %v4755_v63 = vadd.f32 %v4739_v57, %v6336_v22  ;;  %v4708_v45 = vmul.f32 %v11784_v13, %v6328_v17  ;;  %v4740_v62 = vmul.f32 %v11784_v13, %v6330_v18  ;;  %v14336_v30 = vld [vmem:[#allocation154_spill] sm:$0xff] }
 0xa61   : > { %vm4645_vm8 = vcmp.gt.f32.partialorder %v4623_v44, -1e+29  ;;  %vm4677_vm9 = vcmp.eq.f32.partialorder %v14334_v31, %v4623_v44  ;;  %v4974_v20 = vadd.f32 %v4958_v9, %v14335_v0  ;;  %v4692_v11 = vsel %vm4676_vm6, -1e+30, %v14332_v48 }
 0xa62   : > { %v4724_v15 = vadd.f32 %v4708_v45, %v6334_v21  ;;  %v4756_v36 = vadd.f32 %v4740_v62, %v6336_v22  ;;  %v11799_v60 = vsel %vm4645_vm8, %v4623_v44, %v14336_v30  ;;  %v4693_v57 = vsel %vm4677_vm9, -1e+30, %v14334_v31  ;;  %v14338_v45 = vld [vmem:[#allocation84_spill] sm:$0xff] }
 0xa63   : > { %14337 = vst [vmem:[#allocation83_spill] sm:$0xff] %v11799_v60  ;;  %v4709_v13 = vmul.f32 %v11799_v60, %v6328_v17  ;;  %v4741_v55 = vmul.f32 %v11799_v60, %v6330_v18  ;;  %4830 = vmax.xlane.f32.xlu0 %v4693_v57  ;;  %v4771_v39 = vmin.f32 %v4723_v32, %v4755_v63 }
 0xa64   : > { %v2441_v9 = vadd.f32 %v2425_v29, %v6334_v21  ;;  %v2427_v62 = vmul.f32 %v14338_v45, %v6328_v17  ;;  %v2583_v44 = vsel %vm2567_vm7, %v14333_v61, %v11723_v52  ;;  %v4772_v0 = vmin.f32 %v4724_v15, %v4756_v36 }
 0xa65   : > { %v2459_v48 = vmul.f32 %v14338_v45, %v6330_v18  ;;  %v4725_v31 = vadd.f32 %v4709_v13, %v6334_v21  ;;  %v4757_v30 = vadd.f32 %v4741_v55, %v6336_v22  ;;  %5990 = vmatmul.msk.f32.gmra.mxu2 %vm4991_vm2, %v4974_v20  ;;  %v4787_v57 = vmax.f32 %v4771_v39, 0.0  ;;  %v14339_v13 = vld [vmem:[#allocation158_spill] sm:$0xff]  ;;  %v14341_v39 = vld [vmem:[#allocation160_spill] sm:$0xff] }
 0xa66   : > { %v2473_v63 = vadd.f32 %v2457_v4, %v6336_v22  ;;  %v2487_v32 = vmin.f32 %v11765_v16, %v11768_v51  ;;  %v2440_v29 = vadd.f32 %v2424_v59, %v6334_v21  ;;  %4828 = vmax.xlane.f32.xlu2 %v4692_v11  ;;  %v4788_v52 = vmax.f32 %v4772_v0, 0.0  ;;  %v14342_v4 = vld [vmem:[#allocation157_spill] sm:$0xff]  ;;  %v14344_v59 = vld [vmem:[#allocation150_spill] sm:$0xff] }
 0xa67   : > { %v2472_v61 = vadd.f32 %v2456_v12, %v6336_v22  ;;  %v2631_v15 = vmul.f32 %v2583_v44, %v6328_v17  ;;  %v4631_v36 = vpop.xlane.xlu2 %4630  ;;  %v11824_v45 = vadd.f32 %v4787_v57, %v14339_v13  ;;  %v4773_v55 = vmin.f32 %v4725_v31, %v4757_v30  ;;  %v14345_v57 = vld [vmem:[#allocation141_spill] sm:$0xff]  ;;  %v14346_v13 = vld [vmem:[#allocation151_spill] sm:$0xff] }
 0xa68   : > { %v2663_v20 = vmul.f32 %v2583_v44, %v6330_v18  ;;  %vm4649_vm10 = vcmp.gt.f32.partialorder %v4631_v36, -1e+29  ;;  %vm4681_vm11 = vcmp.eq.f32.partialorder %v14341_v39, %v4631_v36  ;;  %v11829_v51 = vadd.f32 %v4788_v52, %v14342_v4  ;;  %v14347_v52 = vld [vmem:[#allocation93_spill] sm:$0xff] }
 0xa69   : > { %14340 = vst [vmem:[#allocation52_spill] sm:$0xff] %v11824_v45  ;;  %v2443_v11 = vadd.f32 %v2427_v62, %v6334_v21  ;;  %v2475_v16 = vadd.f32 %v2459_v48, %v6336_v22  ;;  %v11834_v12 = vsel %vm4649_vm10, %v4631_v36, %v14344_v59  ;;  %v4789_v0 = vmax.f32 %v4773_v55, 0.0  ;;  %v14348_v36 = vld [vmem:[#allocation161_spill] sm:$0xff] }
 0xa6a   : > { %14343 = vst [vmem:[#allocation95_spill] sm:$0xff] %v11829_v51  ;;  %v2489_v60 = vmin.f32 %v2441_v9, %v2473_v63  ;;  %v2634_v31 = vmul.f32 %v14345_v57, %v6328_v17  ;;  %v2666_v30 = vmul.f32 %v14345_v57, %v6330_v18  ;;  %vm2775_vm12 = vcmp.gt.f32.partialorder %v14346_v13, -1e+29 }
 0xa6b   : > { %v2633_v4 = vmul.f32 %v14347_v52, %v6328_v17  ;;  %v2665_v62 = vmul.f32 %v14347_v52, %v6330_v18  ;;  %v4697_v48 = vsel %vm4681_vm11, -1e+30, %v14341_v39  ;;  %v11847_v51 = vadd.f32 %v4789_v0, %v14348_v36 }
 0xa6c   : > { %v14350_v9 = vmin.f32 %v11670_v27, %v11673_v10  ;;  %v2503_v55 = vmax.f32 %v2487_v32, 0.0  ;;  %v2647_v57 = vadd.f32 %v2631_v15, %v6334_v21  ;;  %v2679_v45 = vadd.f32 %v2663_v20, %v6336_v22 }
 0xa6d   : > { %14349 = vst [vmem:[#allocation196_spill] sm:$0xff] %v11847_v51  ;;  %v2488_v2 = vmin.f32 %v2440_v29, %v2472_v61  ;;  %v2491_v52 = vmin.f32 %v2443_v11, %v2475_v16  ;;  %v2791_v39 = vsel %vm2775_vm12, %v14346_v13, %v2583_v44  ;;  %v14351_v0 = vmin.f32 %v11688_v26, %v11691_v58  ;;  %v14360_v16 = vld [vmem:[#allocation94_spill] sm:$0xff] }
 0xa6e   : > { %v11852_v63 = vmax.f32 %v14350_v9, 0.0  ;;  %v14353_v27 = vmin.f32 %v11694_v53, %v11697_v24  ;;  %v14355_v32 = vmin.f32 %v11719_v28, %v11730_v35  ;;  %v11874_v3 = vmax.f32 %v2489_v60, 0.0  ;;  %4838 = vmax.xlane.f32.xlu2 %v4697_v48  ;;  %v14357_v28 = vld [vmem:[#allocation172_spill] sm:$0xff] }
 0xa6f   : > { %v11862_v36 = vmax.f32 %v14351_v0, 0.0  ;;  %v2650_v1 = vadd.f32 %v2634_v31, %v6334_v21  ;;  %v2682_v44 = vadd.f32 %v2666_v30, %v6336_v22  ;;  %v2649_v26 = vadd.f32 %v2633_v4, %v6334_v21  ;;  %v11880_v29 = vpop.xlane.xlu2 %4626 }
 0xa70   : > { %v11867_v10 = vmax.f32 %v14353_v27, 0.0  ;;  %v11872_v15 = vmax.f32 %v14355_v32, 0.0  ;;  %v2681_v58 = vadd.f32 %v2665_v62, %v6336_v22  ;;  %14356 = vst [vmem:[#allocation192_spill] sm:$0xff] %v11880_v29  ;;  %v2519_v53 = vadd.f32 %v2503_v55, %v2311_v41  ;;  %v14362_v62 = vld [vmem:[#allocation142_spill] sm:$0xff] }
 0xa71   : > { %14352 = vst [vmem:[#allocation75_spill] sm:$0xff] %v11862_v36  ;;  %v2695_v24 = vmin.f32 %v2647_v57, %v2679_v45  ;;  %v2839_v61 = vmul.f32 %v2791_v39, %v6328_v17  ;;  %vm4679_vm13 = vcmp.eq.f32.partialorder %v14357_v28, %v11880_v29  ;;  %v11885_v35 = vmax.f32 %v2488_v2, 0.0  ;;  %v14361_v45 = vld [vmem:[#allocation98_spill] sm:$0xff]  ;;  %v14363_v57 = vld [vmem:[#allocation99_spill] sm:$0xff] }
 0xa72   : > { %14354 = vst [vmem:[#allocation60_spill] sm:$0xff] %v11867_v10  ;;  %v11887_v60 = vmax.f32 %v2491_v52, 0.0  ;;  %v2871_v20 = vmul.f32 %v2791_v39, %v6330_v18  ;;  %v4695_v11 = vsel %vm4679_vm13, -1e+30, %v14357_v28  ;;  %v2632_v31 = vmul.f32 %v14360_v16, %v6328_v17  ;;  %v14367_v10 = vld [vmem:[#allocation105_spill] sm:$0xff] }
 0xa73   : > { %14358 = vst [vmem:[#allocation82_spill] sm:$0xff] %v11885_v35  ;;  %v2664_v41 = vmul.f32 %v14360_v16, %v6330_v18  ;;  %v2635_v30 = vmul.f32 %v14361_v45, %v6328_v17  ;;  %v2667_v13 = vmul.f32 %v14361_v45, %v6330_v18  ;;  %4834 = vmax.xlane.f32.xlu0 %v4695_v11  ;;  %v2711_v55 = vmax.f32 %v2695_v24, 0.0  ;;  %v14366_v45 = vld [vmem:[#allocation144_spill] sm:$0xff] }
 0xa74   : > { %14359 = vst [vmem:[#allocation97_spill] sm:$0xff] %v11887_v60  ;;  %v2698_v2 = vmin.f32 %v2650_v1, %v2682_v44  ;;  %v2697_v4 = vmin.f32 %v2649_v26, %v2681_v58  ;;  %v2842_v48 = vmul.f32 %v14362_v62, %v6328_v17  ;;  %v2874_v9 = vmul.f32 %v14362_v62, %v6330_v18  ;;  %v14364_v1 = vld [vmem:[#allocation96_spill] sm:$0xff]  ;;  %v14365_v58 = vld [vmem:[#allocation167_spill] sm:$0xff] }
 0xa75   : > { %v2841_v52 = vmul.f32 %v14363_v57, %v6328_v17  ;;  %v2873_v0 = vmul.f32 %v14363_v57, %v6330_v18  ;;  %v2855_v27 = vadd.f32 %v2839_v61, %v6334_v21  ;;  %v2887_v32 = vadd.f32 %v2871_v20, %v6336_v22 }
 0xa76   : > { %v2840_v44 = vmul.f32 %v14364_v1, %v6328_v17  ;;  %v2872_v26 = vmul.f32 %v14364_v1, %v6330_v18  ;;  %vm2983_vm14 = vcmp.gt.f32.partialorder %v14365_v58, -1e+29  ;;  %v2648_v24 = vadd.f32 %v2632_v31, %v6334_v21 }
 0xa77   : > { %v2680_v28 = vadd.f32 %v2664_v41, %v6336_v22  ;;  %v2651_v11 = vadd.f32 %v2635_v30, %v6334_v21  ;;  %v2683_v16 = vadd.f32 %v2667_v13, %v6336_v22  ;;  %v2858_v61 = vadd.f32 %v2842_v48, %v6334_v21  ;;  %v606_v1 = vpop.xlane.xlu2 %605 }
 0xa78   : > { %v2890_v20 = vadd.f32 %v2874_v9, %v6336_v22  ;;  %v3050_v62 = vmul.f32 %v14366_v45, %v6328_v17  ;;  %v3082_v57 = vmul.f32 %v14366_v45, %v6330_v18  ;;  %v2857_v29 = vadd.f32 %v2841_v52, %v6334_v21 }
 0xa79   : > { %v11926_v31 = vsel %vm2983_vm14, %v14365_v58, %v2791_v39  ;;  %v775_v41 = vmul.f32 %v6328_v17, %v606_v1  ;;  %v809_v30 = vmul.f32 %v6330_v18, %v606_v1  ;;  %v2889_v13 = vadd.f32 %v2873_v0, %v6336_v22 }
 0xa7a   : > { %v2903_v48 = vmin.f32 %v2855_v27, %v2887_v32  ;;  %v2856_v9 = vadd.f32 %v2840_v44, %v6334_v21  ;;  %v2888_v60 = vadd.f32 %v2872_v26, %v6336_v22  ;;  %v2843_v45 = vmul.f32 %v14367_v10, %v6328_v17 }
 0xa7b   : > { %v2875_v52 = vmul.f32 %v14367_v10, %v6330_v18  ;;  %v792_v39 = vadd.f32 %v6334_v21, %v775_v41  ;;  %v826_v58 = vadd.f32 %v6336_v22, %v809_v30  ;;  %v3066_v35 = vadd.f32 %v3050_v62, %v6334_v21 }
 0xa7c   : > { %v3098_v1 = vadd.f32 %v3082_v57, %v6336_v22  ;;  %v3047_v0 = vmul.f32 %v11926_v31, %v6328_v17  ;;  %v3079_v27 = vmul.f32 %v11926_v31, %v6330_v18  ;;  %v2696_v32 = vmin.f32 %v2648_v24, %v2680_v28 }
 0xa7d   : > { %v2699_v44 = vmin.f32 %v2651_v11, %v2683_v16  ;;  %v2906_v26 = vmin.f32 %v2858_v61, %v2890_v20  ;;  %v842_v51 = vmin.f32 %v792_v39, %v826_v58  ;;  %v11945_v36 = vmax.f32 %v2698_v2, 0.0 }
 0xa7e   : > { %v11947_v10 = vmax.f32 %v2697_v4, 0.0  ;;  %v2905_v41 = vmin.f32 %v2857_v29, %v2889_v13  ;;  %v2919_v30 = vmax.f32 %v2903_v48, 0.0  ;;  %v2904_v56 = vmin.f32 %v2856_v9, %v2888_v60  ;;  %v14369_v60 = vld [vmem:[#allocation26_spill] sm:$0xff] }
 0xa7f   : > { %v11950_v62 = vadd.f32 %v2843_v45, %v6334_v21  ;;  %v11953_v57 = vadd.f32 %v2875_v52, %v6336_v22  ;;  %v11955_v7 = vmax.f32 %v842_v51, 0.0  ;;  %v2727_v40 = vadd.f32 %v2711_v55, %v2519_v53  ;;  %v14370_v51 = vld [vmem:[#allocation145_spill] sm:$0xff]  ;;  %v14371_v48 = vld [vmem:[#allocation114_spill] sm:$0xff] }
 0xa80   : > { %v3114_v24 = vmin.f32 %v3066_v35, %v3098_v1  ;;  %v3063_v28 = vadd.f32 %v3047_v0, %v6334_v21  ;;  %v3095_v2 = vadd.f32 %v3079_v27, %v6336_v22  ;;  %v11959_v11 = vmax.f32 %v2696_v32, 0.0  ;;  %v14372_v1 = vld [vmem:[#allocation106_spill] sm:$0xff] }
 0xa81   : > { %v11961_v4 = vmax.f32 %v2699_v44, 0.0  ;;  %v11963_v29 = vmax.f32 %v2906_v26, 0.0  ;;  %v1066_v16 = vadd.f32 %v14369_v60, %v11955_v7  ;;  %v11967_v61 = vmax.f32 %v2905_v41, 0.0  ;;  %v14373_v32 = vld [vmem:[#allocation30_spill] sm:$0xff] }
 0xa82   : > { %v11969_v20 = vadd.f32 %v2919_v30, %v2727_v40  ;;  %v3258_v53 = vmul.f32 %v14370_v51, %v6328_v17  ;;  %v3290_v35 = vmul.f32 %v14370_v51, %v6330_v18  ;;  %v11975_v55 = vmax.f32 %v2904_v56, 0.0  ;;  %v14376_v51 = vld [vmem:[#allocation45_spill] sm:$0xff] }
 0xa83   : > { %14368 = vst [vmem:[#allocation188_spill] sm:$0xff] %v11961_v4  ;;  %v3049_v9 = vmul.f32 %v14371_v48, %v6328_v17  ;;  %v1274_v45 = vadd.f32 %v11424_v50, %v1066_v16  ;;  %v4819_v52 = vpop.xlane.xlu1 %4818  ;;  %v11982_v39 = vmax.f32 %v3114_v24, 0.0  ;;  %v3081_v40 = vmul.f32 %v14371_v48, %v6330_v18  ;;  %v14375_v16 = vld [vmem:[#allocation189_spill] sm:$0xff] }
 0xa84   : > { %v3111_v58 = vmin.f32 %v3063_v28, %v3095_v2  ;;  %vm4847_vm15 = vcmp.gt.f32.partialorder %v4819_v52, -1e+29  ;;  %v3048_v56 = vmul.f32 %v14372_v1, %v6328_v17  ;;  %v3080_v0 = vmul.f32 %v14372_v1, %v6330_v18  ;;  %v14374_v28 = vld [vmem:[#allocation148_spill] sm:$0xff] }
 0xa85   : > { %v1482_v27 = vadd.f32 %v11482_v54, %v1274_v45  ;;  %v4863_v44 = vsel %vm4847_vm15, %v4819_v52, %v14373_v32  ;;  %v3274_v50 = vadd.f32 %v3258_v53, %v6334_v21  ;;  %v3306_v26 = vadd.f32 %v3290_v35, %v6336_v22 }
 0xa86   : > { %v4879_v41 = vmul.f32 %v4863_v44, %v6328_v17  ;;  %v4911_v30 = vmul.f32 %v4863_v44, %v6330_v18  ;;  %v11997_v24 = vadd.f32 %v3049_v9, %v6334_v21  ;;  %v3466_v2 = vmul.f32 %v14374_v28, %v6328_v17 }
 0xa87   : > { %v3498_v60 = vmul.f32 %v14374_v28, %v6330_v18  ;;  %v1690_v54 = vadd.f32 %v11508_v14, %v1482_v27  ;;  %vm3191_vm1 = vcmp.gt.f32.partialorder %v14375_v16, -1e+29  ;;  %v3674_v53 = vmul.f32 %v14376_v51, %v6328_v17 }
 0xa88   : > { %v4895_v35 = vadd.f32 %v4879_v41, %v6334_v21  ;;  %v4927_v48 = vadd.f32 %v4911_v30, %v6336_v22  ;;  %v12010_v9 = vadd.f32 %v3081_v40, %v6336_v22  ;;  %v12012_v45 = vmax.f32 %v3111_v58, 0.0 }
 0xa89   : > { %v3706_v52 = vmul.f32 %v14376_v51, %v6330_v18  ;;  %v1898_v1 = vadd.f32 %v11578_v37, %v1690_v54  ;;  %v12018_v14 = vadd.f32 %v3048_v56, %v6334_v21  ;;  %v12021_v27 = vadd.f32 %v3080_v0, %v6336_v22  ;;  %v14377_v56 = vld [vmem:[#allocation195_spill] sm:$0xff]  ;;  %v14378_v54 = vld [vmem:[#allocation20_spill] sm:$0xff] }
 0xa8a   : > { %v3322_v32 = vmin.f32 %v3274_v50, %v3306_v26  ;;  %v4943_v44 = vmin.f32 %v4895_v35, %v4927_v48  ;;  %v12025_v41 = vsel %vm3191_vm1, %v14375_v16, %v11926_v31  ;;  %v3482_v40 = vadd.f32 %v3466_v2, %v6334_v21  ;;  %v14382_v48 = vld [vmem:[#allocation28_spill] sm:$0xff] }
 0xa8b   : > { %v3514_v58 = vadd.f32 %v3498_v60, %v6336_v22  ;;  %v2106_v30 = vadd.f32 %v11625_v33, %v1898_v1  ;;  %v4625_v28 = vpop.xlane.xlu1 %4624  ;;  %v3690_v37 = vadd.f32 %v3674_v53, %v6334_v21  ;;  %v3722_v50 = vadd.f32 %v3706_v52, %v6336_v22  ;;  %v14380_v60 = vld [vmem:[#allocation134_spill] sm:$0xff]  ;;  %v14381_v53 = vld [vmem:[#allocation165_spill] sm:$0xff] }
 0xa8c   : > { %vm4646_vm3 = vcmp.gt.f32.partialorder %v4625_v28, -1e+29  ;;  %vm4678_vm4 = vcmp.eq.f32.partialorder %v14377_v56, %v4625_v28  ;;  %v4959_v0 = vmax.f32 %v4943_v44, 0.0  ;;  %v3882_v16 = vmul.f32 %v14380_v60, %v6328_v17 }
 0xa8d   : > { %v2314_v26 = vadd.f32 %v11852_v63, %v2106_v30  ;;  %v12035_v31 = vsel %vm4646_vm3, %v4625_v28, %v14378_v54  ;;  %v4694_v2 = vsel %vm4678_vm4, -1e+30, %v14377_v56  ;;  %v3051_v63 = vmul.f32 %v14382_v48, %v6328_v17  ;;  %v14383_v28 = vld [vmem:[#allocation179_spill] sm:$0xff] }
 0xa8e   : > { %14379 = vst [vmem:[#allocation130_spill] sm:$0xff] %v12035_v31  ;;  %v4710_v33 = vmul.f32 %v12035_v31, %v6328_v17  ;;  %v4742_v51 = vmul.f32 %v12035_v31, %v6330_v18  ;;  %4832 = vmax.xlane.f32.xlu1 %v4694_v2  ;;  %v4975_v35 = vadd.f32 %v4959_v0, %v14381_v53  ;;  %v3338_v30 = vmax.f32 %v3322_v32, 0.0 }
 0xa8f   : > { %v3083_v52 = vmul.f32 %v14382_v48, %v6330_v18  ;;  %v3914_v1 = vmul.f32 %v14380_v60, %v6330_v18  ;;  %v2522_v44 = vadd.f32 %v11872_v15, %v2314_v26  ;;  %v4090_v56 = vmul.f32 %v14383_v28, %v6328_v17 }
 0xa90   : > { %v4726_v54 = vadd.f32 %v4710_v33, %v6334_v21  ;;  %v4758_v2 = vadd.f32 %v4742_v51, %v6336_v22  ;;  %5991 = vmatmul.msk.f32.gmra.mxu2 %vm4991_vm2, %v4975_v35  ;;  %v3255_v0 = vmul.f32 %v12025_v41, %v6328_v17  ;;  %v3287_v53 = vmul.f32 %v12025_v41, %v6330_v18 }
 0xa91   : > { %v4122_v60 = vmul.f32 %v14383_v28, %v6330_v18  ;;  %v2730_v15 = vadd.f32 %v11945_v36, %v2522_v44  ;;  %v3530_v32 = vmin.f32 %v3482_v40, %v3514_v58  ;;  %v3738_v26 = vmin.f32 %v3690_v37, %v3722_v50 }
 0xa92   : > { %v3898_v48 = vadd.f32 %v3882_v16, %v6334_v21  ;;  %v4774_v33 = vmin.f32 %v4726_v54, %v4758_v2  ;;  %v3930_v51 = vadd.f32 %v3914_v1, %v6336_v22  ;;  %v4298_v35 = vmul.f32 %v11051_v5, %v6328_v17 }
 0xa93   : > { %v4330_v13 = vmul.f32 %v11051_v5, %v6330_v18  ;;  %v603_v31 = vpop.xlane.xlu1 %602  ;;  %v2938_v4 = vadd.f32 %v11963_v29, %v2730_v15  ;;  %v4106_v28 = vadd.f32 %v4090_v56, %v6334_v21  ;;  %v4138_v37 = vadd.f32 %v4122_v60, %v6336_v22 }
 0xa94   : > { %v774_v36 = vmul.f32 %v6328_v17, %v603_v31  ;;  %v808_v40 = vmul.f32 %v6330_v18, %v603_v31  ;;  %v4790_v58 = vmax.f32 %v4774_v33, 0.0  ;;  %v4506_v50 = vmul.f32 %v11611_v6, %v6328_v17  ;;  %v14385_v33 = vld [vmem:[#allocation123_spill] sm:$0xff] }
 0xa95   : > { %v4538_v16 = vmul.f32 %v11611_v6, %v6330_v18  ;;  %v3146_v5 = vadd.f32 %v11982_v39, %v2938_v4  ;;  %v3546_v1 = vmax.f32 %v3530_v32, 0.0  ;;  %v3946_v31 = vmin.f32 %v3898_v48, %v3930_v51  ;;  %v14386_v51 = vld [vmem:[#allocation101_spill] sm:$0xff] }
 0xa96   : > { %v791_v29 = vadd.f32 %v6334_v21, %v774_v36  ;;  %v825_v44 = vadd.f32 %v6336_v22, %v808_v40  ;;  %v12083_v56 = vadd.f32 %v4790_v58, %v11416_v19  ;;  %v4314_v54 = vadd.f32 %v4298_v35, %v6334_v21 }
 0xa97   : > { %v4346_v2 = vadd.f32 %v4330_v13, %v6336_v22  ;;  %v3354_v60 = vadd.f32 %v3338_v30, %v3146_v5  ;;  %v12088_v15 = vadd.f32 %v3051_v63, %v6334_v21  ;;  %v3257_v4 = vmul.f32 %v14385_v33, %v6328_v17 }
 0xa98   : > { %14384 = vst [vmem:[#allocation136_spill] sm:$0xff] %v12083_v56  ;;  %v3754_v39 = vmax.f32 %v3738_v26, 0.0  ;;  %v841_v32 = vmin.f32 %v791_v29, %v825_v44  ;;  %v4154_v36 = vmin.f32 %v4106_v28, %v4138_v37  ;;  %v4522_v40 = vadd.f32 %v4506_v50, %v6334_v21 }
 0xa99   : > { %v4554_v19 = vadd.f32 %v4538_v16, %v6336_v22  ;;  %v3562_v58 = vadd.f32 %v3546_v1, %v3354_v60  ;;  %v3289_v48 = vmul.f32 %v14385_v33, %v6330_v18  ;;  %v3271_v13 = vadd.f32 %v3255_v0, %v6334_v21  ;;  %v14387_v16 = vld [vmem:[#allocation24_spill] sm:$0xff]  ;;  %v14388_v0 = vld [vmem:[#allocation182_spill] sm:$0xff]  ;;  %v14389_v33 = vld [vmem:[#allocation67_spill] sm:$0xff] }
 0xa9a   : > { %v3303_v30 = vadd.f32 %v3287_v53, %v6336_v22  ;;  %v12098_v63 = vmax.f32 %v841_v32, 0.0  ;;  %v3256_v35 = vmul.f32 %v14386_v51, %v6328_v17  ;;  %v3962_v26 = vmax.f32 %v3946_v31, 0.0  ;;  %v14390_v32 = vld [vmem:[#allocation55_spill] sm:$0xff] }
 0xa9b   : > { %v4362_v5 = vmin.f32 %v4314_v54, %v4346_v2  ;;  %v3770_v28 = vadd.f32 %v3754_v39, %v3562_v58  ;;  %v3099_v37 = vadd.f32 %v3083_v52, %v6336_v22  ;;  %v3288_v50 = vmul.f32 %v14386_v51, %v6330_v18 }
 0xa9c   : > { %v3465_v1 = vmul.f32 %v14387_v16, %v6328_v17  ;;  %v1065_v29 = vadd.f32 %v14388_v0, %v12098_v63  ;;  %5984 = vmatmul.msk.f32.vlgmr.msrb.gmra.mxu3 %vm4991_vm2, %v12098_v63  ;;  %v3497_v53 = vmul.f32 %v14387_v16, %v6330_v18  ;;  %v4170_v44 = vmax.f32 %v4154_v36, 0.0  ;;  %v14391_v16 = vld [vmem:[#allocation170_spill] sm:$0xff] }
 0xa9d   : > { %v4570_v31 = vmin.f32 %v4522_v40, %v4554_v19  ;;  %v3978_v54 = vadd.f32 %v3962_v26, %v3770_v28  ;;  %v3273_v52 = vadd.f32 %v3257_v4, %v6334_v21  ;;  %v3305_v2 = vadd.f32 %v3289_v48, %v6336_v22 }
 0xa9e   : > { %v3319_v60 = vmin.f32 %v3271_v13, %v3303_v30  ;;  %v1273_v39 = vadd.f32 %v14389_v33, %v1065_v29  ;;  %vm3399_vm5 = vcmp.gt.f32.partialorder %v14390_v32, -1e+29  ;;  %v3272_v58 = vadd.f32 %v3256_v35, %v6334_v21 }
 0xa9f   : > { %v4378_v51 = vmax.f32 %v4362_v5, 0.0  ;;  %v4186_v0 = vadd.f32 %v4170_v44, %v3978_v54  ;;  %v3304_v56 = vadd.f32 %v3288_v50, %v6336_v22  ;;  %v3259_v36 = vmul.f32 %v14391_v16, %v6328_v17 }
 0xaa0   : > { %v3291_v40 = vmul.f32 %v14391_v16, %v6330_v18  ;;  %v1481_v4 = vadd.f32 %v11486_v23, %v1273_v39  ;;  %v3481_v19 = vadd.f32 %v3465_v1, %v6334_v21  ;;  %v3513_v48 = vadd.f32 %v3497_v53, %v6336_v22 }
 0xaa1   : > { %v4394_v13 = vadd.f32 %v4378_v51, %v4186_v0  ;;  %v4586_v30 = vmax.f32 %v4570_v31, 0.0  ;;  %v14392_v35 = vmin.f32 %v11950_v62, %v11953_v57  ;;  %v3113_v5 = vmin.f32 %v11997_v24, %v12010_v9  ;;  %v14394_v31 = vld [vmem:[#allocation128_spill] sm:$0xff] }
 0xaa2   : > { %v12135_v28 = vsel %vm3399_vm5, %v14390_v32, %v12025_v41  ;;  %v1689_v23 = vadd.f32 %v11510_v34, %v1481_v4  ;;  %v3143_v50 = vadd.f32 %v12012_v45, %v11969_v20  ;;  %v3112_v1 = vmin.f32 %v12018_v14, %v12021_v27  ;;  %v14393_v27 = vld [vmem:[#allocation126_spill] sm:$0xff] }
 0xaa3   : > { %v12129_v26 = vmax.f32 %v14392_v35, 0.0  ;;  %v3115_v29 = vmin.f32 %v12088_v15, %v3099_v37  ;;  %v12143_v62 = vadd.f32 %v4586_v30, %v4394_v13  ;;  %v3321_v57 = vmin.f32 %v3273_v52, %v3305_v2  ;;  %v14397_v13 = vld [vmem:[#allocation37_spill] sm:$0xff] }
 0xaa4   : > { %v3335_v53 = vmax.f32 %v3319_v60, 0.0  ;;  %v3320_v44 = vmin.f32 %v3272_v58, %v3304_v56  ;;  %v1897_v24 = vadd.f32 %v11547_v46, %v1689_v23  ;;  %5985 = vmatmul.msk.f32.gmra.mxu3 %vm4991_vm2, %v11955_v7  ;;  %v3463_v34 = vmul.f32 %v12135_v28, %v6328_v17 }
 0xaa5   : > { %v12151_v20 = vadd.f32 %v3259_v36, %v6334_v21  ;;  %v12154_v9 = vadd.f32 %v3291_v40, %v6336_v22  ;;  %v3529_v45 = vmin.f32 %v3481_v19, %v3513_v48  ;;  %v3495_v14 = vmul.f32 %v12135_v28, %v6330_v18 }
 0xaa6   : > { %v3673_v41 = vmul.f32 %v14393_v27, %v6328_v17  ;;  %v3705_v46 = vmul.f32 %v14393_v27, %v6330_v18  ;;  %v2105_v56 = vadd.f32 %v11618_v8, %v1897_v24  ;;  %v3129_v15 = vmax.f32 %v3113_v5, 0.0 }
 0xaa7   : > { %v12163_v37 = vmax.f32 %v3112_v1, 0.0  ;;  %v3881_v54 = vmul.f32 %v14394_v31, %v6328_v17  ;;  %v3913_v52 = vmul.f32 %v14394_v31, %v6330_v18  ;;  %v12169_v2 = vmax.f32 %v3115_v29, 0.0  ;;  %v14399_v29 = vld [vmem:[#allocation138_spill] sm:$0xff] }
 0xaa8   : > { %v3337_v60 = vmax.f32 %v3321_v57, 0.0  ;;  %v12171_v33 = vadd.f32 %v3335_v53, %v3143_v50  ;;  %v2313_v39 = vadd.f32 %v11739_v43, %v2105_v56  ;;  %v12175_v32 = vadd.f32 %v3463_v34, %v6334_v21  ;;  %v14396_v43 = vld [vmem:[#allocation113_spill] sm:$0xff] }
 0xaa9   : > { %v12177_v8 = vmax.f32 %v3320_v44, 0.0  ;;  %v3323_v58 = vmin.f32 %v12151_v20, %v12154_v9  ;;  %v3545_v51 = vmax.f32 %v3529_v45, 0.0  ;;  %v12182_v0 = vadd.f32 %v3495_v14, %v6336_v22 }
 0xaaa   : > { %14395 = vst [vmem:[#allocation186_spill] sm:$0xff] %v12171_v33  ;;  %v3689_v16 = vadd.f32 %v3673_v41, %v6334_v21  ;;  %v3721_v36 = vadd.f32 %v3705_v46, %v6336_v22  ;;  %v2521_v40 = vadd.f32 %v11874_v3, %v2313_v39  ;;  %v3464_v4 = vmul.f32 %v14396_v43, %v6328_v17  ;;  %v14398_v3 = vld [vmem:[#allocation108_spill] sm:$0xff] }
 0xaab   : > { %v3897_v19 = vadd.f32 %v3881_v54, %v6334_v21  ;;  %v3929_v48 = vadd.f32 %v3913_v52, %v6336_v22  ;;  %v4089_v30 = vmul.f32 %v14397_v13, %v6328_v17  ;;  %v4821_v35 = vpop.xlane.xlu0 %4820  ;;  %v3496_v5 = vmul.f32 %v14396_v43, %v6330_v18 }
 0xaac   : > { %v4121_v23 = vmul.f32 %v14397_v13, %v6330_v18  ;;  %v2729_v50 = vadd.f32 %v11947_v10, %v2521_v40  ;;  %vm4848_vm0 = vcmp.gt.f32.partialorder %v4821_v35, -1e+29  ;;  %v3467_v1 = vmul.f32 %v14398_v3, %v6328_v17 }
 0xaad   : > { %v4297_v57 = vmul.f32 %v14399_v29, %v6328_v17  ;;  %v4329_v53 = vmul.f32 %v14399_v29, %v6330_v18  ;;  %v4864_v44 = vsel %vm4848_vm0, %v4821_v35, %v11530_v25  ;;  %v3737_v24 = vmin.f32 %v3689_v16, %v3721_v36 }
 0xaae   : > { %v4880_v34 = vmul.f32 %v4864_v44, %v6328_v17  ;;  %v4912_v45 = vmul.f32 %v4864_v44, %v6330_v18  ;;  %v2937_v14 = vadd.f32 %v11967_v61, %v2729_v50  ;;  %v3945_v10 = vmin.f32 %v3897_v19, %v3929_v48  ;;  %v14400_v19 = vld [vmem:[#allocation92_spill] sm:$0xff] }
 0xaaf   : > { %v4105_v27 = vadd.f32 %v4089_v30, %v6334_v21  ;;  %v4505_v41 = vmul.f32 %v14344_v59, %v6328_v17  ;;  %v4537_v46 = vmul.f32 %v14344_v59, %v6330_v18  ;;  %v4137_v56 = vadd.f32 %v4121_v23, %v6336_v22 }
 0xab0   : > { %v4896_v25 = vadd.f32 %v4880_v34, %v6334_v21  ;;  %v4928_v31 = vadd.f32 %v4912_v45, %v6336_v22  ;;  %v3145_v54 = vadd.f32 %v3129_v15, %v2937_v14  ;;  %v4313_v52 = vadd.f32 %v4297_v57, %v6334_v21 }
 0xab1   : > { %v4345_v61 = vadd.f32 %v4329_v53, %v6336_v22  ;;  %v4713_v39 = vmul.f32 %v11834_v12, %v6328_v17  ;;  %v4745_v16 = vmul.f32 %v11834_v12, %v6330_v18  ;;  %v3499_v59 = vmul.f32 %v14398_v3, %v6330_v18 }
 0xab2   : > { %v3753_v36 = vmax.f32 %v3737_v24, 0.0  ;;  %v4944_v40 = vmin.f32 %v4896_v25, %v4928_v31  ;;  %v3353_v43 = vadd.f32 %v3337_v60, %v3145_v54  ;;  %vm3607_vm6 = vcmp.gt.f32.partialorder %v14400_v19, -1e+29  ;;  %v14401_v54 = vld [vmem:[#allocation104_spill] sm:$0xff] }
 0xab3   : > { %v3961_v48 = vmax.f32 %v3945_v10, 0.0  ;;  %v4521_v15 = vadd.f32 %v4505_v41, %v6334_v21  ;;  %v4553_v13 = vadd.f32 %v4537_v46, %v6336_v22  ;;  %v4823_v30 = vpop.xlane.xlu0 %4822  ;;  %v4153_v35 = vmin.f32 %v4105_v27, %v4137_v56 }
 0xab4   : > { %vm4849_vm7 = vcmp.gt.f32.partialorder %v4823_v30, -1e+29  ;;  %v4960_v23 = vmax.f32 %v4944_v40, 0.0  ;;  %v3561_v50 = vadd.f32 %v3545_v51, %v3353_v43  ;;  %v4361_v29 = vmin.f32 %v4313_v52, %v4345_v61  ;;  %v14402_v61 = vld [vmem:[#allocation111_spill] sm:$0xff] }
 0xab5   : > { %v4729_v57 = vadd.f32 %v4713_v39, %v6334_v21  ;;  %v4761_v3 = vadd.f32 %v4745_v16, %v6336_v22  ;;  %v4865_v53 = vsel %vm4849_vm7, %v4823_v30, %v11567_v49  ;;  %v3527_v45 = vmin.f32 %v12175_v32, %v12182_v0 }
 0xab6   : > { %v4881_v60 = vmul.f32 %v4865_v53, %v6328_v17  ;;  %v4913_v44 = vmul.f32 %v4865_v53, %v6330_v18  ;;  %v4976_v24 = vadd.f32 %v4960_v23, %v11576_v38  ;;  %v3769_v34 = vadd.f32 %v3753_v36, %v3561_v50 }
 0xab7   : > { %v12236_v14 = vadd.f32 %v3464_v4, %v6334_v21  ;;  %v12242_v51 = vsel %vm3607_vm6, %v14400_v19, %v12135_v28  ;;  %v4569_v49 = vmin.f32 %v4521_v15, %v4553_v13  ;;  %v4169_v10 = vmax.f32 %v4153_v35, 0.0 }
 0xab8   : > { %v4897_v27 = vadd.f32 %v4881_v60, %v6334_v21  ;;  %v4929_v41 = vadd.f32 %v4913_v44, %v6336_v22  ;;  %5992 = vmatmul.msk.f32.gmra.mxu2 %vm4991_vm2, %v4976_v24  ;;  %v3977_v38 = vadd.f32 %v3961_v48, %v3769_v34  ;;  %v12248_v32 = vadd.f32 %v3496_v5, %v6336_v22  ;;  %v14405_v44 = vld [vmem:[#allocation33_spill] sm:$0xff] }
 0xab9   : > { %v12251_v0 = vadd.f32 %v3467_v1, %v6334_v21  ;;  %v12254_v4 = vadd.f32 %v3499_v59, %v6336_v22  ;;  %v4777_v28 = vmin.f32 %v4729_v57, %v4761_v3  ;;  %v3671_v46 = vmul.f32 %v12242_v51, %v6328_v17  ;;  %v14406_v24 = vld [vmem:[#allocation133_spill] sm:$0xff] }
 0xaba   : > { %v4377_v56 = vmax.f32 %v4361_v29, 0.0  ;;  %v4945_v25 = vmin.f32 %v4897_v27, %v4929_v41  ;;  %v4185_v31 = vadd.f32 %v4169_v10, %v3977_v38  ;;  %v3672_v52 = vmul.f32 %v14401_v54, %v6328_v17  ;;  %v14407_v27 = vld [vmem:[#allocation137_spill] sm:$0xff] }
 0xabb   : > { %v3704_v5 = vmul.f32 %v14401_v54, %v6330_v18  ;;  %v3675_v1 = vmul.f32 %v14402_v61, %v6328_v17  ;;  %v4585_v39 = vmax.f32 %v4569_v49, 0.0  ;;  %v4633_v16 = vpop.xlane.xlu0 %4632  ;;  %v3707_v40 = vmul.f32 %v14402_v61, %v6330_v18 }
 0xabc   : > { %vm4650_vm8 = vcmp.gt.f32.partialorder %v4633_v16, -1e+29  ;;  %vm4682_vm9 = vcmp.eq.f32.partialorder %v11614_v47, %v4633_v16  ;;  %v4961_v59 = vmax.f32 %v4945_v25, 0.0  ;;  %v4393_v36 = vadd.f32 %v4377_v56, %v4185_v31  ;;  %v14410_v25 = vld [vmem:[#allocation177_spill] sm:$0xff] }
 0xabd   : > { %v4793_v43 = vmax.f32 %v4777_v28, 0.0  ;;  %v12268_v19 = vsel %vm4650_vm8, %v4633_v16, %v11611_v6  ;;  %v4698_v48 = vsel %vm4682_vm9, -1e+30, %v11614_v47  ;;  %v12276_v23 = vmax.f32 %v3527_v45, 0.0  ;;  %v14408_v28 = vld [vmem:[#allocation120_spill] sm:$0xff]  ;;  %v14412_v16 = vld [vmem:[#allocation77_spill] sm:$0xff] }
 0xabe   : > { %14403 = vst [vmem:[#allocation51_spill] sm:$0xff] %v12268_v19  ;;  %v4714_v15 = vmul.f32 %v12268_v19, %v6328_v17  ;;  %v4746_v13 = vmul.f32 %v12268_v19, %v6330_v18  ;;  %4840 = vmax.xlane.f32.xlu1 %v4698_v48  ;;  %v4977_v30 = vadd.f32 %v4961_v59, %v11634_v42  ;;  %v12283_v6 = vmax.f32 %v3323_v58, 0.0 }
 0xabf   : > { %v4601_v35 = vadd.f32 %v4585_v39, %v4393_v36  ;;  %14404 = vst [vmem:[#allocation152_spill] sm:$0xff] %v12276_v23  ;;  %v3528_v50 = vmin.f32 %v12236_v14, %v12248_v32  ;;  %v3531_v47 = vmin.f32 %v12251_v0, %v12254_v4  ;;  %v3703_v29 = vmul.f32 %v12242_v51, %v6330_v18  ;;  %v14413_v36 = vld [vmem:[#allocation174_spill] sm:$0xff]  ;;  %v14437_v23 = vld [vmem:[#allocation139_spill] sm:$0xff] }
 0xac0   : > { %v4730_v57 = vadd.f32 %v4714_v15, %v6334_v21  ;;  %v4762_v42 = vadd.f32 %v4746_v13, %v6336_v22  ;;  %5993 = vmatmul.msk.f32.gmra.mxu2 %vm4991_vm2, %v4977_v30  ;;  %v12295_v53 = vadd.f32 %v3671_v46, %v6334_v21  ;;  %v12298_v20 = vadd.f32 %v3672_v52, %v6334_v21  ;;  %v14409_v46 = vld [vmem:[#allocation124_spill] sm:$0xff] }
 0xac1   : > { %v12292_v3 = vadd.f32 %v4793_v43, %v4601_v35  ;;  %v12301_v9 = vadd.f32 %v3704_v5, %v6336_v22  ;;  %v12304_v58 = vadd.f32 %v3675_v1, %v6334_v21  ;;  %v12307_v60 = vadd.f32 %v3707_v40, %v6336_v22  ;;  %v4825_v45 = vpop.xlane.xlu1 %4824  ;;  %v14411_v1 = vld [vmem:[#allocation40_spill] sm:$0xff] }
 0xac2   : > { %vm3815_vm10 = vcmp.gt.f32.partialorder %v14405_v44, -1e+29  ;;  %v3880_v34 = vmul.f32 %v14406_v24, %v6328_v17  ;;  %v4778_v49 = vmin.f32 %v4730_v57, %v4762_v42  ;;  %v3912_v10 = vmul.f32 %v14406_v24, %v6330_v18 }
 0xac3   : > { %v3883_v41 = vmul.f32 %v14407_v27, %v6328_v17  ;;  %v3915_v38 = vmul.f32 %v14407_v27, %v6330_v18  ;;  %vm4850_vm11 = vcmp.gt.f32.partialorder %v4825_v45, -1e+29  ;;  %vm4023_vm12 = vcmp.gt.f32.partialorder %v14408_v28, -1e+29  ;;  %v4629_v54 = vpop.xlane.xlu0 %4628 }
 0xac4   : > { %v4088_v56 = vmul.f32 %v14409_v46, %v6328_v17  ;;  %v4866_v31 = vsel %vm4850_vm11, %v4825_v45, %v14410_v25  ;;  %v4794_v52 = vmax.f32 %v4778_v49, 0.0  ;;  %vm4648_vm13 = vcmp.gt.f32.partialorder %v4629_v54, -1e+29 }
 0xac5   : > { %v4882_v5 = vmul.f32 %v4866_v31, %v6328_v17  ;;  %v4914_v61 = vmul.f32 %v4866_v31, %v6330_v18  ;;  %vm4680_vm14 = vcmp.eq.f32.partialorder %v14411_v1, %v4629_v54  ;;  %v4120_v39 = vmul.f32 %v14409_v46, %v6330_v18 }
 0xac6   : > { %v12328_v59 = vsel %vm4648_vm13, %v4629_v54, %v14412_v16  ;;  %5463 = vadd.xlane.f32.xlu1 %v14413_v36  ;;  %v4696_v40 = vsel %vm4680_vm14, -1e+30, %v14411_v1  ;;  %v12333_v43 = vadd.f32 %v4794_v52, %v12143_v62  ;;  %v12336_v48 = vadd.f32 %v3703_v29, %v6336_v22  ;;  %v14418_v52 = vld [vmem:[#allocation89_spill] sm:$0xff] }
 0xac7   : > { %v3736_v15 = vmin.f32 %v12298_v20, %v12301_v9  ;;  %v4898_v13 = vadd.f32 %v4882_v5, %v6334_v21  ;;  %v4930_v30 = vadd.f32 %v4914_v61, %v6336_v22  ;;  %4836 = vmax.xlane.f32.xlu2 %v4696_v40  ;;  %v3739_v35 = vmin.f32 %v12304_v58, %v12307_v60 }
 0xac8   : > { %14414 = vst [vmem:[#allocation173_spill] sm:$0xff] %v12333_v43  ;;  %v3831_v62 = vsel %vm3815_vm10, %v14405_v44, %v12242_v51  ;;  %v3896_v57 = vadd.f32 %v3880_v34, %v6334_v21  ;;  %v3928_v29 = vadd.f32 %v3912_v10, %v6336_v22  ;;  %v3899_v42 = vadd.f32 %v3883_v41, %v6334_v21  ;;  %v14415_v51 = vld [vmem:[#allocation127_spill] sm:$0xff]  ;;  %v14416_v10 = vld [vmem:[#allocation80_spill] sm:$0xff] }
 0xac9   : > { %v3931_v20 = vadd.f32 %v3915_v38, %v6336_v22  ;;  %v12355_v9 = vsel %vm4023_vm12, %v14408_v28, %v3831_v62  ;;  %v4946_v24 = vmin.f32 %v4898_v13, %v4930_v30  ;;  %v4104_v58 = vadd.f32 %v4088_v56, %v6334_v21  ;;  %v4635_v45 = vpop.xlane.xlu1 %4634  ;;  %v14417_v28 = vld [vmem:[#allocation88_spill] sm:$0xff]  ;;  %v14419_v13 = vld [vmem:[#allocation25_spill] sm:$0xff] }
 0xaca   : > { %v4136_v60 = vadd.f32 %v4120_v39, %v6336_v22  ;;  %v4091_v44 = vmul.f32 %v14415_v51, %v6328_v17  ;;  %v4123_v34 = vmul.f32 %v14415_v51, %v6330_v18  ;;  %v3879_v49 = vmul.f32 %v3831_v62, %v6328_v17 }
 0xacb   : > { %vm4651_vm15 = vcmp.gt.f32.partialorder %v4635_v45, -1e+29  ;;  %vm4683_vm1 = vcmp.eq.f32.partialorder %v14416_v10, %v4635_v45  ;;  %v4962_v27 = vmax.f32 %v4946_v24, 0.0  ;;  %v3911_v41 = vmul.f32 %v3831_v62, %v6330_v18  ;;  %v600_v25 = vpop.xlane.xlu0 %599 }
 0xacc   : > { %v3944_v38 = vmin.f32 %v3896_v57, %v3928_v29  ;;  %v12367_v46 = vsel %vm4651_vm15, %v4635_v45, %v14417_v28  ;;  %v4699_v56 = vsel %vm4683_vm1, -1e+30, %v14416_v10  ;;  %v3947_v31 = vmin.f32 %v3899_v42, %v3931_v20  ;;  %v14420_v42 = vld [vmem:[#allocation156_spill] sm:$0xff] }
 0xacd   : > { %v4087_v54 = vmul.f32 %v12355_v9, %v6328_v17  ;;  %4842 = vmax.xlane.f32.xlu0 %v4699_v56  ;;  %v4978_v5 = vadd.f32 %v4962_v27, %v14418_v52  ;;  %v773_v61 = vmul.f32 %v6328_v17, %v600_v25  ;;  %v4152_v1 = vmin.f32 %v4104_v58, %v4136_v60  ;;  %v14423_v56 = vld [vmem:[#allocation91_spill] sm:$0xff] }
 0xace   : > { %v4107_v39 = vadd.f32 %v4091_v44, %v6334_v21  ;;  %v4139_v36 = vadd.f32 %v4123_v34, %v6336_v22  ;;  %v807_v40 = vmul.f32 %v6330_v18, %v600_v25  ;;  %5472 = vadd.xlane.f32.xlu1 %v14419_v13  ;;  %v12381_v30 = vmax.f32 %v3528_v50, 0.0  ;;  %v14421_v34 = vld [vmem:[#allocation149_spill] sm:$0xff]  ;;  %v14425_v13 = vld [vmem:[#allocation59_spill] sm:$0xff] }
 0xacf   : > { %v12386_v62 = vmax.f32 %v3531_v47, 0.0  ;;  %5994 = vmatmul.msk.f32.gmra.mxu2 %vm4991_vm2, %v4978_v5  ;;  %v790_v29 = vadd.f32 %v6334_v21, %v773_v61  ;;  %5466 = vadd.xlane.f32.xlu2 %v14420_v42  ;;  %v12393_v20 = vmax.f32 %v3736_v15, 0.0  ;;  %v12395_v24 = vmax.f32 %v3739_v35, 0.0 }
 0xad0   : > { %v12398_v14 = vadd.f32 %v3879_v49, %v6334_v21  ;;  %v824_v32 = vadd.f32 %v6336_v22, %v807_v40  ;;  %v12402_v0 = vadd.f32 %v3911_v41, %v6336_v22  ;;  %v12404_v4 = vmax.f32 %v3944_v38, 0.0  ;;  %v14422_v41 = vld [vmem:[#allocation153_spill] sm:$0xff] }
 0xad1   : > { %v12406_v50 = vmax.f32 %v3947_v31, 0.0  ;;  %v12410_v47 = vmul.f32 %v12355_v9, %v6330_v18  ;;  %v12413_v15 = vadd.f32 %v4087_v54, %v6334_v21  ;;  %v12415_v35 = vmax.f32 %v4152_v1, 0.0  ;;  %v4827_v60 = vpop.xlane.xlu2 %4826  ;;  %v609_v51 = vpop.xlane.xlu1 %608 }
 0xad2   : > { %v4155_v58 = vmin.f32 %v4107_v39, %v4139_v36  ;;  %v840_v44 = vmin.f32 %v790_v29, %v824_v32  ;;  %v4296_v45 = vmul.f32 %v14421_v34, %v6328_v17  ;;  %vm4851_vm3 = vcmp.gt.f32.partialorder %v4827_v60, -1e+29  ;;  %v14424_v39 = vld [vmem:[#allocation171_spill] sm:$0xff]  ;;  %v14426_v32 = vld [vmem:[#allocation180_spill] sm:$0xff] }
 0xad3   : > { %v776_v49 = vmul.f32 %v6328_v17, %v609_v51  ;;  %v810_v10 = vmul.f32 %v6330_v18, %v609_v51  ;;  %v4328_v27 = vmul.f32 %v14421_v34, %v6330_v18  ;;  %v4299_v38 = vmul.f32 %v14422_v41, %v6328_v17 }
 0xad4   : > { %v4867_v25 = vsel %vm4851_vm3, %v4827_v60, %v14423_v56  ;;  %v12426_v31 = vmax.f32 %v840_v44, 0.0  ;;  %v5174_v54 = vpop.f32.mrf.mxu2  ;;  %v12433_v36 = vmax.f32 %v4155_v58, 0.0  ;;  %v4331_v40 = vmul.f32 %v14422_v41, %v6330_v18  ;;  %v14428_v41 = vld [vmem:[#allocation197_spill] sm:$0xff] }
 0xad5   : > { %v4883_v52 = vmul.f32 %v4867_v25, %v6328_v17  ;;  %v4915_v5 = vmul.f32 %v4867_v25, %v6330_v18  ;;  %v793_v61 = vadd.f32 %v6334_v21, %v776_v49  ;;  %v827_v1 = vadd.f32 %v6336_v22, %v810_v10  ;;  %5469 = vadd.xlane.f32.xlu0 %v14424_v39  ;;  %v14427_v49 = vld [vmem:[#allocation164_spill] sm:$0xff] }
 0xad6   : > { %v1064_v29 = vadd.f32 %v14425_v13, %v12426_v31  ;;  %v12439_v42 = vadd.f32 1e-16, %v5174_v54  ;;  %5481 = vadd.xlane.f32.xlu1 %v14426_v32  ;;  %5983 = vmatmul.msk.f32.gmra.mxu1 %vm4991_vm2, %v12426_v31  ;;  %v12445_v60 = vadd.f32 %v4296_v45, %v6334_v21  ;;  %v4831_v34 = vpop.xlane.xlu0 %4830  ;;  %v12451_v10 = vadd.f32 %v4328_v27, %v6336_v22 }
 0xad7   : > { %v4899_v51 = vadd.f32 %v4883_v52, %v6334_v21  ;;  %v4931_v58 = vadd.f32 %v4915_v5, %v6336_v22  ;;  %v843_v44 = vmin.f32 %v793_v61, %v827_v1  ;;  %5475 = vadd.xlane.f32.xlu2 %v14427_v49  ;;  %vm4853_vm4 = vcmp.gt.f32.partialorder %v4831_v34, -1e+29  ;;  %v14429_v52 = vld [vmem:[#allocation83_spill] sm:$0xff]  ;;  %v14430_v1 = vld [vmem:[#allocation74_spill] sm:$0xff] }
 0xad8   : > { %v1272_v56 = vadd.f32 %v14428_v41, %v1064_v29  ;;  %6045 = vrcp.f32 %v12439_v42  ;;  %v12456_v25 = vadd.f32 %v4299_v38, %v6334_v21  ;;  %v4869_v5 = vsel %vm4853_vm4, %v4831_v34, %v14429_v52  ;;  %v14431_v38 = vld [vmem:[#allocation66_spill] sm:$0xff]  ;;  %v14434_v52 = vld [vmem:[#allocation35_spill] sm:$0xff] }
 0xad9   : > { %v12458_v45 = vmax.f32 %v843_v44, 0.0  ;;  %v4947_v54 = vmin.f32 %v4899_v51, %v4931_v58  ;;  %v12462_v61 = vadd.f32 %v4331_v40, %v6336_v22  ;;  %v4829_v27 = vpop.xlane.xlu2 %4828  ;;  %v4885_v13 = vmul.f32 %v4869_v5, %v6328_v17  ;;  %v14432_v40 = vld [vmem:[#allocation79_spill] sm:$0xff]  ;;  %v14433_v34 = vld [vmem:[#allocation198_spill] sm:$0xff] }
 0xada   : > { %v1480_v39 = vadd.f32 %v14430_v1, %v1272_v56  ;;  %v4917_v29 = vmul.f32 %v4869_v5, %v6330_v18  ;;  %v4504_v32 = vmul.f32 %v14412_v16, %v6328_v17  ;;  %vm4852_vm5 = vcmp.gt.f32.partialorder %v4829_v27, -1e+29 }
 0xadb   : > { %v1067_v44 = vadd.f32 %v14431_v38, %v12458_v45  ;;  %v4963_v51 = vmax.f32 %v4947_v54, 0.0  ;;  %5986 = vmatmul.msk.f32.gmra.mxu3 %vm4991_vm2, %v12458_v45  ;;  %v4868_v49 = vsel %vm4852_vm5, %v4829_v27, %v14433_v34  ;;  %v4901_v41 = vadd.f32 %v4885_v13, %v6334_v21  ;;  %v14435_v38 = vld [vmem:[#allocation52_spill] sm:$0xff] }
 0xadc   : > { %v1688_v58 = vadd.f32 %v14432_v40, %v1480_v39  ;;  %v4933_v56 = vadd.f32 %v4917_v29, %v6336_v22  ;;  %v4884_v1 = vmul.f32 %v4868_v49, %v6328_v17  ;;  %v4916_v57 = vmul.f32 %v4868_v49, %v6330_v18  ;;  %v14436_v54 = vld [vmem:[#allocation176_spill] sm:$0xff]  ;;  %v14439_v29 = vld [vmem:[#allocation178_spill] sm:$0xff] }
 0xadd   : > { %v1275_v5 = vadd.f32 %v14434_v52, %v1067_v44  ;;  %v4979_v43 = vadd.f32 %v4963_v51, %v14435_v38  ;;  %5478 = vadd.xlane.f32.xlu0 %v14436_v54  ;;  %vm4231_vm0 = vcmp.gt.f32.partialorder %v14437_v23, -1e+29  ;;  %v4360_v39 = vmin.f32 %v12445_v60, %v12451_v10  ;;  %v14438_v27 = vld [vmem:[#allocation76_spill] sm:$0xff]  ;;  %v14441_v10 = vld [vmem:[#allocation42_spill] sm:$0xff] }
 0xade   : > { %v12482_v19 = vpop.eup %6045  ;;  %v1896_v13 = vadd.f32 %v14438_v27, %v1688_v58  ;;  %5490 = vadd.xlane.f32.xlu1 %v14439_v29  ;;  %v4949_v44 = vmin.f32 %v4901_v41, %v4933_v56  ;;  %v14440_v40 = vld [vmem:[#allocation32_spill] sm:$0xff]  ;;  %v4900_v49 = vadd.f32 %v4884_v1, %v6334_v21  ;;  %v4932_v51 = vadd.f32 %v4916_v57, %v6336_v22  ;;  %v14443_v57 = vld [vmem:[#allocation39_spill] sm:$0xff] }
 0xadf   : > { %v1483_v34 = vadd.f32 %v14440_v40, %v1275_v5  ;;  %v5223_v52 = vmul.f32 %v12482_v19, %v12439_v42  ;;  %5995 = vmatmul.msk.f32.gmra.mxu2 %vm4991_vm2, %v4979_v43  ;;  %v4363_v38 = vmin.f32 %v12456_v25, %v12462_v61  ;;  %v4536_v60 = vmul.f32 %v14412_v16, %v6330_v18  ;;  %v14442_v41 = vld [vmem:[#allocation184_spill] sm:$0xff]  ;;  %v14444_v43 = vld [vmem:[#allocation75_spill] sm:$0xff] }
 0xae0   : > { %v2104_v58 = vadd.f32 %v14441_v10, %v1896_v13  ;;  %5484 = vadd.xlane.f32.xlu2 %v14442_v41  ;;  %v4965_v56 = vmax.f32 %v4949_v44, 0.0  ;;  %v12502_v5 = vadd.f32 %v4504_v32, %v6334_v21  ;;  %v5177_v27 = vpop.f32.mrf.mxu2  ;;  %v4948_v29 = vmin.f32 %v4900_v49, %v4932_v51  ;;  %v14445_v61 = vld [vmem:[#allocation196_spill] sm:$0xff]  ;;  %v14446_v10 = vld [vmem:[#allocation193_spill] sm:$0xff]  ;;  %v14447_v51 = vld [vmem:[#allocation90_spill] sm:$0xff] }
 0xae1   : > { %v1691_v1 = vadd.f32 %v14443_v57, %v1483_v34  ;;  %v5224_v54 = vsub.f32 1.0, %v5223_v52  ;;  %v12506_v33 = vadd.f32 1e-16, %v5177_v27  ;;  %v4839_v25 = vpop.xlane.xlu2 %4838  ;;  %v5498_v13 = vsel %vm4991_vm2, %v12426_v31, 0.0  ;;  %v14449_v27 = vld [vmem:[#allocation159_spill] sm:$0xff] }
 0xae2   : > { %v2312_v40 = vadd.f32 %v14444_v43, %v2104_v58  ;;  %v4981_v16 = vadd.f32 %v4965_v56, %v14445_v61  ;;  %v4964_v41 = vmax.f32 %v4948_v29, 0.0  ;;  %vm4857_vm6 = vcmp.gt.f32.partialorder %v4839_v25, -1e+29  ;;  %v14448_v58 = vld [vmem:[#allocation95_spill] sm:$0xff]  ;;  %v14451_v43 = vld [vmem:[#allocation60_spill] sm:$0xff] }
 0xae3   : > { %v1899_v44 = vadd.f32 %v14446_v10, %v1691_v1  ;;  %v5225_v32 = vmul.f32 %v12482_v19, %v5224_v54  ;;  %v12514_v34 = vadd.f32 %v4536_v60, %v6336_v22  ;;  %6047 = vrcp.f32 %v12506_v33 }
 0xae4   : > { %v4873_v49 = vsel %vm4857_vm6, %v4839_v25, %v11834_v12  ;;  %vm5228_vm7 = vweird.f32 %v12482_v19  ;;  %v4980_v56 = vadd.f32 %v4964_v41, %v14448_v58  ;;  %vm5227_vm8 = vweird.f32 %v12439_v42  ;;  %v14450_v12 = vld [vmem:[#allocation82_spill] sm:$0xff]  ;;  %v5061_v41 = vpop.f32.mrf.mxu1 }
 0xae5   : > { %v2107_v52 = vadd.f32 %v14447_v51, %v1899_v44  ;;  %v4889_v57 = vmul.f32 %v4873_v49, %v6328_v17  ;;  %v4921_v1 = vmul.f32 %v4873_v49, %v6330_v18  ;;  %5487 = vadd.xlane.f32.xlu0 %v14449_v27  ;;  %v5226_v60 = vadd.f32 %v12482_v19, %v5225_v32  ;;  %v14452_v49 = vld [vmem:[#allocation185_spill] sm:$0xff]  ;;  %vm12546_vm9 = vmor %vm5227_vm8, %vm5228_vm7 }
 0xae6   : > { %5499 = vadd.xlane.f32.xlu1 %v5498_v13  ;;  %v5233_v54 = vand.u32 2147483648, %v12439_v42  ;;  %v2520_v29 = vadd.f32 %v14450_v12, %v2312_v40  ;;  %v5231_v44 = vand.u32 2147483647, %v12439_v42  ;;  %v12537_v13 = vsel %vm4231_vm0, %v14437_v23, %v12355_v9  ;;  %v14455_v27 = vld [vmem:[#allocation97_spill] sm:$0xff] }
 0xae7   : > { %v2315_v25 = vadd.f32 %v14451_v43, %v2107_v52  ;;  %5996 = vmatmul.msk.f32.gmra.mxu2 %vm4991_vm2, %v4980_v56  ;;  %v4905_v61 = vadd.f32 %v4889_v57, %v6334_v21  ;;  %v4937_v10 = vadd.f32 %v4921_v1, %v6336_v22  ;;  %v12539_v32 = vmax.f32 %v4360_v39, 0.0 }
 0xae8   : > { %v12541_v40 = vmax.f32 %v4363_v38, 0.0  ;;  %5493 = vadd.xlane.f32.xlu2 %v14452_v49  ;;  %v2728_v42 = vadd.f32 %v11959_v11, %v2520_v29  ;;  %v4507_v52 = vmul.f32 %v14417_v28, %v6328_v17  ;;  %v4568_v23 = vmin.f32 %v12502_v5, %v12514_v34  ;;  %v5180_v39 = vpop.f32.mrf.mxu2  ;;  %v14457_v49 = vld [vmem:[#allocation187_spill] sm:$0xff] }
 0xae9   : > { %v4953_v9 = vmin.f32 %v4905_v61, %v4937_v10  ;;  %v5230_v38 = vsel %vm12546_vm9, %v12482_v19, %v5226_v60  ;;  %v6048_v58 = vpop.eup %6047  ;;  %v12558_v56 = vadd.f32 1e-16, %v5180_v39  ;;  %v5234_v57 = vor.u32 1.1754944e-38, %v5233_v54  ;;  %v14456_v54 = vld [vmem:[#allocation163_spill] sm:$0xff]  ;;  %v14458_v39 = vld [vmem:[#allocation188_spill] sm:$0xff] }
 0xaea   : > { %v2936_v1 = vadd.f32 %v11975_v55, %v2728_v42  ;;  %v2523_v11 = vadd.f32 %v14455_v27, %v2315_v25  ;;  %v5238_v12 = vmul.f32 %v6048_v58, %v12506_v33  ;;  %v5507_v43 = vsel %vm4991_vm2, %v12458_v45, 0.0 }
 0xaeb   : > { %v4969_v29 = vmax.f32 %v4953_v9, 0.0  ;;  %vm5232_vm10 = vcmp.eq.f32.partialorder %v5231_v44, 8.507059e+37  ;;  %v4712_v61 = vmul.f32 %v12328_v59, %v6328_v17  ;;  %v4744_v19 = vmul.f32 %v12328_v59, %v6330_v18 }
 0xaec   : > { %6049 = vrcp.f32 %v12558_v56  ;;  %v5235_v60 = vsel %vm5232_vm10, %v5234_v57, %v5230_v38  ;;  %vm4439_vm11 = vcmp.gt.f32.partialorder %v14456_v54, -1e+29  ;;  %v12572_v55 = vadd.f32 %v4507_v52, %v6334_v21 }
 0xaed   : > { %v4539_v25 = vmul.f32 %v14417_v28, %v6330_v18  ;;  %v5239_v10 = vsub.f32 1.0, %v5238_v12  ;;  %v4985_v44 = vadd.f32 %v4969_v29, %v12292_v3  ;;  %5496 = vadd.xlane.f32.xlu0 %v14457_v49  ;;  %v5501_v51 = vsel %vm4991_vm2, %v12098_v63, 0.0  ;;  %v5064_v29 = vpop.f32.mrf.mxu1 }
 0xaee   : > { %5508 = vadd.xlane.f32.xlu1 %v5507_v43  ;;  %v5248_v42 = vand.u32 2147483648, %v12506_v33  ;;  %v3144_v9 = vadd.f32 %v12163_v37, %v2936_v1  ;;  %v2731_v38 = vadd.f32 %v14458_v39, %v2523_v11  ;;  %v5236_v28 = vmul.f32 %v5235_v60, %v5061_v41  ;;  %v14459_v60 = vld [vmem:[#allocation3_spill] sm:$0xff] }
 0xaef   : > { %5997 = vmatmul.msk.f32.gmra.mxu2 %vm4991_vm2, %v4981_v16  ;;  %6001 = vmatmul.msk.f32.vlgmr.msra.gmra.mxu3 %vm4991_vm2, %v4985_v44  ;;  %v5240_v52 = vmul.f32 %v6048_v58, %v5239_v10  ;;  %vm5243_vm12 = vweird.f32 %v6048_v58  ;;  %v5246_v3 = vand.u32 2147483647, %v12506_v33  ;;  %v4728_v57 = vadd.f32 %v4712_v61, %v6334_v21 }
 0xaf0   : > { %v4760_v27 = vadd.f32 %v4744_v19, %v6336_v22  ;;  %5502 = vadd.xlane.f32.xlu2 %v5501_v51  ;;  %v3352_v12 = vadd.f32 %v12177_v8, %v3144_v9  ;;  %v2939_v37 = vadd.f32 %v12129_v26, %v2731_v38  ;;  %v4715_v1 = vmul.f32 %v12367_v46, %v6328_v17 }
 0xaf1   : > { %v4747_v16 = vmul.f32 %v12367_v46, %v6330_v18  ;;  %v5241_v41 = vadd.f32 %v6048_v58, %v5240_v52  ;;  %vm5242_vm13 = vweird.f32 %v12506_v33  ;;  %v5504_v43 = vsel %vm4991_vm2, %v11955_v7, 0.0 }
 0xaf2   : > { %v6050_v11 = vpop.eup %6049  ;;  %vm5244_vm14 = vmor %vm5242_vm13, %vm5243_vm12  ;;  %v5249_v61 = vor.u32 1.1754944e-38, %v5248_v42  ;;  %v3560_v8 = vadd.f32 %v12381_v30, %v3352_v12  ;;  %v3147_v26 = vadd.f32 %v12169_v2, %v2939_v37  ;;  %v5510_v10 = vmul.f32 %v5236_v28, %v14459_v60 }
 0xaf3   : > { %v5253_v19 = vmul.f32 %v6050_v11, %v12558_v56  ;;  %v5245_v44 = vsel %vm5244_vm14, %v6048_v58, %v5241_v41  ;;  %vm5247_vm15 = vcmp.eq.f32.partialorder %v5246_v3, 8.507059e+37  ;;  %v4555_v49 = vadd.f32 %v4539_v25, %v6336_v22 }
 0xaf4   : > { %v5250_v33 = vsel %vm5247_vm15, %v5249_v61, %v5245_v44  ;;  %v3768_v51 = vadd.f32 %v12393_v20, %v3560_v8  ;;  %v3355_v9 = vadd.f32 %v12283_v6, %v3147_v26  ;;  %v4731_v39 = vadd.f32 %v4715_v1, %v6334_v21  ;;  %v14462_v44 = vld [vmem:[#allocation5_spill] sm:$0xff] }
 0xaf5   : > { %v5254_v42 = vsub.f32 1.0, %v5253_v19  ;;  %5505 = vadd.xlane.f32.xlu0 %v5504_v43  ;;  %v5251_v30 = vmul.f32 %v5250_v33, %v5064_v29  ;;  %v4776_v38 = vmin.f32 %v4728_v57, %v4760_v27  ;;  %v4763_v2 = vadd.f32 %v4747_v16, %v6336_v22  ;;  %v14460_v57 = vld [vmem:[#allocation4_spill] sm:$0xff]  ;;  %v5067_v61 = vpop.f32.mrf.mxu1 }
 0xaf6   : > { %v5263_v52 = vand.u32 2147483648, %v12558_v56  ;;  %v3976_v58 = vadd.f32 %v12404_v4, %v3768_v51  ;;  %v3563_v28 = vadd.f32 %v12386_v62, %v3355_v9  ;;  %v5526_v25 = vsel %vm4991_vm2, %v5510_v10, 0.0  ;;  %v14461_v16 = vld [vmem:[#allocation192_spill] sm:$0xff] }
 0xaf7   : > { %v5255_v3 = vmul.f32 %v6050_v11, %v5254_v42  ;;  %vm5258_vm1 = vweird.f32 %v6050_v11  ;;  %v5261_v6 = vand.u32 2147483647, %v12558_v56  ;;  %v4455_v20 = vsel %vm4439_vm11, %v14456_v54, %v12537_v13 }
 0xaf8   : > { %5527 = vadd.xlane.f32.xlu2 %v5526_v25  ;;  %v5511_v27 = vmul.f32 %v5251_v30, %v14460_v57  ;;  %v4184_v12 = vadd.f32 %v12415_v35, %v3976_v58  ;;  %v3771_v4 = vadd.f32 %v12395_v24, %v3563_v28  ;;  %v4571_v62 = vmin.f32 %v12572_v55, %v4555_v49  ;;  %v4835_v35 = vpop.xlane.xlu0 %4834  ;;  %v14464_v28 = vld [vmem:[#allocation130_spill] sm:$0xff] }
 0xaf9   : > { %v5256_v37 = vadd.f32 %v6050_v11, %v5255_v3  ;;  %vm5257_vm3 = vweird.f32 %v12558_v56  ;;  %v4584_v1 = vmax.f32 %v4568_v23, 0.0  ;;  %vm4647_vm4 = vcmp.gt.f32.partialorder %v14461_v16, -1e+29 }
 0xafa   : > { %vm5259_vm5 = vmor %vm5257_vm3, %vm5258_vm1  ;;  %v5264_v54 = vor.u32 1.1754944e-38, %v5263_v52  ;;  %v4392_v41 = vadd.f32 %v12539_v32, %v4184_v12  ;;  %v3979_v29 = vadd.f32 %v12406_v50, %v3771_v4  ;;  %vm5262_vm0 = vcmp.eq.f32.partialorder %v5261_v6, 8.507059e+37  ;;  %v14466_v12 = vld [vmem:[#allocation152_spill] sm:$0xff] }
 0xafb   : > { %v5260_v43 = vsel %vm5259_vm5, %v6050_v11, %v5256_v37  ;;  %v4792_v24 = vmax.f32 %v4776_v38, 0.0  ;;  %v4779_v55 = vmin.f32 %v4731_v39, %v4763_v2  ;;  %v5529_v56 = vsel %vm4991_vm2, %v5511_v27, 0.0  ;;  %v14465_v27 = vld [vmem:[#allocation186_spill] sm:$0xff] }
 0xafc   : > { %v5265_v8 = vsel %vm5262_vm0, %v5264_v54, %v5260_v43  ;;  %v4600_v26 = vadd.f32 %v4584_v1, %v4392_v41  ;;  %v4187_v5 = vadd.f32 %v12433_v36, %v3979_v29  ;;  %v4135_v34 = vadd.f32 %v12410_v47, %v6336_v22 }
 0xafd   : > { %v4295_v32 = vmul.f32 %v12537_v13, %v6328_v17  ;;  %v4327_v50 = vmul.f32 %v12537_v13, %v6330_v18  ;;  %5530 = vadd.xlane.f32.xlu0 %v5529_v56  ;;  %v5266_v23 = vmul.f32 %v5265_v8, %v5067_v61  ;;  %vm4855_vm6 = vcmp.gt.f32.partialorder %v4835_v35, -1e+29 }
 0xafe   : > { %v12634_v11 = vadd.f32 %v4792_v24, %v4600_v26  ;;  %v4395_v19 = vadd.f32 %v12541_v40, %v4187_v5  ;;  %v4587_v60 = vmax.f32 %v4571_v62, 0.0  ;;  %v4503_v10 = vmul.f32 %v4455_v20, %v6328_v17  ;;  %v14467_v5 = vld [vmem:[#allocation136_spill] sm:$0xff] }
 0xaff   : > { %v4535_v36 = vmul.f32 %v4455_v20, %v6330_v18  ;;  %v4663_v47 = vsel %vm4647_vm4, %v14461_v16, %v4455_v20  ;;  %v5512_v49 = vmul.f32 %v5266_v23, %v14462_v44  ;;  %v14463_v13 = vmin.f32 %v12295_v53, %v12336_v48 }
 0xb00   : > { %v3943_v51 = vmin.f32 %v12398_v14, %v12402_v0  ;;  %v4603_v9 = vadd.f32 %v4587_v60, %v4395_v19  ;;  %v4795_v40 = vmax.f32 %v4779_v55, 0.0  ;;  %v4311_v39 = vadd.f32 %v4295_v32, %v6334_v21 }
 0xb01   : > { %v3751_v33 = vmax.f32 %v14463_v13, 0.0  ;;  %v4343_v42 = vadd.f32 %v4327_v50, %v6336_v22  ;;  %v4871_v30 = vsel %vm4855_vm6, %v4835_v35, %v4663_v47  ;;  %v5532_v38 = vsel %vm4991_vm2, %v5512_v49, 0.0  ;;  %v4833_v2 = vpop.xlane.xlu1 %4832 }
 0xb02   : > { %v4711_v52 = vmul.f32 %v4663_v47, %v6328_v17  ;;  %v4743_v58 = vmul.f32 %v4663_v47, %v6330_v18  ;;  %5533 = vadd.xlane.f32.xlu1 %v5532_v38  ;;  %vm4854_vm7 = vcmp.gt.f32.partialorder %v4833_v2, -1e+29  ;;  %v12653_v53 = vadd.f32 %v4795_v40, %v4603_v9 }
 0xb03   : > { %v4151_v48 = vmin.f32 %v12413_v15, %v4135_v34  ;;  %v4519_v14 = vadd.f32 %v4503_v10, %v6334_v21  ;;  %v4551_v0 = vadd.f32 %v4535_v36, %v6336_v22  ;;  %v4870_v25 = vsel %vm4854_vm7, %v4833_v2, %v14464_v28 }
 0xb04   : > { %v4887_v3 = vmul.f32 %v4871_v30, %v6328_v17  ;;  %v4919_v6 = vmul.f32 %v4871_v30, %v6330_v18  ;;  %v4886_v20 = vmul.f32 %v4870_v25, %v6328_v17  ;;  %v4918_v57 = vmul.f32 %v4870_v25, %v6330_v18 }
 0xb05   : > { %v3559_v4 = vadd.f32 %v14466_v12, %v14465_v27  ;;  %v3959_v62 = vmax.f32 %v3943_v51, 0.0  ;;  %v4359_v37 = vmin.f32 %v4311_v39, %v4343_v42  ;;  %v4727_v15 = vadd.f32 %v4711_v52, %v6334_v21  ;;  %v5070_v52 = vpop.f32.mrf.mxu1 }
 0xb06   : > { %v4759_v1 = vadd.f32 %v4743_v58, %v6336_v22  ;;  %v4902_v16 = vadd.f32 %v4886_v20, %v6334_v21  ;;  %v4934_v54 = vadd.f32 %v4918_v57, %v6336_v22  ;;  %v4167_v29 = vmax.f32 %v4151_v48, 0.0 }
 0xb07   : > { %v3767_v41 = vadd.f32 %v3751_v33, %v3559_v4  ;;  %v4567_v35 = vmin.f32 %v4519_v14, %v4551_v0  ;;  %v4903_v43 = vadd.f32 %v4887_v3, %v6334_v21  ;;  %v4935_v24 = vadd.f32 %v4919_v6, %v6336_v22  ;;  %v14468_v14 = vld [vmem:[#allocation6_spill] sm:$0xff]  ;;  %v14469_v3 = vld [vmem:[#allocation51_spill] sm:$0xff] }
 0xb08   : > { %v4950_v55 = vmin.f32 %v4902_v16, %v4934_v54  ;;  %v4375_v56 = vmax.f32 %v4359_v37, 0.0  ;;  %v4775_v26 = vmin.f32 %v4727_v15, %v4759_v1 }
 0xb09   : > { %v3975_v61 = vadd.f32 %v3959_v62, %v3767_v41  ;;  %v4583_v50 = vmax.f32 %v4567_v35, 0.0  ;;  %v4951_v23 = vmin.f32 %v4903_v43, %v4935_v24  ;;  %v14470_v41 = vld [vmem:[#allocation173_spill] sm:$0xff] }
 0xb0a   : > { %v4966_v8 = vmax.f32 %v4950_v55, 0.0  ;;  %v4791_v60 = vmax.f32 %v4775_v26, 0.0 }
 0xb0b   : > { %v4183_v32 = vadd.f32 %v4167_v29, %v3975_v61  ;;  %v4967_v36 = vmax.f32 %v4951_v23, 0.0 }
 0xb0c   : > { %v4982_v34 = vadd.f32 %v4966_v8, %v14467_v5 }
 0xb0d   : > { %v4391_v19 = vadd.f32 %v4375_v56, %v4183_v32 }
 0xb0e   : > { %5998 = vmatmul.msk.f32.gmra.mxu2 %vm4991_vm2, %v4982_v34 }
 0xb0f   : > { %v4599_v10 = vadd.f32 %v4583_v50, %v4391_v19 }
 0xb11   : > { %v4807_v47 = vadd.f32 %v4791_v60, %v4599_v10 }
 0xb13   : > { %v5183_v44 = vpop.f32.mrf.mxu2  ;;  %v4983_v13 = vadd.f32 %v4967_v36, %v4807_v47 }
 0xb14   : > { %v5184_v49 = vadd.f32 1e-16, %v5183_v44 }
 0xb16   : > { %6051 = vrcp.f32 %v5184_v49  ;;  %5999 = vmatmul.msk.f32.gmra.mxu2 %vm4991_vm2, %v4983_v13  ;;  %v5278_v40 = vand.u32 2147483648, %v5184_v49  ;;  %v5276_v42 = vand.u32 2147483647, %v5184_v49  ;;  %vm5272_vm9 = vweird.f32 %v5184_v49 }
 0xb18   : > { %v5279_v38 = vor.u32 1.1754944e-38, %v5278_v40  ;;  %vm5277_vm11 = vcmp.eq.f32.partialorder %v5276_v42, 8.507059e+37  ;;  %v5073_v40 = vpop.f32.mrf.mxu1 }
 0xb1c   : > { %v6052_v33 = vpop.eup %6051 }
 0xb1d   : > { %v5268_v51 = vmul.f32 %v6052_v33, %v5184_v49  ;;  %vm5273_vm8 = vweird.f32 %v6052_v33 }
 0xb1e   : > { %vm5274_vm10 = vmor %vm5272_vm9, %vm5273_vm8 }
 0xb1f   : > { %v5269_v9 = vsub.f32 1.0, %v5268_v51 }
 0xb21   : > { %v5270_v39 = vmul.f32 %v6052_v33, %v5269_v9 }
 0xb23   : > { %v5271_v30 = vadd.f32 %v6052_v33, %v5270_v39 }
 0xb25   : > { %v5275_v2 = vsel %vm5274_vm10, %v6052_v33, %v5271_v30 }
 0xb26   : > { %v5280_v58 = vsel %vm5277_vm11, %v5279_v38, %v5275_v2 }
 0xb27   : > { %v5281_v48 = vmul.f32 %v5280_v58, %v5070_v52 }
 0xb29   : > { %v5513_v0 = vmul.f32 %v5281_v48, %v14468_v14  ;;  %v14471_v48 = vld [vmem:[#allocation7_spill] sm:$0xff] }
 0xb2b   : > { %v5535_v28 = vsel %vm4991_vm2, %v5513_v0, 0.0 }
 0xb2c   : > { %5536 = vadd.xlane.f32.xlu2 %v5535_v28 }
 0xb31   : > { %v4841_v25 = vpop.xlane.xlu1 %4840 }
 0xb32   : > { %vm4858_vm12 = vcmp.gt.f32.partialorder %v4841_v25, -1e+29 }
 0xb33   : > { %v4874_v6 = vsel %vm4858_vm12, %v4841_v25, %v14469_v3 }
 0xb34   : > { %v4890_v20 = vmul.f32 %v4874_v6, %v6328_v17  ;;  %v4922_v57 = vmul.f32 %v4874_v6, %v6330_v18 }
 0xb36   : > { %v4906_v27 = vadd.f32 %v4890_v20, %v6334_v21  ;;  %v4938_v12 = vadd.f32 %v4922_v57, %v6336_v22 }
 0xb38   : > { %v4954_v4 = vmin.f32 %v4906_v27, %v4938_v12 }
 0xb39   : > { %v12681_v15 = vpop.xlane.xlu1 %5463 }
 0xb3a   : > { %v4837_v62 = vpop.xlane.xlu2 %4836  ;;  %v4970_v37 = vmax.f32 %v4954_v4, 0.0 }
 0xb3b   : > { %vm4856_vm13 = vcmp.gt.f32.partialorder %v4837_v62, -1e+29  ;;  %v5186_v1 = vpop.f32.mrf.mxu2 }
 0xb3c   : > { %v4872_v16 = vsel %vm4856_vm13, %v4837_v62, %v12328_v59  ;;  %v5187_v54 = vadd.f32 1e-16, %v5186_v1  ;;  %v4986_v29 = vadd.f32 %v4970_v37, %v14470_v41  ;;  %v5076_v62 = vpop.f32.mrf.mxu1  ;;  %vm5579_vm13 = vweird.f32 %v12681_v15 }
 0xb3d   : > { %v4888_v35 = vmul.f32 %v4872_v16, %v6328_v17  ;;  %v4920_v43 = vmul.f32 %v4872_v16, %v6330_v18 }
 0xb3e   : > { %6053 = vrcp.f32 %v5187_v54  ;;  %6002 = vmatmul.msk.f32.gmra.mxu3 %vm4991_vm2, %v4986_v29  ;;  %v5291_v33 = vand.u32 2147483647, %v5187_v54  ;;  %vm5287_vm1 = vweird.f32 %v5187_v54  ;;  %v14472_v29 = vld [vmem:[#allocation8_spill] sm:$0xff] }
 0xb3f   : > { %v4904_v24 = vadd.f32 %v4888_v35, %v6334_v21  ;;  %v4936_v55 = vadd.f32 %v4920_v43, %v6336_v22 }
 0xb40   : > { %v4843_v61 = vpop.xlane.xlu0 %4842  ;;  %vm5292_vm4 = vcmp.eq.f32.partialorder %v5291_v33, 8.507059e+37 }
 0xb41   : > { %vm4859_vm14 = vcmp.gt.f32.partialorder %v4843_v61, -1e+29  ;;  %v4952_v56 = vmin.f32 %v4904_v24, %v4936_v55  ;;  %v12697_v36 = vpop.xlane.xlu1 %5472 }
 0xb42   : > { %v4875_v8 = vsel %vm4859_vm14, %v4843_v61, %v12367_v46  ;;  %v12691_v59 = vpop.xlane.xlu2 %5466 }
 0xb43   : > { %v4891_v26 = vmul.f32 %v4875_v8, %v6328_v17  ;;  %v4923_v5 = vmul.f32 %v4875_v8, %v6330_v18  ;;  %v5189_v34 = vpop.f32.mrf.mxu2  ;;  %v4968_v23 = vmax.f32 %v4952_v56, 0.0  ;;  %v5293_v17 = vand.u32 2147483648, %v5187_v54 }
 0xb44   : > { %v6054_v32 = vpop.eup %6053  ;;  %v5190_v50 = vadd.f32 1e-16, %v5189_v34 }
 0xb45   : > { %v4907_v19 = vadd.f32 %v4891_v26, %v6334_v21  ;;  %v4939_v60 = vadd.f32 %v4923_v5, %v6336_v22  ;;  %v5283_v10 = vmul.f32 %v6054_v32, %v5187_v54  ;;  %v4984_v46 = vadd.f32 %v4968_v23, %v12634_v11 }
 0xb46   : > { %6055 = vrcp.f32 %v5190_v50  ;;  %vm5288_vm15 = vweird.f32 %v6054_v32  ;;  %v5294_v11 = vor.u32 1.1754944e-38, %v5293_v17  ;;  %v5306_v28 = vand.u32 2147483647, %v5190_v50 }
 0xb47   : > { %v5284_v47 = vsub.f32 1.0, %v5283_v10  ;;  %v4955_v44 = vmin.f32 %v4907_v19, %v4939_v60  ;;  %6000 = vmatmul.msk.f32.gmra.mxu2 %vm4991_vm2, %v4984_v46  ;;  %vm5289_vm3 = vmor %vm5287_vm1, %vm5288_vm15  ;;  %6057 = vrcp.f32 %v12681_v15  ;;  %vm5302_vm0 = vweird.f32 %v5190_v50 }
 0xb48   : > { %v12700_v49 = vpop.xlane.xlu0 %5469  ;;  %6059 = vrcp.f32 %v12691_v59  ;;  %vm5307_vm7 = vcmp.eq.f32.partialorder %v5306_v28, 8.507059e+37 }
 0xb49   : > { %v4971_v18 = vmax.f32 %v4955_v44, 0.0  ;;  %v5285_v13 = vmul.f32 %v6054_v32, %v5284_v47  ;;  %v12708_v2 = vpop.xlane.xlu1 %5481 }
 0xb4a   : > { %v12703_v21 = vpop.xlane.xlu2 %5475 }
 0xb4b   : > { %v4987_v22 = vadd.f32 %v4971_v18, %v12653_v53  ;;  %v5286_v51 = vadd.f32 %v6054_v32, %v5285_v13  ;;  %v5308_v53 = vand.u32 2147483648, %v5190_v50 }
 0xb4c   : > { %v6056_v9 = vpop.eup %6055 }
 0xb4d   : > { %v5298_v39 = vmul.f32 %v6056_v9, %v5190_v50  ;;  %6003 = vmatmul.msk.f32.gmra.mxu3 %vm4991_vm2, %v4987_v22  ;;  %v5290_v42 = vsel %vm5289_vm3, %v6054_v32, %v5286_v51  ;;  %vm5303_vm5 = vweird.f32 %v6056_v9  ;;  %v5309_v27 = vor.u32 1.1754944e-38, %v5308_v53  ;;  %v12717_v12 = vpop.eup %6057 }
 0xb4e   : > { %v5295_v30 = vsel %vm5292_vm4, %v5294_v11, %v5290_v42  ;;  %vm5304_vm6 = vmor %vm5302_vm0, %vm5303_vm5  ;;  %v5575_v16 = vmul.f32 %v12717_v12, %v12681_v15  ;;  %v12727_v43 = vpop.eup %6059  ;;  %vm5580_vm12 = vweird.f32 %v12717_v12  ;;  %vm5814_vm3 = vcmask 7168  }
 0xb4f   : > { %v5299_v38 = vsub.f32 1.0, %v5298_v39  ;;  %v5296_v52 = vmul.f32 %v5295_v30, %v5073_v40  ;;  %v5590_v26 = vmul.f32 %v12727_v43, %v12691_v59  ;;  %v5585_v39 = vand.u32 2147483648, %v12681_v15  ;;  %vm12756_vm14 = vmor %vm5579_vm13, %vm5580_vm12 }
 0xb50   : > { %v12710_v58 = vpop.xlane.xlu0 %5478  ;;  %v5576_v56 = vsub.f32 1.0, %v5575_v16  ;;  %vm5595_vm15 = vweird.f32 %v12727_v43  ;;  %vm5594_vm4 = vweird.f32 %v12691_v59 }
 0xb51   : > { %v5514_v14 = vmul.f32 %v5296_v52, %v14471_v48  ;;  %v5300_v0 = vmul.f32 %v6056_v9, %v5299_v38  ;;  %v12724_v41 = vpop.xlane.xlu1 %5490  ;;  %v5591_v10 = vsub.f32 1.0, %v5590_v26  ;;  %v5583_v38 = vand.u32 2147483647, %v12681_v15  ;;  %v12754_v52 = vpop.f32.mrf.mxu3  ;;  %vm12786_vm5 = vmor %vm5594_vm4, %vm5595_vm15 }
 0xb52   : > { %v5192_v25 = vpop.f32.mrf.mxu2  ;;  %v5577_v60 = vmul.f32 %v12717_v12, %v5576_v56  ;;  %v5598_v15 = vand.u32 2147483647, %v12691_v59 }
 0xb53   : > { %v5193_v3 = vadd.f32 1e-16, %v5192_v25  ;;  %v12713_v6 = vpop.xlane.xlu2 %5484  ;;  %v5538_v20 = vsel %vm4991_vm2, %v5514_v14, 0.0  ;;  %v5301_v57 = vadd.f32 %v6056_v9, %v5300_v0  ;;  %v5592_v11 = vmul.f32 %v12727_v43, %v5591_v10  ;;  %v14475_v14 = vld [vmem:[#allocation9_spill] sm:$0xff] }
 0xb54   : > { %5539 = vadd.xlane.f32.xlu0 %v5538_v20  ;;  %v5578_v51 = vadd.f32 %v12717_v12, %v5577_v60  ;;  %vm5584_vm1 = vcmp.eq.f32.partialorder %v5583_v38, 8.507059e+37  ;;  %vm5599_vm0 = vcmp.eq.f32.partialorder %v5598_v15, 8.507059e+37 }
 0xb55   : > { %6061 = vrcp.f32 %v5193_v3  ;;  %v5305_v4 = vsel %vm5304_vm6, %v6056_v9, %v5301_v57  ;;  %v5323_v32 = vand.u32 2147483648, %v5193_v3  ;;  %v5321_v19 = vand.u32 2147483647, %v5193_v3  ;;  %v5079_v9 = vpop.f32.mrf.mxu1 }
 0xb56   : > { %v5310_v37 = vsel %vm5307_vm7, %v5309_v27, %v5305_v4  ;;  %6063 = vrcp.f32 %v12700_v49  ;;  %vm5317_vm9 = vweird.f32 %v5193_v3  ;;  %v5582_v28 = vsel %vm12756_vm14, %v12717_v12, %v5578_v51 }
 0xb57   : > { %v5311_v1 = vmul.f32 %v5310_v37, %v5076_v62  ;;  %v5324_v33 = vor.u32 1.1754944e-38, %v5323_v32  ;;  %vm5322_vm11 = vcmp.eq.f32.partialorder %v5321_v19, 8.507059e+37  ;;  %v5593_v25 = vadd.f32 %v12727_v43, %v5592_v11 }
 0xb58   : > { %v12721_v54 = vpop.xlane.xlu0 %5487  ;;  %v5600_v27 = vand.u32 2147483648, %v12691_v59  ;;  %vm5609_vm7 = vweird.f32 %v12700_v49  ;;  %v5613_v32 = vand.u32 2147483647, %v12700_v49 }
 0xb59   : > { %v5515_v35 = vmul.f32 %v5311_v1, %v14472_v29  ;;  %v12739_v46 = vpop.xlane.xlu1 %5499  ;;  %v12798_v26 = vpop.f32.mrf.mxu3 }
 0xb5a   : > { %v5601_v59 = vor.u32 1.1754944e-38, %v5600_v27  ;;  %vm5614_vm13 = vcmp.eq.f32.partialorder %v5613_v32, 8.507059e+37 }
 0xb5b   : > { %v6062_v24 = vpop.eup %6061  ;;  %v12729_v55 = vpop.xlane.xlu2 %5493  ;;  %v5541_v61 = vsel %vm4991_vm2, %v5515_v35, 0.0 }
 0xb5c   : > { %v5313_v8 = vmul.f32 %v6062_v24, %v5193_v3  ;;  %5542 = vadd.xlane.f32.xlu1 %v5541_v61  ;;  %v12734_v34 = vpop.eup %6063  ;;  %vm5318_vm8 = vweird.f32 %v6062_v24  ;;  %v5586_v3 = vor.u32 1.1754944e-38, %v5585_v39  ;;  %v5597_v61 = vsel %vm12786_vm5, %v12727_v43, %v5593_v25 }
 0xb5d   : > { %v5605_v47 = vmul.f32 %v12734_v34, %v12700_v49  ;;  %vm5319_vm10 = vmor %vm5317_vm9, %vm5318_vm8  ;;  %vm5610_vm6 = vweird.f32 %v12734_v34  ;;  %v5615_v43 = vand.u32 2147483648, %v12700_v49  ;;  %v5602_v19 = vsel %vm5599_vm0, %v5601_v59, %v5597_v61  ;;  %v14481_v59 = vld [vmem:[#allocation11_spill] sm:$0xff] }
 0xb5e   : > { %v5314_v5 = vsub.f32 1.0, %v5313_v8  ;;  %v5587_v1 = vsel %vm5584_vm1, %v5586_v3, %v5582_v28  ;;  %vm12805_vm9 = vmor %vm5609_vm7, %vm5610_vm6  ;;  %v14480_v28 = vld [vmem:[#allocation10_spill] sm:$0xff] }
 0xb5f   : > { %v5606_v42 = vsub.f32 1.0, %v5605_v47  ;;  %v5082_v47 = vpop.f32.mrf.mxu1  ;;  %v5616_v11 = vor.u32 1.1754944e-38, %v5615_v43 }
 0xb60   : > { %v12736_v50 = vpop.xlane.xlu0 %5496  ;;  %v5315_v23 = vmul.f32 %v6062_v24, %v5314_v5 }
 0xb61   : > { %v5607_v4 = vmul.f32 %v12734_v34, %v5606_v42  ;;  %v12774_v12 = vpop.xlane.xlu1 %5508 }
 0xb62   : > { %v5195_v44 = vpop.f32.mrf.mxu2  ;;  %v5316_v17 = vadd.f32 %v6062_v24, %v5315_v23 }
 0xb63   : > { %v12743_v18 = vadd.f32 1e-16, %v5195_v44  ;;  %v12745_v13 = vpop.xlane.xlu2 %5502  ;;  %v5608_v8 = vadd.f32 %v12734_v34, %v5607_v4 }
 0xb64   : > { %v5320_v22 = vsel %vm5319_vm10, %v6062_v24, %v5316_v17 }
 0xb65   : > { %6065 = vrcp.f32 %v12743_v18  ;;  %v5325_v40 = vsel %vm5322_vm11, %v5324_v33, %v5320_v22  ;;  %v5338_v5 = vand.u32 2147483648, %v12743_v18  ;;  %v5336_v10 = vand.u32 2147483647, %v12743_v18 }
 0xb66   : > { %v5326_v30 = vmul.f32 %v5325_v40, %v5079_v9  ;;  %vm5332_vm10 = vweird.f32 %v12743_v18  ;;  %v5612_v49 = vsel %vm12805_vm9, %v12734_v34, %v5608_v8  ;;  %vm5624_vm9 = vweird.f32 %v12697_v36 }
 0xb67   : > { %v5339_v40 = vor.u32 1.1754944e-38, %v5338_v5  ;;  %vm5337_vm12 = vcmp.eq.f32.partialorder %v5336_v10, 8.507059e+37  ;;  %v5617_v38 = vsel %vm5614_vm13, %v5616_v11, %v5612_v49 }
 0xb68   : > { %v12760_v48 = vpop.xlane.xlu0 %5505  ;;  %v5516_v0 = vmul.f32 %v5326_v30, %v14475_v14 }
 0xb6a   : > { %v5198_v20 = vpop.f32.mrf.mxu2  ;;  %v5544_v57 = vsel %vm4991_vm2, %v5516_v0, 0.0 }
 0xb6b   : > { %v6066_v62 = vpop.eup %6065  ;;  %v12772_v37 = vadd.f32 1e-16, %v5198_v20  ;;  %5545 = vadd.xlane.f32.xlu2 %v5544_v57  ;;  %v5528_v16 = vpop.xlane.xlu2 %5527 }
 0xb6c   : > { %v5328_v29 = vmul.f32 %v6066_v62, %v12743_v18  ;;  %v5588_v24 = vmul.f32 %v5587_v1, %v5528_v16  ;;  %vm5333_vm8 = vweird.f32 %v6066_v62  ;;  %v12821_v20 = vpop.f32.mrf.mxu3 }
 0xb6d   : > { %6067 = vrcp.f32 %v12772_v37  ;;  %vm5334_vm11 = vmor %vm5332_vm10, %vm5333_vm8  ;;  %v5353_v0 = vand.u32 2147483648, %v12772_v37  ;;  %v5351_v3 = vand.u32 2147483647, %v12772_v37  ;;  %vm5347_vm15 = vweird.f32 %v12772_v37 }
 0xb6e   : > { %v5329_v56 = vsub.f32 1.0, %v5328_v29  ;;  %5815 = vst.msk [vmem:[%s12780_s29] sm:$0xff] %vm5814_vm3, %v5588_v24 }
 0xb6f   : > { %v5354_v1 = vor.u32 1.1754944e-38, %v5353_v0  ;;  %vm5352_vm4 = vcmp.eq.f32.partialorder %v5351_v3, 8.507059e+37  ;;  %v5628_v0 = vand.u32 2147483647, %v12697_v36 }
 0xb70   : > { %v5531_v23 = vpop.xlane.xlu0 %5530  ;;  %v5330_v60 = vmul.f32 %v6066_v62, %v5329_v56 }
 0xb71   : > { %v5603_v44 = vmul.f32 %v5602_v19, %v5531_v23 }
 0xb72   : > { %v5201_v33 = vpop.f32.mrf.mxu2  ;;  %v5331_v22 = vadd.f32 %v6066_v62, %v5330_v60 }
 0xb73   : > { %v6068_v51 = vpop.eup %6067  ;;  %v5202_v9 = vadd.f32 1e-16, %v5201_v33  ;;  %5816 = vst.msk [vmem:[%s12780_s29 + $0x8] sm:$0xff] %vm5814_vm3, %v5603_v44 }
 0xb74   : > { %v5343_v39 = vmul.f32 %v6068_v51, %v12772_v37  ;;  %v5335_v42 = vsel %vm5334_vm11, %v6066_v62, %v5331_v22  ;;  %vm5348_vm14 = vweird.f32 %v6068_v51  ;;  %v5085_v62 = vpop.f32.mrf.mxu1  ;;  %v5213_v23 = vpop.f32.mrf.mxu3  ;;  %v14482_v22 = vld [vmem:[#allocation12_spill] sm:$0xff]  ;;  %vm5629_vm11 = vcmp.eq.f32.partialorder %v5628_v0, 8.507059e+37 }
 0xb75   : > { %6069 = vrcp.f32 %v5202_v9  ;;  %v5340_v30 = vsel %vm5337_vm12, %v5339_v40, %v5335_v42  ;;  %v5534_v18 = vpop.xlane.xlu1 %5533  ;;  %vm5349_vm1 = vmor %vm5347_vm15, %vm5348_vm14  ;;  %v5368_v56 = vand.u32 2147483648, %v5202_v9  ;;  %v5366_v32 = vand.u32 2147483647, %v5202_v9 }
 0xb76   : > { %v5344_v53 = vsub.f32 1.0, %v5343_v39  ;;  %v5341_v14 = vmul.f32 %v5340_v30, %v5082_v47  ;;  %v5618_v34 = vmul.f32 %v5617_v38, %v5534_v18  ;;  %6071 = vrcp.f32 %v12697_v36 }
 0xb77   : > { %vm5362_vm0 = vweird.f32 %v5202_v9  ;;  %v5369_v19 = vor.u32 1.1754944e-38, %v5368_v56  ;;  %vm5367_vm7 = vcmp.eq.f32.partialorder %v5366_v32, 8.507059e+37  ;;  %v5214_v44 = vadd.f32 1e-16, %v5213_v23 }
 0xb78   : > { %v5517_v25 = vmul.f32 %v5341_v14, %v14480_v28  ;;  %5817 = vst.msk [vmem:[%s12780_s29 + $0x10] sm:$0xff] %vm5814_vm3, %v5618_v34  ;;  %v5345_v15 = vmul.f32 %v6068_v51, %v5344_v53  ;;  %v5630_v14 = vand.u32 2147483648, %v12697_v36 }
 0xb79   : > { %6073 = vrcp.f32 %v5214_v44  ;;  %vm5422_vm14 = vweird.f32 %v5214_v44 }
 0xb7a   : > { %v5547_v57 = vsel %vm4991_vm2, %v5517_v25, 0.0  ;;  %v5346_v27 = vadd.f32 %v6068_v51, %v5345_v15 }
 0xb7b   : > { %v6070_v4 = vpop.eup %6069  ;;  %5548 = vadd.xlane.f32.xlu0 %v5547_v57 }
 0xb7c   : > { %v5358_v16 = vmul.f32 %v6070_v4, %v5202_v9  ;;  %v5350_v29 = vsel %vm5349_vm1, %v6068_v51, %v5346_v27  ;;  %vm5363_vm5 = vweird.f32 %v6070_v4  ;;  %v5088_v10 = vpop.f32.mrf.mxu1  ;;  %v6072_v33 = vpop.eup %6071  ;;  %v5631_v27 = vor.u32 1.1754944e-38, %v5630_v14 }
 0xb7d   : > { %v5355_v35 = vsel %vm5352_vm4, %v5354_v1, %v5350_v29  ;;  %vm5364_vm6 = vmor %vm5362_vm0, %vm5363_vm5  ;;  %v5620_v40 = vmul.f32 %v6072_v33, %v12697_v36  ;;  %vm5625_vm8 = vweird.f32 %v6072_v33 }
 0xb7e   : > { %v5359_v24 = vsub.f32 1.0, %v5358_v16  ;;  %v5356_v61 = vmul.f32 %v5355_v35, %v5085_v62  ;;  %vm5626_vm10 = vmor %vm5624_vm9, %vm5625_vm8 }
 0xb7f   : > { %v5621_v9 = vsub.f32 1.0, %v5620_v40  ;;  %v6074_v11 = vpop.eup %6073 }
 0xb80   : > { %v5518_v8 = vmul.f32 %v5356_v61, %v14481_v59  ;;  %v5360_v5 = vmul.f32 %v6070_v4, %v5359_v24  ;;  %v5418_v30 = vmul.f32 %v6074_v11, %v5214_v44  ;;  %vm5423_vm12 = vweird.f32 %v6074_v11 }
 0xb81   : > { %v5622_v18 = vmul.f32 %v6072_v33, %v5621_v9  ;;  %v5428_v61 = vand.u32 2147483648, %v5214_v44  ;;  %vm12834_vm1 = vmor %vm5422_vm14, %vm5423_vm12 }
 0xb82   : > { %v5550_v37 = vsel %vm4991_vm2, %v5518_v8, 0.0  ;;  %v5361_v43 = vadd.f32 %v6070_v4, %v5360_v5  ;;  %v5419_v38 = vsub.f32 1.0, %v5418_v30  ;;  %v5426_v8 = vand.u32 2147483647, %v5214_v44  ;;  %v14485_v44 = vld [vmem:[#allocation13_spill] sm:$0xff] }
 0xb83   : > { %5551 = vadd.xlane.f32.xlu1 %v5550_v37  ;;  %v5623_v53 = vadd.f32 %v6072_v33, %v5622_v18 }
 0xb84   : > { %v5365_v60 = vsel %vm5364_vm6, %v6070_v4, %v5361_v43  ;;  %v5420_v57 = vmul.f32 %v6074_v11, %v5419_v38  ;;  %v5091_v32 = vpop.f32.mrf.mxu1  ;;  %vm5427_vm0 = vcmp.eq.f32.partialorder %v5426_v8, 8.507059e+37 }
 0xb85   : > { %v5370_v47 = vsel %vm5367_vm7, %v5369_v19, %v5365_v60  ;;  %v5627_v3 = vsel %vm5626_vm10, %v6072_v33, %v5623_v53 }
 0xb86   : > { %v5371_v17 = vmul.f32 %v5370_v47, %v5088_v10  ;;  %v5632_v62 = vsel %vm5629_vm11, %v5631_v27, %v5627_v3  ;;  %v5421_v24 = vadd.f32 %v6074_v11, %v5420_v57  ;;  %v5429_v10 = vor.u32 1.1754944e-38, %v5428_v61 }
 0xb87   : > { %vm5639_vm11 = vweird.f32 %v12703_v21 }
 0xb88   : > { %v5519_v49 = vmul.f32 %v5371_v17, %v14482_v22  ;;  %v5425_v19 = vsel %vm12834_vm1, %v6074_v11, %v5421_v24 }
 0xb89   : > { %v5430_v22 = vsel %vm5427_vm0, %v5429_v10, %v5425_v19 }
 0xb8a   : > { %v5553_v51 = vsel %vm4991_vm2, %v5519_v49, 0.0 }
 0xb8b   : > { %5554 = vadd.xlane.f32.xlu2 %v5553_v51 }
 0xb8c   : > { %v5094_v18 = vpop.f32.mrf.mxu1 }
 0xb91   : > { %v5204_v39 = vpop.f32.mrf.mxu2 }
 0xb92   : > { %v5205_v42 = vadd.f32 1e-16, %v5204_v39 }
 0xb94   : > { %6075 = vrcp.f32 %v5205_v42  ;;  %v5383_v1 = vand.u32 2147483648, %v5205_v42  ;;  %v5381_v35 = vand.u32 2147483647, %v5205_v42  ;;  %vm5377_vm15 = vweird.f32 %v5205_v42 }
 0xb96   : > { %v5384_v37 = vor.u32 1.1754944e-38, %v5383_v1  ;;  %vm5382_vm5 = vcmp.eq.f32.partialorder %v5381_v35, 8.507059e+37  ;;  %v5643_v35 = vand.u32 2147483647, %v12703_v21 }
 0xb99   : > { %v5207_v34 = vpop.f32.mrf.mxu2 }
 0xb9a   : > { %v6076_v28 = vpop.eup %6075  ;;  %v5208_v25 = vadd.f32 1e-16, %v5207_v34  ;;  %v14486_v34 = vld [vmem:[#allocation14_spill] sm:$0xff] }
 0xb9b   : > { %v5373_v15 = vmul.f32 %v6076_v28, %v5205_v42  ;;  %vm5378_vm13 = vweird.f32 %v6076_v28  ;;  %v5431_v42 = vmul.f32 %v5430_v22, %v12754_v52 }
 0xb9c   : > { %6077 = vrcp.f32 %v5208_v25  ;;  %vm5379_vm4 = vmor %vm5377_vm15, %vm5378_vm13  ;;  %v5398_v33 = vand.u32 2147483648, %v5208_v25  ;;  %v5396_v40 = vand.u32 2147483647, %v5208_v25  ;;  %vm5392_vm7 = vweird.f32 %v5208_v25 }
 0xb9d   : > { %v5374_v4 = vsub.f32 1.0, %v5373_v15  ;;  %6079 = vrcp.f32 %v12703_v21  ;;  %v5523_v14 = vmul.f32 %v5431_v42, %v12098_v63  ;;  %vm5644_vm13 = vcmp.eq.f32.partialorder %v5643_v35, 8.507059e+37 }
 0xb9e   : > { %v5399_v11 = vor.u32 1.1754944e-38, %v5398_v33  ;;  %vm5397_vm9 = vcmp.eq.f32.partialorder %v5396_v40, 8.507059e+37  ;;  %6081 = vrcp.f32 %v12710_v58  ;;  %vm5654_vm15 = vweird.f32 %v12710_v58 }
 0xb9f   : > { %v5537_v16 = vpop.xlane.xlu2 %5536  ;;  %v5375_v29 = vmul.f32 %v6076_v28, %v5374_v4  ;;  %6083 = vrcp.f32 %v12708_v2 }
 0xba0   : > { %v5633_v36 = vmul.f32 %v5632_v62, %v5537_v16  ;;  %v5645_v16 = vand.u32 2147483648, %v12703_v21 }
 0xba1   : > { %v5376_v56 = vadd.f32 %v6076_v28, %v5375_v29 }
 0xba2   : > { %v6078_v5 = vpop.eup %6077  ;;  %5818 = vst.msk [vmem:[%s12780_s29 + $0x18] sm:$0xff] %vm5814_vm3, %v5633_v36  ;;  %v5646_v61 = vor.u32 1.1754944e-38, %v5645_v16 }
 0xba3   : > { %v5388_v43 = vmul.f32 %v6078_v5, %v5208_v25  ;;  %v5380_v23 = vsel %vm5379_vm4, %v6076_v28, %v5376_v56  ;;  %vm5393_vm6 = vweird.f32 %v6078_v5  ;;  %v6080_v28 = vpop.eup %6079  ;;  %v5565_v25 = vsel %vm4991_vm2, %v5523_v14, 0.0 }
 0xba4   : > { %v5385_v60 = vsel %vm5382_vm5, %v5384_v37, %v5380_v23  ;;  %vm5394_vm8 = vmor %vm5392_vm7, %vm5393_vm6  ;;  %v5635_v52 = vmul.f32 %v6080_v28, %v12703_v21  ;;  %v6082_v57 = vpop.eup %6081  ;;  %vm5640_vm10 = vweird.f32 %v6080_v28  ;;  %v5660_v37 = vand.u32 2147483648, %v12710_v58 }
 0xba5   : > { %v5389_v47 = vsub.f32 1.0, %v5388_v43  ;;  %v5386_v17 = vmul.f32 %v5385_v60, %v5091_v32  ;;  %v5650_v27 = vmul.f32 %v6082_v57, %v12710_v58  ;;  %vm5641_vm12 = vmor %vm5639_vm11, %vm5640_vm10  ;;  %v12857_v56 = vpop.eup %6083  ;;  %vm5655_vm14 = vweird.f32 %v6082_v57 }
 0xba6   : > { %v5636_v3 = vsub.f32 1.0, %v5635_v52  ;;  %v5665_v21 = vmul.f32 %v12857_v56, %v12708_v2  ;;  %v5658_v23 = vand.u32 2147483647, %v12710_v58  ;;  %vm5656_vm1 = vmor %vm5654_vm15, %vm5655_vm14  ;;  %v5661_v33 = vor.u32 1.1754944e-38, %v5660_v37 }
 0xba7   : > { %v5520_v49 = vmul.f32 %v5386_v17, %v14485_v44  ;;  %v5390_v51 = vmul.f32 %v6078_v5, %v5389_v47  ;;  %v5651_v62 = vsub.f32 1.0, %v5650_v27 }
 0xba8   : > { %v5637_v4 = vmul.f32 %v6080_v28, %v5636_v3  ;;  %v5666_v22 = vsub.f32 1.0, %v5665_v21  ;;  %vm5659_vm4 = vcmp.eq.f32.partialorder %v5658_v23, 8.507059e+37 }
 0xba9   : > { %v5556_v9 = vsel %vm4991_vm2, %v5520_v49, 0.0  ;;  %v5391_v39 = vadd.f32 %v6078_v5, %v5390_v51  ;;  %v5652_v36 = vmul.f32 %v6082_v57, %v5651_v62 }
 0xbaa   : > { %5557 = vadd.xlane.f32.xlu0 %v5556_v9  ;;  %v5638_v63 = vadd.f32 %v6080_v28, %v5637_v4 }
 0xbab   : > { %v5395_v30 = vsel %vm5394_vm8, %v6078_v5, %v5391_v39  ;;  %v5653_v32 = vadd.f32 %v6082_v57, %v5652_v36  ;;  %vm5670_vm8 = vweird.f32 %v12857_v56 }
 0xbac   : > { %v5400_v38 = vsel %vm5397_vm9, %v5399_v11, %v5395_v30  ;;  %v5642_v24 = vsel %vm5641_vm12, %v6080_v28, %v5638_v63  ;;  %v5667_v30 = vmul.f32 %v12857_v56, %v5666_v22  ;;  %vm5669_vm9 = vweird.f32 %v12708_v2 }
 0xbad   : > { %v5401_v53 = vmul.f32 %v5400_v38, %v5094_v18  ;;  %v5647_v8 = vsel %vm5644_vm13, %v5646_v61, %v5642_v24  ;;  %v5657_v47 = vsel %vm5656_vm1, %v6082_v57, %v5653_v32  ;;  %v5673_v57 = vand.u32 2147483647, %v12708_v2  ;;  %vm12882_vm10 = vmor %vm5669_vm9, %vm5670_vm8 }
 0xbae   : > { %v5662_v51 = vsel %vm5659_vm4, %v5661_v33, %v5657_v47  ;;  %v5668_v28 = vadd.f32 %v12857_v56, %v5667_v30 }
 0xbaf   : > { %v5521_v0 = vmul.f32 %v5401_v53, %v14486_v34  ;;  %vm5674_vm13 = vcmp.eq.f32.partialorder %v5673_v57, 8.507059e+37 }
 0xbb0   : > { %v5672_v16 = vsel %vm12882_vm10, %v12857_v56, %v5668_v28 }
 0xbb1   : > { %v5559_v15 = vsel %vm4991_vm2, %v5521_v0, 0.0 }
 0xbb2   : > { %5560 = vadd.xlane.f32.xlu1 %v5559_v15  ;;  %5566 = vadd.xlane.f32.xlu0 %v5565_v25  ;;  %v5675_v25 = vand.u32 2147483648, %v12708_v2 }
 0xbc1   : > { %v5216_v1 = vpop.f32.mrf.mxu3 }
 0xbc2   : > { %v5217_v29 = vadd.f32 1e-16, %v5216_v1 }
 0xbc4   : > { %6085 = vrcp.f32 %v5217_v29  ;;  %v5443_v44 = vand.u32 2147483648, %v5217_v29  ;;  %v5441_v9 = vand.u32 2147483647, %v5217_v29  ;;  %vm5437_vm0 = vweird.f32 %v5217_v29 }
 0xbc6   : > { %v5444_v18 = vor.u32 1.1754944e-38, %v5443_v44  ;;  %vm5442_vm7 = vcmp.eq.f32.partialorder %v5441_v9, 8.507059e+37 }
 0xbc7   : > { %v5540_v59 = vpop.xlane.xlu0 %5539 }
 0xbc8   : > { %v5648_v5 = vmul.f32 %v5647_v8, %v5540_v59 }
 0xbca   : > { %v6086_v43 = vpop.eup %6085  ;;  %5819 = vst.msk [vmem:[%s12780_s29 + $0x20] sm:$0xff] %vm5814_vm3, %v5648_v5  ;;  %v5210_v60 = vpop.f32.mrf.mxu2 }
 0xbcb   : > { %v5433_v19 = vmul.f32 %v6086_v43, %v5217_v29  ;;  %v5211_v10 = vadd.f32 1e-16, %v5210_v60  ;;  %vm5438_vm5 = vweird.f32 %v6086_v43  ;;  %v5676_v29 = vor.u32 1.1754944e-38, %v5675_v25  ;;  %v5097_v5 = vpop.f32.mrf.mxu1 }
 0xbcc   : > { %vm5439_vm6 = vmor %vm5437_vm0, %vm5438_vm5 }
 0xbcd   : > { %v5434_v17 = vsub.f32 1.0, %v5433_v19  ;;  %6087 = vrcp.f32 %v5211_v10  ;;  %v5413_v27 = vand.u32 2147483648, %v5211_v10  ;;  %v5411_v1 = vand.u32 2147483647, %v5211_v10 }
 0xbce   : > { %6089 = vrcp.f32 %v12713_v6  ;;  %vm5407_vm12 = vweird.f32 %v5211_v10  ;;  %v5677_v61 = vsel %vm5674_vm13, %v5676_v29, %v5672_v16 }
 0xbcf   : > { %v5543_v49 = vpop.xlane.xlu1 %5542  ;;  %v5435_v40 = vmul.f32 %v6086_v43, %v5434_v17  ;;  %v5414_v36 = vor.u32 1.1754944e-38, %v5413_v27  ;;  %vm5412_vm15 = vcmp.eq.f32.partialorder %v5411_v1, 8.507059e+37 }
 0xbd0   : > { %v5219_v39 = vpop.f32.mrf.mxu3  ;;  %v5663_v42 = vmul.f32 %v5662_v51, %v5543_v49 }
 0xbd1   : > { %v12866_v58 = vadd.f32 1e-16, %v5219_v39  ;;  %v5436_v11 = vadd.f32 %v6086_v43, %v5435_v40 }
 0xbd2   : > { %5820 = vst.msk [vmem:[%s12780_s29 + $0x28] sm:$0xff] %vm5814_vm3, %v5663_v42 }
 0xbd3   : > { %6091 = vrcp.f32 %v12866_v58  ;;  %v5440_v38 = vsel %vm5439_vm6, %v6086_v43, %v5436_v11  ;;  %v6088_v53 = vpop.eup %6087  ;;  %v5458_v8 = vand.u32 2147483648, %v12866_v58  ;;  %v5456_v43 = vand.u32 2147483647, %v12866_v58 }
 0xbd4   : > { %v5445_v14 = vsel %vm5442_vm7, %v5444_v18, %v5440_v38  ;;  %v5403_v34 = vmul.f32 %v6088_v53, %v5211_v10  ;;  %v12878_v3 = vpop.eup %6089  ;;  %vm5408_vm11 = vweird.f32 %v6088_v53  ;;  %6093 = vrcp.f32 %v12721_v54 }
 0xbd5   : > { %v5446_v0 = vmul.f32 %v5445_v14, %v12798_v26  ;;  %v5680_v2 = vmul.f32 %v12878_v3, %v12713_v6  ;;  %vm5409_vm14 = vmor %vm5407_vm12, %vm5408_vm11  ;;  %vm5452_vm4 = vweird.f32 %v12866_v58  ;;  %v5459_v17 = vor.u32 1.1754944e-38, %v5458_v8 }
 0xbd6   : > { %v5404_v15 = vsub.f32 1.0, %v5403_v34  ;;  %6095 = vrcp.f32 %v12724_v41  ;;  %vm5457_vm0 = vcmp.eq.f32.partialorder %v5456_v43, 8.507059e+37  ;;  %vm5685_vm6 = vweird.f32 %v12878_v3 }
 0xbd7   : > { %v5524_v52 = vmul.f32 %v5446_v0, %v11955_v7  ;;  %v5681_v21 = vsub.f32 1.0, %v5680_v2  ;;  %vm5684_vm7 = vweird.f32 %v12713_v6  ;;  %v5688_v11 = vand.u32 2147483647, %v12713_v6 }
 0xbd8   : > { %v5405_v62 = vmul.f32 %v6088_v53, %v5404_v15  ;;  %vm5686_vm8 = vmor %vm5684_vm7, %vm5685_vm6  ;;  %vm5699_vm11 = vweird.f32 %v12721_v54  ;;  %v5703_v15 = vand.u32 2147483647, %v12721_v54  ;;  %v5720_v26 = vand.u32 2147483648, %v12724_v41 }
 0xbd9   : > { %v6092_v4 = vpop.eup %6091  ;;  %v5568_v63 = vsel %vm4991_vm2, %v5524_v52, 0.0  ;;  %v5682_v44 = vmul.f32 %v12878_v3, %v5681_v21  ;;  %vm5689_vm9 = vcmp.eq.f32.partialorder %v5688_v11, 8.507059e+37  ;;  %6097 = vrcp.f32 %v12729_v55 }
 0xbda   : > { %v5448_v7 = vmul.f32 %v6092_v4, %v12866_v58  ;;  %5569 = vadd.xlane.f32.xlu1 %v5568_v63  ;;  %v5406_v35 = vadd.f32 %v6088_v53, %v5405_v62  ;;  %vm5453_vm1 = vweird.f32 %v6092_v4  ;;  %v6094_v60 = vpop.eup %6093  ;;  %v5690_v58 = vand.u32 2147483648, %v12713_v6 }
 0xbdb   : > { %vm5454_vm5 = vmor %vm5452_vm4, %vm5453_vm1  ;;  %v5695_v22 = vmul.f32 %v6094_v60, %v12721_v54  ;;  %v5683_v39 = vadd.f32 %v12878_v3, %v5682_v44  ;;  %vm5700_vm10 = vweird.f32 %v6094_v60  ;;  %v5705_v6 = vand.u32 2147483648, %v12721_v54 }
 0xbdc   : > { %v5449_v24 = vsub.f32 1.0, %v5448_v7  ;;  %v5410_v59 = vsel %vm5409_vm14, %v6088_v53, %v5406_v35  ;;  %v6096_v42 = vpop.eup %6095  ;;  %v5691_v53 = vor.u32 1.1754944e-38, %v5690_v58  ;;  %vm5701_vm12 = vmor %vm5699_vm11, %vm5700_vm10  ;;  %vm5714_vm14 = vweird.f32 %v12724_v41 }
 0xbdd   : > { %v5415_v37 = vsel %vm5412_vm15, %v5414_v36, %v5410_v59  ;;  %v5696_v9 = vsub.f32 1.0, %v5695_v22  ;;  %v5710_v30 = vmul.f32 %v6096_v42, %v12724_v41  ;;  %vm5715_vm13 = vweird.f32 %v6096_v42 }
 0xbde   : > { %v5450_v32 = vmul.f32 %v6092_v4, %v5449_v24  ;;  %v5546_v56 = vpop.xlane.xlu2 %5545  ;;  %v5416_v19 = vmul.f32 %v5415_v37, %v5097_v5  ;;  %v5718_v63 = vand.u32 2147483647, %v12724_v41  ;;  %vm5716_vm15 = vmor %vm5714_vm14, %vm5715_vm13  ;;  %v5721_v1 = vor.u32 1.1754944e-38, %v5720_v26 }
 0xbdf   : > { %v5678_v23 = vmul.f32 %v5677_v61, %v5546_v56  ;;  %v5697_v18 = vmul.f32 %v6094_v60, %v5696_v9  ;;  %v5711_v34 = vsub.f32 1.0, %v5710_v30  ;;  %v6098_v29 = vpop.eup %6097  ;;  %6099 = vrcp.f32 %v12736_v50 }
 0xbe0   : > { %v5451_v10 = vadd.f32 %v6092_v4, %v5450_v32  ;;  %v5522_v47 = vmul.f32 %v5416_v19, %v12426_v31  ;;  %vm5719_vm1 = vcmp.eq.f32.partialorder %v5718_v63, 8.507059e+37  ;;  %6101 = vrcp.f32 %v12745_v13 }
 0xbe1   : > { %5821 = vst.msk [vmem:[%s12780_s29 + $0x30] sm:$0xff] %vm5814_vm3, %v5678_v23  ;;  %v5698_v28 = vadd.f32 %v6094_v60, %v5697_v18  ;;  %v5712_v52 = vmul.f32 %v6096_v42, %v5711_v34  ;;  %v5725_v35 = vmul.f32 %v6098_v29, %v12729_v55  ;;  %vm5730_vm4 = vweird.f32 %v6098_v29 }
 0xbe2   : > { %v5455_v33 = vsel %vm5454_vm5, %v6092_v4, %v5451_v10  ;;  %v5562_v49 = vsel %vm4991_vm2, %v5522_v47, 0.0  ;;  %v5735_v37 = vand.u32 2147483648, %v12729_v55  ;;  %vm5729_vm5 = vweird.f32 %v12729_v55 }
 0xbe3   : > { %v5460_v51 = vsel %vm5457_vm0, %v5459_v17, %v5455_v33  ;;  %5563 = vadd.xlane.f32.xlu2 %v5562_v49  ;;  %v5702_v25 = vsel %vm5701_vm12, %v6094_v60, %v5698_v28  ;;  %v5713_v62 = vadd.f32 %v6096_v42, %v5712_v52  ;;  %v5726_v41 = vsub.f32 1.0, %v5725_v35  ;;  %vm5731_vm0 = vmor %vm5729_vm5, %vm5730_vm4 }
 0xbe4   : > { %v5461_v40 = vmul.f32 %v5460_v51, %v12821_v20  ;;  %v5687_v20 = vsel %vm5686_vm8, %v12878_v3, %v5683_v39  ;;  %v5706_v3 = vor.u32 1.1754944e-38, %v5705_v6  ;;  %v5733_v43 = vand.u32 2147483647, %v12729_v55 }
 0xbe5   : > { %v5692_v14 = vsel %vm5689_vm9, %v5691_v53, %v5687_v20  ;;  %v5717_v54 = vsel %vm5716_vm15, %v6096_v42, %v5713_v62  ;;  %v6100_v24 = vpop.eup %6099  ;;  %v5727_v8 = vmul.f32 %v6098_v29, %v5726_v41  ;;  %v5736_v60 = vor.u32 1.1754944e-38, %v5735_v37 }
 0xbe6   : > { %v5525_v31 = vmul.f32 %v5461_v40, %v12458_v45  ;;  %v5722_v7 = vsel %vm5719_vm1, %v5721_v1, %v5717_v54  ;;  %v6102_v36 = vpop.eup %6101  ;;  %v5740_v61 = vmul.f32 %v6100_v24, %v12736_v50  ;;  %vm5734_vm6 = vcmp.eq.f32.partialorder %v5733_v43, 8.507059e+37 }
 0xbe7   : > { %v5770_v59 = vmul.f32 %v6102_v36, %v12745_v13  ;;  %v5728_v56 = vadd.f32 %v6098_v29, %v5727_v8  ;;  %vm5745_vm7 = vweird.f32 %v6100_v24  ;;  %vm5775_vm8 = vweird.f32 %v6102_v36 }
 0xbe8   : > { %v5571_v38 = vsel %vm4991_vm2, %v5525_v31, 0.0  ;;  %vm5704_vm2 = vcmp.eq.f32.partialorder %v5703_v15, 8.507059e+37  ;;  %v5741_v5 = vsub.f32 1.0, %v5740_v61  ;;  %vm5744_vm9 = vweird.f32 %v12736_v50 }
 0xbe9   : > { %v5707_v57 = vsel %vm5704_vm2, %v5706_v3, %v5702_v25  ;;  %v5771_v32 = vsub.f32 1.0, %v5770_v59  ;;  %v5732_v21 = vsel %vm5731_vm0, %v6098_v29, %v5728_v56  ;;  %v5750_v44 = vand.u32 2147483648, %v12736_v50  ;;  %vm5746_vm10 = vmor %vm5744_vm9, %vm5745_vm7 }
 0xbea   : > { %v5742_v23 = vmul.f32 %v6100_v24, %v5741_v5  ;;  %v5737_v47 = vsel %vm5734_vm6, %v5736_v60, %v5732_v21  ;;  %v5780_v55 = vand.u32 2147483648, %v12745_v13  ;;  %v5748_v49 = vand.u32 2147483647, %v12736_v50 }
 0xbeb   : > { %5572 = vadd.xlane.f32.xlu2 %v5571_v38  ;;  %v5772_v19 = vmul.f32 %v6102_v36, %v5771_v32  ;;  %vm5774_vm11 = vweird.f32 %v12745_v13  ;;  %v5778_v51 = vand.u32 2147483647, %v12745_v13  ;;  %v5751_v39 = vor.u32 1.1754944e-38, %v5750_v44 }
 0xbec   : > { %v5743_v33 = vadd.f32 %v6100_v24, %v5742_v23  ;;  %vm5776_vm12 = vmor %vm5774_vm11, %vm5775_vm8  ;;  %v5781_v31 = vor.u32 1.1754944e-38, %v5780_v55  ;;  %vm5749_vm2 = vcmp.eq.f32.partialorder %v5748_v49, 8.507059e+37  ;;  %6103 = vrcp.f32 %v12760_v48 }
 0xbed   : > { %v5773_v22 = vadd.f32 %v6102_v36, %v5772_v19  ;;  %vm5779_vm13 = vcmp.eq.f32.partialorder %v5778_v51, 8.507059e+37  ;;  %6105 = vrcp.f32 %v12739_v46  ;;  %vm5789_vm14 = vweird.f32 %v12760_v48 }
 0xbee   : > { %v5549_v45 = vpop.xlane.xlu0 %5548  ;;  %v5747_v40 = vsel %vm5746_vm10, %v6100_v24, %v5743_v33  ;;  %6107 = vrcp.f32 %v12774_v12  ;;  %v5795_v34 = vand.u32 2147483648, %v12760_v48  ;;  %v5793_v28 = vand.u32 2147483647, %v12760_v48 }
 0xbef   : > { %v5693_v0 = vmul.f32 %v5692_v14, %v5549_v45  ;;  %v5777_v9 = vsel %vm5776_vm12, %v6102_v36, %v5773_v22  ;;  %v5752_v42 = vsel %vm5749_vm2, %v5751_v39, %v5747_v40  ;;  %vm5759_vm5 = vweird.f32 %v12739_v46 }
 0xbf0   : > { %v5782_v30 = vsel %vm5779_vm13, %v5781_v31, %v5777_v9  ;;  %v5796_v25 = vor.u32 1.1754944e-38, %v5795_v34  ;;  %vm5794_vm4 = vcmp.eq.f32.partialorder %v5793_v28, 8.507059e+37  ;;  %v5765_v26 = vand.u32 2147483648, %v12739_v46 }
 0xbf1   : > { %5822 = vst.msk [vmem:[%s12780_s29 + $0x38] sm:$0xff] %vm5814_vm3, %v5693_v0  ;;  %v5763_v54 = vand.u32 2147483647, %v12739_v46  ;;  %vm5804_vm8 = vweird.f32 %v12774_v12  ;;  %v5810_v35 = vand.u32 2147483648, %v12774_v12  ;;  %v5808_v36 = vand.u32 2147483647, %v12774_v12 }
 0xbf2   : > { %v6104_v50 = vpop.eup %6103  ;;  %v5766_v1 = vor.u32 1.1754944e-38, %v5765_v26 }
 0xbf3   : > { %v5785_v13 = vmul.f32 %v6104_v50, %v12760_v48  ;;  %v6106_v53 = vpop.eup %6105  ;;  %vm5790_vm15 = vweird.f32 %v6104_v50  ;;  %vm5764_vm7 = vcmp.eq.f32.partialorder %v5763_v54, 8.507059e+37  ;;  %vm5809_vm11 = vcmp.eq.f32.partialorder %v5808_v36, 8.507059e+37 }
 0xbf4   : > { %v5755_v14 = vmul.f32 %v6106_v53, %v12739_v46  ;;  %vm5791_vm1 = vmor %vm5789_vm14, %vm5790_vm15  ;;  %v6108_v15 = vpop.eup %6107  ;;  %vm5760_vm0 = vweird.f32 %v6106_v53  ;;  %v5811_v46 = vor.u32 1.1754944e-38, %v5810_v35 }
 0xbf5   : > { %v5786_v38 = vsub.f32 1.0, %v5785_v13  ;;  %v5800_v3 = vmul.f32 %v6108_v15, %v12774_v12  ;;  %vm5761_vm6 = vmor %vm5759_vm5, %vm5760_vm0  ;;  %vm5805_vm9 = vweird.f32 %v6108_v15 }
 0xbf6   : > { %v5552_v27 = vpop.xlane.xlu1 %5551  ;;  %v5756_v6 = vsub.f32 1.0, %v5755_v14  ;;  %vm5806_vm10 = vmor %vm5804_vm8, %vm5805_vm9 }
 0xbf7   : > { %v5708_v4 = vmul.f32 %v5707_v57, %v5552_v27  ;;  %v5787_v45 = vmul.f32 %v6104_v50, %v5786_v38  ;;  %v5801_v63 = vsub.f32 1.0, %v5800_v3 }
 0xbf8   : > { %v5757_v57 = vmul.f32 %v6106_v53, %v5756_v6 }
 0xbf9   : > { %5823 = vst.msk [vmem:[%s12780_s29 + $0x40] sm:$0xff] %vm5814_vm3, %v5708_v4  ;;  %v5788_v0 = vadd.f32 %v6104_v50, %v5787_v45 }
 0xbfa   : > { %v5758_v48 = vadd.f32 %v6106_v53, %v5757_v57 }
 0xbfb   : > { %v5792_v52 = vsel %vm5791_vm1, %v6104_v50, %v5788_v0 }
 0xbfc   : > { %v5797_v27 = vsel %vm5794_vm4, %v5796_v25, %v5792_v52 }
 0xbfe   : > { %v5555_v16 = vpop.xlane.xlu2 %5554 }
 0xbff   : > { %v5723_v2 = vmul.f32 %v5722_v7, %v5555_v16  ;;  %v5762_v7 = vsel %vm5761_vm6, %v6106_v53, %v5758_v48  ;;  %v5802_v16 = vmul.f32 %v6108_v15, %v5801_v63 }
 0xc01   : > { %5824 = vst.msk [vmem:[%s12780_s29 + $0x48] sm:$0xff] %vm5814_vm3, %v5723_v2  ;;  %v5767_v2 = vsel %vm5764_vm7, %v5766_v1, %v5762_v7  ;;  %v5803_v41 = vadd.f32 %v6108_v15, %v5802_v16 }
 0xc03   : > { %v5807_v61 = vsel %vm5806_vm10, %v6108_v15, %v5803_v41 }
 0xc04   : > { %v5812_v59 = vsel %vm5809_vm11, %v5811_v46, %v5807_v61 }
 0xc1d   : > { %v5558_v10 = vpop.xlane.xlu0 %5557 }
 0xc1e   : > { %v5738_v17 = vmul.f32 %v5737_v47, %v5558_v10 }
 0xc20   : > { %5825 = vst.msk [vmem:[%s12780_s29 + $0x50] sm:$0xff] %vm5814_vm3, %v5738_v17 }
 0xc25   : > { %v5561_v58 = vpop.xlane.xlu1 %5560  ;;  %v5567_v11 = vpop.xlane.xlu0 %5566 }
 0xc26   : > { %v5753_v20 = vmul.f32 %v5752_v42, %v5561_v58  ;;  %v5783_v18 = vmul.f32 %v5782_v30, %v5567_v11 }
 0xc28   : > { %5826 = vst.msk [vmem:[%s12780_s29 + $0x58] sm:$0xff] %vm5814_vm3, %v5753_v20 }
 0xc29   : > { %5828 = vst.msk [vmem:[%s12780_s29 + $0x68] sm:$0xff] %vm5814_vm3, %v5783_v18 }
 0xc4d   : > { %v5570_v4 = vpop.xlane.xlu1 %5569 }
 0xc4e   : > { %v5798_v62 = vmul.f32 %v5797_v27, %v5570_v4 }
 0xc50   : > { %5829 = vst.msk [vmem:[%s12780_s29 + $0x70] sm:$0xff] %vm5814_vm3, %v5798_v62 }
 0xc56   : > { %v5564_v29 = vpop.xlane.xlu2 %5563 }
 0xc57   : > { %v5768_v24 = vmul.f32 %v5767_v2, %v5564_v29 }
 0xc59   : > { %5827 = vst.msk [vmem:[%s12780_s29 + $0x60] sm:$0xff] %vm5814_vm3, %v5768_v24 }
 0xc5e   : > { %v5573_v8 = vpop.xlane.xlu2 %5572 }
 0xc5f   : > { %v5813_v5 = vmul.f32 %v5812_v59, %v5573_v8 }
 0xc61   : > { %5830 = vst.msk [vmem:[%s12780_s29 + $0x78] sm:$0xff] %vm5814_vm3, %v5813_v5 }
 0xc62 PF: > { %p14_p10 = scmp.ge.s32.totalorder %s6197_s28, 4   ;;  %s14489_s24 = smov %s6131_s25 }
 0xc63   : > { %s14490_s25 = smov %s6206_s8  ;;  %s14491_s26 = smov %s6197_s28 }
 0xc64   :  { %16 = sbr.rel (!%p14_p10) target bundleno = 2 (0x2), region = 136 }

</bundles_post_ra>
